<compile_context>
chip_gen: v7x
topology: tpu7x:2x2x1
jax: 0.10.0
libtpu: 0.0.40
codegen_flags: <defaults>
</compile_context>

<pallas_src>
import jax
import jax.numpy as jnp
from jax import lax
from jax.experimental import pallas as pl
from jax.experimental.pallas import tpu as pltpu

_N_OUT = 10          # logical output features of nn.Linear(d0, 10)
_N_OUT_PAD = 128     # lane-dense padded output width (unmasked 128-wide stores)
_TILE_N_MAX = 4096   # rows per tile; double-buffered budget ~33 MiB (see header)
_LANE = 128


def _linear_kernel(x_ref, wt_ref, o_ref):
    # (tile_n, d0) @ (d0, 128) -> (tile_n, 128) on the MXU, f32 accumulate.
    o_ref[...] = jnp.dot(
        x_ref[...],
        wt_ref[...],
        preferred_element_type=jnp.float32,
        precision=lax.Precision.HIGHEST,
    ).astype(o_ref.dtype)


def _cdiv(a, b):
    return -(-a // b)


def _round_up(x, m):
    return _cdiv(x, m) * m


def _pick_tile_n(n):
    """Rows per grid step: a 256-multiple, capped at _TILE_N_MAX; for medium
    batches force >= 2 tiles so the 'parallel' batch axis can split across
    both TensorCores (v7x megacore)."""
    if n <= 256:
        return 256
    n_tiles = max(1, _cdiv(n, _TILE_N_MAX))
    if n_tiles == 1 and n > 512:
        n_tiles = 2
    return min(_TILE_N_MAX, _round_up(_cdiv(n, n_tiles), 256))


def net_forward(x, w, *, lane_padded_output=False):
    """x: (N, C, H, W) or (N, d0) float32; w: (10, d0) float32 (torch Linear layout)."""
    d0 = w.shape[1]
    x2d = x.reshape((-1, d0)).astype(jnp.float32)   # same semantics as torch .reshape
    n = x2d.shape[0]

    # Weight: (10, d0) -> (d0, 10) -> zero-pad lanes to (d0, 128). Tiny, one-off.
    wt_pad = jnp.pad(
        jnp.transpose(w).astype(jnp.float32), ((0, 0), (0, _N_OUT_PAD - _N_OUT))
    )

    tile_n = _pick_tile_n(n)
    grid_n = _cdiv(n, tile_n)   # ragged final block; NO jnp.pad copy of x

    # x physically occupies round_up(d0, 128) lanes per row in f32 layout.
    d0_lanes = _round_up(d0, _LANE)
    cost = pl.CostEstimate(
        flops=2 * n * d0 * _N_OUT_PAD,
        transcendentals=0,
        bytes_accessed=n * d0_lanes * 4 + d0 * _N_OUT_PAD * 4 + n * _N_OUT_PAD * 4,
    )

    out = pl.pallas_call(
        _linear_kernel,
        out_shape=jax.ShapeDtypeStruct((n, _N_OUT_PAD), jnp.float32),
        grid_spec=pltpu.PrefetchScalarGridSpec(
            num_scalar_prefetch=0,
            grid=(grid_n,),
            in_specs=[
                # x: one batch tile per grid step (pipelined stream from HBM);
                # last block is ragged, OOB rows are never written back.
                pl.BlockSpec((tile_n, d0), lambda i: (i, 0)),
                # weight: constant index_map -> stays resident in VMEM (~0.4 MiB).
                pl.BlockSpec((d0, _N_OUT_PAD), lambda i: (0, 0)),
            ],
            out_specs=pl.BlockSpec((tile_n, _N_OUT_PAD), lambda i: (i, 0)),
        ),
        compiler_params=pltpu.CompilerParams(
            dimension_semantics=("parallel",),   # independent batch tiles (v7x megacore)
            vmem_limit_bytes=48 * 1024 * 1024,
        ),
        cost_estimate=cost,
    )(x2d, wt_pad)

    if lane_padded_output:
        # Fusion-friendly path: columns 10..127 are exact zeros (weight was
        # zero-padded), consumer can slice/ignore them where XLA can fuse.
        return out
    return out[:, :_N_OUT]


if __name__ == "__main__":
    key = jax.random.PRNGKey(0)
    kx, kw, kx2 = jax.random.split(key, 3)

    # MNIST-like small example: NCHW input, d0 = 1*28*28 = 784.
    N, C, H, W = 4, 1, 28, 28
    d0 = C * H * W

    x = jax.random.normal(kx, (N, C, H, W), dtype=jnp.float32)
    # Deterministic weight init (kaiming-uniform-ish scale, like nn.Linear default).
    bound = 1.0 / jnp.sqrt(jnp.float32(d0))
    w = jax.random.uniform(kw, (10, d0), dtype=jnp.float32, minval=-bound, maxval=bound)

    # Case 1: tiny batch (single ragged block).
    out = jax.block_until_ready(net_forward(x, w))
    ref = x.reshape((-1, d0)) @ w.T
    assert out.shape == (N, 10)
    assert jnp.allclose(out, ref, atol=1e-4, rtol=1e-4)

    # Case 2: batch that exercises grid >= 2 with a ragged final block (n=520
    # -> tile_n=512, grid=2, last block has 8 valid rows).
    N2 = 520
    x2 = jax.random.normal(kx2, (N2, d0), dtype=jnp.float32)
    out2 = jax.block_until_ready(net_forward(x2, w))
    ref2 = x2 @ w.T
    assert out2.shape == (N2, 10)
    assert jnp.allclose(out2, ref2, atol=1e-4, rtol=1e-4)

    print("KERNEL_OK")
</pallas_src>

<mosaic_0001>
module attributes {stable_mosaic.version = 11 : i64} {
  func.func @_linear_kernel(%arg0: i32, %arg1: memref<256x784xf32, #tpu.memory_space<vmem>>, %arg2: memref<784x128xf32, #tpu.memory_space<vmem>>, %arg3: memref<256x128xf32, #tpu.memory_space<vmem>>) attributes {dimension_semantics = [#tpu.dimension_semantics<parallel>], iteration_bounds = array<i64: 1>, scalar_prefetch = 0 : i64, scratch_operands = 0 : i64, tpu.core_type = #tpu.core_type<tc>, window_params = [{transform_indices = @transform_0, window_bounds = array<i64: 256, 784>}, {pipeline_mode = #tpu.pipeline_mode<synchronous>, transform_indices = @transform_1, window_bounds = array<i64: 784, 128>}, {transform_indices = @transform_2, window_bounds = array<i64: 256, 128>}]} {
    %c0 = arith.constant 0 : index
    %c0_0 = arith.constant 0 : index
    %0 = vector.load %arg1[%c0, %c0_0] : memref<256x784xf32, #tpu.memory_space<vmem>>, vector<256x784xf32>
    %c0_1 = arith.constant 0 : index
    %c0_2 = arith.constant 0 : index
    %1 = vector.load %arg2[%c0_1, %c0_2] : memref<784x128xf32, #tpu.memory_space<vmem>>, vector<784x128xf32>
    %cst = arith.constant dense<0.000000e+00> : vector<256x128xf32>
    %2 = tpu.matmul %0, %1, %cst {dimension_numbers = #tpu.dot_dimension_numbers<[1], [0], [0], [1], [0, 0, 1, 1], [], []>, precision = #tpu.contract_precision<fp32>} : vector<256x784xf32>, vector<784x128xf32>, vector<256x128xf32> -> vector<256x128xf32>
    %c0_3 = arith.constant 0 : index
    %c0_4 = arith.constant 0 : index
    %3 = vector.load %arg3[%c0_3, %c0_4] : memref<256x128xf32, #tpu.memory_space<vmem>>, vector<256x128xf32>
    tpu.vector_store %arg3[%c0_3, %c0_4], %2 {strides = array<i32>} : memref<256x128xf32, #tpu.memory_space<vmem>>, vector<256x128xf32>,
    return
  }
  func.func @transform_0(%arg0: i32) -> (i32, i32) {
    %c0_i32 = arith.constant 0 : i32
    %c0_i32_0 = arith.constant 0 : i32
    return %arg0, %c0_i32 : i32, i32
  }
  func.func @transform_1(%arg0: i32) -> (i32, i32) {
    %c0_i32 = arith.constant 0 : i32
    %c0_i32_0 = arith.constant 0 : i32
    %c0_i32_1 = arith.constant 0 : i32
    return %c0_i32, %c0_i32_0 : i32, i32
  }
  func.func @transform_2(%arg0: i32) -> (i32, i32) {
    %c0_i32 = arith.constant 0 : i32
    %c0_i32_0 = arith.constant 0 : i32
    return %arg0, %c0_i32 : i32, i32
  }
}

</mosaic_0001>

<bundles_post_ra>
// kernel: tpu_custom_call.1
= control target key start
LH: loop header
LB: loop body
LE: loop exit
PB: predicated region body
PF: predicated region fallthrough
CT: control target
= control target key end

     0   :  { %7 = vsyncpa [#allocation3], 0  ;;  %s19925_s0 = inlined_call_operand.hbm [shape: f32[4,784], index: 0, kind: input, shape index: {}]   ;;  %s19926_s1 = inlined_call_operand.hbm [shape: f32[784,128], index: 1, kind: input, shape index: {}]   ;;  %s19927_s2 = inlined_call_operand.hbm [shape: f32[4,128], index: 2, kind: output, shape index: {}]  }
   0x1   :  { %8 = vsyncpa [#allocation6], 0 }
   0x2   :  { %9 = vsyncpa [#allocation4], 0 }
   0x3   :  { %14 = vsyncadd [#allocation3], 28224  ;;  %s13692_s9 = smov [#allocation2]   ;;  %s13620_s13 = scalar_lea.hbm %s19925_s0, 448 }
   0x4   :  { %s15_s10 = sshll.u32 %s13692_s9, 4  ;;  %p13621_p0 = scmp.ne.s32.totalorder %s19925_s0, %s13620_s13  ;;  %s16_s10 = int_to_ptr.vmem [resolvable:$true] %s15_s10 }
   0x5   :  { %p13624_p1 = scmp.lt.u32.totalorder %s13620_s13, %s19925_s0 }
   0x7   :  { %p13626_p2 = pnand %p13624_p1, %p13621_p0 }
   0x9   :  { %13629 = shalt.err (!%p13626_p2)
}
   0xa   :  { %s13630_s18 = scalar_lea.vmem %s16_s10, 448  ;;  %s13634_s19 = scalar_lea.vmem %s16_s10, 28672 }
   0xb   :  { %p13631_p3 = scmp.ne.s32.totalorder %s16_s10, %s13630_s18  ;;  %p13635_p4 = scmp.lt.s32.totalorder %s16_s10, %s16_s10 }
   0xc   :  { %p13636_p5 = scmp.lt.s32.totalorder %s13634_s19, %s13630_s18 }
   0xe   :  { %p13637_p6 = por %p13636_p5, %p13635_p4 }
  0x10   :  { %p13638_p7 = pnand %p13637_p6, %p13631_p3 }
  0x12   :  { %13641 = shalt.err (!%p13638_p7)
}
  0x13   :  { %s13693_s20 = smov 448   ;;  %s13694_s21 = smov 28  }
  0x14   :  { %21 = dma.hbm_to_vmem [thread:$0]  %s19925_s0, 448, %s16_s10, [#allocation3], %s13693_s20, %s13693_s20, %s13694_s21  }
  0x15   :  { %s13695_s24 = smov [#allocation5]   ;;  %s13642_s28 = scalar_lea.hbm %s19926_s1, 12544 }
  0x16   :  { %s27_s25 = sshll.u32 %s13695_s24, 4  ;;  %p13643_p8 = scmp.ne.s32.totalorder %s19926_s1, %s13642_s28  ;;  %s28_s25 = int_to_ptr.vmem [resolvable:$true] %s27_s25 }
  0x17   :  { %p13646_p9 = scmp.lt.u32.totalorder %s13642_s28, %s19926_s1 }
  0x19   :  { %p13648_p10 = pnand %p13646_p9, %p13643_p8 }
  0x1b   :  { %13651 = shalt.err (!%p13648_p10)
}
  0x1c   :  { %s13652_s5 = scalar_lea.vmem %s28_s25, 12544  ;;  %p13657_p12 = scmp.lt.s32.totalorder %s28_s25, %s28_s25 }
  0x1d   :  { %p13653_p11 = scmp.ne.s32.totalorder %s28_s25, %s13652_s5  ;;  %p13658_p13 = scmp.lt.s32.totalorder %s13652_s5, %s13652_s5 }
  0x1f   :  { %p13659_p0 = por %p13658_p13, %p13657_p12 }
  0x21   :  { %p13660_p1 = pnand %p13659_p0, %p13653_p11 }
  0x23   :  { %13663 = shalt.err (!%p13660_p1)
}
  0x24   :  { %s13696_s0 = smov 128   ;;  %s13697_s6 = smov 8  }
  0x25   :  { %33 = dma.hbm_to_vmem [thread:$0]  %s19926_s1, 12544, %s28_s25, [#allocation6], %s13696_s0, %s13696_s0, %s13697_s6  }
  0x26   :  { %13686 = dma.done.wait [#allocation3], 28672  }
  0x27   :  { %13687 = vsyncadd [#allocation3], 4294938624 }
  0x28   :  { %13688 = dma.done.wait [#allocation6], 12544  }
  0x29   :  { %13689 = vsyncadd [#allocation6], 4294954752  ;;  %v19945_v0 = vmov 0.0|0.0   ;;  %v296_v1 = vld [vmem:[#allocation5] sm:$0xff]  ;;  %v297_v2 = vld [vmem:[#allocation5 + $0x8] sm:$0xff]  ;;  %vm1066_vm0 = vcmask 130048  }
  0x2a   :  { %11283 = vmatprep.subr.bf16.mxu1 %v19945_v0  ;;  %11619 = vmatprep.subr.bf16.mxu0 %v19945_v0  ;;  %v298_v3 = vld [vmem:[#allocation5 + $0x10] sm:$0xff]  ;;  %v1132_v4 = vand.u32 4294901760, %v296_v1  ;;  %v1135_v5 = vand.u32 4294901760, %v297_v2  ;;  %v299_v6 = vld [vmem:[#allocation5 + $0x18] sm:$0xff]  ;;  %v300_v8 = vld [vmem:[#allocation5 + $0x20] sm:$0xff] }
  0x2b   :  { %v1138_v7 = vand.u32 4294901760, %v298_v3  ;;  %v301_v9 = vld [vmem:[#allocation5 + $0x28] sm:$0xff]  ;;  %v1141_v10 = vand.u32 4294901760, %v299_v6  ;;  %v1144_v11 = vand.u32 4294901760, %v300_v8  ;;  %v13743_v13 = vld [vmem:[#allocation5 + $0x100] sm:$0xff]  ;;  %v302_v15 = vld [vmem:[#allocation5 + $0x30] sm:$0xff] }
  0x2c   :  { %v1147_v12 = vand.u32 4294901760, %v301_v9  ;;  %21356 = vst [vmem:[#allocation11_spill] sm:$0xff] %v13743_v13  ;;  %v13745_v14 = vld [vmem:[#allocation5 + $0x108] sm:$0xff]  ;;  %v13747_v16 = vpack.c.bf16 %v1135_v5, %v1132_v4  ;;  %v13749_v17 = vsub.f32 %v296_v1, %v1132_v4  ;;  %v13751_v18 = vsub.f32 %v297_v2, %v1135_v5  ;;  %v303_v20 = vld [vmem:[#allocation5 + $0x38] sm:$0xff]  ;;  %v13755_v21 = vld [vmem:[#allocation5 + $0x110] sm:$0xff] }
  0x2d   :  { %21357 = vst [vmem:[#allocation12_spill] sm:$0xff] %v13745_v14  ;;  %v13753_v19 = vsub.f32 %v298_v3, %v1138_v7  ;;  %21362 = vst [vmem:[#allocation17_spill] sm:$0xff] %v13755_v21  ;;  %v13757_v22 = vld [vmem:[#allocation5 + $0x118] sm:$0xff]  ;;  %v13759_v23 = vpack.c.bf16 %v1141_v10, %v1138_v7  ;;  %v13761_v24 = vsub.f32 %v299_v6, %v1141_v10  ;;  %v304_v27 = vld [vmem:[#allocation5 + $0x40] sm:$0xff]  ;;  %v19944_v30 = vand.u32 4294901760, %v13743_v13 }
  0x2e   :  { %21358 = vst [vmem:[#allocation13_spill] sm:$0xff] %v13747_v16  ;;  %21359 = vst [vmem:[#allocation14_spill] sm:$0xff] %v13749_v17  ;;  %v13763_v25 = vpack.c.bf16 %v1147_v12, %v1144_v11  ;;  %v13765_v26 = vsub.f32 %v300_v8, %v1144_v11  ;;  %v305_v28 = vld [vmem:[#allocation5 + $0x48] sm:$0xff]  ;;  %11285 = vmatpush1.bf16.msra.mxu1 %v13747_v16  ;;  %v13768_v29 = vsub.f32 %v301_v9, %v1147_v12  ;;  %v13787_v41 = vld [vmem:[#allocation5 + $0x120] sm:$0xff] }
  0x2f   :  { %21360 = vst [vmem:[#allocation15_spill] sm:$0xff] %v13751_v18  ;;  %21361 = vst [vmem:[#allocation16_spill] sm:$0xff] %v13753_v19  ;;  %v19943_v31 = vand.u32 4294901760, %v13745_v14  ;;  %v1150_v32 = vand.u32 4294901760, %v302_v15  ;;  %11286 = vmatprep.subr.bf16.mxu1 %v19945_v0  ;;  %v1153_v33 = vand.u32 4294901760, %v303_v20  ;;  %v19942_v34 = vand.u32 4294901760, %v13755_v21 }
  0x30   :  { %21363 = vst [vmem:[#allocation18_spill] sm:$0xff] %v13757_v22  ;;  %21364 = vst [vmem:[#allocation19_spill] sm:$0xff] %v13759_v23  ;;  %v19940_v35 = vand.u32 4294901760, %v13757_v22  ;;  %v1156_v36 = vand.u32 4294901760, %v304_v27  ;;  %v13778_v37 = vsub.f32 %v13743_v13, %v19944_v30  ;;  %v1159_v40 = vand.u32 4294901760, %v305_v28  ;;  %v13803_v46 = vld [vmem:[#allocation5 + $0x128] sm:$0xff] }
  0x31   :  { %21365 = vst [vmem:[#allocation20_spill] sm:$0xff] %v13761_v24  ;;  %21366 = vst [vmem:[#allocation21_spill] sm:$0xff] %v13763_v25  ;;  %v13783_v38 = vsub.f32 %v13745_v14, %v19943_v31  ;;  %v13785_v39 = vsub.f32 %v302_v15, %v1150_v32  ;;  %v13789_v42 = vpack.c.bf16 %v1153_v33, %v1150_v32  ;;  %v306_v47 = vld [vmem:[#allocation5 + $0x50] sm:$0xff]  ;;  %v307_v52 = vld [vmem:[#allocation5 + $0x58] sm:$0xff]  ;;  %v19939_v56 = vand.u32 4294901760, %v13787_v41 }
  0x32   :  { %21367 = vst [vmem:[#allocation22_spill] sm:$0xff] %v13765_v26  ;;  %21368 = vst [vmem:[#allocation23_spill] sm:$0xff] %v13768_v29  ;;  %v13791_v43 = vsub.f32 %v303_v20, %v1153_v33  ;;  %v13796_v44 = vsub.f32 %v13755_v21, %v19942_v34  ;;  %v13801_v45 = vsub.f32 %v13757_v22, %v19940_v35  ;;  %11288 = vmatpush1.bf16.msra.mxu1 %v13759_v23  ;;  %v13836_v2 = vld [vmem:[#allocation5 + $0x130] sm:$0xff]  ;;  %v13846_v7 = vld [vmem:[#allocation5 + $0x138] sm:$0xff] }
  0x33   :  { %21369 = vst [vmem:[#allocation24_spill] sm:$0xff] %v13778_v37  ;;  %21370 = vst [vmem:[#allocation25_spill] sm:$0xff] %v13783_v38  ;;  %v19933_v48 = vand.u32 4294901760, %v13778_v37  ;;  %v19932_v49 = vand.u32 4294901760, %v13783_v38  ;;  %v13808_v50 = vpack.c.bf16 %v1159_v40, %v1156_v36  ;;  %v13810_v51 = vsub.f32 %v304_v27, %v1156_v36  ;;  %11289 = vmatprep.subr.bf16.mxu1 %v19945_v0  ;;  %v308_v8 = vld [vmem:[#allocation5 + $0x60] sm:$0xff]  ;;  %v309_v15 = vld [vmem:[#allocation5 + $0x68] sm:$0xff] }
  0x34   :  { %21371 = vst [vmem:[#allocation26_spill] sm:$0xff] %v13785_v39  ;;  %21372 = vst [vmem:[#allocation27_spill] sm:$0xff] %v13787_v41  ;;  %v19931_v53 = vand.u32 4294901760, %v13796_v44  ;;  %v19930_v54 = vand.u32 4294901760, %v13801_v45  ;;  %v13815_v55 = vsub.f32 %v305_v28, %v1159_v40  ;;  %v19937_v59 = vand.u32 4294901760, %v13803_v46  ;;  %v13852_v20 = vld [vmem:[#allocation5 + $0x140] sm:$0xff] }
  0x35   :  { %21373 = vst [vmem:[#allocation28_spill] sm:$0xff] %v13789_v42  ;;  %21374 = vst [vmem:[#allocation29_spill] sm:$0xff] %v13791_v43  ;;  %v4310_v57 = vsub.f32 %v13778_v37, %v19933_v48  ;;  %v4317_v58 = vsub.f32 %v13783_v38, %v19932_v49  ;;  %v1162_v60 = vand.u32 4294901760, %v306_v47  ;;  %v13834_v63 = vsub.f32 %v13787_v41, %v19939_v56  ;;  %v13860_v36 = vld [vmem:[#allocation5 + $0x148] sm:$0xff]  ;;  %v324_v22 = vld [vmem:[#allocation5 + $0xe0] sm:$0xff] }
  0x36   :  { %21375 = vst [vmem:[#allocation30_spill] sm:$0xff] %v13796_v44  ;;  %21376 = vst [vmem:[#allocation31_spill] sm:$0xff] %v13801_v45  ;;  %v4324_v61 = vsub.f32 %v13796_v44, %v19931_v53  ;;  %v4331_v62 = vsub.f32 %v13801_v45, %v19930_v54  ;;  %v1165_v1 = vand.u32 4294901760, %v307_v52  ;;  %11291 = vmatpush1.bf16.msra.mxu1 %v13763_v25  ;;  %v19935_v33 = vand.u32 4294901760, %v13836_v2  ;;  %v313_v35 = vld [vmem:[#allocation5 + $0x88] sm:$0xff]  ;;  %v14184_v14 = vld [vmem:[#allocation5 + $0x1d8] sm:$0xff] }
  0x37   :  { %21377 = vst [vmem:[#allocation32_spill] sm:$0xff] %v13803_v46  ;;  %21378 = vst [vmem:[#allocation33_spill] sm:$0xff] %v13808_v50  ;;  %v4311_v3 = vand.u32 4294901760, %v4310_v57  ;;  %v4318_v4 = vand.u32 4294901760, %v4317_v58  ;;  %v13842_v5 = vsub.f32 %v13803_v46, %v19937_v59  ;;  %v13844_v6 = vsub.f32 %v306_v47, %v1162_v60  ;;  %11292 = vmatprep.subr.bf16.mxu1 %v19945_v0  ;;  %v312_v59 = vld [vmem:[#allocation5 + $0x80] sm:$0xff] }
  0x38   :  { %21379 = vst [vmem:[#allocation34_spill] sm:$0xff] %v13810_v51  ;;  %21380 = vst [vmem:[#allocation35_spill] sm:$0xff] %v13815_v55  ;;  %v4325_v9 = vand.u32 4294901760, %v4324_v61  ;;  %v4332_v10 = vand.u32 4294901760, %v4331_v62  ;;  %v19929_v11 = vand.u32 4294901760, %v13834_v63  ;;  %v13850_v12 = vpack.c.bf16 %v1165_v1, %v1162_v60 }
  0x39   :  { %21381 = vst [vmem:[#allocation36_spill] sm:$0xff] %v13834_v63  ;;  %21382 = vst [vmem:[#allocation37_spill] sm:$0xff] %v13836_v2  ;;  %v13854_v27 = vpack.c.bf16 %v4318_v4, %v4311_v3  ;;  %v19928_v28 = vand.u32 4294901760, %v13842_v5  ;;  %v13857_v32 = vsub.f32 %v307_v52, %v1165_v1  ;;  %v19934_v57 = vand.u32 4294901760, %v13846_v7  ;;  %v310_v1 = vld [vmem:[#allocation5 + $0x70] sm:$0xff] }
  0x3a   :  { %21383 = vst [vmem:[#allocation38_spill] sm:$0xff] %v13842_v5  ;;  %21384 = vst [vmem:[#allocation39_spill] sm:$0xff] %v13844_v6  ;;  %v13862_v40 = vpack.c.bf16 %v4332_v10, %v4325_v9  ;;  %v4338_v47 = vsub.f32 %v13834_v63, %v19929_v11  ;;  %v1168_v58 = vand.u32 4294901760, %v308_v8  ;;  %11294 = vmatpush1.bf16.msra.mxu1 %v13789_v42  ;;  %v1171_v61 = vand.u32 4294901760, %v309_v15  ;;  %v13889_v11 = vld [vmem:[#allocation5 + $0x150] sm:$0xff] }
  0x3b   :  { %21385 = vst [vmem:[#allocation40_spill] sm:$0xff] %v13846_v7  ;;  %21386 = vst [vmem:[#allocation41_spill] sm:$0xff] %v13850_v12  ;;  %11621 = vmatpush1.bf16.msra.mxu0 %v13854_v27  ;;  %v4345_v52 = vsub.f32 %v13842_v5, %v19928_v28  ;;  %v13876_v60 = vsub.f32 %v13836_v2, %v19935_v33  ;;  %v19936_v62 = vand.u32 4294901760, %v13852_v20  ;;  %11295 = vmatprep.subr.bf16.mxu1 %v19945_v0  ;;  %v311_v28 = vld [vmem:[#allocation5 + $0x78] sm:$0xff] }
  0x3c   :  { %21387 = vst [vmem:[#allocation42_spill] sm:$0xff] %v13852_v20  ;;  %21388 = vst [vmem:[#allocation43_spill] sm:$0xff] %v13854_v27  ;;  %11622 = vmatprep.subr.bf16.mxu0 %v19945_v0  ;;  %v4339_v3 = vand.u32 4294901760, %v4338_v47  ;;  %v13884_v4 = vsub.f32 %v13846_v7, %v19934_v57  ;;  %v13886_v9 = vsub.f32 %v308_v8, %v1168_v58  ;;  %v19938_v10 = vand.u32 4294901760, %v13860_v36  ;;  %v318_v7 = vld [vmem:[#allocation5 + $0xb0] sm:$0xff] }
  0x3d   :  { %21389 = vst [vmem:[#allocation44_spill] sm:$0xff] %v13857_v32  ;;  %21390 = vst [vmem:[#allocation45_spill] sm:$0xff] %v13860_v36  ;;  %v4346_v54 = vand.u32 4294901760, %v4345_v52  ;;  %v19941_v53 = vand.u32 4294901760, %v13876_v60  ;;  %v13892_v49 = vpack.c.bf16 %v1171_v61, %v1168_v58  ;;  %v13894_v48 = vsub.f32 %v309_v15, %v1171_v61  ;;  %v13907_v52 = vld [vmem:[#allocation5 + $0x158] sm:$0xff] }
  0x3e   :  { %21391 = vst [vmem:[#allocation46_spill] sm:$0xff] %v13862_v40  ;;  %21392 = vst [vmem:[#allocation47_spill] sm:$0xff] %v13876_v60  ;;  %v19947_v47 = vand.u32 4294901760, %v13884_v4  ;;  %v13900_v57 = vsub.f32 %v13852_v20, %v19936_v62  ;;  %v13905_v8 = vsub.f32 %v13860_v36, %v19938_v10  ;;  %v1174_v33 = vand.u32 4294901760, %v310_v1  ;;  %11297 = vmatpush1.bf16.msra.mxu1 %v13808_v50  ;;  %v13954_v50 = vld [vmem:[#allocation5 + $0x170] sm:$0xff] }
  0x3f   :  { %21393 = vst [vmem:[#allocation48_spill] sm:$0xff] %v13884_v4  ;;  %21394 = vst [vmem:[#allocation49_spill] sm:$0xff] %v13886_v9  ;;  %11624 = vmatpush1.bf16.msra.mxu0 %v13862_v40  ;;  %v13911_v15 = vpack.c.bf16 %v4346_v54, %v4339_v3  ;;  %v4352_v58 = vsub.f32 %v13876_v60, %v19941_v53  ;;  %v1177_v61 = vand.u32 4294901760, %v311_v28  ;;  %11298 = vmatprep.subr.bf16.mxu1 %v19945_v0  ;;  %v13926_v53 = vld [vmem:[#allocation5 + $0x160] sm:$0xff] }
  0x40   :  { %21395 = vst [vmem:[#allocation50_spill] sm:$0xff] %v13889_v11  ;;  %21396 = vst [vmem:[#allocation51_spill] sm:$0xff] %v13892_v49  ;;  %11625 = vmatprep.subr.bf16.mxu0 %v19945_v0  ;;  %v4359_v10 = vsub.f32 %v13884_v4, %v19947_v47  ;;  %v19951_v56 = vand.u32 4294901760, %v13900_v57  ;;  %v19950_v54 = vand.u32 4294901760, %v13905_v8  ;;  %v13924_v3 = vsub.f32 %v310_v1, %v1174_v33  ;;  %v13269_v13 = vld [vmem:[#allocation2] ss:$28 sps:$4 sm:$0xff]  }
  0x41   :  { %21397 = vst [vmem:[#allocation52_spill] sm:$0xff] %v13894_v48  ;;  %21398 = vst [vmem:[#allocation53_spill] sm:$0xff] %v13900_v57  ;;  %v4353_v34 = vand.u32 4294901760, %v4352_v58  ;;  %v13928_v31 = vpack.c.bf16 %v1177_v61, %v1174_v33  ;;  %v13930_v30 = vsub.f32 %v311_v28, %v1177_v61  ;;  %v19961_v0 = vand.u32 4294901760, %v13907_v52  ;;  %v13944_v33 = vld [vmem:[#allocation5 + $0x168] sm:$0xff]  ;;  %v314_v28 = vld [vmem:[#allocation5 + $0x90] sm:$0xff] }
  0x42   :  { %21399 = vst [vmem:[#allocation54_spill] sm:$0xff] %v13905_v8  ;;  %21400 = vst [vmem:[#allocation55_spill] sm:$0xff] %v13907_v52  ;;  %v4360_v62 = vand.u32 4294901760, %v4359_v10  ;;  %v4366_v47 = vsub.f32 %v13900_v57, %v19951_v56  ;;  %v4373_v1 = vsub.f32 %v13905_v8, %v19950_v54  ;;  %v21406_v40 = vand.u32 4294901760, %v13889_v11  ;;  %11300 = vmatpush1.bf16.msra.mxu1 %v13850_v12  ;;  %v315_v56 = vld [vmem:[#allocation5 + $0x98] sm:$0xff]  ;;  %v14220_v48 = vld [vmem:[#allocation5 + $0x1e8] sm:$0xff] }
  0x43   :  { %21401 = vst [vmem:[#allocation56_spill] sm:$0xff] %v13911_v15  ;;  %21402 = vst [vmem:[#allocation57_spill] sm:$0xff] %v13924_v3  ;;  %11627 = vmatpush1.bf16.msra.mxu0 %v13911_v15  ;;  %v13951_v10 = vsub.f32 %v13907_v52, %v19961_v0  ;;  %v1180_v58 = vand.u32 4294901760, %v312_v59  ;;  %v1183_v61 = vand.u32 4294901760, %v313_v35  ;;  %v13968_v52 = vld [vmem:[#allocation5 + $0x178] sm:$0xff] }
  0x44   :  { %21403 = vst [vmem:[#allocation58_spill] sm:$0xff] %v13926_v53  ;;  %21404 = vst [vmem:[#allocation59_spill] sm:$0xff] %v13928_v31  ;;  %v13942_v27 = vsub.f32 %v13889_v11, %v21406_v40  ;;  %v21411_v40 = vmov 0.0|0.0   ;;  %v13957_v42 = vpack.c.bf16 %v4360_v62, %v4353_v34  ;;  %v4367_v15 = vand.u32 4294901760, %v4366_v47 }
  0x45   :  { %21405 = vst [vmem:[#allocation60_spill] sm:$0xff] %v13930_v30  ;;  %21408 = vst [vmem:[#allocation62_spill] sm:$0xff] %v13944_v33  ;;  %11628 = vmatprep.subr.bf16.mxu0 %v21411_v40  ;;  %11301 = vmatprep.subr.bf16.mxu1 %v21411_v40  ;;  %v4374_v12 = vand.u32 4294901760, %v4373_v1  ;;  %v19970_v0 = vand.u32 4294901760, %v13951_v10  ;;  %v13962_v23 = vpack.c.bf16 %v1183_v61, %v1180_v58  ;;  %v19977_v62 = vand.u32 4294901760, %v13944_v33 }
  0x46   :  { %21407 = vst [vmem:[#allocation61_spill] sm:$0xff] %v13942_v27  ;;  %21409 = vst [vmem:[#allocation63_spill] sm:$0xff] %v13951_v10  ;;  %v19968_v25 = vand.u32 4294901760, %v13942_v27  ;;  %v13964_v16 = vsub.f32 %v312_v59, %v1180_v58  ;;  %v13966_v54 = vsub.f32 %v313_v35, %v1183_v61  ;;  %v21418_v47 = vand.u32 4294901760, %v13926_v53  ;;  %11303 = vmatpush1.bf16.msra.mxu1 %v13892_v49  ;;  %v316_v58 = vld [vmem:[#allocation5 + $0xa0] sm:$0xff] }
  0x47   :  { %21410 = vst [vmem:[#allocation64_spill] sm:$0xff] %v13954_v50  ;;  %21412 = vst [vmem:[#allocation65_spill] sm:$0xff] %v13957_v42  ;;  %v13970_v11 = vpack.c.bf16 %v4374_v12, %v4367_v15  ;;  %11630 = vmatpush1.bf16.msra.mxu0 %v13957_v42  ;;  %v4387_v35 = vsub.f32 %v13951_v10, %v19970_v0  ;;  %v1186_v59 = vand.u32 4294901760, %v314_v28  ;;  %v1189_v12 = vand.u32 4294901760, %v315_v56  ;;  %v317_v0 = vld [vmem:[#allocation5 + $0xa8] sm:$0xff]  ;;  %v13996_v49 = vld [vmem:[#allocation5 + $0x180] sm:$0xff] }
  0x48   :  { %21413 = vst [vmem:[#allocation66_spill] sm:$0xff] %v13962_v23  ;;  %21414 = vst [vmem:[#allocation67_spill] sm:$0xff] %v13964_v16  ;;  %v4380_v34 = vsub.f32 %v13942_v27, %v19968_v25  ;;  %v13979_v1 = vsub.f32 %v13926_v53, %v21418_v47  ;;  %11631 = vmatprep.subr.bf16.mxu0 %v21411_v40  ;;  %11304 = vmatprep.subr.bf16.mxu1 %v21411_v40  ;;  %v21436_v46 = vand.u32 4294901760, %v13996_v49 }
  0x49   :  { %21415 = vst [vmem:[#allocation68_spill] sm:$0xff] %v13966_v54  ;;  %21416 = vst [vmem:[#allocation69_spill] sm:$0xff] %v13968_v52  ;;  %v13993_v25 = vsub.f32 %v13944_v33, %v19977_v62  ;;  %v4388_v53 = vand.u32 4294901760, %v4387_v35  ;;  %v13998_v15 = vpack.c.bf16 %v1189_v12, %v1186_v59  ;;  %v14000_v36 = vsub.f32 %v314_v28, %v1186_v59  ;;  %v14018_v28 = vld [vmem:[#allocation5 + $0x188] sm:$0xff] }
  0x4a   :  { %21417 = vst [vmem:[#allocation70_spill] sm:$0xff] %v13970_v11  ;;  %21419 = vst [vmem:[#allocation71_spill] sm:$0xff] %v13979_v1  ;;  %v4381_v61 = vand.u32 4294901760, %v4380_v34  ;;  %v19979_v47 = vand.u32 4294901760, %v13979_v1  ;;  %v14002_v20 = vsub.f32 %v315_v56, %v1189_v12  ;;  %v21425_v62 = vand.u32 4294901760, %v13954_v50  ;;  %11306 = vmatpush1.bf16.msra.mxu1 %v13928_v31  ;;  %v14076_v54 = vld [vmem:[#allocation5 + $0x1a8] sm:$0xff] }
  0x4b   :  { %21420 = vst [vmem:[#allocation72_spill] sm:$0xff] %v13993_v25  ;;  %21421 = vst [vmem:[#allocation73_spill] sm:$0xff] %v13996_v49  ;;  %v21427_v33 = vand.u32 4294901760, %v13968_v52  ;;  %11633 = vmatpush1.bf16.msra.mxu0 %v13970_v11  ;;  %v1192_v59 = vand.u32 4294901760, %v316_v58  ;;  %v1195_v12 = vand.u32 4294901760, %v317_v0  ;;  %11307 = vmatprep.subr.bf16.mxu1 %v21411_v40  ;;  %v14050_v41 = vsub.f32 %v13996_v49, %v21436_v46  ;;  %v321_v49 = vld [vmem:[#allocation5 + $0xc8] sm:$0xff] }
  0x4c   :  { %21422 = vst [vmem:[#allocation74_spill] sm:$0xff] %v13998_v15  ;;  %21423 = vst [vmem:[#allocation75_spill] sm:$0xff] %v14000_v36  ;;  %v4394_v34 = vsub.f32 %v13979_v1, %v19979_v47  ;;  %v14011_v42 = vsub.f32 %v13954_v50, %v21425_v62  ;;  %v14022_v56 = vpack.c.bf16 %v4388_v53, %v4381_v61  ;;  %11634 = vmatprep.subr.bf16.mxu0 %v21411_v40  ;;  %v319_v53 = vld [vmem:[#allocation5 + $0xb8] sm:$0xff]  ;;  %v14032_v61 = vld [vmem:[#allocation5 + $0x190] sm:$0xff] }
  0x4d   :  { %21424 = vst [vmem:[#allocation76_spill] sm:$0xff] %v14002_v20  ;;  %v14016_v35 = vsub.f32 %v13968_v52, %v21427_v33  ;;  %21429 = vst [vmem:[#allocation79_spill] sm:$0xff] %v14018_v28  ;;  %v21431_v33 = vand.u32 4294901760, %v13993_v25  ;;  %v14034_v50 = vpack.c.bf16 %v1195_v12, %v1192_v59  ;;  %v14036_v47 = vsub.f32 %v316_v58, %v1192_v59  ;;  %v14059_v59 = vld [vmem:[#allocation5 + $0x198] sm:$0xff] }
  0x4e   :  { %21426 = vst [vmem:[#allocation77_spill] sm:$0xff] %v14011_v42  ;;  %21430 = vst [vmem:[#allocation80_spill] sm:$0xff] %v14022_v56  ;;  %v4395_v62 = vand.u32 4294901760, %v4394_v34  ;;  %v19991_v11 = vand.u32 4294901760, %v14011_v42  ;;  %v14038_v2 = vsub.f32 %v317_v0, %v1195_v12  ;;  %v19996_v20 = vand.u32 4294901760, %v14018_v28  ;;  %11309 = vmatpush1.bf16.msra.mxu1 %v13962_v23 }
  0x4f   :  { %21428 = vst [vmem:[#allocation78_spill] sm:$0xff] %v14016_v35  ;;  %v4401_v52 = vsub.f32 %v13993_v25, %v21431_v33  ;;  %v19990_v31 = vand.u32 4294901760, %v14016_v35  ;;  %21432 = vst [vmem:[#allocation81_spill] sm:$0xff] %v14032_v61  ;;  %11636 = vmatpush1.bf16.msra.mxu0 %v14022_v56  ;;  %v1201_v58 = vand.u32 4294901760, %v319_v53  ;;  %11310 = vmatprep.subr.bf16.mxu1 %v21411_v40  ;;  %v20001_v23 = vand.u32 4294901760, %v14050_v41 }
  0x50   :  { %21433 = vst [vmem:[#allocation82_spill] sm:$0xff] %v14034_v50  ;;  %21434 = vst [vmem:[#allocation83_spill] sm:$0xff] %v14036_v47  ;;  %v4408_v33 = vsub.f32 %v14011_v42, %v19991_v11  ;;  %v14057_v0 = vsub.f32 %v14018_v28, %v19996_v20  ;;  %11637 = vmatprep.subr.bf16.mxu0 %v21411_v40  ;;  %v14067_v20 = vld [vmem:[#allocation5 + $0x1a0] sm:$0xff] }
  0x51   :  { %21435 = vst [vmem:[#allocation84_spill] sm:$0xff] %v14038_v2  ;;  %v4402_v34 = vand.u32 4294901760, %v4401_v52  ;;  %v4415_v36 = vsub.f32 %v14016_v35, %v19990_v31  ;;  %21437 = vst [vmem:[#allocation85_spill] sm:$0xff] %v14050_v41  ;;  %v1198_v52 = vand.u32 4294901760, %v318_v7  ;;  %v320_v31 = vld [vmem:[#allocation5 + $0xc0] sm:$0xff]  ;;  %v14074_v12 = vsub.f32 %v319_v53, %v1201_v58 }
  0x52   :  { %21438 = vst [vmem:[#allocation86_spill] sm:$0xff] %v14057_v0  ;;  %21439 = vst [vmem:[#allocation87_spill] sm:$0xff] %v14059_v59  ;;  %v4409_v11 = vand.u32 4294901760, %v4408_v33  ;;  %v21447_v33 = vand.u32 4294901760, %v14032_v61  ;;  %11312 = vmatpush1.bf16.msra.mxu1 %v13998_v15  ;;  %v1207_v53 = vand.u32 4294901760, %v321_v49 }
  0x53   :  { %v14063_v46 = vpack.c.bf16 %v4402_v34, %v4395_v62  ;;  %v4416_v56 = vand.u32 4294901760, %v4415_v36  ;;  %21441 = vst [vmem:[#allocation89_spill] sm:$0xff] %v14067_v20  ;;  %v14070_v2 = vpack.c.bf16 %v1201_v58, %v1198_v52  ;;  %v14072_v47 = vsub.f32 %v318_v7, %v1198_v52  ;;  %21444 = vst [vmem:[#allocation92_spill] sm:$0xff] %v14074_v12  ;;  %v322_v58 = vld [vmem:[#allocation5 + $0xd0] sm:$0xff] }
  0x54   :  { %21445 = vst [vmem:[#allocation93_spill] sm:$0xff] %v14076_v54  ;;  %v4422_v36 = vsub.f32 %v14050_v41, %v20001_v23  ;;  %v20010_v34 = vand.u32 4294901760, %v14059_v59  ;;  %v14087_v28 = vsub.f32 %v14032_v61, %v21447_v33  ;;  %v21449_v7 = vand.u32 4294901760, %v14057_v0  ;;  %11313 = vmatprep.subr.bf16.mxu1 %v21411_v40  ;;  %v14104_v61 = vld [vmem:[#allocation5 + $0x1b0] sm:$0xff]  ;;  %21475 = vst [vmem:[#allocation117_spill] sm:$0xff] %v14184_v14 }
  0x55   :  { %21440 = vst [vmem:[#allocation88_spill] sm:$0xff] %v14063_v46  ;;  %21442 = vst [vmem:[#allocation90_spill] sm:$0xff] %v14070_v2  ;;  %v14078_v62 = vpack.c.bf16 %v4416_v56, %v4409_v11  ;;  %11639 = vmatpush1.bf16.msra.mxu0 %v14063_v46  ;;  %v1204_v56 = vand.u32 4294901760, %v320_v31  ;;  %v14110_v16 = vsub.f32 %v321_v49, %v1207_v53  ;;  %v21466_v30 = vand.u32 4294901760, %v14104_v61 }
  0x56   :  { %21443 = vst [vmem:[#allocation91_spill] sm:$0xff] %v14072_v47  ;;  %21448 = vst [vmem:[#allocation95_spill] sm:$0xff] %v14087_v28  ;;  %v4429_v11 = vsub.f32 %v14057_v0, %v21449_v7  ;;  %11640 = vmatprep.subr.bf16.mxu0 %v21411_v40  ;;  %v4423_v23 = vand.u32 4294901760, %v4422_v36  ;;  %v20012_v33 = vand.u32 4294901760, %v14087_v28  ;;  %v14101_v46 = vsub.f32 %v14059_v59, %v20010_v34  ;;  %v323_v7 = vld [vmem:[#allocation5 + $0xd8] sm:$0xff] }
  0x57   :  { %21446 = vst [vmem:[#allocation94_spill] sm:$0xff] %v14078_v62  ;;  %21451 = vst [vmem:[#allocation97_spill] sm:$0xff] %v14104_v61  ;;  %v14106_v52 = vpack.c.bf16 %v1207_v53, %v1204_v56  ;;  %v14108_v47 = vsub.f32 %v320_v31, %v1204_v56  ;;  %v21455_v34 = vand.u32 4294901760, %v14067_v20  ;;  %v21457_v59 = vand.u32 4294901760, %v14076_v54  ;;  %v14126_v31 = vld [vmem:[#allocation5 + $0x1b8] sm:$0xff]  ;;  %11315 = vmatpush1.bf16.msra.mxu1 %v14034_v50 }
  0x58   :  { %21450 = vst [vmem:[#allocation96_spill] sm:$0xff] %v14101_v46  ;;  %v4430_v12 = vand.u32 4294901760, %v4429_v11  ;;  %21454 = vst [vmem:[#allocation100_spill] sm:$0xff] %v14110_v16  ;;  %v4436_v36 = vsub.f32 %v14087_v28, %v20012_v33  ;;  %v1210_v56 = vand.u32 4294901760, %v322_v58  ;;  %v1213_v53 = vand.u32 4294901760, %v323_v7  ;;  %11316 = vmatprep.subr.bf16.mxu1 %v21411_v40 }
  0x59   :  { %21452 = vst [vmem:[#allocation98_spill] sm:$0xff] %v14106_v52  ;;  %21453 = vst [vmem:[#allocation99_spill] sm:$0xff] %v14108_v47  ;;  %v14119_v15 = vsub.f32 %v14067_v20, %v21455_v34  ;;  %v14124_v11 = vsub.f32 %v14076_v54, %v21457_v59  ;;  %11642 = vmatpush1.bf16.msra.mxu0 %v14078_v62  ;;  %v21461_v59 = vand.u32 4294901760, %v14101_v46  ;;  %v20029_v47 = vand.u32 4294901760, %v14126_v31 }
  0x5a   :  { %21459 = vst [vmem:[#allocation103_spill] sm:$0xff] %v14126_v31  ;;  %v14130_v49 = vpack.c.bf16 %v4430_v12, %v4423_v23  ;;  %11643 = vmatprep.subr.bf16.mxu0 %v21411_v40  ;;  %v4437_v34 = vand.u32 4294901760, %v4436_v36  ;;  %v325_v23 = vld [vmem:[#allocation5 + $0xe8] sm:$0xff]  ;;  %v14140_v12 = vld [vmem:[#allocation5 + $0x1c0] sm:$0xff]  ;;  %v14142_v20 = vpack.c.bf16 %v1213_v53, %v1210_v56  ;;  %v14144_v33 = vsub.f32 %v322_v58, %v1210_v56 }
  0x5b   :  { %21456 = vst [vmem:[#allocation101_spill] sm:$0xff] %v14119_v15  ;;  %21458 = vst [vmem:[#allocation102_spill] sm:$0xff] %v14124_v11  ;;  %v4443_v54 = vsub.f32 %v14101_v46, %v21461_v59  ;;  %v20024_v62 = vand.u32 4294901760, %v14119_v15  ;;  %v20023_v50 = vand.u32 4294901760, %v14124_v11  ;;  %v14146_v16 = vsub.f32 %v323_v7, %v1213_v53  ;;  %11318 = vmatpush1.bf16.msra.mxu1 %v14070_v2  ;;  %v14167_v56 = vld [vmem:[#allocation5 + $0x1c8] sm:$0xff] }
  0x5c   :  { %21460 = vst [vmem:[#allocation104_spill] sm:$0xff] %v14130_v49  ;;  %21462 = vst [vmem:[#allocation105_spill] sm:$0xff] %v14140_v12  ;;  %v14158_v3 = vsub.f32 %v14104_v61, %v21466_v30  ;;  %v1216_v58 = vand.u32 4294901760, %v324_v22  ;;  %v1219_v7 = vand.u32 4294901760, %v325_v23  ;;  %11319 = vmatprep.subr.bf16.mxu1 %v21411_v40  ;;  %v327_v61 = vld [vmem:[#allocation5 + $0xf8] sm:$0xff] }
  0x5d   :  { %21463 = vst [vmem:[#allocation106_spill] sm:$0xff] %v14142_v20  ;;  %21464 = vst [vmem:[#allocation107_spill] sm:$0xff] %v14144_v33  ;;  %v4444_v36 = vand.u32 4294901760, %v4443_v54  ;;  %v4450_v59 = vsub.f32 %v14119_v15, %v20024_v62  ;;  %v4457_v21 = vsub.f32 %v14124_v11, %v20023_v50  ;;  %11645 = vmatpush1.bf16.msra.mxu0 %v14130_v49  ;;  %v326_v50 = vld [vmem:[#allocation5 + $0xf0] sm:$0xff] }
  0x5e   :  { %21465 = vst [vmem:[#allocation108_spill] sm:$0xff] %v14146_v16  ;;  %21467 = vst [vmem:[#allocation109_spill] sm:$0xff] %v14158_v3  ;;  %v14165_v54 = vsub.f32 %v14126_v31, %v20029_v47  ;;  %11646 = vmatprep.subr.bf16.mxu0 %v21411_v40  ;;  %v20035_v2 = vand.u32 4294901760, %v14158_v3  ;;  %v14175_v47 = vld [vmem:[#allocation5 + $0x1d0] sm:$0xff]  ;;  %v14178_v16 = vpack.c.bf16 %v1219_v7, %v1216_v58 }
  0x5f   :  { %21469 = vst [vmem:[#allocation111_spill] sm:$0xff] %v14167_v56  ;;  %v14171_v30 = vpack.c.bf16 %v4444_v36, %v4437_v34  ;;  %v4451_v62 = vand.u32 4294901760, %v4450_v59  ;;  %v4458_v49 = vand.u32 4294901760, %v4457_v21  ;;  %21471 = vst [vmem:[#allocation113_spill] sm:$0xff] %v14175_v47  ;;  %v14180_v33 = vsub.f32 %v324_v22, %v1216_v58  ;;  %11321 = vmatpush1.bf16.msra.mxu1 %v14106_v52 }
  0x60   :  { %21468 = vst [vmem:[#allocation110_spill] sm:$0xff] %v14165_v54  ;;  %21472 = vst [vmem:[#allocation114_spill] sm:$0xff] %v14178_v16  ;;  %v14182_v53 = vsub.f32 %v325_v23, %v1219_v7  ;;  %v4464_v21 = vsub.f32 %v14158_v3, %v20035_v2  ;;  %v20043_v36 = vand.u32 4294901760, %v14167_v56  ;;  %v21477_v59 = vand.u32 4294901760, %v14140_v12  ;;  %v13271_v7 = vld [vmem:[#allocation2 + $0x4] ss:$28 sps:$4 sm:$0xff]   ;;  %11322 = vmatprep.subr.bf16.mxu1 %v21411_v40 }
  0x61   :  { %21470 = vst [vmem:[#allocation112_spill] sm:$0xff] %v14171_v30  ;;  %21473 = vst [vmem:[#allocation115_spill] sm:$0xff] %v14180_v33  ;;  %v14186_v34 = vpack.c.bf16 %v4458_v49, %v4451_v62  ;;  %11648 = vmatpush1.bf16.msra.mxu0 %v14171_v30  ;;  %v21479_v22 = vand.u32 4294901760, %v14165_v54  ;;  %v1222_v49 = vand.u32 4294901760, %v326_v50  ;;  %v1225_v23 = vand.u32 4294901760, %v327_v61 }
  0x62   :  { %21474 = vst [vmem:[#allocation116_spill] sm:$0xff] %v14182_v53  ;;  %v14195_v31 = vsub.f32 %v14140_v12, %v21477_v59  ;;  %11649 = vmatprep.subr.bf16.mxu0 %v21411_v40  ;;  %v4465_v59 = vand.u32 4294901760, %v4464_v21  ;;  %v14209_v30 = vsub.f32 %v14167_v56, %v20043_v36  ;;  %21485 = vst [vmem:[#allocation125_spill] sm:$0xff] %v14220_v48  ;;  %v21486_v56 = vand.u32 4294901760, %v14175_v47 }
  0x63   :  { %21476 = vst [vmem:[#allocation118_spill] sm:$0xff] %v14186_v34  ;;  %v4471_v62 = vsub.f32 %v14165_v54, %v21479_v22  ;;  %v14212_v22 = vld [vmem:[#allocation5 + $0x1e0] sm:$0xff]  ;;  %v14214_v53 = vpack.c.bf16 %v1225_v23, %v1222_v49  ;;  %v14216_v58 = vsub.f32 %v326_v50, %v1222_v49  ;;  %v14218_v33 = vsub.f32 %v327_v61, %v1225_v23  ;;  %v13272_v61 = vld [vmem:[#allocation2 + $0x3c] ss:$28 sps:$4 sm:$0xff]  }
  0x64   :  { %21478 = vst [vmem:[#allocation119_spill] sm:$0xff] %v14195_v31  ;;  %v20045_v2 = vand.u32 4294901760, %v14195_v31  ;;  %21480 = vst [vmem:[#allocation120_spill] sm:$0xff] %v14209_v30  ;;  %v14229_v52 = vsub.f32 %v14175_v47, %v21486_v56  ;;  %11324 = vmatpush1.bf16.msra.mxu1 %v14142_v20  ;;  %v14240_v23 = vand.u32 4294901760, %v13271_v7  ;;  %v21496_v47 = vand.u32 4294901760, %v14212_v22 }
  0x65   :  { %21481 = vst [vmem:[#allocation121_spill] sm:$0xff] %v14212_v22  ;;  %v4472_v12 = vand.u32 4294901760, %v4471_v62  ;;  %21482 = vst [vmem:[#allocation122_spill] sm:$0xff] %v14214_v53  ;;  %v21488_v62 = vand.u32 4294901760, %v14184_v14  ;;  %11651 = vmatpush1.bf16.msra.mxu0 %v14186_v34  ;;  %11325 = vmatprep.subr.bf16.mxu1 %v21411_v40 }
  0x66   :  { %21483 = vst [vmem:[#allocation123_spill] sm:$0xff] %v14216_v58  ;;  %21484 = vst [vmem:[#allocation124_spill] sm:$0xff] %v14218_v33  ;;  %v4478_v21 = vsub.f32 %v14195_v31, %v20045_v2  ;;  %v14242_v2 = vand.u32 4294901760, %v13269_v13  ;;  %11652 = vmatprep.subr.bf16.mxu0 %v21411_v40  ;;  %v20055_v34 = vand.u32 4294901760, %v14229_v52  ;;  %v13277_v58 = vld [vmem:[#allocation2 + $0xc] ss:$28 sps:$4 sm:$0xff]  }
  0x67   :  { %21487 = vst [vmem:[#allocation126_spill] sm:$0xff] %v14229_v52  ;;  %v14234_v50 = vsub.f32 %v14184_v14, %v21488_v62  ;;  %v14238_v49 = vpack.c.bf16 %v4472_v12, %v4465_v59  ;;  %21491 = vst [vmem:[#allocation129_spill] sm:$0xff] %v14240_v23  ;;  %v21493_v62 = vand.u32 4294901760, %v14209_v30  ;;  %v14253_v59 = vsub.f32 %v13271_v7, %v14240_v23 }
  0x68   :  { %21492 = vst [vmem:[#allocation130_spill] sm:$0xff] %v14242_v2  ;;  %v4479_v56 = vand.u32 4294901760, %v4478_v21  ;;  %v14256_v20 = vsub.f32 %v13269_v13, %v14242_v2  ;;  %v14262_v21 = vsub.f32 %v14212_v22, %v21496_v47  ;;  %v14270_v23 = vand.u32 4294901760, %v13272_v61  ;;  %v13274_v13 = vld [vmem:[#allocation2 + $0x38] ss:$28 sps:$4 sm:$0xff]   ;;  %11327 = vmatpush1.bf16.msra.mxu1 %v14178_v16 }
  0x69   :  { %21489 = vst [vmem:[#allocation127_spill] sm:$0xff] %v14234_v50  ;;  %21490 = vst [vmem:[#allocation128_spill] sm:$0xff] %v14238_v49  ;;  %v4485_v14 = vsub.f32 %v14209_v30, %v21493_v62  ;;  %v20058_v12 = vand.u32 4294901760, %v14234_v50  ;;  %v4492_v62 = vsub.f32 %v14229_v52, %v20055_v34  ;;  %11654 = vmatpush1.bf16.msra.mxu0 %v14238_v49  ;;  %v21499_v22 = vand.u32 4294901760, %v14220_v48  ;;  %v14282_v2 = vld [vmem:[#allocation5 + $0x1f0] sm:$0xff] }
  0x6a   :  { %21494 = vst [vmem:[#allocation131_spill] sm:$0xff] %v14253_v59  ;;  %21495 = vst [vmem:[#allocation132_spill] sm:$0xff] %v14256_v20  ;;  %11655 = vmatprep.subr.bf16.mxu0 %v21411_v40  ;;  %11328 = vmatprep.subr.bf16.mxu1 %v21411_v40  ;;  %v14291_v47 = vsub.f32 %v13272_v61, %v14270_v23  ;;  %v21506_v9 = vand.u32 4294901760, %v14256_v20 }
  0x6b   :  { %21497 = vst [vmem:[#allocation133_spill] sm:$0xff] %v14262_v21  ;;  %v4486_v33 = vand.u32 4294901760, %v4485_v14  ;;  %v4499_v7 = vsub.f32 %v14234_v50, %v20058_v12  ;;  %21498 = vst [vmem:[#allocation134_spill] sm:$0xff] %v14270_v23  ;;  %v14280_v34 = vsub.f32 %v14220_v48, %v21499_v22  ;;  %v14284_v12 = vld [vmem:[#allocation5 + $0x1f8] sm:$0xff]  ;;  %v4493_v36 = vand.u32 4294901760, %v4492_v62 }
  0x6c   :  { %21501 = vst [vmem:[#allocation136_spill] sm:$0xff] %v14282_v2  ;;  %21502 = vst [vmem:[#allocation137_spill] sm:$0xff] %v14284_v12  ;;  %v13275_v14 = vld [vmem:[#allocation2 + $0x74] ss:$28 sps:$4 sm:$0xff]   ;;  %v21505_v22 = vand.u32 4294901760, %v14253_v59  ;;  %v1236_v50 = vsub.f32 %v14256_v20, %v21506_v9  ;;  %v20080_v61 = vand.u32 4294901760, %v14291_v47  ;;  %11330 = vmatpush1.bf16.msra.mxu1 %v14214_v53 }
  0x6d   :  { %21500 = vst [vmem:[#allocation135_spill] sm:$0xff] %v14280_v34  ;;  %v14287_v49 = vpack.c.bf16 %v4486_v33, %v4479_v56  ;;  %v4500_v16 = vand.u32 4294901760, %v4499_v7  ;;  %21504 = vst [vmem:[#allocation139_spill] sm:$0xff] %v14291_v47  ;;  %v21507_v33 = vand.u32 4294901760, %v14262_v21  ;;  %v20076_v62 = vand.u32 4294901760, %v14280_v34  ;;  %11331 = vmatprep.subr.bf16.mxu1 %v21411_v40 }
  0x6e   :  { %v1230_v48 = vsub.f32 %v14253_v59, %v21505_v22  ;;  %v13279_v7 = vld [vmem:[#allocation2 + $0x70] ss:$28 sps:$4 sm:$0xff]   ;;  %v14306_v23 = vand.u32 4294901760, %v13274_v13  ;;  %v1237_v22 = vand.u32 4294901760, %v1236_v50  ;;  %v13280_v59 = vld [vmem:[#allocation2 + $0x8] ss:$28 sps:$4 sm:$0xff]  }
  0x6f   :  { %21503 = vst [vmem:[#allocation138_spill] sm:$0xff] %v14287_v49  ;;  %v4506_v56 = vsub.f32 %v14262_v21, %v21507_v33  ;;  %v14303_v52 = vpack.c.bf16 %v4500_v16, %v4493_v36  ;;  %11657 = vmatpush1.bf16.msra.mxu0 %v14287_v49  ;;  %v4513_v33 = vsub.f32 %v14280_v34, %v20076_v62  ;;  %v14328_v62 = vand.u32 4294901760, %v13275_v14 }
  0x70   :  { %21509 = vst [vmem:[#allocation141_spill] sm:$0xff] %v14306_v23  ;;  %v1231_v9 = vand.u32 4294901760, %v1230_v48  ;;  %11658 = vmatprep.subr.bf16.mxu0 %v21411_v40  ;;  %v1245_v16 = vsub.f32 %v14291_v47, %v20080_v61  ;;  %v14319_v36 = vsub.f32 %v13274_v13, %v14306_v23  ;;  %v21511_v48 = vand.u32 4294901760, %v14282_v2  ;;  %v13281_v61 = vld [vmem:[#allocation2 + $0xac] ss:$28 sps:$4 sm:$0xff]  }
  0x71   :  { %21508 = vst [vmem:[#allocation140_spill] sm:$0xff] %v14303_v52  ;;  %v4507_v20 = vand.u32 4294901760, %v4506_v56  ;;  %v4514_v56 = vand.u32 4294901760, %v4513_v33  ;;  %21513 = vst [vmem:[#allocation144_spill] sm:$0xff] %v14328_v62  ;;  %v14330_v49 = vand.u32 4294901760, %v13277_v58  ;;  %v14332_v53 = vand.u32 4294901760, %v13279_v7 }
  0x72   :  { %21510 = vst [vmem:[#allocation142_spill] sm:$0xff] %v14319_v36  ;;  %v14325_v50 = vsub.f32 %v14282_v2, %v21511_v48  ;;  %1232 = vmatprep.mubr.f32.mxu1 %v1231_v9  ;;  %v1246_v13 = vand.u32 4294901760, %v1245_v16  ;;  %v20094_v32 = vand.u32 4294901760, %v14319_v36  ;;  %v21516_v48 = vand.u32 4294901760, %v14284_v12  ;;  %v13283_v16 = vld [vmem:[#allocation2 + $0x44] ss:$28 sps:$4 sm:$0xff]  }
  0x73   :  { %21514 = vst [vmem:[#allocation145_spill] sm:$0xff] %v14330_v49  ;;  %21515 = vst [vmem:[#allocation146_spill] sm:$0xff] %v14332_v53  ;;  %1238 = vmatmul.mubr.f32.vlgmr.msra.gmra.mrb[0].mxu1 %v1237_v22  ;;  %11660 = vmatpush1.bf16.msra.mxu0 %v14303_v52  ;;  %v14342_v9 = vpack.c.bf16 %v4514_v56, %v4507_v20  ;;  %v14345_v58 = vsub.f32 %v13275_v14, %v14328_v62  ;;  %v14351_v33 = vand.u32 4294901760, %v13280_v59  ;;  %v13285_v47 = vld [vmem:[#allocation2 + $0xa8] ss:$28 sps:$4 sm:$0xff]  }
  0x74   :  { %21512 = vst [vmem:[#allocation143_spill] sm:$0xff] %v14325_v50  ;;  %v14339_v2 = vsub.f32 %v14284_v12, %v21516_v48  ;;  %4531 = vmatprep.mubr.f32.mxu0 %v14330_v49  ;;  %v14349_v22 = vsub.f32 %v13279_v7, %v14332_v53  ;;  %11661 = vmatprep.subr.bf16.mxu0 %v21411_v40  ;;  %v21522_v56 = vand.u32 4294901760, %v14325_v50  ;;  %v13286_v52 = vld [vmem:[#allocation2 + $0x40] ss:$28 sps:$4 sm:$0xff]  }
  0x75   :  { %21518 = vst [vmem:[#allocation148_spill] sm:$0xff] %v14342_v9  ;;  %21519 = vst [vmem:[#allocation149_spill] sm:$0xff] %v14345_v58  ;;  %1247 = vmatprep.mubr.f32.mxu1 %v1246_v13  ;;  %v1251_v20 = vsub.f32 %v14319_v36, %v20094_v32  ;;  %v13287_v12 = vld [vmem:[#allocation2 + $0xe4] ss:$28 sps:$4 sm:$0xff]   ;;  %v20105_v53 = vand.u32 4294901760, %v14345_v58  ;;  %v14365_v13 = vand.u32 4294901760, %v13281_v61  ;;  %v14371_v36 = vsub.f32 %v13280_v59, %v14351_v33 }
  0x76   :  { %21517 = vst [vmem:[#allocation147_spill] sm:$0xff] %v14339_v2  ;;  %21520 = vst [vmem:[#allocation150_spill] sm:$0xff] %v14349_v22  ;;  %v4520_v14 = vsub.f32 %v14325_v50, %v21522_v56  ;;  %v20101_v48 = vand.u32 4294901760, %v14339_v2  ;;  %v20109_v62 = vand.u32 4294901760, %v14349_v22  ;;  %v13289_v23 = vld [vmem:[#allocation2 + $0x7c] ss:$28 sps:$4 sm:$0xff]  }
  0x77   :  { %21521 = vst [vmem:[#allocation151_spill] sm:$0xff] %v14351_v33  ;;  %21523 = vst [vmem:[#allocation152_spill] sm:$0xff] %v14365_v13  ;;  %v1252_v49 = vand.u32 4294901760, %v1251_v20  ;;  %v13291_v50 = vld [vmem:[#allocation2 + $0xe0] ss:$28 sps:$4 sm:$0xff]   ;;  %11663 = vmatpush1.bf16.msra.mxu0 %v14342_v9  ;;  %v1260_v7 = vsub.f32 %v14345_v58, %v20105_v53  ;;  %v14381_v20 = vsub.f32 %v13281_v61, %v14365_v13  ;;  %v14386_v9 = vand.u32 4294901760, %v13283_v16 }
  0x78   :  { %v4521_v32 = vand.u32 4294901760, %v4520_v14  ;;  %v4527_v56 = vsub.f32 %v14339_v2, %v20101_v48  ;;  %21524 = vst [vmem:[#allocation153_spill] sm:$0xff] %v14371_v36  ;;  %v1266_v34 = vsub.f32 %v14349_v22, %v20109_v62  ;;  %v14383_v14 = vand.u32 4294901760, %v13285_v47  ;;  %v13292_v48 = vld [vmem:[#allocation2 + $0x78] ss:$28 sps:$4 sm:$0xff]   ;;  %11664 = vmatprep.subr.bf16.mxu0 %v21411_v40 }
  0x79   :  { %21525 = vst [vmem:[#allocation154_spill] sm:$0xff] %v14381_v20  ;;  %v13293_v2 = vld [vmem:[#allocation2 + $0x11c] ss:$28 sps:$4 sm:$0xff]   ;;  %1253 = vmatmul.mubr.f32.gmra.mrb[2].mxu1 %v1252_v49  ;;  %21527 = vst [vmem:[#allocation156_spill] sm:$0xff] %v14386_v9  ;;  %v14390_v58 = vand.u32 4294901760, %v13287_v12  ;;  %v1261_v36 = vand.u32 4294901760, %v1260_v7 }
  0x7a   :  { %21526 = vst [vmem:[#allocation155_spill] sm:$0xff] %v14383_v14  ;;  %v4528_v59 = vand.u32 4294901760, %v4527_v56  ;;  %v1267_v62 = vand.u32 4294901760, %v1266_v34  ;;  %v20116_v61 = vand.u32 4294901760, %v14381_v20  ;;  %v14394_v22 = vsub.f32 %v13285_v47, %v14383_v14  ;;  %v13297_v13 = vld [vmem:[#allocation2 + $0x118] ss:$28 sps:$4 sm:$0xff]  }
  0x7b   :  { %21528 = vst [vmem:[#allocation157_spill] sm:$0xff] %v14390_v58  ;;  %v14398_v49 = vand.u32 4294901760, %v13286_v52  ;;  %v14401_v16 = vsub.f32 %v13287_v12, %v14390_v58  ;;  %v14403_v56 = vand.u32 4294901760, %v13291_v50  ;;  %1262 = vmatprep.mubr.f32.mxu1 %v1261_v36  ;;  %v14409_v53 = vand.u32 4294901760, %v13289_v23  ;;  %v13295_v47 = vld [vmem:[#allocation2 + $0xb4] ss:$28 sps:$4 sm:$0xff]  }
  0x7c   :  { %21529 = vst [vmem:[#allocation158_spill] sm:$0xff] %v14394_v22  ;;  %v14396_v21 = vpack.c.bf16 %v4528_v59, %v4521_v32  ;;  %v1275_v34 = vsub.f32 %v14381_v20, %v20116_v61  ;;  %v20124_v7 = vand.u32 4294901760, %v14394_v22  ;;  %v14418_v36 = vand.u32 4294901760, %v13292_v48  ;;  %v13301_v58 = vld [vmem:[#allocation2 + $0xec] ss:$28 sps:$4 sm:$0xff]  }
  0x7d   :  { %21531 = vst [vmem:[#allocation160_spill] sm:$0xff] %v14398_v49  ;;  %21532 = vst [vmem:[#allocation161_spill] sm:$0xff] %v14401_v16  ;;  %1268 = vmatmul.mubr.f32.gmra.mrb[4].mxu1 %v1267_v62  ;;  %v20127_v52 = vand.u32 4294901760, %v14401_v16  ;;  %v14416_v12 = vsub.f32 %v13291_v50, %v14403_v56  ;;  %v14420_v59 = vand.u32 4294901760, %v13293_v2  ;;  %v14426_v32 = vand.u32 4294901760, %v13297_v13 }
  0x7e   :  { %21530 = vst [vmem:[#allocation159_spill] sm:$0xff] %v14396_v21  ;;  %21533 = vst [vmem:[#allocation162_spill] sm:$0xff] %v14403_v56  ;;  %11666 = vmatpush1.bf16.msra.mxu0 %v14396_v21  ;;  %v1276_v23 = vand.u32 4294901760, %v1275_v34  ;;  %v1281_v61 = vsub.f32 %v14394_v22, %v20124_v7  ;;  %v13299_v21 = vld [vmem:[#allocation2 + $0x154] ss:$28 sps:$4 sm:$0xff]   ;;  %v14438_v22 = vand.u32 4294901760, %v13295_v47 }
  0x7f   :  { %21534 = vst [vmem:[#allocation163_spill] sm:$0xff] %v14409_v53  ;;  %21535 = vst [vmem:[#allocation164_spill] sm:$0xff] %v14416_v12  ;;  %11667 = vmatprep.subr.bf16.mxu0 %v21411_v40  ;;  %v1290_v50 = vsub.f32 %v14401_v16, %v20127_v52  ;;  %v14434_v20 = vsub.f32 %v13293_v2, %v14420_v59  ;;  %v13298_v56 = vld [vmem:[#allocation2 + $0xb0] ss:$28 sps:$4 sm:$0xff]   ;;  %v14441_v62 = vsub.f32 %v13297_v13, %v14426_v32 }
  0x80   :  { %21536 = vst [vmem:[#allocation165_spill] sm:$0xff] %v14418_v36  ;;  %21537 = vst [vmem:[#allocation166_spill] sm:$0xff] %v14420_v59  ;;  %1277 = vmatprep.mubr.f32.mxu1 %v1276_v23  ;;  %v1282_v7 = vand.u32 4294901760, %v1281_v61  ;;  %v21542_v52 = vand.u32 4294901760, %v13749_v17  ;;  %v13303_v16 = vld [vmem:[#allocation2 + $0x150] ss:$28 sps:$4 sm:$0xff]   ;;  %v21543_v2 = vpack.c.bf16 %v13783_v38, %v13778_v37 }
  0x81   :  { %21538 = vst [vmem:[#allocation167_spill] sm:$0xff] %v14426_v32  ;;  %21539 = vst [vmem:[#allocation168_spill] sm:$0xff] %v14434_v20  ;;  %4533 = vmatmul.mubr.f32.vlgmr.msra.gmra.mrb[0].mxu0 %v14351_v33  ;;  %v1291_v34 = vand.u32 4294901760, %v1290_v50  ;;  %v21544_v23 = vand.u32 4294901760, %v14416_v12  ;;  %v20142_v47 = vand.u32 4294901760, %v14434_v20  ;;  %v21545_v13 = vand.u32 4294901760, %v13751_v18 }
  0x82   :  { %21540 = vst [vmem:[#allocation169_spill] sm:$0xff] %v14438_v22  ;;  %21541 = vst [vmem:[#allocation170_spill] sm:$0xff] %v14441_v62  ;;  %v1712_v48 = vsub.f32 %v13749_v17, %v21542_v52  ;;  %11669 = vmatpush1.bf16.msra.mxu0 %v21543_v2  ;;  %4538 = vmatprep.mubr.f32.mxu0 %v14386_v9  ;;  %v13304_v32 = vld [vmem:[#allocation2 + $0xe8] ss:$28 sps:$4 sm:$0xff]   ;;  %v20145_v2 = vand.u32 4294901760, %v14441_v62  ;;  %v14461_v37 = vand.u32 4294901760, %v13299_v21 }
  0x83   :  { %v1296_v61 = vsub.f32 %v14416_v12, %v21544_v23  ;;  %v1719_v33 = vsub.f32 %v13751_v18, %v21545_v13  ;;  %v13305_v52 = vld [vmem:[#allocation2 + $0x18c] ss:$28 sps:$4 sm:$0xff]   ;;  %1283 = vmatmul.mubr.f32.gmra.mrb[6].mxu1 %v1282_v7  ;;  %11670 = vmatprep.subr.bf16.mxu0 %v21411_v40  ;;  %v1305_v12 = vsub.f32 %v14434_v20, %v20142_v47  ;;  %v14466_v59 = vand.u32 4294901760, %v13298_v56 }
  0x84   :  { %v1713_v38 = vand.u32 4294901760, %v1712_v48  ;;  %21546 = vst [vmem:[#allocation171_spill] sm:$0xff] %v14461_v37  ;;  %1292 = vmatprep.mubr.f32.mxu1 %v1291_v34  ;;  %v13309_v7 = vld [vmem:[#allocation2 + $0x188] ss:$28 sps:$4 sm:$0xff]   ;;  %v1311_v48 = vsub.f32 %v14441_v62, %v20145_v2  ;;  %v14473_v50 = vsub.f32 %v13299_v21, %v14461_v37  ;;  %v14475_v14 = vand.u32 4294901760, %v13301_v58 }
  0x85   :  { %v1297_v23 = vand.u32 4294901760, %v1296_v61  ;;  %v1720_v13 = vand.u32 4294901760, %v1719_v33  ;;  %21547 = vst [vmem:[#allocation172_spill] sm:$0xff] %v14466_v59  ;;  %4540 = vmatmul.mubr.f32.gmra.mrb[2].mxu0 %v14398_v49  ;;  %v14477_v34 = vand.u32 4294901760, %v13303_v16  ;;  %v13307_v61 = vld [vmem:[#allocation2 + $0x124] ss:$28 sps:$4 sm:$0xff]   ;;  %v21551_v33 = vpack.c.bf16 %v13801_v45, %v13796_v44 }
  0x86   :  { %21548 = vst [vmem:[#allocation173_spill] sm:$0xff] %v14473_v50  ;;  %21549 = vst [vmem:[#allocation174_spill] sm:$0xff] %v14475_v14  ;;  %4545 = vmatprep.mubr.f32.mxu0 %v14409_v53  ;;  %v1306_v56 = vand.u32 4294901760, %v1305_v12  ;;  %v14485_v2 = vand.u32 4294901760, %v13305_v52  ;;  %v13310_v21 = vld [vmem:[#allocation2 + $0x120] ss:$28 sps:$4 sm:$0xff]   ;;  %v21558_v20 = vpack.c.bf16 %v13842_v5, %v13834_v63 }
  0x87   :  { %21550 = vst [vmem:[#allocation175_spill] sm:$0xff] %v14477_v34  ;;  %11672 = vmatpush1.bf16.msra.mxu0 %v21551_v33  ;;  %v11332_v47 = vpack.c.bf16 %v1720_v13, %v1713_v38  ;;  %1298 = vmatmul.mubr.f32.gmra.mrb[8].mxu1 %v1297_v23  ;;  %v1312_v58 = vand.u32 4294901760, %v1311_v48  ;;  %v20151_v62 = vand.u32 4294901760, %v14473_v50  ;;  %v14490_v37 = vsub.f32 %v13303_v16, %v14477_v34  ;;  %v13311_v45 = vld [vmem:[#allocation2 + $0x1c4] ss:$28 sps:$4 sm:$0xff]  }
  0x88   :  { %21552 = vst [vmem:[#allocation176_spill] sm:$0xff] %v14485_v2  ;;  %11673 = vmatprep.subr.bf16.mxu0 %v21411_v40  ;;  %v14492_v33 = vand.u32 4294901760, %v13304_v32  ;;  %1307 = vmatprep.mubr.f32.mxu1 %v1306_v56  ;;  %v14495_v38 = vsub.f32 %v13305_v52, %v14485_v2  ;;  %v14497_v12 = vand.u32 4294901760, %v13309_v7  ;;  %v20157_v23 = vand.u32 4294901760, %v13753_v19  ;;  %v13313_v48 = vld [vmem:[#allocation2 + $0x15c] ss:$28 sps:$4 sm:$0xff]  }
  0x89   :  { %21553 = vst [vmem:[#allocation177_spill] sm:$0xff] %v14490_v37  ;;  %11333 = vmatpush1.bf16.msra.mxu1 %v11332_v47  ;;  %4547 = vmatmul.mubr.f32.gmra.mrb[4].mxu0 %v14418_v36  ;;  %v1320_v16 = vsub.f32 %v14473_v50, %v20151_v62  ;;  %v14507_v47 = vand.u32 4294901760, %v13307_v61  ;;  %v13315_v56 = vld [vmem:[#allocation2 + $0x1c0] ss:$28 sps:$4 sm:$0xff]   ;;  %v21560_v32 = vand.u32 4294901760, %v13761_v24  ;;  %v21561_v5 = vand.u32 4294901760, %v14490_v37 }
  0x8a   :  { %21554 = vst [vmem:[#allocation178_spill] sm:$0xff] %v14492_v33  ;;  %21555 = vst [vmem:[#allocation179_spill] sm:$0xff] %v14495_v38  ;;  %11334 = vmatprep.subr.bf16.mxu1 %v21411_v40  ;;  %4552 = vmatprep.mubr.f32.mxu0 %v14438_v22  ;;  %v14517_v62 = vsub.f32 %v13309_v7, %v14497_v12  ;;  %v1726_v61 = vsub.f32 %v13753_v19, %v20157_v23  ;;  %v13316_v50 = vld [vmem:[#allocation2 + $0x158] ss:$28 sps:$4 sm:$0xff]   ;;  %v14529_v63 = vand.u32 4294901760, %v13310_v21 }
  0x8b   :  { %21556 = vst [vmem:[#allocation180_spill] sm:$0xff] %v14497_v12  ;;  %21557 = vst [vmem:[#allocation181_spill] sm:$0xff] %v14507_v47  ;;  %11675 = vmatpush1.bf16.msra.mxu0 %v21558_v20  ;;  %v1733_v52 = vsub.f32 %v13761_v24, %v21560_v32  ;;  %1313 = vmatmul.mubr.f32.gmra.mrb[10].mxu1 %v1312_v58  ;;  %v1321_v20 = vand.u32 4294901760, %v1320_v16  ;;  %v1326_v13 = vsub.f32 %v14490_v37, %v21561_v5  ;;  %v13317_v44 = vld [vmem:[#allocation2 + $0x1fc] ss:$28 sps:$4 sm:$0xff]  }
  0x8c   :  { %21559 = vst [vmem:[#allocation182_spill] sm:$0xff] %v14517_v62  ;;  %11676 = vmatprep.subr.bf16.mxu0 %v21411_v40  ;;  %21562 = vst [vmem:[#allocation183_spill] sm:$0xff] %v14529_v63  ;;  %v14531_v7 = vand.u32 4294901760, %v13311_v45  ;;  %v21564_v23 = vand.u32 4294901760, %v14495_v38  ;;  %v20171_v32 = vand.u32 4294901760, %v14517_v62  ;;  %v1727_v2 = vand.u32 4294901760, %v1726_v61 }
  0x8d   :  { %v1734_v58 = vand.u32 4294901760, %v1733_v52  ;;  %v13321_v34 = vld [vmem:[#allocation2 + $0x1f8] ss:$28 sps:$4 sm:$0xff]   ;;  %4554 = vmatmul.mubr.f32.gmra.mrb[6].mxu0 %v14466_v59  ;;  %1322 = vmatprep.mubr.f32.mxu1 %v1321_v20  ;;  %v1327_v16 = vand.u32 4294901760, %v1326_v13  ;;  %v14541_v21 = vand.u32 4294901760, %v13313_v48  ;;  %v14543_v37 = vand.u32 4294901760, %v13315_v56 }
  0x8e   :  { %21563 = vst [vmem:[#allocation184_spill] sm:$0xff] %v14531_v7  ;;  %v1335_v12 = vsub.f32 %v14495_v38, %v21564_v23  ;;  %v14539_v5 = vsub.f32 %v13311_v45, %v14531_v7  ;;  %v13319_v24 = vld [vmem:[#allocation2 + $0x194] ss:$28 sps:$4 sm:$0xff]   ;;  %v21568_v23 = vpack.c.bf16 %v13884_v4, %v13876_v60  ;;  %4559 = vmatprep.mubr.f32.mxu0 %v14475_v14  ;;  %v14559_v4 = vand.u32 4294901760, %v13316_v50  ;;  %v13325_v45 = vld [vmem:[#allocation2 + $0x1cc] ss:$28 sps:$4 sm:$0xff]  }
  0x8f   :  { %21566 = vst [vmem:[#allocation186_spill] sm:$0xff] %v14541_v21  ;;  %21567 = vst [vmem:[#allocation187_spill] sm:$0xff] %v14543_v37  ;;  %v1341_v61 = vsub.f32 %v14517_v62, %v20171_v32  ;;  %v11335_v13 = vpack.c.bf16 %v1734_v58, %v1727_v2  ;;  %v13322_v48 = vld [vmem:[#allocation2 + $0x190] ss:$28 sps:$4 sm:$0xff]   ;;  %1328 = vmatmul.mubr.f32.gmra.mrb[12].mxu1 %v1327_v16  ;;  %v14563_v2 = vand.u32 4294901760, %v13321_v34  ;;  %v20182_v58 = vand.u32 4294901760, %v13765_v26 }
  0x90   :  { %21565 = vst [vmem:[#allocation185_spill] sm:$0xff] %v14539_v5  ;;  %11678 = vmatpush1.bf16.msra.mxu0 %v21568_v23  ;;  %v1336_v52 = vand.u32 4294901760, %v1335_v12  ;;  %v13323_v20 = vld [vmem:[#allocation2 + $0x234] ss:$28 sps:$4 sm:$0xff]   ;;  %v20174_v38 = vand.u32 4294901760, %v14539_v5  ;;  %v14557_v23 = vsub.f32 %v13315_v56, %v14543_v37  ;;  %21570 = vst [vmem:[#allocation189_spill] sm:$0xff] %v14559_v4 }
  0x91   :  { %11679 = vmatprep.subr.bf16.mxu0 %v21411_v40  ;;  %v14561_v12 = vand.u32 4294901760, %v13317_v44  ;;  %v1342_v32 = vand.u32 4294901760, %v1341_v61  ;;  %11336 = vmatpush1.bf16.msra.mxu1 %v11335_v13  ;;  %21572 = vst [vmem:[#allocation191_spill] sm:$0xff] %v14563_v2  ;;  %v13327_v61 = vld [vmem:[#allocation2 + $0x230] ss:$28 sps:$4 sm:$0xff]   ;;  %v21575_v13 = vpack.c.bf16 %v13905_v8, %v13900_v57  ;;  %v14583_v16 = vsub.f32 %v13321_v34, %v14563_v2 }
  0x92   :  { %21569 = vst [vmem:[#allocation188_spill] sm:$0xff] %v14557_v23  ;;  %1337 = vmatprep.mubr.f32.mxu1 %v1336_v52  ;;  %4561 = vmatmul.mubr.f32.gmra.mrb[8].mxu0 %v14492_v33  ;;  %v1350_v56 = vsub.f32 %v14539_v5, %v20174_v38  ;;  %v14576_v52 = vand.u32 4294901760, %v13319_v24  ;;  %v1740_v38 = vsub.f32 %v13765_v26, %v20182_v58  ;;  %v14591_v24 = vand.u32 4294901760, %v13323_v20  ;;  %v13328_v5 = vld [vmem:[#allocation2 + $0x1c8] ss:$28 sps:$4 sm:$0xff]  }
  0x93   :  { %21571 = vst [vmem:[#allocation190_spill] sm:$0xff] %v14561_v12  ;;  %v14573_v62 = vsub.f32 %v13317_v44, %v14561_v12  ;;  %11337 = vmatprep.subr.bf16.mxu1 %v21411_v40  ;;  %4566 = vmatprep.mubr.f32.mxu0 %v14507_v47  ;;  %21576 = vst [vmem:[#allocation194_spill] sm:$0xff] %v14583_v16  ;;  %v21577_v44 = vand.u32 4294901760, %v13768_v29  ;;  %v13329_v60 = vld [vmem:[#allocation2 + $0x26c] ss:$28 sps:$4 sm:$0xff]   ;;  %v21579_v8 = vand.u32 4294901760, %v14557_v23 }
  0x94   :  { %21574 = vst [vmem:[#allocation193_spill] sm:$0xff] %v14576_v52  ;;  %11681 = vmatpush1.bf16.msra.mxu0 %v21575_v13  ;;  %21578 = vst [vmem:[#allocation195_spill] sm:$0xff] %v14591_v24  ;;  %1343 = vmatmul.mubr.f32.gmra.mrb[14].mxu1 %v1342_v32  ;;  %v1351_v13 = vand.u32 4294901760, %v1350_v56  ;;  %v14598_v2 = vand.u32 4294901760, %v13322_v48  ;;  %v13333_v58 = vld [vmem:[#allocation2 + $0x268] ss:$28 sps:$4 sm:$0xff]   ;;  %v14602_v7 = vsub.f32 %v13323_v20, %v14591_v24 }
  0x95   :  { %21573 = vst [vmem:[#allocation192_spill] sm:$0xff] %v14573_v62  ;;  %v1747_v50 = vsub.f32 %v13768_v29, %v21577_v44  ;;  %11682 = vmatprep.subr.bf16.mxu0 %v21411_v40  ;;  %v1356_v34 = vsub.f32 %v14557_v23, %v21579_v8  ;;  %v20191_v57 = vand.u32 4294901760, %v14573_v62  ;;  %v20199_v12 = vand.u32 4294901760, %v14583_v16  ;;  %v13331_v23 = vld [vmem:[#allocation2 + $0x204] ss:$28 sps:$4 sm:$0xff]  }
  0x96   :  { %21580 = vst [vmem:[#allocation196_spill] sm:$0xff] %v14598_v2  ;;  %v1741_v44 = vand.u32 4294901760, %v1740_v38  ;;  %21581 = vst [vmem:[#allocation197_spill] sm:$0xff] %v14602_v7  ;;  %4568 = vmatmul.mubr.f32.gmra.mrb[10].mxu0 %v14529_v63  ;;  %1352 = vmatprep.mubr.f32.mxu1 %v1351_v13  ;;  %v11689_v48 = vpack.c.bf16 %v14016_v35, %v14011_v42  ;;  %v14610_v56 = vand.u32 4294901760, %v13327_v61  ;;  %v20198_v13 = vand.u32 4294901760, %v14602_v7 }
  0x97   :  { %v1748_v37 = vand.u32 4294901760, %v1747_v50  ;;  %v1357_v32 = vand.u32 4294901760, %v1356_v34  ;;  %v1365_v8 = vsub.f32 %v14573_v62, %v20191_v57  ;;  %v21583_v38 = vpack.c.bf16 %v13951_v10, %v13942_v27  ;;  %4573 = vmatprep.mubr.f32.mxu0 %v14541_v21  ;;  %v13334_v57 = vld [vmem:[#allocation2 + $0x200] ss:$28 sps:$4 sm:$0xff]  }
  0x98   :  { %21582 = vst [vmem:[#allocation198_spill] sm:$0xff] %v14610_v56  ;;  %v1371_v20 = vsub.f32 %v14583_v16, %v20199_v12  ;;  %v14620_v34 = vand.u32 4294901760, %v13325_v45  ;;  %v13335_v62 = vld [vmem:[#allocation2 + $0x2a4] ss:$28 sps:$4 sm:$0xff]   ;;  %v14624_v42 = vsub.f32 %v13327_v61, %v14610_v56  ;;  %v14628_v10 = vand.u32 4294901760, %v13329_v60 }
  0x99   :  { %11684 = vmatpush1.bf16.msra.mxu0 %v21583_v38  ;;  %v11338_v50 = vpack.c.bf16 %v1748_v37, %v1741_v44  ;;  %1358 = vmatmul.mubr.f32.gmra.mrb[16].mxu1 %v1357_v32  ;;  %v1366_v35 = vand.u32 4294901760, %v1365_v8  ;;  %v14626_v38 = vand.u32 4294901760, %v13328_v5  ;;  %v1380_v37 = vsub.f32 %v14602_v7, %v20198_v13  ;;  %v13339_v32 = vld [vmem:[#allocation2 + $0x2a0] ss:$28 sps:$4 sm:$0xff]   ;;  %v13340_v7 = vld [vmem:[#allocation2 + $0x238] ss:$28 sps:$4 sm:$0xff]  }
  0x9a   :  { %21584 = vst [vmem:[#allocation199_spill] sm:$0xff] %v14620_v34  ;;  %11685 = vmatprep.subr.bf16.mxu0 %v21411_v40  ;;  %21585 = vst [vmem:[#allocation200_spill] sm:$0xff] %v14624_v42  ;;  %v1372_v27 = vand.u32 4294901760, %v1371_v20  ;;  %v11692_v45 = vpack.c.bf16 %v14057_v0, %v14050_v41  ;;  %v14635_v44 = vand.u32 4294901760, %v13333_v58  ;;  %4575 = vmatmul.mubr.f32.gmra.mrb[12].mxu0 %v14559_v4  ;;  %v14648_v12 = vand.u32 4294901760, %v13331_v23 }
  0x9b   :  { %21586 = vst [vmem:[#allocation201_spill] sm:$0xff] %v14626_v38  ;;  %21587 = vst [vmem:[#allocation202_spill] sm:$0xff] %v14628_v10  ;;  %11339 = vmatpush1.bf16.msra.mxu1 %v11338_v50  ;;  %1367 = vmatprep.mubr.f32.mxu1 %v1366_v35  ;;  %v14640_v61 = vsub.f32 %v13329_v60, %v14628_v10  ;;  %v21590_v50 = vpack.c.bf16 %v13993_v25, %v13979_v1  ;;  %v1381_v13 = vand.u32 4294901760, %v1380_v37  ;;  %v13337_v5 = vld [vmem:[#allocation2 + $0x23c] ss:$28 sps:$4 sm:$0xff]  }
  0x9c   :  { %21588 = vst [vmem:[#allocation203_spill] sm:$0xff] %v14635_v44  ;;  %4580 = vmatprep.mubr.f32.mxu0 %v14576_v52  ;;  %21591 = vst [vmem:[#allocation205_spill] sm:$0xff] %v14648_v12  ;;  %v14651_v35 = vsub.f32 %v13333_v58, %v14635_v44  ;;  %v21593_v20 = vand.u32 4294901760, %v14624_v42  ;;  %v21594_v23 = vand.u32 4294901760, %v13785_v39  ;;  %v21595_v58 = vand.u32 4294901760, %v13791_v43  ;;  %11340 = vmatprep.subr.bf16.mxu1 %v21411_v40 }
  0x9d   :  { %21589 = vst [vmem:[#allocation204_spill] sm:$0xff] %v14640_v61  ;;  %11687 = vmatpush1.bf16.msra.mxu0 %v21590_v50  ;;  %1373 = vmatmul.mubr.f32.gmra.mrb[18].mxu1 %v1372_v27  ;;  %v13341_v60 = vld [vmem:[#allocation2 + $0x2dc] ss:$28 sps:$4 sm:$0xff]   ;;  %v14668_v0 = vand.u32 4294901760, %v13334_v57  ;;  %v14670_v41 = vand.u32 4294901760, %v13335_v62  ;;  %v14685_v44 = vand.u32 4294901760, %v13337_v5 }
  0x9e   :  { %21592 = vst [vmem:[#allocation206_spill] sm:$0xff] %v14651_v35  ;;  %11688 = vmatprep.subr.bf16.mxu0 %v21411_v40  ;;  %v1386_v50 = vsub.f32 %v14624_v42, %v21593_v20  ;;  %v1754_v37 = vsub.f32 %v13785_v39, %v21594_v23  ;;  %v1761_v16 = vsub.f32 %v13791_v43, %v21595_v58  ;;  %v20216_v27 = vand.u32 4294901760, %v14651_v35  ;;  %v13345_v8 = vld [vmem:[#allocation2 + $0x2d8] ss:$28 sps:$4 sm:$0xff]   ;;  %v13346_v56 = vld [vmem:[#allocation2 + $0x270] ss:$28 sps:$4 sm:$0xff]  }
  0x9f   :  { %1382 = vmatprep.mubr.f32.mxu1 %v1381_v13  ;;  %21596 = vst [vmem:[#allocation207_spill] sm:$0xff] %v14668_v0  ;;  %21597 = vst [vmem:[#allocation208_spill] sm:$0xff] %v14670_v41  ;;  %v14672_v20 = vand.u32 4294901760, %v13339_v32  ;;  %4582 = vmatmul.mubr.f32.gmra.mrb[14].mxu0 %v14598_v2  ;;  %v21599_v42 = vand.u32 4294901760, %v14640_v61  ;;  %v14683_v1 = vsub.f32 %v13335_v62, %v14670_v41  ;;  %v13343_v10 = vld [vmem:[#allocation2 + $0x274] ss:$28 sps:$4 sm:$0xff]  }
  0xa0   :  { %v1387_v23 = vand.u32 4294901760, %v1386_v50  ;;  %v1755_v25 = vand.u32 4294901760, %v1754_v37  ;;  %v1762_v13 = vand.u32 4294901760, %v1761_v16  ;;  %4587 = vmatprep.mubr.f32.mxu0 %v14620_v34  ;;  %v1401_v57 = vsub.f32 %v14651_v35, %v20216_v27  ;;  %21601 = vst [vmem:[#allocation211_spill] sm:$0xff] %v14685_v44  ;;  %v13347_v27 = vld [vmem:[#allocation2 + $0x314] ss:$28 sps:$4 sm:$0xff]  }
  0xa1   :  { %21598 = vst [vmem:[#allocation209_spill] sm:$0xff] %v14672_v20  ;;  %v1395_v58 = vsub.f32 %v14640_v61, %v21599_v42  ;;  %11690 = vmatpush1.bf16.msra.mxu0 %v11689_v48  ;;  %21600 = vst [vmem:[#allocation210_spill] sm:$0xff] %v14683_v1  ;;  %v14688_v50 = vsub.f32 %v13339_v32, %v14672_v20  ;;  %v14691_v48 = vand.u32 4294901760, %v13340_v7  ;;  %v14693_v37 = vand.u32 4294901760, %v13341_v60  ;;  %v13351_v7 = vld [vmem:[#allocation2 + $0x310] ss:$28 sps:$4 sm:$0xff]  }
  0xa2   :  { %1388 = vmatmul.mubr.f32.gmra.mrb[20].mxu1 %v1387_v23  ;;  %11691 = vmatprep.subr.bf16.mxu0 %v21411_v40  ;;  %v11341_v16 = vpack.c.bf16 %v1762_v13, %v1755_v25  ;;  %v1402_v35 = vand.u32 4294901760, %v1401_v57  ;;  %v20221_v62 = vand.u32 4294901760, %v14683_v1  ;;  %v14703_v25 = vand.u32 4294901760, %v13345_v8  ;;  %v13349_v13 = vld [vmem:[#allocation2 + $0x2ac] ss:$28 sps:$4 sm:$0xff]  }
  0xa3   :  { %21602 = vst [vmem:[#allocation212_spill] sm:$0xff] %v14688_v50  ;;  %v1396_v42 = vand.u32 4294901760, %v1395_v58  ;;  %21603 = vst [vmem:[#allocation213_spill] sm:$0xff] %v14691_v48  ;;  %v20224_v5 = vand.u32 4294901760, %v14688_v50  ;;  %4589 = vmatmul.mubr.f32.gmra.mrb[16].mxu0 %v14626_v38  ;;  %v14701_v23 = vsub.f32 %v13341_v60, %v14693_v37  ;;  %v14714_v60 = vand.u32 4294901760, %v13343_v10 }
  0xa4   :  { %21604 = vst [vmem:[#allocation214_spill] sm:$0xff] %v14693_v37  ;;  %21606 = vst [vmem:[#allocation216_spill] sm:$0xff] %v14703_v25  ;;  %4594 = vmatprep.mubr.f32.mxu0 %v14648_v12  ;;  %v1410_v57 = vsub.f32 %v14683_v1, %v20221_v62  ;;  %v13352_v61 = vld [vmem:[#allocation2 + $0x2a8] ss:$28 sps:$4 sm:$0xff]   ;;  %v14721_v58 = vsub.f32 %v13345_v8, %v14703_v25  ;;  %v21609_v62 = vand.u32 4294901760, %v13810_v51  ;;  %v21610_v10 = vand.u32 4294901760, %v13815_v55 }
  0xa5   :  { %1397 = vmatprep.mubr.f32.mxu1 %v1396_v42  ;;  %21605 = vst [vmem:[#allocation215_spill] sm:$0xff] %v14701_v23  ;;  %11693 = vmatpush1.bf16.msra.mxu0 %v11692_v45  ;;  %v1416_v42 = vsub.f32 %v14688_v50, %v20224_v5  ;;  %21607 = vst [vmem:[#allocation217_spill] sm:$0xff] %v14714_v60  ;;  %v13353_v50 = vld [vmem:[#allocation2 + $0x34c] ss:$28 sps:$4 sm:$0xff]   ;;  %v14731_v20 = vand.u32 4294901760, %v13347_v27  ;;  %v21613_v8 = vand.u32 4294901760, %v14701_v23 }
  0xa6   :  { %1403 = vmatmul.mubr.f32.gmra.mrb[22].mxu1 %v1402_v35  ;;  %11694 = vmatprep.subr.bf16.mxu0 %v21411_v40  ;;  %21608 = vst [vmem:[#allocation218_spill] sm:$0xff] %v14721_v58  ;;  %v1768_v1 = vsub.f32 %v13810_v51, %v21609_v62  ;;  %v1775_v5 = vsub.f32 %v13815_v55, %v21610_v10  ;;  %v1411_v32 = vand.u32 4294901760, %v1410_v57  ;;  %v14729_v35 = vand.u32 4294901760, %v13346_v56  ;;  %v13355_v45 = vld [vmem:[#allocation2 + $0x2e4] ss:$28 sps:$4 sm:$0xff]  }
  0xa7   :  { %11342 = vmatpush1.bf16.msra.mxu1 %v11341_v16  ;;  %v1417_v37 = vand.u32 4294901760, %v1416_v42  ;;  %21612 = vst [vmem:[#allocation220_spill] sm:$0xff] %v14731_v20  ;;  %v13357_v41 = vld [vmem:[#allocation2 + $0x348] ss:$28 sps:$4 sm:$0xff]   ;;  %4596 = vmatmul.mubr.f32.gmra.mrb[18].mxu0 %v14668_v0  ;;  %v1425_v62 = vsub.f32 %v14701_v23, %v21613_v8  ;;  %v20242_v10 = vand.u32 4294901760, %v14721_v58  ;;  %v21614_v56 = vpack.c.bf16 %v14101_v46, %v14087_v28 }
  0xa8   :  { %21611 = vst [vmem:[#allocation219_spill] sm:$0xff] %v14729_v35  ;;  %11343 = vmatprep.subr.bf16.mxu1 %v21411_v40  ;;  %v1769_v25 = vand.u32 4294901760, %v1768_v1  ;;  %v1776_v16 = vand.u32 4294901760, %v1775_v5  ;;  %v13358_v57 = vld [vmem:[#allocation2 + $0x2e0] ss:$28 sps:$4 sm:$0xff]   ;;  %1412 = vmatprep.mubr.f32.mxu1 %v1411_v32  ;;  %v14743_v42 = vsub.f32 %v13347_v27, %v14731_v20  ;;  %v14745_v24 = vand.u32 4294901760, %v13349_v13 }
  0xa9   :  { %11696 = vmatpush1.bf16.msra.mxu0 %v21614_v56  ;;  %v14747_v55 = vand.u32 4294901760, %v13351_v7  ;;  %v13359_v23 = vld [vmem:[#allocation2 + $0x384] ss:$28 sps:$4 sm:$0xff]   ;;  %4601 = vmatprep.mubr.f32.mxu0 %v14685_v44  ;;  %v1426_v1 = vand.u32 4294901760, %v1425_v62  ;;  %v1431_v5 = vsub.f32 %v14721_v58, %v20242_v10  ;;  %v14755_v32 = vand.u32 4294901760, %v13352_v61  ;;  %v21623_v58 = vld [vmem:[#allocation44_spill] sm:$0xff] }
  0xaa   :  { %21615 = vst [vmem:[#allocation221_spill] sm:$0xff] %v14743_v42  ;;  %21616 = vst [vmem:[#allocation222_spill] sm:$0xff] %v14745_v24  ;;  %1418 = vmatmul.mubr.f32.gmra.mrb[24].mxu1 %v1417_v37  ;;  %v14757_v27 = vand.u32 4294901760, %v13353_v50  ;;  %11697 = vmatprep.subr.bf16.mxu0 %v21411_v40  ;;  %v11344_v13 = vpack.c.bf16 %v1776_v16, %v1769_v25  ;;  %v20250_v56 = vand.u32 4294901760, %v14743_v42  ;;  %v14764_v46 = vand.u32 4294901760, %v13357_v41  ;;  %v21634_v20 = vld [vmem:[#allocation127_spill] sm:$0xff] }
  0xab   :  { %21617 = vst [vmem:[#allocation223_spill] sm:$0xff] %v14747_v55  ;;  %21618 = vst [vmem:[#allocation224_spill] sm:$0xff] %v14755_v32  ;;  %v14762_v8 = vsub.f32 %v13351_v7, %v14747_v55  ;;  %v13363_v37 = vld [vmem:[#allocation2 + $0x380] ss:$28 sps:$4 sm:$0xff]   ;;  %4603 = vmatmul.mubr.f32.gmra.mrb[20].mxu0 %v14691_v48  ;;  %1427 = vmatprep.mubr.f32.mxu1 %v1426_v1  ;;  %v1432_v62 = vand.u32 4294901760, %v1431_v5  ;;  %v21624_v7 = vpack.c.bf16 %v14124_v11, %v14119_v15 }
  0xac   :  { %21619 = vst [vmem:[#allocation225_spill] sm:$0xff] %v14757_v27  ;;  %21621 = vst [vmem:[#allocation227_spill] sm:$0xff] %v14764_v46  ;;  %v14768_v61 = vsub.f32 %v13353_v50, %v14757_v27  ;;  %v13361_v25 = vld [vmem:[#allocation2 + $0x31c] ss:$28 sps:$4 sm:$0xff]   ;;  %4608 = vmatprep.mubr.f32.mxu0 %v14714_v60  ;;  %v1440_v1 = vsub.f32 %v14743_v42, %v20250_v56  ;;  %v14780_v50 = vand.u32 4294901760, %v13355_v45  ;;  %v21628_v27 = vand.u32 4294901760, %v21623_v58 }
  0xad   :  { %21620 = vst [vmem:[#allocation226_spill] sm:$0xff] %v14762_v8  ;;  %v13364_v16 = vld [vmem:[#allocation2 + $0x318] ss:$28 sps:$4 sm:$0xff]   ;;  %11699 = vmatpush1.bf16.msra.mxu0 %v21624_v7  ;;  %v14783_v10 = vsub.f32 %v13357_v41, %v14764_v46  ;;  %v21627_v7 = vand.u32 4294901760, %v13844_v6  ;;  %v14793_v5 = vand.u32 4294901760, %v13358_v57  ;;  %11345 = vmatpush1.bf16.msra.mxu1 %v11344_v13  ;;  %v21630_v41 = vand.u32 4294901760, %v14762_v8 }
  0xae   :  { %21622 = vst [vmem:[#allocation228_spill] sm:$0xff] %v14768_v61  ;;  %21625 = vst [vmem:[#allocation229_spill] sm:$0xff] %v14780_v50  ;;  %v13365_v28 = vld [vmem:[#allocation2 + $0x3bc] ss:$28 sps:$4 sm:$0xff]   ;;  %1433 = vmatmul.mubr.f32.gmra.mrb[26].mxu1 %v1432_v62  ;;  %11700 = vmatprep.subr.bf16.mxu0 %v21411_v40  ;;  %v1789_v56 = vsub.f32 %v21623_v58, %v21628_v27  ;;  %v1441_v45 = vand.u32 4294901760, %v1440_v1  ;;  %v14799_v46 = vand.u32 4294901760, %v13359_v23 }
  0xaf   :  { %21626 = vst [vmem:[#allocation230_spill] sm:$0xff] %v14783_v10  ;;  %v1782_v15 = vsub.f32 %v13844_v6, %v21627_v7  ;;  %21629 = vst [vmem:[#allocation231_spill] sm:$0xff] %v14793_v5  ;;  %v1446_v62 = vsub.f32 %v14762_v8, %v21630_v41  ;;  %v13367_v11 = vld [vmem:[#allocation2 + $0x354] ss:$28 sps:$4 sm:$0xff]   ;;  %4610 = vmatmul.mubr.f32.gmra.mrb[22].mxu0 %v14729_v35  ;;  %v21632_v7 = vand.u32 4294901760, %v14768_v61  ;;  %11346 = vmatprep.subr.bf16.mxu1 %v21411_v40  ;;  %v21633_v1 = vld [vmem:[#allocation126_spill] sm:$0xff] }
  0xb0   :  { %21631 = vst [vmem:[#allocation232_spill] sm:$0xff] %v14799_v46  ;;  %v13369_v55 = vld [vmem:[#allocation2 + $0x3b8] ss:$28 sps:$4 sm:$0xff]   ;;  %v1790_v13 = vand.u32 4294901760, %v1789_v56  ;;  %v11707_v58 = vpack.c.bf16 %v21634_v20, %v21633_v1  ;;  %v21635_v42 = vpack.c.bf16 %v14165_v54, %v14158_v3  ;;  %1442 = vmatprep.mubr.f32.mxu1 %v1441_v45  ;;  %v21636_v6 = vand.u32 4294901760, %v14783_v10  ;;  %4615 = vmatprep.mubr.f32.mxu0 %v14745_v24  ;;  %v21643_v1 = vld [vmem:[#allocation133_spill] sm:$0xff] }
  0xb1   :  { %v1455_v27 = vsub.f32 %v14768_v61, %v21632_v7  ;;  %v1783_v57 = vand.u32 4294901760, %v1782_v15  ;;  %v13371_v41 = vld [vmem:[#allocation2 + $0x3f4] ss:$28 sps:$4 sm:$0xff]   ;;  %v1447_v8 = vand.u32 4294901760, %v1446_v62  ;;  %v14815_v7 = vsub.f32 %v13359_v23, %v14799_v46 }
  0xb2   :  { %11702 = vmatpush1.bf16.msra.mxu0 %v21635_v42  ;;  %v1461_v51 = vsub.f32 %v14783_v10, %v21636_v6  ;;  %v14817_v61 = vand.u32 4294901760, %v13363_v37  ;;  %v14821_v20 = vand.u32 4294901760, %v13361_v25  ;;  %v14823_v42 = vand.u32 4294901760, %v13364_v16  ;;  %v13370_v10 = vld [vmem:[#allocation2 + $0x350] ss:$28 sps:$4 sm:$0xff]   ;;  %v21646_v16 = vld [vmem:[#allocation49_spill] sm:$0xff] }
  0xb3   :  { %21637 = vst [vmem:[#allocation233_spill] sm:$0xff] %v14815_v7  ;;  %11703 = vmatprep.subr.bf16.mxu0 %v21411_v40  ;;  %v1456_v15 = vand.u32 4294901760, %v1455_v27  ;;  %v11347_v56 = vpack.c.bf16 %v1790_v13, %v1783_v57  ;;  %1448 = vmatmul.mubr.f32.gmra.mrb[28].mxu1 %v1447_v8  ;;  %v20273_v62 = vand.u32 4294901760, %v14815_v7  ;;  %v14829_v23 = vand.u32 4294901760, %v13365_v28  ;;  %v21644_v27 = vld [vmem:[#allocation135_spill] sm:$0xff]  ;;  %v21647_v8 = vld [vmem:[#allocation52_spill] sm:$0xff] }
  0xb4   :  { %21638 = vst [vmem:[#allocation234_spill] sm:$0xff] %v14817_v61  ;;  %21639 = vst [vmem:[#allocation235_spill] sm:$0xff] %v14821_v20  ;;  %v1462_v45 = vand.u32 4294901760, %v1461_v51  ;;  %v14827_v6 = vsub.f32 %v13363_v37, %v14817_v61  ;;  %4617 = vmatmul.mubr.f32.gmra.mrb[24].mxu0 %v14755_v32  ;;  %v11710_v57 = vpack.c.bf16 %v21644_v27, %v21643_v1  ;;  %v14834_v25 = vand.u32 4294901760, %v13369_v55  ;;  %v13373_v54 = vld [vmem:[#allocation2 + $0x3f0] ss:$28 sps:$4 sm:$0xff]  }
  0xb5   :  { %21640 = vst [vmem:[#allocation236_spill] sm:$0xff] %v14823_v42  ;;  %21642 = vst [vmem:[#allocation238_spill] sm:$0xff] %v14829_v23  ;;  %1457 = vmatprep.mubr.f32.mxu1 %v1456_v15  ;;  %v21648_v37 = vpack.c.bf16 %v14209_v30, %v14195_v31  ;;  %4622 = vmatprep.mubr.f32.mxu0 %v14780_v50  ;;  %v1470_v15 = vsub.f32 %v14815_v7, %v20273_v62  ;;  %v14849_v1 = vand.u32 4294901760, %v13367_v11  ;;  %v13374_v13 = vld [vmem:[#allocation2 + $0x42c] ss:$28 sps:$4 sm:$0xff]  }
  0xb6   :  { %21641 = vst [vmem:[#allocation237_spill] sm:$0xff] %v14827_v6  ;;  %21645 = vst [vmem:[#allocation239_spill] sm:$0xff] %v14834_v25  ;;  %v14847_v27 = vsub.f32 %v13365_v28, %v14829_v23  ;;  %11348 = vmatpush1.bf16.msra.mxu1 %v11347_v56  ;;  %v14853_v51 = vsub.f32 %v13369_v55, %v14834_v25  ;;  %v21653_v62 = vand.u32 4294901760, %v21647_v8  ;;  %v14861_v7 = vand.u32 4294901760, %v13371_v41  ;;  %v21656_v55 = vld [vmem:[#allocation143_spill] sm:$0xff] }
  0xb7   :  { %11705 = vmatpush1.bf16.msra.mxu0 %v21648_v37  ;;  %21650 = vst [vmem:[#allocation241_spill] sm:$0xff] %v14849_v1  ;;  %v21652_v37 = vand.u32 4294901760, %v21646_v16  ;;  %1463 = vmatmul.mubr.f32.gmra.mrb[30].mxu1 %v1462_v45  ;;  %v1471_v28 = vand.u32 4294901760, %v1470_v15  ;;  %v21655_v11 = vand.u32 4294901760, %v14827_v6  ;;  %v21657_v25 = vld [vmem:[#allocation147_spill] sm:$0xff]  ;;  %v14900_v39 = vand.u32 4294901760, %v13374_v13 }
  0xb8   :  { %21649 = vst [vmem:[#allocation240_spill] sm:$0xff] %v14847_v27  ;;  %11706 = vmatprep.subr.bf16.mxu0 %v21411_v40  ;;  %21651 = vst [vmem:[#allocation242_spill] sm:$0xff] %v14853_v51  ;;  %v1803_v3 = vsub.f32 %v21647_v8, %v21653_v62  ;;  %v20288_v31 = vand.u32 4294901760, %v14847_v27  ;;  %11349 = vmatprep.subr.bf16.mxu1 %v21411_v40  ;;  %v11713_v23 = vpack.c.bf16 %v21657_v25, %v21656_v55  ;;  %v13377_v15 = vld [vmem:[#allocation2 + $0x464] ss:$28 sps:$4 sm:$0xff]  }
  0xb9   :  { %v1796_v30 = vsub.f32 %v21646_v16, %v21652_v37  ;;  %21654 = vst [vmem:[#allocation243_spill] sm:$0xff] %v14861_v7  ;;  %v1476_v56 = vsub.f32 %v14827_v6, %v21655_v11  ;;  %v13376_v37 = vld [vmem:[#allocation2 + $0x428] ss:$28 sps:$4 sm:$0xff]   ;;  %4624 = vmatmul.mubr.f32.gmra.mrb[26].mxu0 %v14793_v5  ;;  %v20298_v62 = vand.u32 4294901760, %v14853_v51  ;;  %v14873_v45 = vsub.f32 %v13371_v41, %v14861_v7  ;;  %v21666_v7 = vld [vmem:[#allocation12_spill] sm:$0xff] }
  0xba   :  { %v1804_v46 = vand.u32 4294901760, %v1803_v3  ;;  %1472 = vmatprep.mubr.f32.mxu1 %v1471_v28  ;;  %v1485_v6 = vsub.f32 %v14847_v27, %v20288_v31  ;;  %v14878_v8 = vand.u32 4294901760, %v13370_v10  ;;  %v14880_v25 = vand.u32 4294901760, %v13373_v54  ;;  %4629 = vmatprep.mubr.f32.mxu0 %v14821_v20  ;;  %v13589_v41 = vld [vmem:[#allocation2 + $0xc] ss:$28 sps:$4 sm:$0xff]   ;;  %v21661_v28 = vld [vmem:[#allocation145_spill] sm:$0xff] }
  0xbb   :  { %v1797_v61 = vand.u32 4294901760, %v1796_v30  ;;  %21658 = vst [vmem:[#allocation244_spill] sm:$0xff] %v14873_v45  ;;  %11708 = vmatpush1.bf16.msra.mxu0 %v11707_v58  ;;  %v1477_v11 = vand.u32 4294901760, %v1476_v56  ;;  %v1491_v3 = vsub.f32 %v14853_v51, %v20298_v62  ;;  %v20299_v58 = vand.u32 4294901760, %v14873_v45  ;;  %v21664_v27 = vld [vmem:[#allocation11_spill] sm:$0xff]  ;;  %21669 = vst [vmem:[#allocation12_spill] sm:$0xff] %v14900_v39 }
  0xbc   :  { %21659 = vst [vmem:[#allocation245_spill] sm:$0xff] %v14878_v8  ;;  %21660 = vst [vmem:[#allocation246_spill] sm:$0xff] %v14880_v25  ;;  %11709 = vmatprep.subr.bf16.mxu0 %v21411_v40  ;;  %v14889_v56 = vsub.f32 %v13589_v41, %v21661_v28  ;;  %v1486_v10 = vand.u32 4294901760, %v1485_v6  ;;  %v14892_v31 = vsub.f32 %v13373_v54, %v14880_v25  ;;  %v21665_v55 = vand.u32 4294901760, %v21664_v27  ;;  %v21671_v54 = vld [vmem:[#allocation57_spill] sm:$0xff] }
  0xbd   :  { %v11350_v30 = vpack.c.bf16 %v1804_v46, %v1797_v61  ;;  %1478 = vmatmul.mubr.f32.gmra.mrb[32].mxu1 %v1477_v11  ;;  %v21667_v16 = vand.u32 4294901760, %v21666_v7  ;;  %4631 = vmatmul.mubr.f32.gmra.mrb[28].mxu0 %v14823_v42  ;;  %v1492_v46 = vand.u32 4294901760, %v1491_v3  ;;  %v1500_v61 = vsub.f32 %v14873_v45, %v20299_v58  ;;  %v13379_v41 = vld [vmem:[#allocation2 + $0x460] ss:$28 sps:$4 sm:$0xff]   ;;  %v13382_v7 = vld [vmem:[#allocation2 + $0x498] ss:$28 sps:$4 sm:$0xff]  }
  0xbe   :  { %21662 = vst [vmem:[#allocation247_spill] sm:$0xff] %v14889_v56  ;;  %21663 = vst [vmem:[#allocation248_spill] sm:$0xff] %v14892_v31  ;;  %v14906_v6 = vand.u32 4294901760, %v13376_v37  ;;  %v20306_v11 = vand.u32 4294901760, %v21671_v54  ;;  %1487 = vmatprep.mubr.f32.mxu1 %v1486_v10  ;;  %v14911_v27 = vsub.f32 %v13374_v13, %v14900_v39  ;;  %v21674_v3 = vld [vmem:[#allocation60_spill] sm:$0xff]  ;;  %4636 = vmatprep.mubr.f32.mxu0 %v14849_v1  ;;  %v14925_v10 = vand.u32 4294901760, %v13377_v15 }
  0xbf   :  { %v14898_v43 = vpack.c.bf16 %v21667_v16, %v21665_v55  ;;  %11351 = vmatpush1.bf16.msra.mxu1 %v11350_v30  ;;  %11711 = vmatpush1.bf16.msra.mxu0 %v11710_v57  ;;  %v13590_v16 = vld [vmem:[#allocation2 + $0x44] ss:$28 sps:$4 sm:$0xff]   ;;  %v13380_v62 = vld [vmem:[#allocation2 + $0x49c] ss:$28 sps:$4 sm:$0xff]   ;;  %v1501_v58 = vand.u32 4294901760, %v1500_v61  ;;  %v21678_v61 = vand.u32 4294901760, %v21674_v3 }
  0xc0   :  { %21670 = vst [vmem:[#allocation249_spill] sm:$0xff] %v14906_v6  ;;  %21672 = vst [vmem:[#allocation250_spill] sm:$0xff] %v14911_v27  ;;  %v14914_v55 = vsub.f32 %v13590_v16, %v14386_v9  ;;  %11712 = vmatprep.subr.bf16.mxu0 %v21411_v40  ;;  %v14920_v57 = vsub.f32 %v13376_v37, %v14906_v6  ;;  %v1810_v13 = vsub.f32 %v21671_v54, %v20306_v11  ;;  %v13591_v45 = vld [vmem:[#allocation2 + $0x40] ss:$28 sps:$4 sm:$0xff]   ;;  %v21688_v39 = vld [vmem:[#allocation18_spill] sm:$0xff] }
  0xc1   :  { %21668 = vst [vmem:[#allocation11_spill] sm:$0xff] %v14898_v43  ;;  %21676 = vst [vmem:[#allocation253_spill] sm:$0xff] %v14925_v10  ;;  %1493 = vmatmul.mubr.f32.gmra.mrb[34].mxu1 %v1492_v46  ;;  %v21677_v16 = vand.u32 4294901760, %v14892_v31  ;;  %11352 = vmatprep.subr.bf16.mxu1 %v21411_v40  ;;  %v1817_v37 = vsub.f32 %v21674_v3, %v21678_v61  ;;  %v14936_v51 = vsub.f32 %v13591_v45, %v14398_v49  ;;  %v13592_v6 = vld [vmem:[#allocation2 + $0x7c] ss:$28 sps:$4 sm:$0xff]  }
  0xc2   :  { %21673 = vst [vmem:[#allocation251_spill] sm:$0xff] %v14914_v55  ;;  %21675 = vst [vmem:[#allocation252_spill] sm:$0xff] %v14920_v57  ;;  %4638 = vmatmul.mubr.f32.gmra.mrb[30].mxu0 %v14878_v8  ;;  %1502 = vmatprep.mubr.f32.mxu1 %v1501_v58  ;;  %v20325_v46 = vand.u32 4294901760, %v14920_v57  ;;  %v1811_v11 = vand.u32 4294901760, %v1810_v13  ;;  %v14943_v9 = vand.u32 4294901760, %v13379_v41  ;;  %v21682_v28 = vand.u32 4294901760, %v14911_v27 }
  0xc3   :  { %v1506_v30 = vsub.f32 %v14892_v31, %v21677_v16  ;;  %21679 = vst [vmem:[#allocation254_spill] sm:$0xff] %v14936_v51  ;;  %v14941_v16 = vsub.f32 %v13377_v15, %v14925_v10  ;;  %v13383_v31 = vld [vmem:[#allocation2 + $0x4d4] ss:$28 sps:$4 sm:$0xff]   ;;  %11714 = vmatpush1.bf16.msra.mxu0 %v11713_v23  ;;  %4885 = vmatprep.mubr.f32.mxu0 %v14889_v56  ;;  %v1818_v49 = vand.u32 4294901760, %v1817_v37  ;;  %v21689_v25 = vand.u32 4294901760, %v21688_v39  ;;  %v21692_v23 = vld [vmem:[#allocation153_spill] sm:$0xff] }
  0xc4   :  { %21681 = vst [vmem:[#allocation256_spill] sm:$0xff] %v14943_v9  ;;  %v1515_v45 = vsub.f32 %v14911_v27, %v21682_v28  ;;  %v14950_v58 = vsub.f32 %v13592_v6, %v14409_v53  ;;  %11715 = vmatprep.subr.bf16.mxu0 %v21411_v40  ;;  %v1521_v15 = vsub.f32 %v14920_v57, %v20325_v46  ;;  %v13385_v28 = vld [vmem:[#allocation2 + $0x4d0] ss:$28 sps:$4 sm:$0xff]   ;;  %v21686_v53 = vld [vmem:[#allocation17_spill] sm:$0xff]  ;;  %v14969_v46 = vand.u32 4294901760, %v13380_v62 }
  0xc5   :  { %21680 = vst [vmem:[#allocation255_spill] sm:$0xff] %v14941_v16  ;;  %v1507_v61 = vand.u32 4294901760, %v1506_v30  ;;  %v14958_v13 = vsub.f32 %v13379_v41, %v14943_v9  ;;  %v13593_v30 = vld [vmem:[#allocation2 + $0x78] ss:$28 sps:$4 sm:$0xff]   ;;  %v11353_v6 = vpack.c.bf16 %v1818_v49, %v1811_v11  ;;  %v21687_v27 = vand.u32 4294901760, %v21686_v53 }
  0xc6   :  { %21683 = vst [vmem:[#allocation257_spill] sm:$0xff] %v14950_v58  ;;  %v14961_v10 = vsub.f32 %v13593_v30, %v14418_v36  ;;  %v1516_v37 = vand.u32 4294901760, %v1515_v45  ;;  %21691 = vst [vmem:[#allocation18_spill] sm:$0xff] %v14969_v46  ;;  %4888 = vmatmul.mubr.f32.vlgmr.msra.gmra.mrb[0].mxu0 %v21692_v23  ;;  %v1522_v41 = vand.u32 4294901760, %v1521_v15  ;;  %v21693_v57 = vand.u32 4294901760, %v14941_v16 }
  0xc7   :  { %21684 = vst [vmem:[#allocation258_spill] sm:$0xff] %v14958_v13  ;;  %1508 = vmatmul.mubr.f32.gmra.mrb[36].mxu1 %v1507_v61  ;;  %v14967_v56 = vpack.c.bf16 %v21689_v25, %v21687_v27  ;;  %v20334_v36 = vand.u32 4294901760, %v14958_v13  ;;  %v14976_v61 = vand.u32 4294901760, %v13382_v7  ;;  %11717 = vmatpush1.bf16.msra.mxu0 %v14898_v43  ;;  %v14980_v39 = vsub.f32 %v13380_v62, %v14969_v46  ;;  %v13594_v53 = vld [vmem:[#allocation2 + $0xb4] ss:$28 sps:$4 sm:$0xff]   ;;  %v21698_v27 = vld [vmem:[#allocation68_spill] sm:$0xff] }
  0xc8   :  { %21685 = vst [vmem:[#allocation259_spill] sm:$0xff] %v14961_v10  ;;  %v1530_v30 = vsub.f32 %v14941_v16, %v21693_v57  ;;  %1517 = vmatprep.mubr.f32.mxu1 %v1516_v37  ;;  %v14983_v49 = vsub.f32 %v13594_v53, %v14438_v22  ;;  %v21697_v25 = vld [vmem:[#allocation67_spill] sm:$0xff]  ;;  %v13386_v15 = vld [vmem:[#allocation2 + $0x50c] ss:$28 sps:$4 sm:$0xff]   ;;  %4894 = vmatprep.mubr.f32.mxu0 %v14914_v55  ;;  %v14994_v16 = vand.u32 4294901760, %v13383_v31  ;;  %v15012_v43 = vand.u32 4294901760, %v13385_v28 }
  0xc9   :  { %21690 = vst [vmem:[#allocation17_spill] sm:$0xff] %v14967_v56  ;;  %21694 = vst [vmem:[#allocation260_spill] sm:$0xff] %v14976_v61  ;;  %v20339_v11 = vand.u32 4294901760, %v21697_v25  ;;  %11354 = vmatpush1.bf16.msra.mxu1 %v11353_v6  ;;  %v1536_v37 = vsub.f32 %v14958_v13, %v20334_v36  ;;  %v14992_v62 = vsub.f32 %v13382_v7, %v14976_v61  ;;  %v13388_v53 = vld [vmem:[#allocation2 + $0x508] ss:$28 sps:$4 sm:$0xff]   ;;  %11718 = vmatprep.subr.bf16.mxu0 %v21411_v40 }
  0xca   :  { %21695 = vst [vmem:[#allocation261_spill] sm:$0xff] %v14980_v39  ;;  %21696 = vst [vmem:[#allocation262_spill] sm:$0xff] %v14983_v49  ;;  %v1531_v57 = vand.u32 4294901760, %v1530_v30  ;;  %v21701_v30 = vand.u32 4294901760, %v21698_v27  ;;  %v13595_v36 = vld [vmem:[#allocation2 + $0xb0] ss:$28 sps:$4 sm:$0xff]   ;;  %4897 = vmatmul.mubr.f32.gmra.mrb[2].mxu0 %v14936_v51  ;;  %v15010_v45 = vsub.f32 %v13383_v31, %v14994_v16  ;;  %11355 = vmatprep.subr.bf16.mxu1 %v21411_v40 }
  0xcb   :  { %21699 = vst [vmem:[#allocation263_spill] sm:$0xff] %v14992_v62  ;;  %21700 = vst [vmem:[#allocation264_spill] sm:$0xff] %v14994_v16  ;;  %1523 = vmatmul.mubr.f32.gmra.mrb[38].mxu1 %v1522_v41  ;;  %v1824_v6 = vsub.f32 %v21697_v25, %v20339_v11  ;;  %v15005_v7 = vsub.f32 %v13595_v36, %v14466_v59  ;;  %v1537_v41 = vand.u32 4294901760, %v1536_v37  ;;  %v20358_v13 = vand.u32 4294901760, %v14992_v62  ;;  %v13389_v11 = vld [vmem:[#allocation2 + $0x544] ss:$28 sps:$4 sm:$0xff]  }
  0xcc   :  { %v1831_v22 = vsub.f32 %v21698_v27, %v21701_v30  ;;  %1532 = vmatprep.mubr.f32.mxu1 %v1531_v57  ;;  %21703 = vst [vmem:[#allocation266_spill] sm:$0xff] %v15010_v45  ;;  %21704 = vst [vmem:[#allocation267_spill] sm:$0xff] %v15012_v43  ;;  %4903 = vmatprep.mubr.f32.mxu0 %v14950_v58  ;;  %v21705_v30 = vand.u32 4294901760, %v14980_v39  ;;  %v13596_v57 = vld [vmem:[#allocation2 + $0xec] ss:$28 sps:$4 sm:$0xff]   ;;  %v15040_v16 = vand.u32 4294901760, %v13386_v15 }
  0xcd   :  { %21702 = vst [vmem:[#allocation265_spill] sm:$0xff] %v15005_v7  ;;  %11720 = vmatpush1.bf16.msra.mxu0 %v14967_v56  ;;  %v1825_v59 = vand.u32 4294901760, %v1824_v6  ;;  %v15020_v37 = vsub.f32 %v13596_v57, %v14475_v14  ;;  %v1551_v31 = vsub.f32 %v14992_v62, %v20358_v13  ;;  %v15028_v56 = vsub.f32 %v13385_v28, %v15012_v43  ;;  %v13391_v57 = vld [vmem:[#allocation2 + $0x540] ss:$28 sps:$4 sm:$0xff]   ;;  %v13597_v58 = vld [vmem:[#allocation2 + $0xe8] ss:$28 sps:$4 sm:$0xff]  }
  0xce   :  { %v1545_v36 = vsub.f32 %v14980_v39, %v21705_v30  ;;  %v1832_v61 = vand.u32 4294901760, %v1831_v22  ;;  %11721 = vmatprep.subr.bf16.mxu0 %v21411_v40  ;;  %v21708_v30 = vld [vmem:[#allocation27_spill] sm:$0xff]  ;;  %v21710_v22 = vld [vmem:[#allocation32_spill] sm:$0xff]  ;;  %v15038_v13 = vsub.f32 %v13597_v58, %v14492_v33  ;;  %21714 = vst [vmem:[#allocation270_spill] sm:$0xff] %v15040_v16  ;;  %4906 = vmatmul.mubr.f32.gmra.mrb[4].mxu0 %v14961_v10  ;;  %v21715_v62 = vand.u32 4294901760, %v15010_v45  ;;  %v21730_v43 = vld [vmem:[#allocation37_spill] sm:$0xff] }
  0xcf   :  { %21706 = vst [vmem:[#allocation268_spill] sm:$0xff] %v15020_v37  ;;  %21707 = vst [vmem:[#allocation269_spill] sm:$0xff] %v15028_v56  ;;  %v21709_v6 = vand.u32 4294901760, %v21708_v30  ;;  %v21711_v39 = vand.u32 4294901760, %v21710_v22  ;;  %1538 = vmatmul.mubr.f32.gmra.mrb[40].mxu1 %v1537_v41  ;;  %v1552_v28 = vand.u32 4294901760, %v1551_v31  ;;  %4912 = vmatprep.mubr.f32.mxu0 %v14983_v49  ;;  %v21719_v41 = vld [vmem:[#allocation75_spill] sm:$0xff] }
  0xd0   :  { %v1546_v14 = vand.u32 4294901760, %v1545_v36  ;;  %v11356_v9 = vpack.c.bf16 %v1832_v61, %v1825_v59  ;;  %21713 = vst [vmem:[#allocation32_spill] sm:$0xff] %v15038_v13  ;;  %v1560_v30 = vsub.f32 %v15010_v45, %v21715_v62  ;;  %v15051_v59 = vsub.f32 %v13386_v15, %v15040_v16  ;;  %v13598_v58 = vld [vmem:[#allocation2 + $0x124] ss:$28 sps:$4 sm:$0xff]   ;;  %v21720_v31 = vld [vmem:[#allocation76_spill] sm:$0xff] }
  0xd1   :  { %v15035_v46 = vpack.c.bf16 %v21711_v39, %v21709_v6  ;;  %v20365_v39 = vand.u32 4294901760, %v15028_v56  ;;  %v15047_v6 = vand.u32 4294901760, %v13388_v53  ;;  %v15054_v61 = vsub.f32 %v13598_v58, %v14507_v47  ;;  %v13392_v33 = vld [vmem:[#allocation2 + $0x57c] ss:$28 sps:$4 sm:$0xff]  }
  0xd2   :  { %1547 = vmatprep.mubr.f32.mxu1 %v1546_v14  ;;  %21717 = vst [vmem:[#allocation272_spill] sm:$0xff] %v15051_v59  ;;  %v20372_v22 = vand.u32 4294901760, %v21720_v31  ;;  %11357 = vmatpush1.bf16.msra.mxu1 %v11356_v9  ;;  %v1561_v62 = vand.u32 4294901760, %v1560_v30  ;;  %v15065_v45 = vand.u32 4294901760, %v13389_v11  ;;  %v13394_v58 = vld [vmem:[#allocation2 + $0x578] ss:$28 sps:$4 sm:$0xff]  }
  0xd3   :  { %21712 = vst [vmem:[#allocation27_spill] sm:$0xff] %v15035_v46  ;;  %21716 = vst [vmem:[#allocation271_spill] sm:$0xff] %v15047_v6  ;;  %v1566_v14 = vsub.f32 %v15028_v56, %v20365_v39  ;;  %11723 = vmatpush1.bf16.msra.mxu0 %v15035_v46  ;;  %v15063_v15 = vsub.f32 %v13388_v53, %v15047_v6  ;;  %1553 = vmatmul.mubr.f32.gmra.mrb[42].mxu1 %v1552_v28  ;;  %v21723_v9 = vand.u32 4294901760, %v21719_v41  ;;  %v13599_v56 = vld [vmem:[#allocation2 + $0x120] ss:$28 sps:$4 sm:$0xff]  }
  0xd4   :  { %21718 = vst [vmem:[#allocation273_spill] sm:$0xff] %v15054_v61  ;;  %21722 = vst [vmem:[#allocation275_spill] sm:$0xff] %v15065_v45  ;;  %11358 = vmatprep.subr.bf16.mxu1 %v21411_v40  ;;  %v1845_v39 = vsub.f32 %v21720_v31, %v20372_v22  ;;  %v15076_v53 = vsub.f32 %v13599_v56, %v14529_v63  ;;  %4915 = vmatmul.mubr.f32.gmra.mrb[6].mxu0 %v15005_v7  ;;  %v15083_v46 = vand.u32 4294901760, %v13391_v57  ;;  %v13600_v16 = vld [vmem:[#allocation2 + $0x15c] ss:$28 sps:$4 sm:$0xff]  }
  0xd5   :  { %21721 = vst [vmem:[#allocation274_spill] sm:$0xff] %v15063_v15  ;;  %v1838_v30 = vsub.f32 %v21719_v41, %v21723_v9  ;;  %1562 = vmatprep.mubr.f32.mxu1 %v1561_v62  ;;  %v1567_v28 = vand.u32 4294901760, %v1566_v14  ;;  %v20393_v36 = vand.u32 4294901760, %v15063_v15  ;;  %v15081_v47 = vsub.f32 %v13389_v11, %v15065_v45  ;;  %v13395_v9 = vld [vmem:[#allocation2 + $0x5b4] ss:$28 sps:$4 sm:$0xff]   ;;  %4921 = vmatprep.mubr.f32.mxu0 %v15020_v37 }
  0xd6   :  { %21724 = vst [vmem:[#allocation276_spill] sm:$0xff] %v15076_v53  ;;  %21726 = vst [vmem:[#allocation278_spill] sm:$0xff] %v15083_v46  ;;  %v21727_v22 = vand.u32 4294901760, %v15051_v59  ;;  %v1846_v63 = vand.u32 4294901760, %v1845_v39  ;;  %v15090_v62 = vsub.f32 %v13600_v16, %v14541_v21  ;;  %11724 = vmatprep.subr.bf16.mxu0 %v21411_v40  ;;  %v15098_v45 = vsub.f32 %v13391_v57, %v15083_v46  ;;  %v13601_v7 = vld [vmem:[#allocation2 + $0x158] ss:$28 sps:$4 sm:$0xff]  }
  0xd7   :  { %21725 = vst [vmem:[#allocation277_spill] sm:$0xff] %v15081_v47  ;;  %v1839_v56 = vand.u32 4294901760, %v1838_v30  ;;  %v1581_v11 = vsub.f32 %v15063_v15, %v20393_v36  ;;  %v20396_v14 = vand.u32 4294901760, %v15081_v47  ;;  %v21731_v37 = vand.u32 4294901760, %v21730_v43  ;;  %1568 = vmatmul.mubr.f32.gmra.mrb[44].mxu1 %v1567_v28  ;;  %v21740_v28 = vld [vmem:[#allocation83_spill] sm:$0xff] }
  0xd8   :  { %v1575_v6 = vsub.f32 %v15051_v59, %v21727_v22  ;;  %21728 = vst [vmem:[#allocation279_spill] sm:$0xff] %v15090_v62  ;;  %21729 = vst [vmem:[#allocation280_spill] sm:$0xff] %v15098_v45  ;;  %v21732_v22 = vld [vmem:[#allocation40_spill] sm:$0xff]  ;;  %v13397_v59 = vld [vmem:[#allocation2 + $0x5b0] ss:$28 sps:$4 sm:$0xff]   ;;  %v15107_v49 = vsub.f32 %v13601_v7, %v14559_v4  ;;  %v15109_v36 = vand.u32 4294901760, %v13392_v33  ;;  %4924 = vmatmul.mubr.f32.gmra.mrb[8].mxu0 %v15038_v13 }
  0xd9   :  { %v21733_v30 = vand.u32 4294901760, %v21732_v22  ;;  %v11359_v21 = vpack.c.bf16 %v1846_v63, %v1839_v56  ;;  %v1582_v57 = vand.u32 4294901760, %v1581_v11  ;;  %v1590_v43 = vsub.f32 %v15081_v47, %v20396_v14  ;;  %4930 = vmatprep.mubr.f32.mxu0 %v15054_v61  ;;  %v13602_v7 = vld [vmem:[#allocation2 + $0x194] ss:$28 sps:$4 sm:$0xff]   ;;  %v21741_v11 = vld [vmem:[#allocation84_spill] sm:$0xff] }
  0xda   :  { %v1576_v16 = vand.u32 4294901760, %v1575_v6  ;;  %21735 = vst [vmem:[#allocation40_spill] sm:$0xff] %v15107_v49  ;;  %21736 = vst [vmem:[#allocation281_spill] sm:$0xff] %v15109_v36  ;;  %v15116_v22 = vand.u32 4294901760, %v13394_v58  ;;  %v15120_v63 = vsub.f32 %v13392_v33, %v15109_v36  ;;  %v15123_v6 = vsub.f32 %v13602_v7, %v14576_v52  ;;  %v13398_v4 = vld [vmem:[#allocation2 + $0x5ec] ss:$28 sps:$4 sm:$0xff]  }
  0xdb   :  { %v15104_v39 = vpack.c.bf16 %v21733_v30, %v21731_v37  ;;  %v20399_v37 = vand.u32 4294901760, %v15098_v45  ;;  %v20406_v30 = vand.u32 4294901760, %v21741_v11  ;;  %11360 = vmatpush1.bf16.msra.mxu1 %v11359_v21  ;;  %v1591_v14 = vand.u32 4294901760, %v1590_v43  ;;  %v13400_v7 = vld [vmem:[#allocation2 + $0x5e8] ss:$28 sps:$4 sm:$0xff]  }
  0xdc   :  { %21737 = vst [vmem:[#allocation282_spill] sm:$0xff] %v15116_v22  ;;  %1577 = vmatprep.mubr.f32.mxu1 %v1576_v16  ;;  %21738 = vst [vmem:[#allocation283_spill] sm:$0xff] %v15120_v63  ;;  %v15132_v33 = vsub.f32 %v13394_v58, %v15116_v22  ;;  %v15134_v47 = vand.u32 4294901760, %v13395_v9  ;;  %11361 = vmatprep.subr.bf16.mxu1 %v21411_v40  ;;  %v21744_v21 = vand.u32 4294901760, %v21740_v28  ;;  %v15152_v15 = vand.u32 4294901760, %v13397_v59  ;;  %v21751_v36 = vld [vmem:[#allocation42_spill] sm:$0xff] }
  0xdd   :  { %21734 = vst [vmem:[#allocation37_spill] sm:$0xff] %v15104_v39  ;;  %21739 = vst [vmem:[#allocation284_spill] sm:$0xff] %v15123_v6  ;;  %v1596_v16 = vsub.f32 %v15098_v45, %v20399_v37  ;;  %11726 = vmatpush1.bf16.msra.mxu0 %v15104_v39  ;;  %1583 = vmatmul.mubr.f32.gmra.mrb[46].mxu1 %v1582_v57  ;;  %v1859_v37 = vsub.f32 %v21741_v11, %v20406_v30  ;;  %v13603_v45 = vld [vmem:[#allocation2 + $0x190] ss:$28 sps:$4 sm:$0xff]   ;;  %v21748_v30 = vand.u32 4294901760, %v15120_v63 }
  0xde   :  { %21742 = vst [vmem:[#allocation285_spill] sm:$0xff] %v15132_v33  ;;  %21743 = vst [vmem:[#allocation286_spill] sm:$0xff] %v15134_v47  ;;  %v1852_v43 = vsub.f32 %v21740_v28, %v21744_v21  ;;  %v15145_v58 = vsub.f32 %v13603_v45, %v14598_v2  ;;  %4933 = vmatmul.mubr.f32.gmra.mrb[10].mxu0 %v15076_v53  ;;  %1592 = vmatprep.mubr.f32.mxu1 %v1591_v14  ;;  %v20427_v56 = vand.u32 4294901760, %v15132_v33  ;;  %v13401_v21 = vld [vmem:[#allocation2 + $0x624] ss:$28 sps:$4 sm:$0xff]  }
  0xdf   :  { %v1597_v57 = vand.u32 4294901760, %v1596_v16  ;;  %v15150_v52 = vsub.f32 %v13395_v9, %v15134_v47  ;;  %21747 = vst [vmem:[#allocation289_spill] sm:$0xff] %v15152_v15  ;;  %4939 = vmatprep.mubr.f32.mxu0 %v15090_v62  ;;  %v1605_v39 = vsub.f32 %v15120_v63, %v21748_v30  ;;  %v1860_v2 = vand.u32 4294901760, %v1859_v37  ;;  %v13604_v22 = vld [vmem:[#allocation2 + $0x1cc] ss:$28 sps:$4 sm:$0xff]   ;;  %11727 = vmatprep.subr.bf16.mxu0 %v21411_v40  ;;  %v21753_v30 = vld [vmem:[#allocation45_spill] sm:$0xff] }
  0xe0   :  { %21745 = vst [vmem:[#allocation287_spill] sm:$0xff] %v15145_v58  ;;  %v1853_v45 = vand.u32 4294901760, %v1852_v43  ;;  %v15159_v14 = vsub.f32 %v13604_v22, %v14620_v34  ;;  %v1611_v9 = vsub.f32 %v15132_v33, %v20427_v56  ;;  %v15167_v47 = vsub.f32 %v13397_v59, %v15152_v15  ;;  %v13403_v63 = vld [vmem:[#allocation2 + $0x620] ss:$28 sps:$4 sm:$0xff]   ;;  %v13605_v62 = vld [vmem:[#allocation2 + $0x1c8] ss:$28 sps:$4 sm:$0xff]  }
  0xe1   :  { %21746 = vst [vmem:[#allocation288_spill] sm:$0xff] %v15150_v52  ;;  %v20428_v16 = vand.u32 4294901760, %v15150_v52  ;;  %v21752_v46 = vand.u32 4294901760, %v21751_v36  ;;  %v21754_v43 = vand.u32 4294901760, %v21753_v30  ;;  %1598 = vmatmul.mubr.f32.gmra.mrb[48].mxu1 %v1597_v57  ;;  %v1606_v22 = vand.u32 4294901760, %v1605_v39  ;;  %v21761_v57 = vld [vmem:[#allocation91_spill] sm:$0xff] }
  0xe2   :  { %21749 = vst [vmem:[#allocation290_spill] sm:$0xff] %v15159_v14  ;;  %21750 = vst [vmem:[#allocation291_spill] sm:$0xff] %v15167_v47  ;;  %v11362_v34 = vpack.c.bf16 %v1860_v2, %v1853_v45  ;;  %v15176_v53 = vsub.f32 %v13605_v62, %v14626_v38  ;;  %v15178_v56 = vand.u32 4294901760, %v13398_v4  ;;  %4942 = vmatmul.mubr.f32.gmra.mrb[12].mxu0 %v15107_v49  ;;  %v1612_v59 = vand.u32 4294901760, %v1611_v9  ;;  %v13606_v62 = vld [vmem:[#allocation2 + $0x204] ss:$28 sps:$4 sm:$0xff]  }
  0xe3   :  { %v15173_v37 = vpack.c.bf16 %v21754_v43, %v21752_v46  ;;  %v1620_v36 = vsub.f32 %v15150_v52, %v20428_v16  ;;  %v20431_v46 = vand.u32 4294901760, %v15167_v47  ;;  %v15185_v30 = vand.u32 4294901760, %v13400_v7  ;;  %1607 = vmatprep.mubr.f32.mxu1 %v1606_v22  ;;  %4948 = vmatprep.mubr.f32.mxu0 %v15123_v6  ;;  %v21762_v9 = vld [vmem:[#allocation92_spill] sm:$0xff] }
  0xe4   :  { %21756 = vst [vmem:[#allocation45_spill] sm:$0xff] %v15176_v53  ;;  %21757 = vst [vmem:[#allocation292_spill] sm:$0xff] %v15178_v56  ;;  %v15189_v2 = vsub.f32 %v13398_v4, %v15178_v56  ;;  %v15192_v39 = vsub.f32 %v13606_v62, %v14648_v12  ;;  %v20438_v45 = vand.u32 4294901760, %v21761_v57  ;;  %v20439_v43 = vand.u32 4294901760, %v21762_v9  ;;  %11363 = vmatpush1.bf16.msra.mxu1 %v11362_v34  ;;  %v13406_v12 = vld [vmem:[#allocation2 + $0x658] ss:$28 sps:$4 sm:$0xff]  }
  0xe5   :  { %21755 = vst [vmem:[#allocation42_spill] sm:$0xff] %v15173_v37  ;;  %21758 = vst [vmem:[#allocation293_spill] sm:$0xff] %v15185_v30  ;;  %v1621_v16 = vand.u32 4294901760, %v1620_v36  ;;  %v1626_v38 = vsub.f32 %v15167_v47, %v20431_v46  ;;  %11729 = vmatpush1.bf16.msra.mxu0 %v15173_v37  ;;  %v15201_v22 = vsub.f32 %v13400_v7, %v15185_v30  ;;  %v15203_v4 = vand.u32 4294901760, %v13401_v21  ;;  %v13607_v46 = vld [vmem:[#allocation2 + $0x200] ss:$28 sps:$4 sm:$0xff]  }
  0xe6   :  { %21759 = vst [vmem:[#allocation294_spill] sm:$0xff] %v15189_v2  ;;  %21760 = vst [vmem:[#allocation295_spill] sm:$0xff] %v15192_v39  ;;  %1613 = vmatmul.mubr.f32.gmra.mrb[50].mxu1 %v1612_v59  ;;  %11364 = vmatprep.subr.bf16.mxu1 %v21411_v40  ;;  %v1866_v34 = vsub.f32 %v21761_v57, %v20438_v45  ;;  %v1873_v36 = vsub.f32 %v21762_v9, %v20439_v43  ;;  %v13404_v7 = vld [vmem:[#allocation2 + $0x65c] ss:$28 sps:$4 sm:$0xff]   ;;  %v15221_v45 = vand.u32 4294901760, %v13403_v63 }
  0xe7   :  { %21763 = vst [vmem:[#allocation296_spill] sm:$0xff] %v15201_v22  ;;  %21764 = vst [vmem:[#allocation297_spill] sm:$0xff] %v15203_v4  ;;  %v15214_v47 = vsub.f32 %v13607_v46, %v14668_v0  ;;  %4951 = vmatmul.mubr.f32.gmra.mrb[14].mxu0 %v15145_v58  ;;  %1622 = vmatprep.mubr.f32.mxu1 %v1621_v16  ;;  %v1627_v59 = vand.u32 4294901760, %v1626_v38  ;;  %v20464_v62 = vand.u32 4294901760, %v15201_v22  ;;  %v21768_v43 = vand.u32 4294901760, %v15189_v2 }
  0xe8   :  { %v15219_v52 = vsub.f32 %v13401_v21, %v15203_v4  ;;  %21767 = vst [vmem:[#allocation300_spill] sm:$0xff] %v15221_v45  ;;  %4957 = vmatprep.mubr.f32.mxu0 %v15159_v14  ;;  %v1867_v0 = vand.u32 4294901760, %v1866_v34  ;;  %v1874_v33 = vand.u32 4294901760, %v1873_v36  ;;  %v13608_v37 = vld [vmem:[#allocation2 + $0x23c] ss:$28 sps:$4 sm:$0xff]   ;;  %11730 = vmatprep.subr.bf16.mxu0 %v21411_v40  ;;  %v15236_v16 = vsub.f32 %v13403_v63, %v15221_v45  ;;  %v21771_v4 = vld [vmem:[#allocation99_spill] sm:$0xff] }
  0xe9   :  { %21765 = vst [vmem:[#allocation298_spill] sm:$0xff] %v15214_v47  ;;  %v1635_v46 = vsub.f32 %v15189_v2, %v21768_v43  ;;  %v15228_v30 = vsub.f32 %v13608_v37, %v14685_v44  ;;  %v1641_v38 = vsub.f32 %v15201_v22, %v20464_v62  ;;  %v13407_v43 = vld [vmem:[#allocation2 + $0x694] ss:$28 sps:$4 sm:$0xff]   ;;  %v21772_v2 = vld [vmem:[#allocation100_spill] sm:$0xff]  ;;  %v21773_v44 = vld [vmem:[#allocation50_spill] sm:$0xff] }
  0xea   :  { %21766 = vst [vmem:[#allocation299_spill] sm:$0xff] %v15219_v52  ;;  %v20465_v21 = vand.u32 4294901760, %v15219_v52  ;;  %21770 = vst [vmem:[#allocation302_spill] sm:$0xff] %v15236_v16  ;;  %1628 = vmatmul.mubr.f32.gmra.mrb[52].mxu1 %v1627_v59  ;;  %v11365_v36 = vpack.c.bf16 %v1874_v33, %v1867_v0  ;;  %v20466_v37 = vand.u32 4294901760, %v21772_v2  ;;  %v21774_v15 = vand.u32 4294901760, %v21773_v44  ;;  %v21775_v14 = vld [vmem:[#allocation55_spill] sm:$0xff] }
  0xeb   :  { %21769 = vst [vmem:[#allocation301_spill] sm:$0xff] %v15228_v30  ;;  %v1636_v34 = vand.u32 4294901760, %v1635_v46  ;;  %v21776_v58 = vand.u32 4294901760, %v21775_v14  ;;  %4960 = vmatmul.mubr.f32.gmra.mrb[16].mxu0 %v15176_v53  ;;  %v1642_v62 = vand.u32 4294901760, %v1641_v38  ;;  %v20471_v56 = vand.u32 4294901760, %v15236_v16 }
  0xec   :  { %v1650_v63 = vsub.f32 %v15219_v52, %v20465_v21  ;;  %v21778_v59 = vand.u32 4294901760, %v21771_v4  ;;  %v13409_v33 = vld [vmem:[#allocation2 + $0x690] ss:$28 sps:$4 sm:$0xff]   ;;  %4966 = vmatprep.mubr.f32.mxu0 %v15192_v39  ;;  %v13609_v44 = vld [vmem:[#allocation2 + $0x238] ss:$28 sps:$4 sm:$0xff]   ;;  %v15261_v14 = vand.u32 4294901760, %v13404_v7  ;;  %11366 = vmatpush1.bf16.msra.mxu1 %v11365_v36 }
  0xed   :  { %v15244_v6 = vpack.c.bf16 %v21776_v58, %v21774_v15  ;;  %1637 = vmatprep.mubr.f32.mxu1 %v1636_v34  ;;  %v15256_v15 = vsub.f32 %v13609_v44, %v14691_v48  ;;  %v1887_v58 = vsub.f32 %v21772_v2, %v20466_v37  ;;  %v15263_v46 = vand.u32 4294901760, %v13406_v12  ;;  %v13610_v21 = vld [vmem:[#allocation2 + $0x274] ss:$28 sps:$4 sm:$0xff]   ;;  %11367 = vmatprep.subr.bf16.mxu1 %v21411_v40 }
  0xee   :  { %v1880_v0 = vsub.f32 %v21771_v4, %v21778_v59  ;;  %21780 = vst [vmem:[#allocation55_spill] sm:$0xff] %v15261_v14  ;;  %v1651_v38 = vand.u32 4294901760, %v1650_v63  ;;  %v1656_v34 = vsub.f32 %v15236_v16, %v20471_v56  ;;  %v15270_v44 = vsub.f32 %v13610_v21, %v14714_v60  ;;  %1643 = vmatmul.mubr.f32.gmra.mrb[54].mxu1 %v1642_v62  ;;  %v21785_v63 = vld [vmem:[#allocation107_spill] sm:$0xff]  ;;  %v21787_v62 = vld [vmem:[#allocation108_spill] sm:$0xff] }
  0xef   :  { %21777 = vst [vmem:[#allocation99_spill] sm:$0xff] %v15244_v6  ;;  %21779 = vst [vmem:[#allocation50_spill] sm:$0xff] %v15256_v15  ;;  %11732 = vmatpush1.bf16.msra.mxu0 %v15244_v6  ;;  %v1888_v37 = vand.u32 4294901760, %v1887_v58  ;;  %v15274_v48 = vsub.f32 %v13404_v7, %v15261_v14  ;;  %v15277_v36 = vsub.f32 %v13406_v12, %v15263_v46  ;;  %v20480_v52 = vand.u32 4294901760, %v21785_v63  ;;  %v13611_v56 = vld [vmem:[#allocation2 + $0x270] ss:$28 sps:$4 sm:$0xff]  }
  0xf0   :  { %21781 = vst [vmem:[#allocation303_spill] sm:$0xff] %v15263_v46  ;;  %v1881_v59 = vand.u32 4294901760, %v1880_v0  ;;  %21782 = vst [vmem:[#allocation304_spill] sm:$0xff] %v15270_v44  ;;  %4969 = vmatmul.mubr.f32.gmra.mrb[18].mxu0 %v15214_v47  ;;  %1652 = vmatprep.mubr.f32.mxu1 %v1651_v38  ;;  %v1657_v0 = vand.u32 4294901760, %v1656_v34  ;;  %v15282_v21 = vsub.f32 %v13611_v56, %v14729_v35  ;;  %v20487_v16 = vand.u32 4294901760, %v21787_v62 }
  0xf1   :  { %21783 = vst [vmem:[#allocation305_spill] sm:$0xff] %v15274_v48  ;;  %21784 = vst [vmem:[#allocation306_spill] sm:$0xff] %v15277_v36  ;;  %v15285_v60 = vand.u32 4294901760, %v13407_v43  ;;  %4975 = vmatprep.mubr.f32.mxu0 %v15228_v30  ;;  %v20496_v12 = vand.u32 4294901760, %v15274_v48  ;;  %v1894_v38 = vsub.f32 %v21785_v63, %v20480_v52  ;;  %11733 = vmatprep.subr.bf16.mxu0 %v21411_v40  ;;  %v13410_v34 = vld [vmem:[#allocation2 + $0x6cc] ss:$28 sps:$4 sm:$0xff]  }
  0xf2   :  { %21786 = vst [vmem:[#allocation307_spill] sm:$0xff] %v15282_v21  ;;  %v11368_v7 = vpack.c.bf16 %v1888_v37, %v1881_v59  ;;  %v13412_v56 = vld [vmem:[#allocation2 + $0x6c8] ss:$28 sps:$4 sm:$0xff]   ;;  %v1901_v35 = vsub.f32 %v21787_v62, %v20487_v16  ;;  %v15303_v58 = vand.u32 4294901760, %v13409_v33  ;;  %1658 = vmatmul.mubr.f32.gmra.mrb[56].mxu1 %v1657_v0  ;;  %v21792_v6 = vand.u32 4294901760, %v15277_v36  ;;  %v21793_v16 = vld [vmem:[#allocation115_spill] sm:$0xff] }
  0xf3   :  { %21788 = vst [vmem:[#allocation308_spill] sm:$0xff] %v15285_v60  ;;  %v15298_v22 = vsub.f32 %v13407_v43, %v15285_v60  ;;  %v13612_v37 = vld [vmem:[#allocation2 + $0x2ac] ss:$28 sps:$4 sm:$0xff]   ;;  %v1665_v52 = vsub.f32 %v15274_v48, %v20496_v12  ;;  %v1895_v14 = vand.u32 4294901760, %v1894_v38  ;;  %v20505_v45 = vand.u32 4294901760, %v21793_v16  ;;  %v21795_v0 = vld [vmem:[#allocation116_spill] sm:$0xff] }
  0xf4   :  { %v15301_v59 = vsub.f32 %v13612_v37, %v14745_v24  ;;  %21791 = vst [vmem:[#allocation311_spill] sm:$0xff] %v15303_v58  ;;  %v1671_v46 = vsub.f32 %v15277_v36, %v21792_v6  ;;  %4978 = vmatmul.mubr.f32.gmra.mrb[20].mxu0 %v15256_v15  ;;  %11369 = vmatpush1.bf16.msra.mxu1 %v11368_v7  ;;  %v1902_v43 = vand.u32 4294901760, %v1901_v35  ;;  %v21796_v38 = vld [vmem:[#allocation58_spill] sm:$0xff] }
  0xf5   :  { %21789 = vst [vmem:[#allocation309_spill] sm:$0xff] %v15298_v22  ;;  %v15315_v24 = vsub.f32 %v13409_v33, %v15303_v58  ;;  %v1666_v30 = vand.u32 4294901760, %v1665_v52  ;;  %4984 = vmatprep.mubr.f32.mxu0 %v15270_v44  ;;  %11370 = vmatprep.subr.bf16.mxu1 %v21411_v40  ;;  %v1908_v6 = vsub.f32 %v21793_v16, %v20505_v45  ;;  %v21797_v7 = vand.u32 4294901760, %v21796_v38  ;;  %v21798_v35 = vld [vmem:[#allocation62_spill] sm:$0xff] }
  0xf6   :  { %21790 = vst [vmem:[#allocation310_spill] sm:$0xff] %v15301_v59  ;;  %v1672_v12 = vand.u32 4294901760, %v1671_v46  ;;  %v21799_v36 = vand.u32 4294901760, %v21798_v35  ;;  %v11371_v33 = vpack.c.bf16 %v1902_v43, %v1895_v14  ;;  %v21801_v48 = vand.u32 4294901760, %v15298_v22  ;;  %v13613_v44 = vld [vmem:[#allocation2 + $0x2a8] ss:$28 sps:$4 sm:$0xff]  }
  0xf7   :  { %21794 = vst [vmem:[#allocation312_spill] sm:$0xff] %v15315_v24  ;;  %v20508_v60 = vand.u32 4294901760, %v15315_v24  ;;  %v21802_v46 = vand.u32 4294901760, %v21795_v0  ;;  %1667 = vmatprep.mubr.f32.mxu1 %v1666_v30  ;;  %v15337_v45 = vsub.f32 %v13613_v44, %v14755_v32  ;;  %v1909_v38 = vand.u32 4294901760, %v1908_v6  ;;  %v21809_v35 = vld [vmem:[#allocation123_spill] sm:$0xff] }
  0xf8   :  { %v15327_v37 = vpack.c.bf16 %v21799_v36, %v21797_v7  ;;  %v1680_v52 = vsub.f32 %v15298_v22, %v21801_v48  ;;  %v15340_v36 = vand.u32 4294901760, %v13410_v34  ;;  %v15342_v14 = vand.u32 4294901760, %v13412_v56  ;;  %1673 = vmatmul.mubr.f32.gmra.mrb[58].mxu1 %v1672_v12  ;;  %4987 = vmatmul.mubr.f32.gmra.mrb[22].mxu0 %v15282_v21  ;;  %v13614_v7 = vld [vmem:[#allocation2 + $0x2e4] ss:$28 sps:$4 sm:$0xff]  }
  0xf9   :  { %v1915_v58 = vsub.f32 %v21795_v0, %v21802_v46  ;;  %21803 = vst [vmem:[#allocation62_spill] sm:$0xff] %v15337_v45  ;;  %v1686_v43 = vsub.f32 %v15315_v24, %v20508_v60  ;;  %v15349_v44 = vsub.f32 %v13614_v7, %v14780_v50  ;;  %11372 = vmatpush1.bf16.msra.mxu1 %v11371_v33  ;;  %v21810_v46 = vld [vmem:[#allocation124_spill] sm:$0xff]  ;;  %v21814_v33 = vld [vmem:[#allocation69_spill] sm:$0xff] }
  0xfa   :  { %21800 = vst [vmem:[#allocation58_spill] sm:$0xff] %v15327_v37  ;;  %11735 = vmatpush1.bf16.msra.mxu0 %v15327_v37  ;;  %21804 = vst [vmem:[#allocation313_spill] sm:$0xff] %v15340_v36  ;;  %v1681_v48 = vand.u32 4294901760, %v1680_v52  ;;  %4993 = vmatprep.mubr.f32.mxu0 %v15301_v59  ;;  %v15353_v6 = vsub.f32 %v13410_v34, %v15340_v36  ;;  %v15356_v12 = vsub.f32 %v13412_v56, %v15342_v14  ;;  %v21822_v37 = vld [vmem:[#allocation79_spill] sm:$0xff] }
  0xfb   :  { %21805 = vst [vmem:[#allocation314_spill] sm:$0xff] %v15342_v14  ;;  %v1916_v30 = vand.u32 4294901760, %v1915_v58  ;;  %21806 = vst [vmem:[#allocation315_spill] sm:$0xff] %v15349_v44  ;;  %v20511_v52 = vand.u32 4294901760, %v21809_v35  ;;  %v20512_v32 = vand.u32 4294901760, %v21810_v46  ;;  %v1687_v60 = vand.u32 4294901760, %v1686_v43  ;;  %11373 = vmatprep.subr.bf16.mxu1 %v21411_v40  ;;  %11736 = vmatprep.subr.bf16.mxu0 %v21411_v40 }
  0xfc   :  { %21807 = vst [vmem:[#allocation316_spill] sm:$0xff] %v15353_v6  ;;  %21808 = vst [vmem:[#allocation317_spill] sm:$0xff] %v15356_v12  ;;  %1682 = vmatprep.mubr.f32.mxu1 %v1681_v48  ;;  %4996 = vmatmul.mubr.f32.gmra.mrb[24].mxu0 %v15337_v45  ;;  %v13615_v48 = vld [vmem:[#allocation2 + $0x2e0] ss:$28 sps:$4 sm:$0xff]   ;;  %v21815_v7 = vand.u32 4294901760, %v21814_v33 }
  0xfd   :  { %v11374_v58 = vpack.c.bf16 %v1916_v30, %v1909_v38  ;;  %v1922_v34 = vsub.f32 %v21809_v35, %v20511_v52  ;;  %v1929_v56 = vsub.f32 %v21810_v46, %v20512_v32  ;;  %1688 = vmatmul.mubr.f32.gmra.mrb[60].mxu1 %v1687_v60  ;;  %v15372_v38 = vsub.f32 %v13615_v48, %v14793_v5  ;;  %v21812_v43 = vld [vmem:[#allocation64_spill] sm:$0xff]  ;;  %v13413_v5 = vld [vmem:[#allocation2 + $0x38c] ss:$28 sps:$4 sm:$0xff]  }
  0xfe   :  { %v21813_v30 = vand.u32 4294901760, %v21812_v43  ;;  %v21817_v52 = vand.u32 4294901760, %v15353_v6  ;;  %5002 = vmatprep.mubr.f32.mxu0 %v15349_v44  ;;  %v21818_v60 = vand.u32 4294901760, %v15356_v12  ;;  %v13616_v43 = vld [vmem:[#allocation2 + $0x31c] ss:$28 sps:$4 sm:$0xff]  }
  0xff   :  { %21811 = vst [vmem:[#allocation318_spill] sm:$0xff] %v15372_v38  ;;  %11375 = vmatpush1.bf16.msra.mxu1 %v11374_v58  ;;  %v1923_v22 = vand.u32 4294901760, %v1922_v34  ;;  %v1930_v48 = vand.u32 4294901760, %v1929_v56  ;;  %v13617_v56 = vld [vmem:[#allocation2 + $0x318] ss:$28 sps:$4 sm:$0xff]  }
 0x100   :  { %v15378_v24 = vpack.c.bf16 %v21815_v7, %v21813_v30  ;;  %v1695_v32 = vsub.f32 %v15353_v6, %v21817_v52  ;;  %v1701_v50 = vsub.f32 %v15356_v12, %v21818_v60  ;;  %11376 = vmatprep.subr.bf16.mxu1 %v21411_v40  ;;  %v15389_v7 = vsub.f32 %v13616_v43, %v14821_v20  ;;  %v21820_v30 = vld [vmem:[#allocation73_spill] sm:$0xff] }
 0x101   :  { %v11377_v52 = vpack.c.bf16 %v1930_v48, %v1923_v22  ;;  %v21821_v6 = vand.u32 4294901760, %v21820_v30  ;;  %v21823_v60 = vand.u32 4294901760, %v21822_v37  ;;  %5005 = vmatmul.mubr.f32.gmra.mrb[26].mxu0 %v15372_v38  ;;  %v15401_v12 = vsub.f32 %v13617_v56, %v14823_v42  ;;  %v13415_v43 = vld [vmem:[#allocation2 + $0x388] ss:$28 sps:$4 sm:$0xff]  }
 0x102   :  { %21816 = vst [vmem:[#allocation64_spill] sm:$0xff] %v15378_v24  ;;  %21819 = vst [vmem:[#allocation69_spill] sm:$0xff] %v15389_v7  ;;  %11738 = vmatpush1.bf16.msra.mxu0 %v15378_v24  ;;  %v1696_v58 = vand.u32 4294901760, %v1695_v32  ;;  %v1702_v33 = vand.u32 4294901760, %v1701_v50  ;;  %v13618_v32 = vld [vmem:[#allocation2 + $0x354] ss:$28 sps:$4 sm:$0xff]   ;;  %5011 = vmatprep.mubr.f32.mxu0 %v15389_v7 }
 0x103   :  { %11739 = vmatprep.subr.bf16.mxu0 %v21411_v40  ;;  %v15397_v34 = vpack.c.bf16 %v21823_v60, %v21821_v6  ;;  %21825 = vst [vmem:[#allocation79_spill] sm:$0xff] %v15401_v12  ;;  %11378 = vmatpush1.bf16.msra.mxu1 %v11377_v52  ;;  %v15404_v50 = vsub.f32 %v13618_v32, %v14849_v1  ;;  %v15406_v22 = vand.u32 4294901760, %v13413_v5  ;;  %v13416_v48 = vld [vmem:[#allocation2 + $0x3c4] ss:$28 sps:$4 sm:$0xff]   ;;  %v21831_v60 = vld [vmem:[#allocation87_spill] sm:$0xff]  ;;  %v15421_v1 = vand.u32 4294901760, %v13415_v43 }
 0x104   :  { %1697 = vmatprep.mubr.f32.mxu1 %v1696_v58  ;;  %v21828_v37 = vld [vmem:[#allocation129_spill] sm:$0xff]  ;;  %v21832_v56 = vand.u32 4294901760, %v21831_v60  ;;  %v13619_v52 = vld [vmem:[#allocation2 + $0x350] ss:$28 sps:$4 sm:$0xff]   ;;  %v13419_v60 = vld [vmem:[#allocation2 + $0x3fc] ss:$28 sps:$4 sm:$0xff]   ;;  %11379 = vmatprep.subr.bf16.mxu1 %v21411_v40 }
 0x105   :  { %21824 = vst [vmem:[#allocation73_spill] sm:$0xff] %v15397_v34  ;;  %21826 = vst [vmem:[#allocation319_spill] sm:$0xff] %v15404_v50  ;;  %1703 = vmatmul.mubr.f32.gmra.mrb[62].mxu1 %v1702_v33  ;;  %v21829_v6 = vld [vmem:[#allocation81_spill] sm:$0xff]  ;;  %5014 = vmatmul.mubr.f32.gmra.mrb[28].mxu0 %v15401_v12  ;;  %v15419_v32 = vsub.f32 %v13619_v52, %v14878_v8  ;;  %v21839_v52 = vld [vmem:[#allocation134_spill] sm:$0xff] }
 0x106   :  { %21827 = vst [vmem:[#allocation320_spill] sm:$0xff] %v15406_v22  ;;  %1933 = vmatprep.mubr.f32.mxu1 %v21828_v37  ;;  %11741 = vmatpush1.bf16.msra.mxu0 %v15397_v34  ;;  %v21830_v30 = vand.u32 4294901760, %v21829_v6  ;;  %21835 = vst [vmem:[#allocation321_spill] sm:$0xff] %v15421_v1  ;;  %v13418_v33 = vld [vmem:[#allocation2 + $0x3c0] ss:$28 sps:$4 sm:$0xff]   ;;  %v11380_v37 = vpack.c.bf16 %v13751_v18, %v13749_v17  ;;  %v15428_v6 = vsub.f32 %v13413_v5, %v15406_v22  ;;  %v21870_v24 = vld [vmem:[#allocation26_spill] sm:$0xff] }
 0x107   :  { %21834 = vst [vmem:[#allocation87_spill] sm:$0xff] %v15419_v32  ;;  %11742 = vmatprep.subr.bf16.mxu0 %v21411_v40  ;;  %5020 = vmatprep.mubr.f32.mxu0 %v15404_v50  ;;  %v21840_v8 = vld [vmem:[#allocation89_spill] sm:$0xff]  ;;  %v15444_v5 = vsub.f32 %v13415_v43, %v15421_v1  ;;  %v15446_v22 = vand.u32 4294901760, %v13418_v33  ;;  %v13421_v34 = vld [vmem:[#allocation2 + $0x3f8] ss:$28 sps:$4 sm:$0xff]  }
 0x108   :  { %v15415_v58 = vpack.c.bf16 %v21832_v56, %v21830_v30  ;;  %21836 = vst [vmem:[#allocation322_spill] sm:$0xff] %v15428_v6  ;;  %v15430_v30 = vand.u32 4294901760, %v13416_v48  ;;  %v21838_v56 = vld [vmem:[#allocation130_spill] sm:$0xff]  ;;  %v21841_v42 = vand.u32 4294901760, %v21840_v8  ;;  %v21842_v20 = vld [vmem:[#allocation93_spill] sm:$0xff]  ;;  %v21851_v43 = vld [vmem:[#allocation144_spill] sm:$0xff] }
 0x109   :  { %1935 = vmatmul.mubr.f32.vlgmr.msra.gmra.mrb[0].mxu1 %v21838_v56  ;;  %v21843_v18 = vand.u32 4294901760, %v21842_v20  ;;  %5023 = vmatmul.mubr.f32.gmra.mrb[30].mxu0 %v15419_v32  ;;  %21845 = vst [vmem:[#allocation93_spill] sm:$0xff] %v15444_v5  ;;  %21846 = vst [vmem:[#allocation324_spill] sm:$0xff] %v15446_v22  ;;  %v21847_v56 = vld [vmem:[#allocation20_spill] sm:$0xff]  ;;  %v15454_v20 = vand.u32 4294901760, %v13419_v60 }
 0x10a   :  { %21833 = vst [vmem:[#allocation81_spill] sm:$0xff] %v15415_v58  ;;  %21837 = vst [vmem:[#allocation323_spill] sm:$0xff] %v15430_v30  ;;  %1940 = vmatprep.mubr.f32.mxu1 %v21839_v52  ;;  %11744 = vmatpush1.bf16.msra.mxu0 %v15415_v58  ;;  %v11383_v52 = vpack.c.bf16 %v21847_v56, %v13753_v19  ;;  %v15452_v8 = vsub.f32 %v13416_v48, %v15430_v30  ;;  %v21854_v56 = vld [vmem:[#allocation103_spill] sm:$0xff]  ;;  %v15471_v30 = vand.u32 4294901760, %v13421_v34 }
 0x10b   :  { %v15440_v17 = vpack.c.bf16 %v21843_v18, %v21841_v42  ;;  %11381 = vmatpush1.bf16.msra.mxu1 %v11380_v37  ;;  %5029 = vmatprep.mubr.f32.mxu0 %v15428_v6  ;;  %21849 = vst [vmem:[#allocation326_spill] sm:$0xff] %v15454_v20  ;;  %v13422_v18 = vld [vmem:[#allocation2 + $0x434] ss:$28 sps:$4 sm:$0xff]   ;;  %v21850_v42 = vld [vmem:[#allocation141_spill] sm:$0xff]  ;;  %v21855_v19 = vand.u32 4294901760, %v21854_v56  ;;  %v15469_v48 = vsub.f32 %v13418_v33, %v15446_v22  ;;  %v21862_v33 = vld [vmem:[#allocation152_spill] sm:$0xff] }
 0x10c   :  { %21848 = vst [vmem:[#allocation325_spill] sm:$0xff] %v15452_v8  ;;  %11745 = vmatprep.subr.bf16.mxu0 %v21411_v40  ;;  %11382 = vmatprep.subr.bf16.mxu1 %v21411_v40  ;;  %v21852_v37 = vld [vmem:[#allocation97_spill] sm:$0xff]  ;;  %21858 = vst [vmem:[#allocation327_spill] sm:$0xff] %v15471_v30  ;;  %v15479_v56 = vand.u32 4294901760, %v13422_v18 }
 0x10d   :  { %21844 = vst [vmem:[#allocation89_spill] sm:$0xff] %v15440_v17  ;;  %1942 = vmatmul.mubr.f32.gmra.mrb[2].mxu1 %v21850_v42  ;;  %v21853_v1 = vand.u32 4294901760, %v21852_v37  ;;  %5032 = vmatmul.mubr.f32.gmra.mrb[32].mxu0 %v15444_v5  ;;  %21857 = vst [vmem:[#allocation103_spill] sm:$0xff] %v15469_v48  ;;  %v13424_v42 = vld [vmem:[#allocation2 + $0x430] ss:$28 sps:$4 sm:$0xff]   ;;  %v15477_v37 = vsub.f32 %v13419_v60, %v15454_v20  ;;  %v15494_v60 = vsub.f32 %v13421_v34, %v15471_v30  ;;  %v21875_v34 = vld [vmem:[#allocation157_spill] sm:$0xff] }
 0x10e   :  { %1947 = vmatprep.mubr.f32.mxu1 %v21851_v43  ;;  %11747 = vmatpush1.bf16.msra.mxu0 %v15440_v17  ;;  %v11386_v43 = vpack.c.bf16 %v13768_v29, %v13765_v26  ;;  %21860 = vst [vmem:[#allocation329_spill] sm:$0xff] %v15479_v56  ;;  %v21865_v29 = vld [vmem:[#allocation111_spill] sm:$0xff]  ;;  %v15496_v20 = vand.u32 4294901760, %v13424_v42 }
 0x10f   :  { %v15465_v58 = vpack.c.bf16 %v21855_v19, %v21853_v1  ;;  %11384 = vmatpush1.bf16.msra.mxu1 %v11383_v52  ;;  %5038 = vmatprep.mubr.f32.mxu0 %v15452_v8  ;;  %21859 = vst [vmem:[#allocation328_spill] sm:$0xff] %v15477_v37  ;;  %v13425_v19 = vld [vmem:[#allocation2 + $0x46c] ss:$28 sps:$4 sm:$0xff]   ;;  %v21863_v52 = vld [vmem:[#allocation105_spill] sm:$0xff]  ;;  %v21866_v26 = vand.u32 4294901760, %v21865_v29  ;;  %21868 = vst [vmem:[#allocation111_spill] sm:$0xff] %v15494_v60 }
 0x110   :  { %11748 = vmatprep.subr.bf16.mxu0 %v21411_v40  ;;  %v21861_v1 = vld [vmem:[#allocation146_spill] sm:$0xff]  ;;  %11385 = vmatprep.subr.bf16.mxu1 %v21411_v40  ;;  %v21864_v22 = vand.u32 4294901760, %v21863_v52  ;;  %21869 = vst [vmem:[#allocation330_spill] sm:$0xff] %v15496_v20  ;;  %v21871_v8 = vld [vmem:[#allocation29_spill] sm:$0xff]  ;;  %v15502_v52 = vsub.f32 %v13422_v18, %v15479_v56  ;;  %v15504_v29 = vand.u32 4294901760, %v13425_v19  ;;  %v15519_v18 = vsub.f32 %v13424_v42, %v15496_v20 }
 0x111   :  { %21856 = vst [vmem:[#allocation97_spill] sm:$0xff] %v15465_v58  ;;  %1949 = vmatmul.mubr.f32.gmra.mrb[4].mxu1 %v21861_v1  ;;  %5041 = vmatmul.mubr.f32.gmra.mrb[34].mxu0 %v15469_v48  ;;  %v13427_v1 = vld [vmem:[#allocation2 + $0x468] ss:$28 sps:$4 sm:$0xff]   ;;  %v21884_v48 = vld [vmem:[#allocation35_spill] sm:$0xff] }
 0x112   :  { %1954 = vmatprep.mubr.f32.mxu1 %v21862_v33  ;;  %11750 = vmatpush1.bf16.msra.mxu0 %v15465_v58  ;;  %v15490_v17 = vpack.c.bf16 %v21866_v26, %v21864_v22  ;;  %v11389_v33 = vpack.c.bf16 %v21871_v8, %v21870_v24  ;;  %21872 = vst [vmem:[#allocation331_spill] sm:$0xff] %v15502_v52  ;;  %21873 = vst [vmem:[#allocation332_spill] sm:$0xff] %v15504_v29  ;;  %v13428_v26 = vld [vmem:[#allocation2 + $0x4a4] ss:$28 sps:$4 sm:$0xff]   ;;  %v21874_v22 = vld [vmem:[#allocation155_spill] sm:$0xff]  ;;  %v15521_v56 = vand.u32 4294901760, %v13427_v1 }
 0x113   :  { %11387 = vmatpush1.bf16.msra.mxu1 %v11386_v43  ;;  %5047 = vmatprep.mubr.f32.mxu0 %v15477_v37  ;;  %v21876_v43 = vld [vmem:[#allocation113_spill] sm:$0xff]  ;;  %v21883_v37 = vld [vmem:[#allocation34_spill] sm:$0xff] }
 0x114   :  { %21867 = vst [vmem:[#allocation105_spill] sm:$0xff] %v15490_v17  ;;  %11751 = vmatprep.subr.bf16.mxu0 %v21411_v40  ;;  %11388 = vmatprep.subr.bf16.mxu1 %v21411_v40  ;;  %v21877_v30 = vand.u32 4294901760, %v21876_v43  ;;  %v21878_v8 = vld [vmem:[#allocation117_spill] sm:$0xff]  ;;  %21882 = vst [vmem:[#allocation333_spill] sm:$0xff] %v15521_v56  ;;  %v15527_v43 = vsub.f32 %v13425_v19, %v15504_v29  ;;  %v21888_v42 = vld [vmem:[#allocation166_spill] sm:$0xff]  ;;  %v15546_v29 = vsub.f32 %v13427_v1, %v15521_v56 }
 0x115   :  { %1956 = vmatmul.mubr.f32.gmra.mrb[6].mxu1 %v21874_v22  ;;  %v21879_v24 = vand.u32 4294901760, %v21878_v8  ;;  %5050 = vmatmul.mubr.f32.gmra.mrb[36].mxu0 %v15494_v60  ;;  %21881 = vst [vmem:[#allocation117_spill] sm:$0xff] %v15519_v18  ;;  %v13430_v22 = vld [vmem:[#allocation2 + $0x4a0] ss:$28 sps:$4 sm:$0xff]   ;;  %v15529_v8 = vand.u32 4294901760, %v13428_v26  ;;  %v21901_v19 = vld [vmem:[#allocation171_spill] sm:$0xff] }
 0x116   :  { %1961 = vmatprep.mubr.f32.mxu1 %v21875_v34  ;;  %11753 = vmatpush1.bf16.msra.mxu0 %v15490_v17  ;;  %v11392_v34 = vpack.c.bf16 %v21884_v48, %v21883_v37  ;;  %21885 = vst [vmem:[#allocation334_spill] sm:$0xff] %v15527_v43  ;;  %v21891_v48 = vld [vmem:[#allocation125_spill] sm:$0xff]  ;;  %v21914_v1 = vld [vmem:[#allocation176_spill] sm:$0xff] }
 0x117   :  { %v15515_v58 = vpack.c.bf16 %v21879_v24, %v21877_v30  ;;  %11390 = vmatpush1.bf16.msra.mxu1 %v11389_v33  ;;  %5056 = vmatprep.mubr.f32.mxu0 %v15502_v52  ;;  %21886 = vst [vmem:[#allocation335_spill] sm:$0xff] %v15529_v8  ;;  %v13431_v24 = vld [vmem:[#allocation2 + $0x4dc] ss:$28 sps:$4 sm:$0xff]   ;;  %v21887_v30 = vld [vmem:[#allocation162_spill] sm:$0xff]  ;;  %v21889_v33 = vld [vmem:[#allocation121_spill] sm:$0xff]  ;;  %v21892_v37 = vand.u32 4294901760, %v21891_v48 }
 0x118   :  { %11754 = vmatprep.subr.bf16.mxu0 %v21411_v40  ;;  %11391 = vmatprep.subr.bf16.mxu1 %v21411_v40  ;;  %v21890_v20 = vand.u32 4294901760, %v21889_v33  ;;  %21894 = vst [vmem:[#allocation125_spill] sm:$0xff] %v15546_v29  ;;  %v13433_v52 = vld [vmem:[#allocation2 + $0x4d8] ss:$28 sps:$4 sm:$0xff]   ;;  %v15556_v48 = vand.u32 4294901760, %v13431_v24  ;;  %v21904_v56 = vld [vmem:[#allocation137_spill] sm:$0xff] }
 0x119   :  { %21880 = vst [vmem:[#allocation113_spill] sm:$0xff] %v15515_v58  ;;  %1963 = vmatmul.mubr.f32.gmra.mrb[8].mxu1 %v21887_v30  ;;  %5059 = vmatmul.mubr.f32.gmra.mrb[38].mxu0 %v15519_v18  ;;  %v15548_v30 = vand.u32 4294901760, %v13430_v22  ;;  %v21900_v33 = vld [vmem:[#allocation167_spill] sm:$0xff] }
 0x11a   :  { %1968 = vmatprep.mubr.f32.mxu1 %v21888_v42  ;;  %11756 = vmatpush1.bf16.msra.mxu0 %v15515_v58  ;;  %v15540_v17 = vpack.c.bf16 %v21892_v37, %v21890_v20  ;;  %v21896_v42 = vld [vmem:[#allocation39_spill] sm:$0xff]  ;;  %v21897_v58 = vld [vmem:[#allocation44_spill] sm:$0xff]  ;;  %v15554_v20 = vsub.f32 %v13428_v26, %v15529_v8  ;;  %21899 = vst [vmem:[#allocation338_spill] sm:$0xff] %v15556_v48 }
 0x11b   :  { %21895 = vst [vmem:[#allocation336_spill] sm:$0xff] %v15548_v30  ;;  %11393 = vmatpush1.bf16.msra.mxu1 %v11392_v34  ;;  %v11395_v60 = vpack.c.bf16 %v21897_v58, %v21896_v42  ;;  %5065 = vmatprep.mubr.f32.mxu0 %v15527_v43  ;;  %v13434_v37 = vld [vmem:[#allocation2 + $0x514] ss:$28 sps:$4 sm:$0xff]   ;;  %v21902_v26 = vld [vmem:[#allocation136_spill] sm:$0xff]  ;;  %v21905_v58 = vand.u32 4294901760, %v21904_v56  ;;  %v15579_v43 = vand.u32 4294901760, %v13433_v52 }
 0x11c   :  { %21893 = vst [vmem:[#allocation121_spill] sm:$0xff] %v15540_v17  ;;  %21898 = vst [vmem:[#allocation337_spill] sm:$0xff] %v15554_v20  ;;  %11757 = vmatprep.subr.bf16.mxu0 %v21411_v40  ;;  %11394 = vmatprep.subr.bf16.mxu1 %v21411_v40  ;;  %v21903_v8 = vand.u32 4294901760, %v21902_v26  ;;  %v13436_v34 = vld [vmem:[#allocation2 + $0x510] ss:$28 sps:$4 sm:$0xff]  }
 0x11d   :  { %1970 = vmatmul.mubr.f32.gmra.mrb[10].mxu1 %v21900_v33  ;;  %5068 = vmatmul.mubr.f32.gmra.mrb[40].mxu0 %v15546_v29  ;;  %v15577_v33 = vsub.f32 %v13430_v22, %v15548_v30  ;;  %21908 = vst [vmem:[#allocation339_spill] sm:$0xff] %v15579_v43  ;;  %v13437_v26 = vld [vmem:[#allocation2 + $0x54c] ss:$28 sps:$4 sm:$0xff]   ;;  %v15602_v56 = vand.u32 4294901760, %v13436_v34  ;;  %v11401_v22 = vpack.c.bf16 %v21674_v3, %v21671_v54  ;;  %v13440_v30 = vld [vmem:[#allocation2 + $0x584] ss:$28 sps:$4 sm:$0xff]  }
 0x11e   :  { %1975 = vmatprep.mubr.f32.mxu1 %v21901_v19  ;;  %11759 = vmatpush1.bf16.msra.mxu0 %v15540_v17  ;;  %v15571_v42 = vpack.c.bf16 %v21905_v58, %v21903_v8  ;;  %v21909_v19 = vld [vmem:[#allocation49_spill] sm:$0xff]  ;;  %v21910_v17 = vld [vmem:[#allocation52_spill] sm:$0xff]  ;;  %v15587_v58 = vsub.f32 %v13431_v24, %v15556_v48  ;;  %v15589_v8 = vand.u32 4294901760, %v13434_v37  ;;  %v15600_v24 = vsub.f32 %v13433_v52, %v15579_v43  ;;  %v21925_v54 = vld [vmem:[#allocation187_spill] sm:$0xff] }
 0x11f   :  { %21907 = vst [vmem:[#allocation137_spill] sm:$0xff] %v15577_v33  ;;  %11396 = vmatpush1.bf16.msra.mxu1 %v11395_v60  ;;  %v11398_v18 = vpack.c.bf16 %v21910_v17, %v21909_v19  ;;  %5074 = vmatprep.mubr.f32.mxu0 %v15554_v20  ;;  %v21913_v60 = vld [vmem:[#allocation175_spill] sm:$0xff]  ;;  %21916 = vst [vmem:[#allocation343_spill] sm:$0xff] %v15602_v56  ;;  %v13439_v48 = vld [vmem:[#allocation2 + $0x548] ss:$28 sps:$4 sm:$0xff]   ;;  %v15628_v3 = vand.u32 4294901760, %v13440_v30 }
 0x120   :  { %21906 = vst [vmem:[#allocation136_spill] sm:$0xff] %v15571_v42  ;;  %21911 = vst [vmem:[#allocation340_spill] sm:$0xff] %v15587_v58  ;;  %11760 = vmatprep.subr.bf16.mxu0 %v21411_v40  ;;  %11397 = vmatprep.subr.bf16.mxu1 %v21411_v40  ;;  %v21919_v17 = vld [vmem:[#allocation180_spill] sm:$0xff]  ;;  %v15620_v43 = vand.u32 4294901760, %v13439_v48  ;;  %v21944_v19 = vld [vmem:[#allocation203_spill] sm:$0xff] }
 0x121   :  { %21912 = vst [vmem:[#allocation341_spill] sm:$0xff] %v15589_v8  ;;  %1977 = vmatmul.mubr.f32.gmra.mrb[12].mxu1 %v21913_v60  ;;  %5077 = vmatmul.mubr.f32.gmra.mrb[42].mxu0 %v15577_v33  ;;  %21915 = vst [vmem:[#allocation342_spill] sm:$0xff] %v15600_v24  ;;  %v15608_v60 = vsub.f32 %v13434_v37, %v15589_v8  ;;  %v21920_v52 = vld [vmem:[#allocation184_spill] sm:$0xff]  ;;  %v11404_v8 = vpack.c.bf16 %v21698_v27, %v21697_v25  ;;  %v21931_v25 = vld [vmem:[#allocation191_spill] sm:$0xff] }
 0x122   :  { %1982 = vmatprep.mubr.f32.mxu1 %v21914_v1  ;;  %11762 = vmatpush1.bf16.msra.mxu0 %v15571_v42  ;;  %v15610_v1 = vand.u32 4294901760, %v13437_v26  ;;  %21922 = vst [vmem:[#allocation347_spill] sm:$0xff] %v15620_v43  ;;  %v13442_v37 = vld [vmem:[#allocation2 + $0x580] ss:$28 sps:$4 sm:$0xff]   ;;  %21924 = vst [vmem:[#allocation349_spill] sm:$0xff] %v15628_v3 }
 0x123   :  { %11399 = vmatpush1.bf16.msra.mxu1 %v11398_v18  ;;  %5083 = vmatprep.mubr.f32.mxu0 %v15587_v58  ;;  %21917 = vst [vmem:[#allocation344_spill] sm:$0xff] %v15608_v60  ;;  %v15618_v18 = vsub.f32 %v13436_v34, %v15602_v56  ;;  %v21926_v34 = vld [vmem:[#allocation190_spill] sm:$0xff]  ;;  %v15637_v56 = vand.u32 4294901760, %v13442_v37  ;;  %v13445_v27 = vld [vmem:[#allocation2 + $0x5b8] ss:$28 sps:$4 sm:$0xff]  }
 0x124   :  { %21918 = vst [vmem:[#allocation345_spill] sm:$0xff] %v15610_v1  ;;  %11763 = vmatprep.subr.bf16.mxu0 %v21411_v40  ;;  %11400 = vmatprep.subr.bf16.mxu1 %v21411_v40 }
 0x125   :  { %1984 = vmatmul.mubr.f32.gmra.mrb[14].mxu1 %v21919_v17  ;;  %5086 = vmatmul.mubr.f32.gmra.mrb[44].mxu0 %v15600_v24  ;;  %21921 = vst [vmem:[#allocation346_spill] sm:$0xff] %v15618_v18  ;;  %v15626_v17 = vsub.f32 %v13437_v26, %v15610_v1  ;;  %21928 = vst [vmem:[#allocation351_spill] sm:$0xff] %v15637_v56  ;;  %v11407_v26 = vpack.c.bf16 %v21720_v31, %v21719_v41  ;;  %v13448_v31 = vld [vmem:[#allocation2 + $0x5f0] ss:$28 sps:$4 sm:$0xff]  }
 0x126   :  { %1989 = vmatprep.mubr.f32.mxu1 %v21920_v52  ;;  %5092 = vmatprep.mubr.f32.mxu0 %v15608_v60  ;;  %v13443_v52 = vld [vmem:[#allocation2 + $0x5bc] ss:$28 sps:$4 sm:$0xff]   ;;  %v15643_v1 = vsub.f32 %v13440_v30, %v15628_v3  ;;  %v13449_v41 = vld [vmem:[#allocation2 + $0x62c] ss:$28 sps:$4 sm:$0xff]  }
 0x127   :  { %11402 = vmatpush1.bf16.msra.mxu1 %v11401_v22  ;;  %21923 = vst [vmem:[#allocation348_spill] sm:$0xff] %v15626_v17  ;;  %v15635_v22 = vsub.f32 %v13439_v48, %v15620_v43  ;;  %v21932_v48 = vld [vmem:[#allocation195_spill] sm:$0xff]  ;;  %v15654_v43 = vand.u32 4294901760, %v13445_v27 }
 0x128   :  { %11403 = vmatprep.subr.bf16.mxu1 %v21411_v40  ;;  %21929 = vst [vmem:[#allocation352_spill] sm:$0xff] %v15643_v1 }
 0x129   :  { %1991 = vmatmul.mubr.f32.gmra.mrb[16].mxu1 %v21925_v54  ;;  %5095 = vmatmul.mubr.f32.gmra.mrb[46].mxu0 %v15618_v18  ;;  %21927 = vst [vmem:[#allocation350_spill] sm:$0xff] %v15635_v22  ;;  %v15645_v54 = vand.u32 4294901760, %v13443_v52  ;;  %21934 = vst [vmem:[#allocation355_spill] sm:$0xff] %v15654_v43 }
 0x12a   :  { %1996 = vmatprep.mubr.f32.mxu1 %v21926_v34  ;;  %5101 = vmatprep.mubr.f32.mxu0 %v15626_v17  ;;  %v13446_v34 = vld [vmem:[#allocation2 + $0x5f4] ss:$28 sps:$4 sm:$0xff]  }
 0x12b   :  { %11405 = vmatpush1.bf16.msra.mxu1 %v11404_v8  ;;  %21930 = vst [vmem:[#allocation353_spill] sm:$0xff] %v15645_v54  ;;  %v15652_v8 = vsub.f32 %v13442_v37, %v15637_v56  ;;  %v15658_v30 = vsub.f32 %v13443_v52, %v15645_v54  ;;  %v15660_v3 = vand.u32 4294901760, %v13446_v34  ;;  %v15667_v37 = vsub.f32 %v13445_v27, %v15654_v43  ;;  %v13451_v56 = vld [vmem:[#allocation2 + $0x628] ss:$28 sps:$4 sm:$0xff]   ;;  %v21945_v27 = vld [vmem:[#allocation208_spill] sm:$0xff] }
 0x12c   :  { %11406 = vmatprep.subr.bf16.mxu1 %v21411_v40  ;;  %v21941_v52 = vpack.c.bf16 %v21741_v11, %v21740_v28  ;;  %v13454_v11 = vld [vmem:[#allocation2 + $0x660] ss:$28 sps:$4 sm:$0xff]  }
 0x12d   :  { %1998 = vmatmul.mubr.f32.gmra.mrb[18].mxu1 %v21931_v25  ;;  %5104 = vmatmul.mubr.f32.gmra.mrb[48].mxu0 %v15635_v22  ;;  %21933 = vst [vmem:[#allocation354_spill] sm:$0xff] %v15652_v8  ;;  %21935 = vst [vmem:[#allocation356_spill] sm:$0xff] %v15658_v30  ;;  %v21938_v25 = vld [vmem:[#allocation202_spill] sm:$0xff]  ;;  %v15676_v54 = vsub.f32 %v13446_v34, %v15660_v3  ;;  %v21948_v34 = vpack.c.bf16 %v21762_v9, %v21761_v57  ;;  %v21951_v28 = vld [vmem:[#allocation209_spill] sm:$0xff] }
 0x12e   :  { %2003 = vmatprep.mubr.f32.mxu1 %v21932_v48  ;;  %5110 = vmatprep.mubr.f32.mxu0 %v15643_v1  ;;  %21936 = vst [vmem:[#allocation357_spill] sm:$0xff] %v15660_v3  ;;  %v21937_v48 = vld [vmem:[#allocation198_spill] sm:$0xff]  ;;  %21939 = vst [vmem:[#allocation358_spill] sm:$0xff] %v15667_v37  ;;  %v13457_v9 = vld [vmem:[#allocation2 + $0x698] ss:$28 sps:$4 sm:$0xff]  }
 0x12f   :  { %11408 = vmatpush1.bf16.msra.mxu1 %v11407_v26  ;;  %v15669_v26 = vand.u32 4294901760, %v13448_v31  ;;  %21942 = vst [vmem:[#allocation360_spill] sm:$0xff] %v15676_v54  ;;  %v21958_v57 = vld [vmem:[#allocation216_spill] sm:$0xff] }
 0x130   :  { %11409 = vmatprep.subr.bf16.mxu1 %v21411_v40 }
 0x131   :  { %2005 = vmatmul.mubr.f32.gmra.mrb[20].mxu1 %v21937_v48  ;;  %5113 = vmatmul.mubr.f32.gmra.mrb[50].mxu0 %v15652_v8  ;;  %21940 = vst [vmem:[#allocation359_spill] sm:$0xff] %v15669_v26  ;;  %v15678_v48 = vand.u32 4294901760, %v13449_v41  ;;  %v15685_v43 = vsub.f32 %v13448_v31, %v15669_v26  ;;  %v21952_v31 = vld [vmem:[#allocation214_spill] sm:$0xff] }
 0x132   :  { %2010 = vmatprep.mubr.f32.mxu1 %v21938_v25  ;;  %5119 = vmatprep.mubr.f32.mxu0 %v15658_v30  ;;  %v13452_v25 = vld [vmem:[#allocation2 + $0x664] ss:$28 sps:$4 sm:$0xff]  }
 0x133   :  { %11411 = vmatpush1.bf16.msra.mxu1 %v21941_v52  ;;  %21943 = vst [vmem:[#allocation361_spill] sm:$0xff] %v15678_v48  ;;  %21946 = vst [vmem:[#allocation362_spill] sm:$0xff] %v15685_v43  ;;  %v15687_v52 = vand.u32 4294901760, %v13451_v56  ;;  %v15694_v3 = vsub.f32 %v13449_v41, %v15678_v48  ;;  %v21955_v41 = vpack.c.bf16 %v21772_v2, %v21771_v4  ;;  %v13460_v2 = vld [vmem:[#allocation2 + $0x6d0] ss:$28 sps:$4 sm:$0xff]  }
 0x134   :  { %11412 = vmatprep.subr.bf16.mxu1 %v21411_v40 }
 0x135   :  { %2012 = vmatmul.mubr.f32.gmra.mrb[22].mxu1 %v21944_v19  ;;  %5122 = vmatmul.mubr.f32.gmra.mrb[52].mxu0 %v15667_v37  ;;  %21947 = vst [vmem:[#allocation363_spill] sm:$0xff] %v15687_v52  ;;  %21949 = vst [vmem:[#allocation364_spill] sm:$0xff] %v15694_v3  ;;  %v15696_v19 = vand.u32 4294901760, %v13452_v25  ;;  %v15703_v26 = vsub.f32 %v13451_v56, %v15687_v52  ;;  %v21959_v56 = vld [vmem:[#allocation220_spill] sm:$0xff] }
 0x136   :  { %2017 = vmatprep.mubr.f32.mxu1 %v21945_v27  ;;  %5128 = vmatprep.mubr.f32.mxu0 %v15676_v54  ;;  %v13455_v27 = vld [vmem:[#allocation2 + $0x69c] ss:$28 sps:$4 sm:$0xff]  }
 0x137   :  { %11414 = vmatpush1.bf16.msra.mxu1 %v21948_v34  ;;  %21950 = vst [vmem:[#allocation365_spill] sm:$0xff] %v15696_v19  ;;  %21953 = vst [vmem:[#allocation366_spill] sm:$0xff] %v15703_v26  ;;  %v15705_v34 = vand.u32 4294901760, %v13454_v11  ;;  %v15712_v48 = vsub.f32 %v13452_v25, %v15696_v19  ;;  %v21962_v25 = vpack.c.bf16 %v21787_v62, %v21785_v63  ;;  %v15741_v62 = vand.u32 4294901760, %v13460_v2  ;;  %v21989_v63 = vld [vmem:[#allocation246_spill] sm:$0xff] }
 0x138   :  { %11415 = vmatprep.subr.bf16.mxu1 %v21411_v40 }
 0x139   :  { %2019 = vmatmul.mubr.f32.gmra.mrb[24].mxu1 %v21951_v28  ;;  %5131 = vmatmul.mubr.f32.gmra.mrb[54].mxu0 %v15685_v43  ;;  %21954 = vst [vmem:[#allocation367_spill] sm:$0xff] %v15705_v34  ;;  %21956 = vst [vmem:[#allocation368_spill] sm:$0xff] %v15712_v48  ;;  %v15714_v28 = vand.u32 4294901760, %v13455_v27  ;;  %v15721_v52 = vsub.f32 %v13454_v11, %v15705_v34  ;;  %v21966_v11 = vld [vmem:[#allocation225_spill] sm:$0xff] }
 0x13a   :  { %2024 = vmatprep.mubr.f32.mxu1 %v21952_v31  ;;  %5137 = vmatprep.mubr.f32.mxu0 %v15694_v3  ;;  %v13458_v31 = vld [vmem:[#allocation2 + $0x6d4] ss:$28 sps:$4 sm:$0xff]   ;;  %21968 = vst [vmem:[#allocation375_spill] sm:$0xff] %v15741_v62 }
 0x13b   :  { %11417 = vmatpush1.bf16.msra.mxu1 %v21955_v41  ;;  %21957 = vst [vmem:[#allocation369_spill] sm:$0xff] %v15714_v28  ;;  %21960 = vst [vmem:[#allocation370_spill] sm:$0xff] %v15721_v52  ;;  %v15723_v41 = vand.u32 4294901760, %v13457_v9  ;;  %v15730_v19 = vsub.f32 %v13455_v27, %v15714_v28 }
 0x13c   :  { %11418 = vmatprep.subr.bf16.mxu1 %v21411_v40 }
 0x13d   :  { %2026 = vmatmul.mubr.f32.gmra.mrb[26].mxu1 %v21958_v57  ;;  %5140 = vmatmul.mubr.f32.gmra.mrb[56].mxu0 %v15703_v26  ;;  %21961 = vst [vmem:[#allocation371_spill] sm:$0xff] %v15723_v41  ;;  %21963 = vst [vmem:[#allocation372_spill] sm:$0xff] %v15730_v19  ;;  %v15732_v57 = vand.u32 4294901760, %v13458_v31  ;;  %v15739_v34 = vsub.f32 %v13457_v9, %v15723_v41  ;;  %v15755_v9 = vsub.f32 %v13460_v2, %v15741_v62  ;;  %v21978_v2 = vld [vmem:[#allocation24_spill] sm:$0xff] }
 0x13e   :  { %2031 = vmatprep.mubr.f32.mxu1 %v21959_v56  ;;  %5146 = vmatprep.mubr.f32.mxu0 %v15712_v48  ;;  %v21965_v56 = vld [vmem:[#allocation223_spill] sm:$0xff]  ;;  %v21974_v41 = vpack.c.bf16 %v21810_v46, %v21809_v35  ;;  %v21979_v62 = vand.u32 4294901760, %v21978_v2  ;;  %v20651_v35 = vand.u32 4294901760, %v14914_v55 }
 0x13f   :  { %11420 = vmatpush1.bf16.msra.mxu1 %v21962_v25  ;;  %21964 = vst [vmem:[#allocation373_spill] sm:$0xff] %v15732_v57  ;;  %21967 = vst [vmem:[#allocation374_spill] sm:$0xff] %v15739_v34  ;;  %v21969_v25 = vpack.c.bf16 %v21795_v0, %v21793_v16  ;;  %v15748_v27 = vsub.f32 %v13458_v31, %v15732_v57  ;;  %v21976_v57 = vld [vmem:[#allocation234_spill] sm:$0xff]  ;;  %v21982_v0 = vld [vmem:[#allocation239_spill] sm:$0xff] }
 0x140   :  { %11421 = vmatprep.subr.bf16.mxu1 %v21411_v40  ;;  %21973 = vst [vmem:[#allocation377_spill] sm:$0xff] %v15755_v9  ;;  %v21983_v16 = vld [vmem:[#allocation243_spill] sm:$0xff] }
 0x141   :  { %2033 = vmatmul.mubr.f32.gmra.mrb[28].mxu1 %v21965_v56  ;;  %5149 = vmatmul.mubr.f32.gmra.mrb[58].mxu0 %v15721_v52  ;;  %21970 = vst [vmem:[#allocation376_spill] sm:$0xff] %v15748_v27  ;;  %v21971_v56 = vld [vmem:[#allocation227_spill] sm:$0xff] }
 0x142   :  { %2038 = vmatprep.mubr.f32.mxu1 %v21966_v11  ;;  %5155 = vmatprep.mubr.f32.mxu0 %v15730_v19  ;;  %v21972_v11 = vld [vmem:[#allocation232_spill] sm:$0xff] }
 0x143   :  { %11423 = vmatpush1.bf16.msra.mxu1 %v21969_v25  ;;  %v21975_v25 = vld [vmem:[#allocation247_spill] sm:$0xff] }
 0x144   :  { %11424 = vmatprep.subr.bf16.mxu1 %v21411_v40  ;;  %v20648_v31 = vand.u32 4294901760, %v21975_v25  ;;  %v21985_v25 = vld [vmem:[#allocation30_spill] sm:$0xff] }
 0x145   :  { %2040 = vmatmul.mubr.f32.gmra.mrb[30].mxu1 %v21971_v56  ;;  %5158 = vmatmul.mubr.f32.gmra.mrb[60].mxu0 %v15739_v34  ;;  %v21977_v56 = vld [vmem:[#allocation238_spill] sm:$0xff] }
 0x146   :  { %2045 = vmatprep.mubr.f32.mxu1 %v21972_v11  ;;  %5164 = vmatprep.mubr.f32.mxu0 %v15748_v27  ;;  %v20652_v11 = vand.u32 4294901760, %v21692_v23  ;;  %v21996_v23 = vld [vmem:[#allocation249_spill] sm:$0xff] }
 0x147   :  { %11426 = vmatpush1.bf16.msra.mxu1 %v21974_v41  ;;  %v21980_v41 = vld [vmem:[#allocation25_spill] sm:$0xff] }
 0x148   :  { %11427 = vmatprep.subr.bf16.mxu1 %v21411_v40  ;;  %v21981_v28 = vand.u32 4294901760, %v21980_v41  ;;  %v21986_v41 = vand.u32 4294901760, %v21985_v25 }
 0x149   :  { %2047 = vmatmul.mubr.f32.gmra.mrb[32].mxu1 %v21976_v57  ;;  %5167 = vmatmul.mubr.f32.gmra.mrb[62].mxu0 %v15755_v9 }
 0x14a   :  { %2052 = vmatprep.mubr.f32.mxu1 %v21977_v56  ;;  %5271 = vmatprep.mubr.f32.mxu0 %v20648_v31  ;;  %v11764_v46 = vpack.c.bf16 %v21981_v28, %v21979_v62  ;;  %v20656_v56 = vand.u32 4294901760, %v14936_v51  ;;  %v21984_v31 = vld [vmem:[#allocation257_spill] sm:$0xff]  ;;  %v21987_v28 = vld [vmem:[#allocation31_spill] sm:$0xff] }
 0x14b   :  { %v20658_v2 = vand.u32 4294901760, %v21984_v31  ;;  %v21988_v62 = vand.u32 4294901760, %v21987_v28 }
 0x14d   :  { %2054 = vmatmul.mubr.f32.gmra.mrb[34].mxu1 %v21982_v0  ;;  %5275 = vmatmul.mubr.f32.vlgmr.msra.gmra.mrb[0].mxu0 %v20652_v11  ;;  %v11767_v57 = vpack.c.bf16 %v21988_v62, %v21986_v41  ;;  %v21992_v11 = vld [vmem:[#allocation36_spill] sm:$0xff]  ;;  %v21994_v41 = vld [vmem:[#allocation38_spill] sm:$0xff] }
 0x14e   :  { %2059 = vmatprep.mubr.f32.mxu1 %v21983_v16  ;;  %11765 = vmatpush1.bf16.msra.mxu0 %v11764_v46  ;;  %v21990_v16 = vld [vmem:[#allocation12_spill] sm:$0xff]  ;;  %v20661_v46 = vand.u32 4294901760, %v14961_v10  ;;  %v21993_v28 = vand.u32 4294901760, %v21992_v11  ;;  %v21995_v62 = vand.u32 4294901760, %v21994_v41  ;;  %v22000_v11 = vld [vmem:[#allocation47_spill] sm:$0xff] }
 0x14f   :  { %5282 = vmatprep.mubr.f32.mxu0 %v20651_v35  ;;  %11766 = vmatprep.subr.bf16.mxu0 %v21411_v40  ;;  %v21991_v35 = vld [vmem:[#allocation262_spill] sm:$0xff]  ;;  %v22001_v41 = vand.u32 4294901760, %v22000_v11  ;;  %v22006_v11 = vld [vmem:[#allocation53_spill] sm:$0xff]  ;;  %v22011_v10 = vld [vmem:[#allocation264_spill] sm:$0xff] }
 0x150   :  { %v20662_v25 = vand.u32 4294901760, %v21991_v35  ;;  %v11770_v55 = vpack.c.bf16 %v21995_v62, %v21993_v28  ;;  %v22002_v28 = vld [vmem:[#allocation48_spill] sm:$0xff] }
 0x151   :  { %2061 = vmatmul.mubr.f32.gmra.mrb[36].mxu1 %v21989_v63  ;;  %5286 = vmatmul.mubr.f32.gmra.mrb[2].mxu0 %v20656_v56  ;;  %v21998_v56 = vld [vmem:[#allocation265_spill] sm:$0xff]  ;;  %v22003_v62 = vand.u32 4294901760, %v22002_v28  ;;  %v22007_v28 = vand.u32 4294901760, %v22006_v11  ;;  %v22010_v35 = vld [vmem:[#allocation260_spill] sm:$0xff]  ;;  %v22142_v63 = vld [vmem:[#allocation11_spill] sm:$0xff] }
 0x152   :  { %2066 = vmatprep.mubr.f32.mxu1 %v21990_v16  ;;  %5293 = vmatprep.mubr.f32.mxu0 %v20658_v2  ;;  %v21997_v16 = vld [vmem:[#allocation253_spill] sm:$0xff]  ;;  %v20666_v31 = vand.u32 4294901760, %v21998_v56  ;;  %v22143_v0 = vld [vmem:[#allocation156_spill] sm:$0xff] }
 0x153   :  { %11768 = vmatpush1.bf16.msra.mxu0 %v11767_v57  ;;  %v21999_v57 = vld [vmem:[#allocation268_spill] sm:$0xff]  ;;  %v11773_v51 = vpack.c.bf16 %v22003_v62, %v22001_v41  ;;  %v22008_v41 = vld [vmem:[#allocation54_spill] sm:$0xff]  ;;  %v22014_v11 = vld [vmem:[#allocation61_spill] sm:$0xff] }
 0x154   :  { %11769 = vmatprep.subr.bf16.mxu0 %v21411_v40  ;;  %v20668_v2 = vand.u32 4294901760, %v21999_v57  ;;  %v22009_v62 = vand.u32 4294901760, %v22008_v41  ;;  %v22015_v41 = vand.u32 4294901760, %v22014_v11  ;;  %v22021_v11 = vld [vmem:[#allocation71_spill] sm:$0xff] }
 0x155   :  { %2068 = vmatmul.mubr.f32.gmra.mrb[38].mxu1 %v21996_v23  ;;  %5297 = vmatmul.mubr.f32.gmra.mrb[4].mxu0 %v20661_v46  ;;  %v22004_v23 = vld [vmem:[#allocation256_spill] sm:$0xff]  ;;  %v20670_v46 = vand.u32 4294901760, %v15038_v13  ;;  %v22025_v13 = vld [vmem:[#allocation271_spill] sm:$0xff] }
 0x156   :  { %2073 = vmatprep.mubr.f32.mxu1 %v21997_v16  ;;  %5304 = vmatprep.mubr.f32.mxu0 %v20662_v25  ;;  %v22005_v16 = vld [vmem:[#allocation18_spill] sm:$0xff]  ;;  %v11776_v25 = vpack.c.bf16 %v22009_v62, %v22007_v28  ;;  %v22016_v28 = vld [vmem:[#allocation63_spill] sm:$0xff] }
 0x157   :  { %11771 = vmatpush1.bf16.msra.mxu0 %v11770_v55  ;;  %v20671_v55 = vand.u32 4294901760, %v15054_v61  ;;  %v22017_v62 = vand.u32 4294901760, %v22016_v28  ;;  %v22022_v28 = vand.u32 4294901760, %v22021_v11  ;;  %v22029_v11 = vld [vmem:[#allocation77_spill] sm:$0xff] }
 0x158   :  { %11772 = vmatprep.subr.bf16.mxu0 %v21411_v40 }
 0x159   :  { %2075 = vmatmul.mubr.f32.gmra.mrb[40].mxu1 %v22004_v23  ;;  %5308 = vmatmul.mubr.f32.gmra.mrb[6].mxu0 %v20666_v31  ;;  %v22012_v31 = vld [vmem:[#allocation276_spill] sm:$0xff]  ;;  %v11779_v56 = vpack.c.bf16 %v22017_v62, %v22015_v41  ;;  %v22139_v23 = vld [vmem:[#allocation242_spill] sm:$0xff] }
 0x15a   :  { %2080 = vmatprep.mubr.f32.mxu1 %v22005_v16  ;;  %5315 = vmatprep.mubr.f32.mxu0 %v20668_v2  ;;  %v20676_v57 = vand.u32 4294901760, %v22012_v31  ;;  %v22023_v41 = vld [vmem:[#allocation72_spill] sm:$0xff]  ;;  %v22135_v16 = vld [vmem:[#allocation122_spill] sm:$0xff] }
 0x15b   :  { %11774 = vmatpush1.bf16.msra.mxu0 %v11773_v51  ;;  %v22013_v51 = vld [vmem:[#allocation279_spill] sm:$0xff]  ;;  %v22024_v62 = vand.u32 4294901760, %v22023_v41  ;;  %v22030_v41 = vand.u32 4294901760, %v22029_v11  ;;  %v22035_v11 = vld [vmem:[#allocation85_spill] sm:$0xff] }
 0x15c   :  { %11775 = vmatprep.subr.bf16.mxu0 %v21411_v40  ;;  %v20678_v2 = vand.u32 4294901760, %v22013_v51 }
 0x15d   :  { %2082 = vmatmul.mubr.f32.gmra.mrb[42].mxu1 %v22010_v35  ;;  %5319 = vmatmul.mubr.f32.gmra.mrb[8].mxu0 %v20670_v46  ;;  %v22018_v35 = vld [vmem:[#allocation267_spill] sm:$0xff]  ;;  %v20680_v46 = vand.u32 4294901760, %v15107_v49  ;;  %v11782_v61 = vpack.c.bf16 %v22024_v62, %v22022_v28  ;;  %v22031_v28 = vld [vmem:[#allocation78_spill] sm:$0xff] }
 0x15e   :  { %2087 = vmatprep.mubr.f32.mxu1 %v22011_v10  ;;  %5326 = vmatprep.mubr.f32.mxu0 %v20671_v55  ;;  %v22019_v10 = vld [vmem:[#allocation270_spill] sm:$0xff]  ;;  %v22032_v62 = vand.u32 4294901760, %v22031_v28  ;;  %v22036_v28 = vand.u32 4294901760, %v22035_v11  ;;  %v22042_v11 = vld [vmem:[#allocation95_spill] sm:$0xff] }
 0x15f   :  { %11777 = vmatpush1.bf16.msra.mxu0 %v11776_v25  ;;  %v22020_v25 = vld [vmem:[#allocation284_spill] sm:$0xff]  ;;  %v22040_v49 = vld [vmem:[#allocation286_spill] sm:$0xff] }
 0x160   :  { %11778 = vmatprep.subr.bf16.mxu0 %v21411_v40  ;;  %v20681_v55 = vand.u32 4294901760, %v22020_v25  ;;  %v11785_v31 = vpack.c.bf16 %v22032_v62, %v22030_v41  ;;  %v22037_v41 = vld [vmem:[#allocation86_spill] sm:$0xff] }
 0x161   :  { %2089 = vmatmul.mubr.f32.gmra.mrb[44].mxu1 %v22018_v35  ;;  %5330 = vmatmul.mubr.f32.gmra.mrb[10].mxu0 %v20676_v57  ;;  %v22027_v57 = vld [vmem:[#allocation287_spill] sm:$0xff]  ;;  %v22038_v62 = vand.u32 4294901760, %v22037_v41  ;;  %v22039_v25 = vld [vmem:[#allocation282_spill] sm:$0xff]  ;;  %v22043_v41 = vand.u32 4294901760, %v22042_v11  ;;  %v22049_v11 = vld [vmem:[#allocation101_spill] sm:$0xff] }
 0x162   :  { %2094 = vmatprep.mubr.f32.mxu1 %v22019_v10  ;;  %5337 = vmatprep.mubr.f32.mxu0 %v20678_v2  ;;  %v22026_v10 = vld [vmem:[#allocation275_spill] sm:$0xff]  ;;  %v20685_v51 = vand.u32 4294901760, %v22027_v57  ;;  %v22046_v57 = vld [vmem:[#allocation289_spill] sm:$0xff]  ;;  %v22132_v35 = vld [vmem:[#allocation114_spill] sm:$0xff] }
 0x163   :  { %11780 = vmatpush1.bf16.msra.mxu0 %v11779_v56  ;;  %v22028_v56 = vld [vmem:[#allocation290_spill] sm:$0xff] }
 0x164   :  { %11781 = vmatprep.subr.bf16.mxu0 %v21411_v40  ;;  %v20686_v2 = vand.u32 4294901760, %v22028_v56 }
 0x165   :  { %2096 = vmatmul.mubr.f32.gmra.mrb[46].mxu1 %v22025_v13  ;;  %5341 = vmatmul.mubr.f32.gmra.mrb[12].mxu0 %v20680_v46  ;;  %v22033_v13 = vld [vmem:[#allocation278_spill] sm:$0xff]  ;;  %v20689_v46 = vand.u32 4294901760, %v15176_v53  ;;  %v22053_v53 = vld [vmem:[#allocation293_spill] sm:$0xff] }
 0x166   :  { %2101 = vmatprep.mubr.f32.mxu1 %v22026_v10  ;;  %5348 = vmatprep.mubr.f32.mxu0 %v20681_v55  ;;  %v22034_v10 = vld [vmem:[#allocation281_spill] sm:$0xff]  ;;  %v11788_v55 = vpack.c.bf16 %v22038_v62, %v22036_v28  ;;  %v22044_v28 = vld [vmem:[#allocation96_spill] sm:$0xff] }
 0x167   :  { %11783 = vmatpush1.bf16.msra.mxu0 %v11782_v61  ;;  %v20690_v61 = vand.u32 4294901760, %v15192_v39  ;;  %v22045_v62 = vand.u32 4294901760, %v22044_v28  ;;  %v22050_v28 = vand.u32 4294901760, %v22049_v11  ;;  %v22055_v11 = vld [vmem:[#allocation109_spill] sm:$0xff] }
 0x168   :  { %11784 = vmatprep.subr.bf16.mxu0 %v21411_v40 }
 0x169   :  { %2103 = vmatmul.mubr.f32.gmra.mrb[48].mxu1 %v22033_v13  ;;  %5352 = vmatmul.mubr.f32.gmra.mrb[14].mxu0 %v20685_v51  ;;  %v20695_v51 = vand.u32 4294901760, %v15214_v47  ;;  %v11791_v56 = vpack.c.bf16 %v22045_v62, %v22043_v41  ;;  %v22051_v41 = vld [vmem:[#allocation102_spill] sm:$0xff]  ;;  %v22060_v47 = vld [vmem:[#allocation55_spill] sm:$0xff] }
 0x16a   :  { %2108 = vmatprep.mubr.f32.mxu1 %v22034_v10  ;;  %5359 = vmatprep.mubr.f32.mxu0 %v20686_v2  ;;  %v22052_v62 = vand.u32 4294901760, %v22051_v41  ;;  %v22056_v41 = vand.u32 4294901760, %v22055_v11  ;;  %v22061_v11 = vld [vmem:[#allocation119_spill] sm:$0xff]  ;;  %v22126_v10 = vld [vmem:[#allocation98_spill] sm:$0xff] }
 0x16b   :  { %11786 = vmatpush1.bf16.msra.mxu0 %v11785_v31  ;;  %v22041_v31 = vld [vmem:[#allocation301_spill] sm:$0xff]  ;;  %v22129_v13 = vld [vmem:[#allocation106_spill] sm:$0xff] }
 0x16c   :  { %11787 = vmatprep.subr.bf16.mxu0 %v21411_v40  ;;  %v20696_v2 = vand.u32 4294901760, %v22041_v31  ;;  %v11794_v39 = vpack.c.bf16 %v22052_v62, %v22050_v28  ;;  %v22057_v28 = vld [vmem:[#allocation110_spill] sm:$0xff]  ;;  %v22059_v31 = vld [vmem:[#allocation300_spill] sm:$0xff] }
 0x16d   :  { %2110 = vmatmul.mubr.f32.gmra.mrb[50].mxu1 %v22039_v25  ;;  %5363 = vmatmul.mubr.f32.gmra.mrb[16].mxu0 %v20689_v46  ;;  %v20700_v46 = vand.u32 4294901760, %v15256_v15  ;;  %v22058_v62 = vand.u32 4294901760, %v22057_v28  ;;  %v22062_v28 = vand.u32 4294901760, %v22061_v11  ;;  %v22066_v15 = vld [vmem:[#allocation308_spill] sm:$0xff]  ;;  %v22067_v11 = vld [vmem:[#allocation126_spill] sm:$0xff] }
 0x16e   :  { %2115 = vmatprep.mubr.f32.mxu1 %v22040_v49  ;;  %5370 = vmatprep.mubr.f32.mxu0 %v20690_v61  ;;  %v22047_v49 = vld [vmem:[#allocation292_spill] sm:$0xff]  ;;  %v22123_v25 = vld [vmem:[#allocation90_spill] sm:$0xff] }
 0x16f   :  { %11789 = vmatpush1.bf16.msra.mxu0 %v11788_v55  ;;  %v22048_v55 = vld [vmem:[#allocation304_spill] sm:$0xff] }
 0x170   :  { %11790 = vmatprep.subr.bf16.mxu0 %v21411_v40  ;;  %v20701_v61 = vand.u32 4294901760, %v22048_v55  ;;  %v22065_v55 = vld [vmem:[#allocation303_spill] sm:$0xff] }
 0x171   :  { %2117 = vmatmul.mubr.f32.gmra.mrb[52].mxu1 %v22046_v57  ;;  %5374 = vmatmul.mubr.f32.gmra.mrb[18].mxu0 %v20695_v51  ;;  %v20705_v51 = vand.u32 4294901760, %v15282_v21  ;;  %v22096_v21 = vld [vmem:[#allocation161_spill] sm:$0xff]  ;;  %v22120_v57 = vld [vmem:[#allocation82_spill] sm:$0xff] }
 0x172   :  { %2122 = vmatprep.mubr.f32.mxu1 %v22047_v49  ;;  %5381 = vmatprep.mubr.f32.mxu0 %v20696_v2  ;;  %v22054_v49 = vld [vmem:[#allocation297_spill] sm:$0xff]  ;;  %v11797_v2 = vpack.c.bf16 %v22058_v62, %v22056_v41  ;;  %v22063_v41 = vld [vmem:[#allocation120_spill] sm:$0xff] }
 0x173   :  { %11792 = vmatpush1.bf16.msra.mxu0 %v11791_v56  ;;  %v20706_v56 = vand.u32 4294901760, %v15301_v59  ;;  %v22064_v62 = vand.u32 4294901760, %v22063_v41  ;;  %v22068_v41 = vand.u32 4294901760, %v22067_v11  ;;  %v22071_v59 = vld [vmem:[#allocation311_spill] sm:$0xff]  ;;  %v22072_v11 = vld [vmem:[#allocation133_spill] sm:$0xff] }
 0x174   :  { %11793 = vmatprep.subr.bf16.mxu0 %v21411_v40 }
 0x175   :  { %2124 = vmatmul.mubr.f32.gmra.mrb[54].mxu1 %v22053_v53  ;;  %5385 = vmatmul.mubr.f32.gmra.mrb[20].mxu0 %v20700_v46  ;;  %v20709_v46 = vand.u32 4294901760, %v15337_v45  ;;  %v22095_v45 = vld [vmem:[#allocation158_spill] sm:$0xff] }
 0x176   :  { %2129 = vmatprep.mubr.f32.mxu1 %v22054_v49  ;;  %5392 = vmatprep.mubr.f32.mxu0 %v20701_v61  ;;  %v11800_v61 = vpack.c.bf16 %v22064_v62, %v22062_v28  ;;  %v22069_v28 = vld [vmem:[#allocation127_spill] sm:$0xff]  ;;  %v22114_v49 = vld [vmem:[#allocation66_spill] sm:$0xff] }
 0x177   :  { %11795 = vmatpush1.bf16.msra.mxu0 %v11794_v39  ;;  %v20710_v39 = vand.u32 4294901760, %v15349_v44  ;;  %v22070_v62 = vand.u32 4294901760, %v22069_v28  ;;  %v22073_v28 = vand.u32 4294901760, %v22072_v11  ;;  %v22076_v44 = vld [vmem:[#allocation131_spill] sm:$0xff]  ;;  %v22117_v53 = vld [vmem:[#allocation74_spill] sm:$0xff] }
 0x178   :  { %11796 = vmatprep.subr.bf16.mxu0 %v21411_v40  ;;  %v22077_v11 = vld [vmem:[#allocation143_spill] sm:$0xff] }
 0x179   :  { %2131 = vmatmul.mubr.f32.gmra.mrb[56].mxu1 %v22059_v31  ;;  %5396 = vmatmul.mubr.f32.gmra.mrb[22].mxu0 %v20705_v51  ;;  %v20713_v51 = vand.u32 4294901760, %v15372_v38  ;;  %v22082_v38 = vld [vmem:[#allocation139_spill] sm:$0xff] }
 0x17a   :  { %2136 = vmatprep.mubr.f32.mxu1 %v22060_v47  ;;  %5403 = vmatprep.mubr.f32.mxu0 %v20706_v56  ;;  %v11803_v56 = vpack.c.bf16 %v22070_v62, %v22068_v41  ;;  %v22074_v41 = vld [vmem:[#allocation135_spill] sm:$0xff] }
 0x17b   :  { %11798 = vmatpush1.bf16.msra.mxu0 %v11797_v2  ;;  %v20714_v2 = vand.u32 4294901760, %v15389_v7  ;;  %v22075_v62 = vand.u32 4294901760, %v22074_v41  ;;  %v22078_v41 = vand.u32 4294901760, %v22077_v11  ;;  %v22081_v7 = vld [vmem:[#allocation132_spill] sm:$0xff]  ;;  %v22108_v47 = vld [vmem:[#allocation51_spill] sm:$0xff] }
 0x17c   :  { %11799 = vmatprep.subr.bf16.mxu0 %v21411_v40  ;;  %v22111_v31 = vld [vmem:[#allocation59_spill] sm:$0xff] }
 0x17d   :  { %2138 = vmatmul.mubr.f32.gmra.mrb[58].mxu1 %v22065_v55  ;;  %5407 = vmatmul.mubr.f32.gmra.mrb[24].mxu0 %v20709_v46  ;;  %v20719_v46 = vand.u32 4294901760, %v15401_v12  ;;  %v22092_v12 = vld [vmem:[#allocation21_spill] sm:$0xff] }
 0x17e   :  { %2143 = vmatprep.mubr.f32.mxu1 %v22066_v15  ;;  %5414 = vmatprep.mubr.f32.mxu0 %v20710_v39  ;;  %v11806_v39 = vpack.c.bf16 %v22075_v62, %v22073_v28  ;;  %v22079_v28 = vld [vmem:[#allocation147_spill] sm:$0xff]  ;;  %v22102_v15 = vld [vmem:[#allocation33_spill] sm:$0xff] }
 0x17f   :  { %11801 = vmatpush1.bf16.msra.mxu0 %v11800_v61  ;;  %v20720_v61 = vand.u32 4294901760, %v15404_v50  ;;  %v22080_v62 = vand.u32 4294901760, %v22079_v28  ;;  %v22086_v28 = vld [vmem:[#allocation149_spill] sm:$0xff]  ;;  %v22091_v50 = vld [vmem:[#allocation154_spill] sm:$0xff] }
 0x180   :  { %11802 = vmatprep.subr.bf16.mxu0 %v21411_v40  ;;  %v22105_v55 = vld [vmem:[#allocation41_spill] sm:$0xff] }
 0x181   :  { %2145 = vmatmul.mubr.f32.gmra.mrb[60].mxu1 %v22071_v59  ;;  %5418 = vmatmul.mubr.f32.gmra.mrb[26].mxu0 %v20713_v51  ;;  %v20721_v51 = vand.u32 4294901760, %v15419_v32  ;;  %v22101_v59 = vld [vmem:[#allocation168_spill] sm:$0xff] }
 0x182   :  { %2150 = vmatprep.mubr.f32.mxu1 %v15340_v36  ;;  %5425 = vmatprep.mubr.f32.mxu0 %v20714_v2  ;;  %v11809_v2 = vpack.c.bf16 %v22080_v62, %v22078_v41  ;;  %v22085_v41 = vld [vmem:[#allocation142_spill] sm:$0xff]  ;;  %v22087_v62 = vld [vmem:[#allocation19_spill] sm:$0xff]  ;;  %v22100_v36 = vld [vmem:[#allocation164_spill] sm:$0xff] }
 0x183   :  { %11804 = vmatpush1.bf16.msra.mxu0 %v11803_v56  ;;  %v20724_v56 = vand.u32 4294901760, %v15428_v6  ;;  %v22090_v6 = vld [vmem:[#allocation150_spill] sm:$0xff] }
 0x184   :  { %11805 = vmatprep.subr.bf16.mxu0 %v21411_v40 }
 0x185   :  { %2152 = vmatmul.mubr.f32.gmra.mrb[62].mxu1 %v15342_v14  ;;  %5429 = vmatmul.mubr.f32.gmra.mrb[28].mxu0 %v20719_v46  ;;  %v22083_v46 = vld [vmem:[#allocation13_spill] sm:$0xff]  ;;  %v22097_v14 = vld [vmem:[#allocation28_spill] sm:$0xff] }
 0x186   :  { %2287 = vmatprep.mubr.f32.mxu1 %v22076_v44  ;;  %5436 = vmatprep.mubr.f32.mxu0 %v20720_v61  ;;  %v20733_v61 = vand.u32 4294901760, %v15444_v5  ;;  %v22093_v5 = vld [vmem:[#allocation111_spill] sm:$0xff] }
 0x187   :  { %11807 = vmatpush1.bf16.msra.mxu0 %v11806_v39  ;;  %v22084_v39 = vld [vmem:[#allocation325_spill] sm:$0xff] }
 0x188   :  { %11808 = vmatprep.subr.bf16.mxu0 %v21411_v40  ;;  %v20735_v11 = vand.u32 4294901760, %v22084_v39  ;;  %v22094_v39 = vld [vmem:[#allocation331_spill] sm:$0xff] }
 0x189   :  { %2290 = vmatmul.mubr.f32.vlgmr.msra.gmra.mrb[0].mxu1 %v22081_v7  ;;  %5440 = vmatmul.mubr.f32.gmra.mrb[30].mxu0 %v20721_v51  ;;  %v22088_v51 = vld [vmem:[#allocation103_spill] sm:$0xff] }
 0x18a   :  { %2296 = vmatprep.mubr.f32.mxu1 %v22082_v38  ;;  %11429 = vmatpush1.bf16.msra.mxu1 %v22083_v46  ;;  %v20743_v32 = vand.u32 4294901760, %v22088_v51  ;;  %v22098_v51 = vld [vmem:[#allocation117_spill] sm:$0xff] }
 0x18b   :  { %11430 = vmatprep.subr.bf16.mxu1 %v21411_v40  ;;  %5447 = vmatprep.mubr.f32.mxu0 %v20724_v56  ;;  %v22089_v56 = vld [vmem:[#allocation328_spill] sm:$0xff] }
 0x18c   :  { %11810 = vmatpush1.bf16.msra.mxu0 %v11809_v2  ;;  %v20745_v2 = vand.u32 4294901760, %v22089_v56  ;;  %v22099_v56 = vld [vmem:[#allocation334_spill] sm:$0xff] }
 0x18d   :  { %2299 = vmatmul.mubr.f32.gmra.mrb[2].mxu1 %v22085_v41  ;;  %11811 = vmatprep.subr.bf16.mxu0 %v21411_v40 }
 0x18e   :  { %2305 = vmatprep.mubr.f32.mxu1 %v22086_v28  ;;  %11432 = vmatpush1.bf16.msra.mxu1 %v22087_v62  ;;  %v22160_v62 = vld [vmem:[#allocation37_spill] sm:$0xff] }
 0x18f   :  { %5451 = vmatmul.mubr.f32.gmra.mrb[32].mxu0 %v20733_v61  ;;  %11433 = vmatprep.subr.bf16.mxu1 %v21411_v40  ;;  %v20748_v61 = vand.u32 4294901760, %v22093_v5  ;;  %v22104_v5 = vld [vmem:[#allocation173_spill] sm:$0xff] }
 0x190   :  { %5458 = vmatprep.mubr.f32.mxu0 %v20735_v11  ;;  %v20749_v11 = vand.u32 4294901760, %v22094_v39  ;;  %v22103_v39 = vld [vmem:[#allocation170_spill] sm:$0xff] }
 0x191   :  { %2308 = vmatmul.mubr.f32.gmra.mrb[4].mxu1 %v22090_v6 }
 0x192   :  { %2314 = vmatprep.mubr.f32.mxu1 %v22091_v50  ;;  %11435 = vmatpush1.bf16.msra.mxu1 %v22092_v12  ;;  %v22159_v12 = vld [vmem:[#allocation174_spill] sm:$0xff] }
 0x193   :  { %5462 = vmatmul.mubr.f32.gmra.mrb[34].mxu0 %v20743_v32  ;;  %11436 = vmatprep.subr.bf16.mxu1 %v21411_v40  ;;  %v20752_v32 = vand.u32 4294901760, %v22098_v51  ;;  %v22107_v51 = vld [vmem:[#allocation179_spill] sm:$0xff] }
 0x194   :  { %5469 = vmatprep.mubr.f32.mxu0 %v20745_v2  ;;  %v20753_v2 = vand.u32 4294901760, %v22099_v56  ;;  %v22106_v56 = vld [vmem:[#allocation177_spill] sm:$0xff] }
 0x195   :  { %2317 = vmatmul.mubr.f32.gmra.mrb[6].mxu1 %v22095_v45 }
 0x196   :  { %2323 = vmatprep.mubr.f32.mxu1 %v22096_v21  ;;  %11438 = vmatpush1.bf16.msra.mxu1 %v22097_v14  ;;  %v22158_v14 = vld [vmem:[#allocation172_spill] sm:$0xff] }
 0x197   :  { %5473 = vmatmul.mubr.f32.gmra.mrb[36].mxu0 %v20748_v61  ;;  %11439 = vmatprep.subr.bf16.mxu1 %v21411_v40  ;;  %v20756_v61 = vand.u32 4294901760, %v15546_v29  ;;  %v22110_v29 = vld [vmem:[#allocation185_spill] sm:$0xff] }
 0x198   :  { %5480 = vmatprep.mubr.f32.mxu0 %v20749_v11  ;;  %v20757_v11 = vand.u32 4294901760, %v15554_v20  ;;  %v22109_v20 = vld [vmem:[#allocation182_spill] sm:$0xff] }
 0x199   :  { %2326 = vmatmul.mubr.f32.gmra.mrb[8].mxu1 %v22100_v36 }
 0x19a   :  { %2332 = vmatprep.mubr.f32.mxu1 %v22101_v59  ;;  %11441 = vmatpush1.bf16.msra.mxu1 %v22102_v15 }
 0x19b   :  { %5484 = vmatmul.mubr.f32.gmra.mrb[38].mxu0 %v20752_v32  ;;  %11442 = vmatprep.subr.bf16.mxu1 %v21411_v40  ;;  %v20762_v32 = vand.u32 4294901760, %v15577_v33  ;;  %v22113_v33 = vld [vmem:[#allocation192_spill] sm:$0xff] }
 0x19c   :  { %5491 = vmatprep.mubr.f32.mxu0 %v20753_v2  ;;  %v20763_v2 = vand.u32 4294901760, %v15587_v58  ;;  %v22112_v58 = vld [vmem:[#allocation188_spill] sm:$0xff] }
 0x19d   :  { %2335 = vmatmul.mubr.f32.gmra.mrb[10].mxu1 %v22103_v39 }
 0x19e   :  { %2341 = vmatprep.mubr.f32.mxu1 %v22104_v5  ;;  %11444 = vmatpush1.bf16.msra.mxu1 %v22105_v55  ;;  %v22156_v55 = vld [vmem:[#allocation258_spill] sm:$0xff] }
 0x19f   :  { %5495 = vmatmul.mubr.f32.gmra.mrb[40].mxu0 %v20756_v61  ;;  %11445 = vmatprep.subr.bf16.mxu1 %v21411_v40  ;;  %v20768_v61 = vand.u32 4294901760, %v15600_v24  ;;  %v22116_v24 = vld [vmem:[#allocation197_spill] sm:$0xff] }
 0x1a0   :  { %5502 = vmatprep.mubr.f32.mxu0 %v20757_v11  ;;  %v20769_v11 = vand.u32 4294901760, %v15608_v60  ;;  %v22115_v60 = vld [vmem:[#allocation194_spill] sm:$0xff] }
 0x1a1   :  { %2344 = vmatmul.mubr.f32.gmra.mrb[12].mxu1 %v22106_v56 }
 0x1a2   :  { %2350 = vmatprep.mubr.f32.mxu1 %v22107_v51  ;;  %11447 = vmatpush1.bf16.msra.mxu1 %v22108_v47  ;;  %v22154_v47 = vld [vmem:[#allocation169_spill] sm:$0xff] }
 0x1a3   :  { %5506 = vmatmul.mubr.f32.gmra.mrb[42].mxu0 %v20762_v32  ;;  %11448 = vmatprep.subr.bf16.mxu1 %v21411_v40  ;;  %v20774_v32 = vand.u32 4294901760, %v15618_v18  ;;  %v22119_v18 = vld [vmem:[#allocation204_spill] sm:$0xff] }
 0x1a4   :  { %5513 = vmatprep.mubr.f32.mxu0 %v20763_v2  ;;  %v20775_v2 = vand.u32 4294901760, %v15626_v17  ;;  %v22118_v17 = vld [vmem:[#allocation200_spill] sm:$0xff] }
 0x1a5   :  { %2353 = vmatmul.mubr.f32.gmra.mrb[14].mxu1 %v22109_v20 }
 0x1a6   :  { %2359 = vmatprep.mubr.f32.mxu1 %v22110_v29  ;;  %11450 = vmatpush1.bf16.msra.mxu1 %v22111_v31  ;;  %v22153_v31 = vld [vmem:[#allocation165_spill] sm:$0xff] }
 0x1a7   :  { %5517 = vmatmul.mubr.f32.gmra.mrb[44].mxu0 %v20768_v61  ;;  %11451 = vmatprep.subr.bf16.mxu1 %v21411_v40  ;;  %v20780_v61 = vand.u32 4294901760, %v15635_v22  ;;  %v22122_v22 = vld [vmem:[#allocation210_spill] sm:$0xff] }
 0x1a8   :  { %5524 = vmatprep.mubr.f32.mxu0 %v20769_v11  ;;  %v20781_v11 = vand.u32 4294901760, %v15643_v1  ;;  %v22121_v1 = vld [vmem:[#allocation206_spill] sm:$0xff] }
 0x1a9   :  { %2362 = vmatmul.mubr.f32.gmra.mrb[16].mxu1 %v22112_v58 }
 0x1aa   :  { %2368 = vmatprep.mubr.f32.mxu1 %v22113_v33  ;;  %11453 = vmatpush1.bf16.msra.mxu1 %v22114_v49  ;;  %v22152_v49 = vld [vmem:[#allocation255_spill] sm:$0xff] }
 0x1ab   :  { %5528 = vmatmul.mubr.f32.gmra.mrb[46].mxu0 %v20774_v32  ;;  %11454 = vmatprep.subr.bf16.mxu1 %v21411_v40  ;;  %v20786_v32 = vand.u32 4294901760, %v15652_v8  ;;  %v22125_v8 = vld [vmem:[#allocation215_spill] sm:$0xff] }
 0x1ac   :  { %5535 = vmatprep.mubr.f32.mxu0 %v20775_v2  ;;  %v20787_v2 = vand.u32 4294901760, %v15658_v30  ;;  %v22124_v30 = vld [vmem:[#allocation212_spill] sm:$0xff] }
 0x1ad   :  { %2371 = vmatmul.mubr.f32.gmra.mrb[18].mxu1 %v22115_v60 }
 0x1ae   :  { %2377 = vmatprep.mubr.f32.mxu1 %v22116_v24  ;;  %11456 = vmatpush1.bf16.msra.mxu1 %v22117_v53  ;;  %v22151_v53 = vld [vmem:[#allocation252_spill] sm:$0xff] }
 0x1af   :  { %5539 = vmatmul.mubr.f32.gmra.mrb[48].mxu0 %v20780_v61  ;;  %11457 = vmatprep.subr.bf16.mxu1 %v21411_v40  ;;  %v20792_v61 = vand.u32 4294901760, %v15667_v37  ;;  %v22128_v37 = vld [vmem:[#allocation221_spill] sm:$0xff] }
 0x1b0   :  { %5546 = vmatprep.mubr.f32.mxu0 %v20781_v11  ;;  %v20793_v11 = vand.u32 4294901760, %v15676_v54  ;;  %v22127_v54 = vld [vmem:[#allocation218_spill] sm:$0xff] }
 0x1b1   :  { %2380 = vmatmul.mubr.f32.gmra.mrb[20].mxu1 %v22118_v17 }
 0x1b2   :  { %2386 = vmatprep.mubr.f32.mxu1 %v22119_v18  ;;  %11459 = vmatpush1.bf16.msra.mxu1 %v22120_v57 }
 0x1b3   :  { %5550 = vmatmul.mubr.f32.gmra.mrb[50].mxu0 %v20786_v32  ;;  %11460 = vmatprep.subr.bf16.mxu1 %v21411_v40  ;;  %v20798_v32 = vand.u32 4294901760, %v15685_v43  ;;  %v22131_v43 = vld [vmem:[#allocation228_spill] sm:$0xff] }
 0x1b4   :  { %5557 = vmatprep.mubr.f32.mxu0 %v20787_v2  ;;  %v20799_v2 = vand.u32 4294901760, %v15694_v3  ;;  %v22130_v3 = vld [vmem:[#allocation226_spill] sm:$0xff] }
 0x1b5   :  { %2389 = vmatmul.mubr.f32.gmra.mrb[22].mxu1 %v22121_v1 }
 0x1b6   :  { %2395 = vmatprep.mubr.f32.mxu1 %v22122_v22  ;;  %11462 = vmatpush1.bf16.msra.mxu1 %v22123_v25 }
 0x1b7   :  { %5561 = vmatmul.mubr.f32.gmra.mrb[52].mxu0 %v20792_v61  ;;  %11463 = vmatprep.subr.bf16.mxu1 %v21411_v40  ;;  %v20804_v61 = vand.u32 4294901760, %v15703_v26  ;;  %v22134_v26 = vld [vmem:[#allocation233_spill] sm:$0xff] }
 0x1b8   :  { %5568 = vmatprep.mubr.f32.mxu0 %v20793_v11  ;;  %v20805_v11 = vand.u32 4294901760, %v15712_v48  ;;  %v22133_v48 = vld [vmem:[#allocation230_spill] sm:$0xff] }
 0x1b9   :  { %2398 = vmatmul.mubr.f32.gmra.mrb[24].mxu1 %v22124_v30 }
 0x1ba   :  { %2404 = vmatprep.mubr.f32.mxu1 %v22125_v8  ;;  %11465 = vmatpush1.bf16.msra.mxu1 %v22126_v10  ;;  %v22147_v10 = vld [vmem:[#allocation163_spill] sm:$0xff] }
 0x1bb   :  { %5572 = vmatmul.mubr.f32.gmra.mrb[54].mxu0 %v20798_v32  ;;  %11466 = vmatprep.subr.bf16.mxu1 %v21411_v40  ;;  %v20810_v32 = vand.u32 4294901760, %v15721_v52  ;;  %v22138_v52 = vld [vmem:[#allocation145_spill] sm:$0xff] }
 0x1bc   :  { %5579 = vmatprep.mubr.f32.mxu0 %v20799_v2  ;;  %v20813_v2 = vand.u32 4294901760, %v15730_v19  ;;  %v22136_v19 = vld [vmem:[#allocation237_spill] sm:$0xff] }
 0x1bd   :  { %2407 = vmatmul.mubr.f32.gmra.mrb[26].mxu1 %v22127_v54 }
 0x1be   :  { %2413 = vmatprep.mubr.f32.mxu1 %v22128_v37  ;;  %11468 = vmatpush1.bf16.msra.mxu1 %v22129_v13  ;;  %v22146_v13 = vld [vmem:[#allocation160_spill] sm:$0xff] }
 0x1bf   :  { %5583 = vmatmul.mubr.f32.gmra.mrb[56].mxu0 %v20804_v61  ;;  %11469 = vmatprep.subr.bf16.mxu1 %v21411_v40  ;;  %v20818_v61 = vand.u32 4294901760, %v15739_v34  ;;  %v22140_v34 = vld [vmem:[#allocation244_spill] sm:$0xff] }
 0x1c0   :  { %5590 = vmatprep.mubr.f32.mxu0 %v20805_v11  ;;  %v20819_v11 = vand.u32 4294901760, %v15748_v27  ;;  %v16141_v27 = vld [vmem:[#allocation5 + $0x200] sm:$0xff] }
 0x1c1   :  { %2416 = vmatmul.mubr.f32.gmra.mrb[28].mxu1 %v22130_v3 }
 0x1c2   :  { %2422 = vmatprep.mubr.f32.mxu1 %v22131_v43  ;;  %11471 = vmatpush1.bf16.msra.mxu1 %v22132_v35 }
 0x1c3   :  { %5594 = vmatmul.mubr.f32.gmra.mrb[58].mxu0 %v20810_v32  ;;  %11472 = vmatprep.subr.bf16.mxu1 %v21411_v40  ;;  %v20824_v32 = vand.u32 4294901760, %v15755_v9  ;;  %v16143_v9 = vld [vmem:[#allocation5 + $0x208] sm:$0xff] }
 0x1c4   :  { %5601 = vmatprep.mubr.f32.mxu0 %v20813_v2  ;;  %v22137_v2 = vld [vmem:[#allocation240_spill] sm:$0xff]  ;;  %v20826_v35 = vand.u32 4294901760, %v16143_v9 }
 0x1c5   :  { %2425 = vmatmul.mubr.f32.gmra.mrb[30].mxu1 %v22133_v48 }
 0x1c6   :  { %2431 = vmatprep.mubr.f32.mxu1 %v22134_v26  ;;  %11474 = vmatpush1.bf16.msra.mxu1 %v22135_v16  ;;  %v20825_v16 = vand.u32 4294901760, %v16141_v27  ;;  %v16159_v57 = vsub.f32 %v16143_v9, %v20826_v35  ;;  %v16171_v35 = vld [vmem:[#allocation5 + $0x218] sm:$0xff] }
 0x1c7   :  { %5605 = vmatmul.mubr.f32.gmra.mrb[60].mxu0 %v20818_v61  ;;  %11475 = vmatprep.subr.bf16.mxu1 %v21411_v40  ;;  %v22141_v61 = vld [vmem:[#allocation151_spill] sm:$0xff]  ;;  %v20830_v15 = vand.u32 4294901760, %v16171_v35 }
 0x1c8   :  { %5612 = vmatprep.mubr.f32.mxu0 %v20819_v11  ;;  %v22144_v11 = vld [vmem:[#allocation248_spill] sm:$0xff]  ;;  %v16154_v25 = vsub.f32 %v16141_v27, %v20825_v16  ;;  %22150 = vst [vmem:[#allocation25_spill] sm:$0xff] %v16159_v57  ;;  %v16169_v16 = vld [vmem:[#allocation5 + $0x210] sm:$0xff]  ;;  %v22157_v57 = vld [vmem:[#allocation261_spill] sm:$0xff] }
 0x1c9   :  { %2434 = vmatmul.mubr.f32.gmra.mrb[32].mxu1 %v22136_v19  ;;  %v16187_v46 = vsub.f32 %v16171_v35, %v20830_v15  ;;  %v16199_v15 = vld [vmem:[#allocation5 + $0x228] sm:$0xff] }
 0x1ca   :  { %2440 = vmatprep.mubr.f32.mxu1 %v22137_v2  ;;  %22149 = vst [vmem:[#allocation24_spill] sm:$0xff] %v16154_v25  ;;  %v20829_v25 = vand.u32 4294901760, %v16169_v16  ;;  %22170 = vst [vmem:[#allocation38_spill] sm:$0xff] %v16199_v15 }
 0x1cb   :  { %5616 = vmatmul.mubr.f32.gmra.mrb[62].mxu0 %v20824_v32  ;;  %v22145_v32 = vld [vmem:[#allocation250_spill] sm:$0xff]  ;;  %22162 = vst [vmem:[#allocation31_spill] sm:$0xff] %v16187_v46  ;;  %v22171_v46 = vld [vmem:[#allocation272_spill] sm:$0xff] }
 0x1cc   :  { %5782 = vmatprep.mubr.f32.mxu0 %v22138_v52 }
 0x1cd   :  { %2443 = vmatmul.mubr.f32.gmra.mrb[34].mxu1 %v22139_v23 }
 0x1ce   :  { %2449 = vmatprep.mubr.f32.mxu1 %v22140_v34 }
 0x1cf   :  { %5784 = vmatmul.mubr.f32.vlgmr.msra.gmra.mrb[0].mxu0 %v22141_v61 }
 0x1d0   :  { %11813 = vmatpush1.bf16.msra.mxu0 %v22142_v63  ;;  %5789 = vmatprep.mubr.f32.mxu0 %v22143_v0  ;;  %v22148_v63 = vld [vmem:[#allocation17_spill] sm:$0xff] }
 0x1d1   :  { %2452 = vmatmul.mubr.f32.gmra.mrb[36].mxu1 %v22144_v11  ;;  %11814 = vmatprep.subr.bf16.mxu0 %v21411_v40 }
 0x1d2   :  { %2458 = vmatprep.mubr.f32.mxu1 %v22145_v32 }
 0x1d3   :  { %5791 = vmatmul.mubr.f32.gmra.mrb[2].mxu0 %v22146_v13 }
 0x1d4   :  { %5796 = vmatprep.mubr.f32.mxu0 %v22147_v10  ;;  %11816 = vmatpush1.bf16.msra.mxu0 %v22148_v63  ;;  %v22155_v63 = vld [vmem:[#allocation27_spill] sm:$0xff]  ;;  %v22237_v10 = vld [vmem:[#allocation236_spill] sm:$0xff] }
 0x1d5   :  { %2461 = vmatmul.mubr.f32.gmra.mrb[38].mxu1 %v22151_v53  ;;  %11817 = vmatprep.subr.bf16.mxu0 %v21411_v40  ;;  %v22192_v53 = vld [vmem:[#allocation288_spill] sm:$0xff] }
 0x1d6   :  { %2467 = vmatprep.mubr.f32.mxu1 %v22152_v49  ;;  %v22182_v49 = vld [vmem:[#allocation280_spill] sm:$0xff] }
 0x1d7   :  { %5798 = vmatmul.mubr.f32.gmra.mrb[4].mxu0 %v22153_v31  ;;  %v22178_v31 = vld [vmem:[#allocation277_spill] sm:$0xff] }
 0x1d8   :  { %5803 = vmatprep.mubr.f32.mxu0 %v22154_v47  ;;  %11819 = vmatpush1.bf16.msra.mxu0 %v22155_v63  ;;  %v16182_v63 = vsub.f32 %v16169_v16, %v20829_v25  ;;  %v22168_v47 = vld [vmem:[#allocation269_spill] sm:$0xff] }
 0x1d9   :  { %2470 = vmatmul.mubr.f32.gmra.mrb[40].mxu1 %v22156_v55  ;;  %11820 = vmatprep.subr.bf16.mxu0 %v21411_v40  ;;  %v22164_v55 = vld [vmem:[#allocation266_spill] sm:$0xff]  ;;  %v16197_v25 = vld [vmem:[#allocation5 + $0x220] sm:$0xff] }
 0x1da   :  { %2476 = vmatprep.mubr.f32.mxu1 %v22157_v57  ;;  %22161 = vst [vmem:[#allocation30_spill] sm:$0xff] %v16182_v63  ;;  %v22163_v57 = vld [vmem:[#allocation263_spill] sm:$0xff]  ;;  %22169 = vst [vmem:[#allocation36_spill] sm:$0xff] %v16197_v25  ;;  %v20833_v63 = vand.u32 4294901760, %v16197_v25 }
 0x1db   :  { %5805 = vmatmul.mubr.f32.gmra.mrb[6].mxu0 %v22158_v14  ;;  %v22165_v14 = vld [vmem:[#allocation178_spill] sm:$0xff] }
 0x1dc   :  { %5810 = vmatprep.mubr.f32.mxu0 %v22159_v12  ;;  %11822 = vmatpush1.bf16.msra.mxu0 %v22160_v62  ;;  %v22166_v12 = vld [vmem:[#allocation181_spill] sm:$0xff]  ;;  %v22167_v62 = vld [vmem:[#allocation42_spill] sm:$0xff] }
 0x1dd   :  { %2479 = vmatmul.mubr.f32.gmra.mrb[42].mxu1 %v22163_v57  ;;  %11823 = vmatprep.subr.bf16.mxu0 %v21411_v40  ;;  %v22172_v57 = vld [vmem:[#allocation183_spill] sm:$0xff] }
 0x1de   :  { %2485 = vmatprep.mubr.f32.mxu1 %v22164_v55  ;;  %v20834_v55 = vand.u32 4294901760, %v16199_v15 }
 0x1df   :  { %5812 = vmatmul.mubr.f32.gmra.mrb[8].mxu0 %v22165_v14  ;;  %v22173_v14 = vld [vmem:[#allocation186_spill] sm:$0xff] }
 0x1e0   :  { %5817 = vmatprep.mubr.f32.mxu0 %v22166_v12  ;;  %11825 = vmatpush1.bf16.msra.mxu0 %v22167_v62  ;;  %v22174_v12 = vld [vmem:[#allocation99_spill] sm:$0xff]  ;;  %v16210_v62 = vsub.f32 %v16197_v25, %v20833_v63 }
 0x1e1   :  { %2488 = vmatmul.mubr.f32.gmra.mrb[44].mxu1 %v22168_v47  ;;  %11826 = vmatprep.subr.bf16.mxu0 %v21411_v40  ;;  %v16215_v47 = vsub.f32 %v16199_v15, %v20834_v55  ;;  %v16225_v63 = vld [vmem:[#allocation5 + $0x230] sm:$0xff]  ;;  %v16227_v55 = vld [vmem:[#allocation5 + $0x238] sm:$0xff] }
 0x1e2   :  { %2494 = vmatprep.mubr.f32.mxu1 %v22171_v46  ;;  %22175 = vst [vmem:[#allocation47_spill] sm:$0xff] %v16210_v62  ;;  %v22177_v46 = vld [vmem:[#allocation274_spill] sm:$0xff]  ;;  %22183 = vst [vmem:[#allocation53_spill] sm:$0xff] %v16225_v63  ;;  %v20838_v62 = vand.u32 4294901760, %v16225_v63  ;;  %v22196_v15 = vld [vmem:[#allocation291_spill] sm:$0xff] }
 0x1e3   :  { %5819 = vmatmul.mubr.f32.gmra.mrb[10].mxu0 %v22172_v57  ;;  %22176 = vst [vmem:[#allocation48_spill] sm:$0xff] %v16215_v47  ;;  %v22179_v57 = vld [vmem:[#allocation189_spill] sm:$0xff]  ;;  %22184 = vst [vmem:[#allocation54_spill] sm:$0xff] %v16227_v55  ;;  %v22185_v47 = vld [vmem:[#allocation283_spill] sm:$0xff] }
 0x1e4   :  { %5824 = vmatprep.mubr.f32.mxu0 %v22173_v14  ;;  %11828 = vmatpush1.bf16.msra.mxu0 %v22174_v12  ;;  %v22180_v14 = vld [vmem:[#allocation193_spill] sm:$0xff]  ;;  %v22181_v12 = vld [vmem:[#allocation58_spill] sm:$0xff] }
 0x1e5   :  { %2497 = vmatmul.mubr.f32.gmra.mrb[46].mxu1 %v22177_v46  ;;  %11829 = vmatprep.subr.bf16.mxu0 %v21411_v40  ;;  %v22186_v46 = vld [vmem:[#allocation196_spill] sm:$0xff] }
 0x1e6   :  { %2503 = vmatprep.mubr.f32.mxu1 %v22178_v31  ;;  %v20839_v31 = vand.u32 4294901760, %v16227_v55 }
 0x1e7   :  { %5826 = vmatmul.mubr.f32.gmra.mrb[12].mxu0 %v22179_v57  ;;  %v22187_v57 = vld [vmem:[#allocation199_spill] sm:$0xff] }
 0x1e8   :  { %5831 = vmatprep.mubr.f32.mxu0 %v22180_v14  ;;  %11831 = vmatpush1.bf16.msra.mxu0 %v22181_v12  ;;  %v22188_v14 = vld [vmem:[#allocation64_spill] sm:$0xff]  ;;  %v16238_v12 = vsub.f32 %v16225_v63, %v20838_v62  ;;  %v16253_v62 = vld [vmem:[#allocation5 + $0x240] sm:$0xff]  ;;  %v22210_v63 = vld [vmem:[#allocation302_spill] sm:$0xff] }
 0x1e9   :  { %2506 = vmatmul.mubr.f32.gmra.mrb[48].mxu1 %v22182_v49  ;;  %11832 = vmatprep.subr.bf16.mxu0 %v21411_v40  ;;  %v16243_v49 = vsub.f32 %v16227_v55, %v20839_v31  ;;  %22197 = vst [vmem:[#allocation71_spill] sm:$0xff] %v16253_v62  ;;  %v16255_v31 = vld [vmem:[#allocation5 + $0x248] sm:$0xff]  ;;  %v22206_v55 = vld [vmem:[#allocation299_spill] sm:$0xff] }
 0x1ea   :  { %2512 = vmatprep.mubr.f32.mxu1 %v22185_v47  ;;  %22189 = vst [vmem:[#allocation61_spill] sm:$0xff] %v16238_v12  ;;  %v22191_v47 = vld [vmem:[#allocation285_spill] sm:$0xff]  ;;  %22198 = vst [vmem:[#allocation72_spill] sm:$0xff] %v16255_v31  ;;  %v20844_v12 = vand.u32 4294901760, %v16253_v62 }
 0x1eb   :  { %5833 = vmatmul.mubr.f32.gmra.mrb[14].mxu0 %v22186_v46  ;;  %22190 = vst [vmem:[#allocation63_spill] sm:$0xff] %v16243_v49  ;;  %v22193_v46 = vld [vmem:[#allocation201_spill] sm:$0xff]  ;;  %v22199_v49 = vld [vmem:[#allocation294_spill] sm:$0xff] }
 0x1ec   :  { %5838 = vmatprep.mubr.f32.mxu0 %v22187_v57  ;;  %11834 = vmatpush1.bf16.msra.mxu0 %v22188_v14  ;;  %v22194_v57 = vld [vmem:[#allocation205_spill] sm:$0xff] }
 0x1ed   :  { %2515 = vmatmul.mubr.f32.gmra.mrb[50].mxu1 %v22191_v47  ;;  %11835 = vmatprep.subr.bf16.mxu0 %v21411_v40  ;;  %v22195_v14 = vld [vmem:[#allocation73_spill] sm:$0xff]  ;;  %v22200_v47 = vld [vmem:[#allocation207_spill] sm:$0xff] }
 0x1ee   :  { %2521 = vmatprep.mubr.f32.mxu1 %v22192_v53  ;;  %v20845_v53 = vand.u32 4294901760, %v16255_v31 }
 0x1ef   :  { %5840 = vmatmul.mubr.f32.gmra.mrb[16].mxu0 %v22193_v46  ;;  %v22201_v46 = vld [vmem:[#allocation211_spill] sm:$0xff] }
 0x1f0   :  { %5845 = vmatprep.mubr.f32.mxu0 %v22194_v57  ;;  %11837 = vmatpush1.bf16.msra.mxu0 %v22195_v14  ;;  %v22202_v57 = vld [vmem:[#allocation81_spill] sm:$0xff]  ;;  %v16266_v14 = vsub.f32 %v16253_v62, %v20844_v12  ;;  %v16281_v12 = vld [vmem:[#allocation5 + $0x250] sm:$0xff]  ;;  %v22224_v62 = vld [vmem:[#allocation312_spill] sm:$0xff] }
 0x1f1   :  { %2524 = vmatmul.mubr.f32.gmra.mrb[52].mxu1 %v22196_v15  ;;  %11838 = vmatprep.subr.bf16.mxu0 %v21411_v40  ;;  %v16271_v15 = vsub.f32 %v16255_v31, %v20845_v53  ;;  %22211 = vst [vmem:[#allocation85_spill] sm:$0xff] %v16281_v12  ;;  %v16283_v53 = vld [vmem:[#allocation5 + $0x258] sm:$0xff]  ;;  %v22220_v31 = vld [vmem:[#allocation309_spill] sm:$0xff] }
 0x1f2   :  { %2530 = vmatprep.mubr.f32.mxu1 %v22199_v49  ;;  %22203 = vst [vmem:[#allocation77_spill] sm:$0xff] %v16266_v14  ;;  %v22205_v49 = vld [vmem:[#allocation296_spill] sm:$0xff]  ;;  %22212 = vst [vmem:[#allocation86_spill] sm:$0xff] %v16283_v53  ;;  %v20850_v14 = vand.u32 4294901760, %v16281_v12 }
 0x1f3   :  { %5847 = vmatmul.mubr.f32.gmra.mrb[18].mxu0 %v22200_v47  ;;  %22204 = vst [vmem:[#allocation78_spill] sm:$0xff] %v16271_v15  ;;  %v22207_v47 = vld [vmem:[#allocation213_spill] sm:$0xff] }
 0x1f4   :  { %5852 = vmatprep.mubr.f32.mxu0 %v22201_v46  ;;  %11840 = vmatpush1.bf16.msra.mxu0 %v22202_v57  ;;  %v22208_v46 = vld [vmem:[#allocation217_spill] sm:$0xff] }
 0x1f5   :  { %2533 = vmatmul.mubr.f32.gmra.mrb[54].mxu1 %v22205_v49  ;;  %11841 = vmatprep.subr.bf16.mxu0 %v21411_v40  ;;  %v22209_v57 = vld [vmem:[#allocation89_spill] sm:$0xff]  ;;  %v22214_v49 = vld [vmem:[#allocation219_spill] sm:$0xff] }
 0x1f6   :  { %2539 = vmatprep.mubr.f32.mxu1 %v22206_v55  ;;  %v22213_v15 = vld [vmem:[#allocation305_spill] sm:$0xff]  ;;  %v20851_v55 = vand.u32 4294901760, %v16283_v53 }
 0x1f7   :  { %5854 = vmatmul.mubr.f32.gmra.mrb[20].mxu0 %v22207_v47  ;;  %v22215_v47 = vld [vmem:[#allocation222_spill] sm:$0xff] }
 0x1f8   :  { %5859 = vmatprep.mubr.f32.mxu0 %v22208_v46  ;;  %11843 = vmatpush1.bf16.msra.mxu0 %v22209_v57  ;;  %v22216_v46 = vld [vmem:[#allocation97_spill] sm:$0xff]  ;;  %v16294_v57 = vsub.f32 %v16281_v12, %v20850_v14 }
 0x1f9   :  { %2542 = vmatmul.mubr.f32.gmra.mrb[56].mxu1 %v22210_v63  ;;  %11844 = vmatprep.subr.bf16.mxu0 %v21411_v40  ;;  %v16299_v63 = vsub.f32 %v16283_v53, %v20851_v55  ;;  %v16309_v14 = vld [vmem:[#allocation5 + $0x260] sm:$0xff]  ;;  %v16311_v55 = vld [vmem:[#allocation5 + $0x268] sm:$0xff] }
 0x1fa   :  { %2548 = vmatprep.mubr.f32.mxu1 %v22213_v15  ;;  %22217 = vst [vmem:[#allocation95_spill] sm:$0xff] %v16294_v57  ;;  %v22219_v15 = vld [vmem:[#allocation306_spill] sm:$0xff]  ;;  %v20857_v57 = vand.u32 4294901760, %v16309_v14 }
 0x1fb   :  { %5861 = vmatmul.mubr.f32.gmra.mrb[22].mxu0 %v22214_v49  ;;  %22218 = vst [vmem:[#allocation96_spill] sm:$0xff] %v16299_v63  ;;  %v22221_v49 = vld [vmem:[#allocation224_spill] sm:$0xff] }
 0x1fc   :  { %5866 = vmatprep.mubr.f32.mxu0 %v22215_v47  ;;  %11846 = vmatpush1.bf16.msra.mxu0 %v22216_v46  ;;  %v22222_v47 = vld [vmem:[#allocation229_spill] sm:$0xff]  ;;  %v22225_v63 = vld [vmem:[#allocation316_spill] sm:$0xff] }
 0x1fd   :  { %2551 = vmatmul.mubr.f32.gmra.mrb[58].mxu1 %v22219_v15  ;;  %11847 = vmatprep.subr.bf16.mxu0 %v21411_v40  ;;  %v22223_v46 = vld [vmem:[#allocation105_spill] sm:$0xff]  ;;  %v22226_v15 = vld [vmem:[#allocation231_spill] sm:$0xff] }
 0x1fe   :  { %2557 = vmatprep.mubr.f32.mxu1 %v22220_v31  ;;  %v20859_v31 = vand.u32 4294901760, %v16311_v55 }
 0x1ff   :  { %5868 = vmatmul.mubr.f32.gmra.mrb[24].mxu0 %v22221_v49  ;;  %v22227_v49 = vld [vmem:[#allocation235_spill] sm:$0xff] }
 0x200   :  { %5873 = vmatprep.mubr.f32.mxu0 %v22222_v47  ;;  %11849 = vmatpush1.bf16.msra.mxu0 %v22223_v46  ;;  %v22228_v47 = vld [vmem:[#allocation113_spill] sm:$0xff]  ;;  %v16322_v46 = vsub.f32 %v16309_v14, %v20857_v57 }
 0x201   :  { %2560 = vmatmul.mubr.f32.gmra.mrb[60].mxu1 %v22224_v62  ;;  %11850 = vmatprep.subr.bf16.mxu0 %v21411_v40  ;;  %v16327_v62 = vsub.f32 %v16311_v55, %v20859_v31  ;;  %v22238_v57 = vld [vmem:[#allocation241_spill] sm:$0xff]  ;;  %v22240_v31 = vand.u32 4294901760, %v22081_v7 }
 0x202   :  { %2566 = vmatprep.mubr.f32.mxu1 %v22225_v63  ;;  %22229 = vst [vmem:[#allocation101_spill] sm:$0xff] %v16322_v46  ;;  %v22231_v63 = vld [vmem:[#allocation317_spill] sm:$0xff] }
 0x203   :  { %5875 = vmatmul.mubr.f32.gmra.mrb[26].mxu0 %v22226_v15  ;;  %22230 = vst [vmem:[#allocation102_spill] sm:$0xff] %v16327_v62  ;;  %v22232_v15 = vand.u32 4294901760, %v22076_v44  ;;  %v22239_v46 = vld [vmem:[#allocation121_spill] sm:$0xff]  ;;  %v16343_v62 = vld [vmem:[#allocation5 + $0x270] sm:$0xff]  ;;  %v16345_v44 = vld [vmem:[#allocation5 + $0x278] sm:$0xff] }
 0x204   :  { %5880 = vmatprep.mubr.f32.mxu0 %v22227_v49  ;;  %11852 = vmatpush1.bf16.msra.mxu0 %v22228_v47  ;;  %v22233_v49 = vld [vmem:[#allocation14_spill] sm:$0xff]  ;;  %v22235_v47 = vld [vmem:[#allocation15_spill] sm:$0xff]  ;;  %v20864_v7 = vand.u32 4294901760, %v16345_v44 }
 0x205   :  { %2569 = vmatmul.mubr.f32.gmra.mrb[62].mxu1 %v22231_v63  ;;  %11853 = vmatprep.subr.bf16.mxu0 %v21411_v40  ;;  %v22234_v53 = vand.u32 4294901760, %v22233_v49  ;;  %v22236_v12 = vand.u32 4294901760, %v22235_v47  ;;  %v22241_v49 = vand.u32 4294901760, %v22082_v38  ;;  %v22242_v47 = vld [vmem:[#allocation16_spill] sm:$0xff] }
 0x206   :  { %2673 = vmatprep.mubr.f32.mxu1 %v22232_v15  ;;  %v22244_v15 = vld [vmem:[#allocation20_spill] sm:$0xff] }
 0x207   :  { %v11476_v25 = vpack.c.bf16 %v22236_v12, %v22234_v53  ;;  %5882 = vmatmul.mubr.f32.gmra.mrb[28].mxu0 %v22237_v10  ;;  %v22243_v53 = vand.u32 4294901760, %v22242_v47  ;;  %v22245_v12 = vand.u32 4294901760, %v22244_v15  ;;  %v22247_v10 = vld [vmem:[#allocation320_spill] sm:$0xff]  ;;  %v22251_v47 = vand.u32 4294901760, %v22086_v28  ;;  %v22260_v28 = vld [vmem:[#allocation26_spill] sm:$0xff] }
 0x208   :  { %5887 = vmatprep.mubr.f32.mxu0 %v22238_v57  ;;  %11855 = vmatpush1.bf16.msra.mxu0 %v22239_v46  ;;  %v20862_v46 = vand.u32 4294901760, %v16343_v62 }
 0x209   :  { %2677 = vmatmul.mubr.f32.vlgmr.msra.gmra.mrb[0].mxu1 %v22240_v31  ;;  %11856 = vmatprep.subr.bf16.mxu0 %v21411_v40  ;;  %v11479_v57 = vpack.c.bf16 %v22245_v12, %v22243_v53  ;;  %v22246_v31 = vld [vmem:[#allocation245_spill] sm:$0xff]  ;;  %v22252_v53 = vld [vmem:[#allocation22_spill] sm:$0xff]  ;;  %v22254_v12 = vld [vmem:[#allocation23_spill] sm:$0xff] }
 0x20a   :  { %2684 = vmatprep.mubr.f32.mxu1 %v22241_v49  ;;  %11477 = vmatpush1.bf16.msra.mxu1 %v11476_v25  ;;  %v16362_v38 = vsub.f32 %v16343_v62, %v20862_v46  ;;  %v16367_v25 = vsub.f32 %v16345_v44, %v20864_v7  ;;  %v22250_v49 = vand.u32 4294901760, %v22085_v41  ;;  %v22253_v15 = vand.u32 4294901760, %v22252_v53  ;;  %v22257_v7 = vld [vmem:[#allocation323_spill] sm:$0xff] }
 0x20b   :  { %5889 = vmatmul.mubr.f32.gmra.mrb[30].mxu0 %v22246_v31  ;;  %11478 = vmatprep.subr.bf16.mxu1 %v21411_v40  ;;  %v22258_v41 = vand.u32 4294901760, %v22090_v6  ;;  %v22265_v6 = vld [vmem:[#allocation326_spill] sm:$0xff] }
 0x20c   :  { %5894 = vmatprep.mubr.f32.mxu0 %v22247_v10  ;;  %11858 = vmatpush1.bf16.msra.mxu0 %v15571_v42  ;;  %22248 = vst [vmem:[#allocation109_spill] sm:$0xff] %v16362_v38  ;;  %22249 = vst [vmem:[#allocation110_spill] sm:$0xff] %v16367_v25  ;;  %v22255_v42 = vand.u32 4294901760, %v22254_v12  ;;  %v22256_v38 = vld [vmem:[#allocation321_spill] sm:$0xff]  ;;  %v16385_v25 = vld [vmem:[#allocation5 + $0x288] sm:$0xff] }
 0x20d   :  { %2688 = vmatmul.mubr.f32.gmra.mrb[2].mxu1 %v22250_v49  ;;  %11859 = vmatprep.subr.bf16.mxu0 %v21411_v40  ;;  %v16383_v49 = vld [vmem:[#allocation5 + $0x280] sm:$0xff] }
 0x20e   :  { %2695 = vmatprep.mubr.f32.mxu1 %v22251_v47  ;;  %11480 = vmatpush1.bf16.msra.mxu1 %v11479_v57  ;;  %v11482_v46 = vpack.c.bf16 %v22255_v42, %v22253_v15  ;;  %v22259_v57 = vand.u32 4294901760, %v22091_v50  ;;  %v22261_v47 = vand.u32 4294901760, %v22260_v28  ;;  %v22262_v42 = vld [vmem:[#allocation29_spill] sm:$0xff]  ;;  %v20866_v12 = vand.u32 4294901760, %v16383_v49  ;;  %v22270_v28 = vld [vmem:[#allocation34_spill] sm:$0xff] }
 0x20f   :  { %5896 = vmatmul.mubr.f32.gmra.mrb[32].mxu0 %v22256_v38  ;;  %11481 = vmatprep.subr.bf16.mxu1 %v21411_v40  ;;  %v22263_v53 = vand.u32 4294901760, %v22262_v42  ;;  %v22264_v38 = vld [vmem:[#allocation324_spill] sm:$0xff]  ;;  %v22272_v42 = vld [vmem:[#allocation35_spill] sm:$0xff] }
 0x210   :  { %5901 = vmatprep.mubr.f32.mxu0 %v22257_v7  ;;  %v20867_v7 = vand.u32 4294901760, %v16385_v25  ;;  %v16401_v50 = vsub.f32 %v16383_v49, %v20866_v12  ;;  %v22275_v12 = vld [vmem:[#allocation329_spill] sm:$0xff] }
 0x211   :  { %2699 = vmatmul.mubr.f32.gmra.mrb[4].mxu1 %v22258_v41  ;;  %v11485_v15 = vpack.c.bf16 %v22263_v53, %v22261_v47  ;;  %v22268_v41 = vand.u32 4294901760, %v22095_v45  ;;  %v22271_v47 = vand.u32 4294901760, %v22270_v28  ;;  %v22273_v53 = vand.u32 4294901760, %v22272_v42  ;;  %v16421_v45 = vld [vmem:[#allocation5 + $0x290] sm:$0xff]  ;;  %v22280_v28 = vld [vmem:[#allocation44_spill] sm:$0xff] }
 0x212   :  { %2706 = vmatprep.mubr.f32.mxu1 %v22259_v57  ;;  %11483 = vmatpush1.bf16.msra.mxu1 %v11482_v46  ;;  %22266 = vst [vmem:[#allocation119_spill] sm:$0xff] %v16401_v50  ;;  %v16406_v46 = vsub.f32 %v16385_v25, %v20867_v7  ;;  %v22269_v57 = vand.u32 4294901760, %v22096_v21  ;;  %v22276_v7 = vand.u32 4294901760, %v22100_v36  ;;  %v22277_v21 = vand.u32 4294901760, %v22101_v59  ;;  %v22282_v50 = vld [vmem:[#allocation330_spill] sm:$0xff]  ;;  %v22283_v36 = vld [vmem:[#allocation332_spill] sm:$0xff] }
 0x213   :  { %5903 = vmatmul.mubr.f32.gmra.mrb[34].mxu0 %v22264_v38  ;;  %11484 = vmatprep.subr.bf16.mxu1 %v21411_v40  ;;  %v22274_v38 = vld [vmem:[#allocation327_spill] sm:$0xff] }
 0x214   :  { %5908 = vmatprep.mubr.f32.mxu0 %v22265_v6  ;;  %22267 = vst [vmem:[#allocation120_spill] sm:$0xff] %v16406_v46  ;;  %v11488_v6 = vpack.c.bf16 %v22273_v53, %v22271_v47  ;;  %v22281_v47 = vand.u32 4294901760, %v22280_v28  ;;  %v20870_v53 = vand.u32 4294901760, %v16421_v45  ;;  %v22290_v28 = vld [vmem:[#allocation52_spill] sm:$0xff] }
 0x215   :  { %2710 = vmatmul.mubr.f32.gmra.mrb[6].mxu1 %v22268_v41  ;;  %v16423_v41 = vld [vmem:[#allocation5 + $0x298] sm:$0xff] }
 0x216   :  { %2717 = vmatprep.mubr.f32.mxu1 %v22269_v57  ;;  %11486 = vmatpush1.bf16.msra.mxu1 %v11485_v15  ;;  %v22278_v15 = vld [vmem:[#allocation39_spill] sm:$0xff]  ;;  %v20871_v46 = vand.u32 4294901760, %v16423_v41  ;;  %v16439_v59 = vsub.f32 %v16421_v45, %v20870_v53 }
 0x217   :  { %5910 = vmatmul.mubr.f32.gmra.mrb[36].mxu0 %v22274_v38  ;;  %11487 = vmatprep.subr.bf16.mxu1 %v21411_v40  ;;  %v22279_v57 = vand.u32 4294901760, %v22278_v15  ;;  %v22288_v15 = vld [vmem:[#allocation49_spill] sm:$0xff]  ;;  %v22293_v53 = vld [vmem:[#allocation335_spill] sm:$0xff] }
 0x218   :  { %5915 = vmatprep.mubr.f32.mxu0 %v22275_v12  ;;  %22284 = vst [vmem:[#allocation126_spill] sm:$0xff] %v16439_v59  ;;  %v22300_v59 = vld [vmem:[#allocation336_spill] sm:$0xff] }
 0x219   :  { %2721 = vmatmul.mubr.f32.gmra.mrb[8].mxu1 %v22276_v7  ;;  %v11491_v42 = vpack.c.bf16 %v22281_v47, %v22279_v57  ;;  %v16444_v7 = vsub.f32 %v16423_v41, %v20871_v46  ;;  %v22289_v57 = vand.u32 4294901760, %v22288_v15  ;;  %v22291_v47 = vand.u32 4294901760, %v22290_v28  ;;  %v22298_v15 = vld [vmem:[#allocation60_spill] sm:$0xff] }
 0x21a   :  { %2728 = vmatprep.mubr.f32.mxu1 %v22277_v21  ;;  %11489 = vmatpush1.bf16.msra.mxu1 %v11488_v6  ;;  %v22286_v6 = vand.u32 4294901760, %v22103_v39  ;;  %v22287_v21 = vand.u32 4294901760, %v22104_v5  ;;  %v22294_v46 = vand.u32 4294901760, %v22106_v56  ;;  %v16459_v39 = vld [vmem:[#allocation5 + $0x2a0] sm:$0xff]  ;;  %v22295_v5 = vand.u32 4294901760, %v22107_v51  ;;  %v22301_v56 = vld [vmem:[#allocation338_spill] sm:$0xff] }
 0x21b   :  { %5917 = vmatmul.mubr.f32.gmra.mrb[38].mxu0 %v22282_v50  ;;  %11490 = vmatprep.subr.bf16.mxu1 %v21411_v40  ;;  %22285 = vst [vmem:[#allocation127_spill] sm:$0xff] %v16444_v7  ;;  %v22292_v50 = vld [vmem:[#allocation333_spill] sm:$0xff] }
 0x21c   :  { %5922 = vmatprep.mubr.f32.mxu0 %v22283_v36  ;;  %v11494_v36 = vpack.c.bf16 %v22291_v47, %v22289_v57  ;;  %v22299_v57 = vand.u32 4294901760, %v22298_v15  ;;  %v20874_v47 = vand.u32 4294901760, %v16459_v39  ;;  %v22308_v15 = vld [vmem:[#allocation68_spill] sm:$0xff] }
 0x21d   :  { %2732 = vmatmul.mubr.f32.gmra.mrb[10].mxu1 %v22286_v6  ;;  %v16461_v6 = vld [vmem:[#allocation5 + $0x2a8] sm:$0xff] }
 0x21e   :  { %2739 = vmatprep.mubr.f32.mxu1 %v22287_v21  ;;  %11492 = vmatpush1.bf16.msra.mxu1 %v11491_v42  ;;  %v22296_v42 = vld [vmem:[#allocation57_spill] sm:$0xff]  ;;  %v20875_v7 = vand.u32 4294901760, %v16461_v6  ;;  %v16477_v51 = vsub.f32 %v16459_v39, %v20874_v47 }
 0x21f   :  { %5924 = vmatmul.mubr.f32.gmra.mrb[40].mxu0 %v22292_v50  ;;  %11493 = vmatprep.subr.bf16.mxu1 %v21411_v40  ;;  %v22297_v21 = vand.u32 4294901760, %v22296_v42  ;;  %v22306_v42 = vld [vmem:[#allocation67_spill] sm:$0xff]  ;;  %v22311_v47 = vld [vmem:[#allocation341_spill] sm:$0xff] }
 0x220   :  { %5929 = vmatprep.mubr.f32.mxu0 %v22293_v53  ;;  %22302 = vst [vmem:[#allocation133_spill] sm:$0xff] %v16477_v51  ;;  %v22318_v51 = vld [vmem:[#allocation343_spill] sm:$0xff] }
 0x221   :  { %2743 = vmatmul.mubr.f32.gmra.mrb[12].mxu1 %v22294_v46  ;;  %v11497_v28 = vpack.c.bf16 %v22299_v57, %v22297_v21  ;;  %v16482_v46 = vsub.f32 %v16461_v6, %v20875_v7  ;;  %v22307_v21 = vand.u32 4294901760, %v22306_v42  ;;  %v22309_v57 = vand.u32 4294901760, %v22308_v15  ;;  %v22316_v42 = vld [vmem:[#allocation76_spill] sm:$0xff] }
 0x222   :  { %2750 = vmatprep.mubr.f32.mxu1 %v22295_v5  ;;  %11495 = vmatpush1.bf16.msra.mxu1 %v11494_v36  ;;  %v22304_v36 = vand.u32 4294901760, %v22109_v20  ;;  %v22305_v5 = vand.u32 4294901760, %v22110_v29  ;;  %v22312_v7 = vand.u32 4294901760, %v22112_v58  ;;  %v16497_v20 = vld [vmem:[#allocation5 + $0x2b0] sm:$0xff]  ;;  %v22313_v29 = vand.u32 4294901760, %v22113_v33  ;;  %v22319_v58 = vld [vmem:[#allocation345_spill] sm:$0xff] }
 0x223   :  { %5931 = vmatmul.mubr.f32.gmra.mrb[42].mxu0 %v22300_v59  ;;  %11496 = vmatprep.subr.bf16.mxu1 %v21411_v40  ;;  %22303 = vst [vmem:[#allocation135_spill] sm:$0xff] %v16482_v46  ;;  %v22310_v59 = vld [vmem:[#allocation339_spill] sm:$0xff] }
 0x224   :  { %5936 = vmatprep.mubr.f32.mxu0 %v22301_v56  ;;  %v11500_v56 = vpack.c.bf16 %v22309_v57, %v22307_v21  ;;  %v22317_v21 = vand.u32 4294901760, %v22316_v42  ;;  %v20878_v57 = vand.u32 4294901760, %v16497_v20  ;;  %v22326_v42 = vld [vmem:[#allocation84_spill] sm:$0xff] }
 0x225   :  { %2754 = vmatmul.mubr.f32.gmra.mrb[14].mxu1 %v22304_v36  ;;  %v16499_v36 = vld [vmem:[#allocation5 + $0x2b8] sm:$0xff] }
 0x226   :  { %2761 = vmatprep.mubr.f32.mxu1 %v22305_v5  ;;  %11498 = vmatpush1.bf16.msra.mxu1 %v11497_v28  ;;  %v22314_v28 = vld [vmem:[#allocation75_spill] sm:$0xff]  ;;  %v20879_v46 = vand.u32 4294901760, %v16499_v36  ;;  %v16515_v33 = vsub.f32 %v16497_v20, %v20878_v57  ;;  %v22329_v57 = vld [vmem:[#allocation349_spill] sm:$0xff] }
 0x227   :  { %5938 = vmatmul.mubr.f32.gmra.mrb[44].mxu0 %v22310_v59  ;;  %11499 = vmatprep.subr.bf16.mxu1 %v21411_v40  ;;  %v22315_v5 = vand.u32 4294901760, %v22314_v28  ;;  %v22324_v28 = vld [vmem:[#allocation83_spill] sm:$0xff] }
 0x228   :  { %5943 = vmatprep.mubr.f32.mxu0 %v22311_v47  ;;  %22320 = vst [vmem:[#allocation131_spill] sm:$0xff] %v16515_v33  ;;  %v22336_v33 = vld [vmem:[#allocation351_spill] sm:$0xff] }
 0x229   :  { %2765 = vmatmul.mubr.f32.gmra.mrb[16].mxu1 %v22312_v7  ;;  %v11503_v15 = vpack.c.bf16 %v22317_v21, %v22315_v5  ;;  %v16520_v7 = vsub.f32 %v16499_v36, %v20879_v46  ;;  %v22325_v5 = vand.u32 4294901760, %v22324_v28  ;;  %v22327_v21 = vand.u32 4294901760, %v22326_v42  ;;  %v22334_v28 = vld [vmem:[#allocation92_spill] sm:$0xff] }
 0x22a   :  { %2772 = vmatprep.mubr.f32.mxu1 %v22313_v29  ;;  %11501 = vmatpush1.bf16.msra.mxu1 %v11500_v56  ;;  %v22322_v56 = vand.u32 4294901760, %v22115_v60  ;;  %v22323_v29 = vand.u32 4294901760, %v22116_v24  ;;  %v22330_v46 = vand.u32 4294901760, %v22118_v17  ;;  %v16535_v60 = vld [vmem:[#allocation5 + $0x2c0] sm:$0xff]  ;;  %v22331_v24 = vand.u32 4294901760, %v22119_v18 }
 0x22b   :  { %5945 = vmatmul.mubr.f32.gmra.mrb[46].mxu0 %v22318_v51  ;;  %11502 = vmatprep.subr.bf16.mxu1 %v21411_v40  ;;  %22321 = vst [vmem:[#allocation143_spill] sm:$0xff] %v16520_v7  ;;  %v22328_v51 = vld [vmem:[#allocation347_spill] sm:$0xff]  ;;  %v22337_v17 = vld [vmem:[#allocation353_spill] sm:$0xff] }
 0x22c   :  { %5950 = vmatprep.mubr.f32.mxu0 %v22319_v58  ;;  %v11506_v58 = vpack.c.bf16 %v22327_v21, %v22325_v5  ;;  %v22335_v5 = vand.u32 4294901760, %v22334_v28  ;;  %v20882_v21 = vand.u32 4294901760, %v16535_v60 }
 0x22d   :  { %2776 = vmatmul.mubr.f32.gmra.mrb[18].mxu1 %v22322_v56  ;;  %v16537_v56 = vld [vmem:[#allocation5 + $0x2c8] sm:$0xff] }
 0x22e   :  { %2783 = vmatprep.mubr.f32.mxu1 %v22323_v29  ;;  %11504 = vmatpush1.bf16.msra.mxu1 %v11503_v15  ;;  %v22332_v15 = vld [vmem:[#allocation91_spill] sm:$0xff]  ;;  %v20883_v7 = vand.u32 4294901760, %v16537_v56  ;;  %v16553_v18 = vsub.f32 %v16535_v60, %v20882_v21  ;;  %v22346_v21 = vld [vmem:[#allocation357_spill] sm:$0xff] }
 0x22f   :  { %5952 = vmatmul.mubr.f32.gmra.mrb[48].mxu0 %v22328_v51  ;;  %11505 = vmatprep.subr.bf16.mxu1 %v21411_v40  ;;  %v22333_v29 = vand.u32 4294901760, %v22332_v15  ;;  %v22342_v15 = vand.u32 4294901760, %v21771_v4  ;;  %v22349_v4 = vld [vmem:[#allocation107_spill] sm:$0xff] }
 0x230   :  { %5957 = vmatprep.mubr.f32.mxu0 %v22329_v57  ;;  %22338 = vst [vmem:[#allocation147_spill] sm:$0xff] %v16553_v18  ;;  %v22353_v18 = vld [vmem:[#allocation359_spill] sm:$0xff] }
 0x231   :  { %2787 = vmatmul.mubr.f32.gmra.mrb[20].mxu1 %v22330_v46  ;;  %v11509_v42 = vpack.c.bf16 %v22335_v5, %v22333_v29  ;;  %v16558_v46 = vsub.f32 %v16537_v56, %v20883_v7  ;;  %v22343_v29 = vld [vmem:[#allocation100_spill] sm:$0xff]  ;;  %v22347_v7 = vand.u32 4294901760, %v22124_v30  ;;  %v22354_v30 = vld [vmem:[#allocation361_spill] sm:$0xff] }
 0x232   :  { %2794 = vmatprep.mubr.f32.mxu1 %v22331_v24  ;;  %11507 = vmatpush1.bf16.msra.mxu1 %v11506_v58  ;;  %v22340_v58 = vand.u32 4294901760, %v22121_v1  ;;  %v22341_v24 = vand.u32 4294901760, %v22122_v22  ;;  %v22344_v28 = vand.u32 4294901760, %v22343_v29  ;;  %v16573_v1 = vld [vmem:[#allocation5 + $0x2d0] sm:$0xff]  ;;  %v22348_v22 = vand.u32 4294901760, %v22125_v8 }
 0x233   :  { %5959 = vmatmul.mubr.f32.gmra.mrb[50].mxu0 %v22336_v33  ;;  %11508 = vmatprep.subr.bf16.mxu1 %v21411_v40  ;;  %22339 = vst [vmem:[#allocation132_spill] sm:$0xff] %v16558_v46 }
 0x234   :  { %5964 = vmatprep.mubr.f32.mxu0 %v22337_v17  ;;  %v11512_v5 = vpack.c.bf16 %v22344_v28, %v22342_v15  ;;  %v22345_v17 = vld [vmem:[#allocation355_spill] sm:$0xff]  ;;  %v20886_v28 = vand.u32 4294901760, %v16573_v1 }
 0x235   :  { %2798 = vmatmul.mubr.f32.gmra.mrb[22].mxu1 %v22340_v58  ;;  %v16575_v58 = vld [vmem:[#allocation5 + $0x2d8] sm:$0xff] }
 0x236   :  { %2805 = vmatprep.mubr.f32.mxu1 %v22341_v24  ;;  %11510 = vmatpush1.bf16.msra.mxu1 %v11509_v42  ;;  %v22350_v42 = vand.u32 4294901760, %v22349_v4  ;;  %v22351_v24 = vld [vmem:[#allocation108_spill] sm:$0xff]  ;;  %v20887_v46 = vand.u32 4294901760, %v16575_v58  ;;  %v16591_v8 = vsub.f32 %v16573_v1, %v20886_v28  ;;  %v22359_v4 = vld [vmem:[#allocation115_spill] sm:$0xff]  ;;  %v22364_v28 = vld [vmem:[#allocation365_spill] sm:$0xff] }
 0x237   :  { %5966 = vmatmul.mubr.f32.gmra.mrb[52].mxu0 %v22345_v17  ;;  %11511 = vmatprep.subr.bf16.mxu1 %v21411_v40  ;;  %v22352_v15 = vand.u32 4294901760, %v22351_v24  ;;  %v22361_v24 = vld [vmem:[#allocation116_spill] sm:$0xff] }
 0x238   :  { %5971 = vmatprep.mubr.f32.mxu0 %v22346_v21  ;;  %22355 = vst [vmem:[#allocation139_spill] sm:$0xff] %v16591_v8  ;;  %v22371_v8 = vld [vmem:[#allocation367_spill] sm:$0xff] }
 0x239   :  { %2809 = vmatmul.mubr.f32.gmra.mrb[24].mxu1 %v22347_v7  ;;  %v11515_v29 = vpack.c.bf16 %v22352_v15, %v22350_v42  ;;  %v16596_v7 = vsub.f32 %v16575_v58, %v20887_v46  ;;  %v22360_v42 = vand.u32 4294901760, %v22359_v4  ;;  %v22362_v15 = vand.u32 4294901760, %v22361_v24  ;;  %v22369_v4 = vld [vmem:[#allocation124_spill] sm:$0xff] }
 0x23a   :  { %2816 = vmatprep.mubr.f32.mxu1 %v22348_v22  ;;  %11513 = vmatpush1.bf16.msra.mxu1 %v11512_v5  ;;  %v22357_v5 = vand.u32 4294901760, %v22127_v54  ;;  %v22358_v22 = vand.u32 4294901760, %v22128_v37  ;;  %v22365_v46 = vand.u32 4294901760, %v22130_v3  ;;  %v16611_v54 = vld [vmem:[#allocation5 + $0x2e0] sm:$0xff]  ;;  %v22366_v37 = vand.u32 4294901760, %v22131_v43 }
 0x23b   :  { %5973 = vmatmul.mubr.f32.gmra.mrb[54].mxu0 %v22353_v18  ;;  %11514 = vmatprep.subr.bf16.mxu1 %v21411_v40  ;;  %22356 = vst [vmem:[#allocation142_spill] sm:$0xff] %v16596_v7  ;;  %v22363_v18 = vld [vmem:[#allocation363_spill] sm:$0xff]  ;;  %v22372_v3 = vld [vmem:[#allocation369_spill] sm:$0xff] }
 0x23c   :  { %5978 = vmatprep.mubr.f32.mxu0 %v22354_v30  ;;  %v11518_v30 = vpack.c.bf16 %v22362_v15, %v22360_v42  ;;  %v22370_v42 = vand.u32 4294901760, %v22369_v4  ;;  %v20891_v15 = vand.u32 4294901760, %v16611_v54  ;;  %v22379_v4 = vand.u32 4294901760, %v22136_v19 }
 0x23d   :  { %2820 = vmatmul.mubr.f32.gmra.mrb[26].mxu1 %v22357_v5  ;;  %v16613_v5 = vld [vmem:[#allocation5 + $0x2e8] sm:$0xff]  ;;  %v22383_v19 = vand.u32 4294901760, %v16143_v9  ;;  %v22390_v9 = vand.u32 4294901760, %v16171_v35 }
 0x23e   :  { %2827 = vmatprep.mubr.f32.mxu1 %v22358_v22  ;;  %11516 = vmatpush1.bf16.msra.mxu1 %v11515_v29  ;;  %v22367_v29 = vld [vmem:[#allocation123_spill] sm:$0xff]  ;;  %v20890_v7 = vand.u32 4294901760, %v16613_v5  ;;  %v16629_v43 = vsub.f32 %v16611_v54, %v20891_v15 }
 0x23f   :  { %5980 = vmatmul.mubr.f32.gmra.mrb[56].mxu0 %v22363_v18  ;;  %11517 = vmatprep.subr.bf16.mxu1 %v21411_v40  ;;  %v22368_v22 = vand.u32 4294901760, %v22367_v29  ;;  %v22377_v29 = vld [vmem:[#allocation371_spill] sm:$0xff] }
 0x240   :  { %5985 = vmatprep.mubr.f32.mxu0 %v22364_v28  ;;  %22373 = vst [vmem:[#allocation149_spill] sm:$0xff] %v16629_v43 }
 0x241   :  { %2831 = vmatmul.mubr.f32.gmra.mrb[28].mxu1 %v22365_v46  ;;  %v11521_v24 = vpack.c.bf16 %v22370_v42, %v22368_v22  ;;  %v16634_v46 = vsub.f32 %v16613_v5, %v20890_v7  ;;  %v22378_v22 = vld [vmem:[#allocation373_spill] sm:$0xff]  ;;  %v16645_v42 = vld [vmem:[#allocation5 + $0x2f0] sm:$0xff]  ;;  %v16647_v7 = vld [vmem:[#allocation5 + $0x2f8] sm:$0xff] }
 0x242   :  { %2838 = vmatprep.mubr.f32.mxu1 %v22366_v37  ;;  %11519 = vmatpush1.bf16.msra.mxu1 %v11518_v30  ;;  %v22375_v30 = vand.u32 4294901760, %v22133_v48  ;;  %v22376_v37 = vand.u32 4294901760, %v22134_v26  ;;  %v22380_v48 = vand.u32 4294901760, %v22137_v2  ;;  %v6418_v26 = vand.u32 4294901760, %v16645_v42 }
 0x243   :  { %5987 = vmatmul.mubr.f32.gmra.mrb[58].mxu0 %v22371_v8  ;;  %11520 = vmatprep.subr.bf16.mxu1 %v21411_v40  ;;  %22374 = vst [vmem:[#allocation150_spill] sm:$0xff] %v16634_v46 }
 0x244   :  { %5992 = vmatprep.mubr.f32.mxu0 %v22372_v3  ;;  %v16664_v15 = vsub.f32 %v16645_v42, %v6418_v26  ;;  %v22523_v42 = vld [vmem:[#allocation141_spill] sm:$0xff] }
 0x245   :  { %2842 = vmatmul.mubr.f32.gmra.mrb[30].mxu1 %v22375_v30  ;;  %v22381_v30 = vld [vmem:[#allocation375_spill] sm:$0xff] }
 0x246   :  { %2849 = vmatprep.mubr.f32.mxu1 %v22376_v37  ;;  %11522 = vmatpush1.bf16.msra.mxu1 %v11521_v24  ;;  %v20892_v24 = vand.u32 4294901760, %v16647_v7  ;;  %v22382_v37 = vand.u32 4294901760, %v16141_v27  ;;  %22385 = vst [vmem:[#allocation158_spill] sm:$0xff] %v16664_v15  ;;  %v22389_v27 = vand.u32 4294901760, %v16169_v16 }
 0x247   :  { %5994 = vmatmul.mubr.f32.gmra.mrb[60].mxu0 %v22377_v29  ;;  %11523 = vmatprep.subr.bf16.mxu1 %v21411_v40 }
 0x248   :  { %5999 = vmatprep.mubr.f32.mxu0 %v22378_v22  ;;  %v16669_v2 = vsub.f32 %v16647_v7, %v20892_v24  ;;  %v22430_v24 = vld [vmem:[#allocation86_spill] sm:$0xff] }
 0x249   :  { %2853 = vmatmul.mubr.f32.gmra.mrb[32].mxu1 %v22379_v4  ;;  %v16659_v4 = vpack.c.bf16 %v22383_v19, %v22382_v37  ;;  %v16682_v37 = vpack.c.bf16 %v22390_v9, %v22389_v27  ;;  %v22392_v19 = vand.u32 4294901760, %v22144_v11  ;;  %v22402_v27 = vld [vmem:[#allocation255_spill] sm:$0xff]  ;;  %v22404_v9 = vld [vmem:[#allocation165_spill] sm:$0xff] }
 0x24a   :  { %2860 = vmatprep.mubr.f32.mxu1 %v22380_v48  ;;  %22386 = vst [vmem:[#allocation161_spill] sm:$0xff] %v16669_v2  ;;  %v22387_v48 = vand.u32 4294901760, %v22139_v23  ;;  %v22393_v23 = vand.u32 4294901760, %v22145_v32  ;;  %v22403_v32 = vand.u32 4294901760, %v22402_v27  ;;  %v22415_v27 = vld [vmem:[#allocation172_spill] sm:$0xff] }
 0x24b   :  { %6001 = vmatmul.mubr.f32.gmra.mrb[62].mxu0 %v22381_v30  ;;  %22384 = vst [vmem:[#allocation154_spill] sm:$0xff] %v16659_v4  ;;  %22391 = vst [vmem:[#allocation164_spill] sm:$0xff] %v16682_v37 }
 0x24c   :  { %6103 = vmatprep.mubr.f32.mxu0 %v22138_v52  ;;  %v22388_v52 = vand.u32 4294901760, %v22140_v34  ;;  %v22394_v34 = vld [vmem:[#allocation163_spill] sm:$0xff] }
 0x24d   :  { %2864 = vmatmul.mubr.f32.gmra.mrb[34].mxu1 %v22387_v48 }
 0x24e   :  { %2871 = vmatprep.mubr.f32.mxu1 %v22388_v52  ;;  %v22400_v52 = vld [vmem:[#allocation252_spill] sm:$0xff] }
 0x24f   :  { %6105 = vmatmul.mubr.f32.vlgmr.msra.gmra.mrb[0].mxu0 %v22141_v61  ;;  %v22397_v61 = vld [vmem:[#allocation38_spill] sm:$0xff]  ;;  %v22401_v11 = vand.u32 4294901760, %v22400_v52  ;;  %v22413_v52 = vld [vmem:[#allocation261_spill] sm:$0xff] }
 0x250   :  { %11861 = vmatpush1.bf16.msra.mxu0 %v16659_v4  ;;  %6110 = vmatprep.mubr.f32.mxu0 %v22143_v0  ;;  %v22395_v0 = vld [vmem:[#allocation36_spill] sm:$0xff]  ;;  %v22398_v35 = vand.u32 4294901760, %v22397_v61  ;;  %v22411_v61 = vld [vmem:[#allocation258_spill] sm:$0xff] }
 0x251   :  { %2875 = vmatmul.mubr.f32.gmra.mrb[36].mxu1 %v22392_v19  ;;  %11862 = vmatprep.subr.bf16.mxu0 %v21411_v40  ;;  %v22396_v16 = vand.u32 4294901760, %v22395_v0  ;;  %v22406_v19 = vld [vmem:[#allocation53_spill] sm:$0xff]  ;;  %v22586_v4 = vld [vmem:[#allocation220_spill] sm:$0xff] }
 0x252   :  { %2882 = vmatprep.mubr.f32.mxu1 %v22393_v23  ;;  %v22407_v23 = vand.u32 4294901760, %v22406_v19  ;;  %v22419_v19 = vld [vmem:[#allocation72_spill] sm:$0xff] }
 0x253   :  { %6112 = vmatmul.mubr.f32.gmra.mrb[2].mxu0 %v22146_v13  ;;  %v16696_v48 = vpack.c.bf16 %v22398_v35, %v22396_v16  ;;  %v22405_v13 = vld [vmem:[#allocation169_spill] sm:$0xff]  ;;  %v22412_v35 = vand.u32 4294901760, %v22411_v61 }
 0x254   :  { %6117 = vmatprep.mubr.f32.mxu0 %v22394_v34  ;;  %11864 = vmatpush1.bf16.msra.mxu0 %v16682_v37  ;;  %v22408_v34 = vld [vmem:[#allocation54_spill] sm:$0xff]  ;;  %v13473_v37 = vld [vmem:[#allocation2 + $0xf4] ss:$28 sps:$4 sm:$0xff]  }
 0x255   :  { %22399 = vst [vmem:[#allocation168_spill] sm:$0xff] %v16696_v48  ;;  %2886 = vmatmul.mubr.f32.gmra.mrb[38].mxu1 %v22401_v11  ;;  %11865 = vmatprep.subr.bf16.mxu0 %v21411_v40  ;;  %v22409_v0 = vand.u32 4294901760, %v22408_v34  ;;  %v22414_v11 = vand.u32 4294901760, %v22413_v52  ;;  %v22420_v34 = vand.u32 4294901760, %v22419_v19  ;;  %v22431_v19 = vand.u32 4294901760, %v22430_v24 }
 0x256   :  { %2893 = vmatprep.mubr.f32.mxu1 %v22403_v32  ;;  %v22416_v32 = vld [vmem:[#allocation174_spill] sm:$0xff]  ;;  %v22440_v24 = vand.u32 4294901760, %v16311_v55  ;;  %v22449_v55 = vand.u32 4294901760, %v16345_v44  ;;  %v22458_v44 = vand.u32 4294901760, %v16385_v25  ;;  %v22467_v25 = vand.u32 4294901760, %v16423_v41 }
 0x257   :  { %6119 = vmatmul.mubr.f32.gmra.mrb[4].mxu0 %v22404_v9  ;;  %v16710_v16 = vpack.c.bf16 %v22409_v0, %v22407_v23  ;;  %v22417_v9 = vld [vmem:[#allocation71_spill] sm:$0xff]  ;;  %v22476_v41 = vand.u32 4294901760, %v16461_v6  ;;  %v22485_v6 = vand.u32 4294901760, %v16499_v36  ;;  %v22494_v36 = vand.u32 4294901760, %v16537_v56 }
 0x258   :  { %6124 = vmatprep.mubr.f32.mxu0 %v22405_v13  ;;  %11867 = vmatpush1.bf16.msra.mxu0 %v16696_v48  ;;  %v22418_v13 = vand.u32 4294901760, %v22417_v9  ;;  %v22422_v0 = vld [vmem:[#allocation263_spill] sm:$0xff]  ;;  %v22503_v56 = vand.u32 4294901760, %v16575_v58  ;;  %v22512_v58 = vand.u32 4294901760, %v16613_v5 }
 0x259   :  { %22410 = vst [vmem:[#allocation170_spill] sm:$0xff] %v16710_v16  ;;  %2897 = vmatmul.mubr.f32.gmra.mrb[40].mxu1 %v22412_v35  ;;  %11868 = vmatprep.subr.bf16.mxu0 %v21411_v40  ;;  %v22423_v61 = vand.u32 4294901760, %v22422_v0  ;;  %v22424_v35 = vld [vmem:[#allocation266_spill] sm:$0xff] }
 0x25a   :  { %2904 = vmatprep.mubr.f32.mxu1 %v22414_v11  ;;  %v16724_v23 = vpack.c.bf16 %v22420_v34, %v22418_v13  ;;  %v22425_v52 = vand.u32 4294901760, %v22424_v35  ;;  %v22426_v11 = vld [vmem:[#allocation178_spill] sm:$0xff]  ;;  %v22433_v34 = vld [vmem:[#allocation269_spill] sm:$0xff] }
 0x25b   :  { %6126 = vmatmul.mubr.f32.gmra.mrb[6].mxu0 %v22415_v27  ;;  %v22427_v27 = vld [vmem:[#allocation181_spill] sm:$0xff]  ;;  %v22434_v0 = vand.u32 4294901760, %v22433_v34 }
 0x25c   :  { %6131 = vmatprep.mubr.f32.mxu0 %v22416_v32  ;;  %11870 = vmatpush1.bf16.msra.mxu0 %v16710_v16  ;;  %22421 = vst [vmem:[#allocation173_spill] sm:$0xff] %v16724_v23  ;;  %v22428_v32 = vld [vmem:[#allocation85_spill] sm:$0xff] }
 0x25d   :  { %2908 = vmatmul.mubr.f32.gmra.mrb[42].mxu1 %v22423_v61  ;;  %11871 = vmatprep.subr.bf16.mxu0 %v21411_v40  ;;  %v22429_v9 = vand.u32 4294901760, %v22428_v32  ;;  %v22435_v61 = vld [vmem:[#allocation272_spill] sm:$0xff]  ;;  %v22444_v34 = vld [vmem:[#allocation277_spill] sm:$0xff] }
 0x25e   :  { %2915 = vmatprep.mubr.f32.mxu1 %v22425_v52  ;;  %v22436_v35 = vand.u32 4294901760, %v22435_v61  ;;  %v22437_v52 = vld [vmem:[#allocation183_spill] sm:$0xff]  ;;  %v22446_v61 = vld [vmem:[#allocation189_spill] sm:$0xff] }
 0x25f   :  { %6133 = vmatmul.mubr.f32.gmra.mrb[8].mxu0 %v22426_v11  ;;  %v16738_v13 = vpack.c.bf16 %v22431_v19, %v22429_v9  ;;  %v22438_v11 = vld [vmem:[#allocation186_spill] sm:$0xff] }
 0x260   :  { %6138 = vmatprep.mubr.f32.mxu0 %v22427_v27  ;;  %11873 = vmatpush1.bf16.msra.mxu0 %v16724_v23  ;;  %v22439_v27 = vand.u32 4294901760, %v16309_v14  ;;  %v22442_v9 = vld [vmem:[#allocation274_spill] sm:$0xff]  ;;  %v22448_v14 = vand.u32 4294901760, %v16343_v62  ;;  %v22457_v62 = vand.u32 4294901760, %v16383_v49  ;;  %v22466_v49 = vand.u32 4294901760, %v16421_v45 }
 0x261   :  { %22432 = vst [vmem:[#allocation177_spill] sm:$0xff] %v16738_v13  ;;  %2919 = vmatmul.mubr.f32.gmra.mrb[44].mxu1 %v22434_v0  ;;  %11874 = vmatprep.subr.bf16.mxu0 %v21411_v40  ;;  %v22443_v19 = vand.u32 4294901760, %v22442_v9  ;;  %v22445_v0 = vand.u32 4294901760, %v22444_v34  ;;  %v22456_v34 = vld [vmem:[#allocation199_spill] sm:$0xff]  ;;  %v22475_v45 = vand.u32 4294901760, %v16459_v39  ;;  %v22484_v39 = vand.u32 4294901760, %v16497_v20 }
 0x262   :  { %2926 = vmatprep.mubr.f32.mxu1 %v22436_v35  ;;  %v16752_v32 = vpack.c.bf16 %v22440_v24, %v22439_v27  ;;  %v22447_v35 = vld [vmem:[#allocation193_spill] sm:$0xff]  ;;  %v22453_v24 = vld [vmem:[#allocation283_spill] sm:$0xff]  ;;  %v22493_v20 = vand.u32 4294901760, %v16535_v60  ;;  %v22502_v60 = vand.u32 4294901760, %v16573_v1  ;;  %v22511_v1 = vand.u32 4294901760, %v16611_v54 }
 0x263   :  { %6140 = vmatmul.mubr.f32.gmra.mrb[10].mxu0 %v22437_v52  ;;  %v16766_v52 = vpack.c.bf16 %v22449_v55, %v22448_v14  ;;  %v22454_v9 = vand.u32 4294901760, %v22453_v24  ;;  %v22462_v14 = vld [vmem:[#allocation288_spill] sm:$0xff]  ;;  %v16794_v24 = vpack.c.bf16 %v22467_v25, %v22466_v49  ;;  %v22482_v49 = vld [vmem:[#allocation213_spill] sm:$0xff]  ;;  %v22518_v54 = vand.u32 4294901760, %v16647_v7  ;;  %v13475_v23 = vld [vmem:[#allocation2 + $0xf0] ss:$28 sps:$4 sm:$0xff]  }
 0x264   :  { %6145 = vmatprep.mubr.f32.mxu0 %v22438_v11  ;;  %11876 = vmatpush1.bf16.msra.mxu0 %v16738_v13  ;;  %22441 = vst [vmem:[#allocation179_spill] sm:$0xff] %v16752_v32  ;;  %v22451_v11 = vld [vmem:[#allocation280_spill] sm:$0xff]  ;;  %v22463_v55 = vand.u32 4294901760, %v22462_v14  ;;  %v22483_v25 = vld [vmem:[#allocation217_spill] sm:$0xff] }
 0x265   :  { %2930 = vmatmul.mubr.f32.gmra.mrb[46].mxu1 %v22443_v19  ;;  %11877 = vmatprep.subr.bf16.mxu0 %v21411_v40  ;;  %22450 = vst [vmem:[#allocation182_spill] sm:$0xff] %v16766_v52  ;;  %v22452_v27 = vand.u32 4294901760, %v22451_v11  ;;  %v22455_v19 = vld [vmem:[#allocation196_spill] sm:$0xff]  ;;  %v22464_v11 = vld [vmem:[#allocation201_spill] sm:$0xff]  ;;  %22468 = vst [vmem:[#allocation188_spill] sm:$0xff] %v16794_v24  ;;  %v16877_v5 = vpack.c.bf16 %v22518_v54, %v6418_v26 }
 0x266   :  { %2937 = vmatprep.mubr.f32.mxu1 %v22445_v0  ;;  %v16780_v0 = vpack.c.bf16 %v22458_v44, %v22457_v62  ;;  %v22473_v44 = vld [vmem:[#allocation207_spill] sm:$0xff]  ;;  %v22478_v14 = vld [vmem:[#allocation296_spill] sm:$0xff] }
 0x267   :  { %6147 = vmatmul.mubr.f32.gmra.mrb[12].mxu0 %v22446_v61  ;;  %v22460_v61 = vld [vmem:[#allocation285_spill] sm:$0xff]  ;;  %22519 = vst [vmem:[#allocation206_spill] sm:$0xff] %v16877_v5  ;;  %v22524_v7 = vld [vmem:[#allocation144_spill] sm:$0xff]  ;;  %v22525_v26 = vld [vmem:[#allocation19_spill] sm:$0xff] }
 0x268   :  { %6152 = vmatprep.mubr.f32.mxu0 %v22447_v35  ;;  %11879 = vmatpush1.bf16.msra.mxu0 %v16752_v32  ;;  %22459 = vst [vmem:[#allocation185_spill] sm:$0xff] %v16780_v0  ;;  %v22461_v35 = vand.u32 4294901760, %v22460_v61  ;;  %v22474_v61 = vld [vmem:[#allocation211_spill] sm:$0xff] }
 0x269   :  { %2941 = vmatmul.mubr.f32.gmra.mrb[48].mxu1 %v22452_v27  ;;  %11880 = vmatprep.subr.bf16.mxu0 %v21411_v40  ;;  %v22465_v27 = vld [vmem:[#allocation205_spill] sm:$0xff]  ;;  %v22542_v54 = vld [vmem:[#allocation171_spill] sm:$0xff] }
 0x26a   :  { %2948 = vmatprep.mubr.f32.mxu1 %v22454_v9  ;;  %v22469_v9 = vld [vmem:[#allocation291_spill] sm:$0xff] }
 0x26b   :  { %6154 = vmatmul.mubr.f32.gmra.mrb[14].mxu0 %v22455_v19  ;;  %v22470_v19 = vand.u32 4294901760, %v22469_v9  ;;  %v16822_v9 = vpack.c.bf16 %v22485_v6, %v22484_v39  ;;  %v16850_v39 = vpack.c.bf16 %v22503_v56, %v22502_v60  ;;  %v22505_v6 = vld [vmem:[#allocation312_spill] sm:$0xff]  ;;  %v22530_v56 = vld [vmem:[#allocation21_spill] sm:$0xff] }
 0x26c   :  { %6159 = vmatprep.mubr.f32.mxu0 %v22456_v34  ;;  %11882 = vmatpush1.bf16.msra.mxu0 %v16766_v52  ;;  %v22471_v34 = vld [vmem:[#allocation294_spill] sm:$0xff]  ;;  %v22529_v60 = vld [vmem:[#allocation152_spill] sm:$0xff] }
 0x26d   :  { %2952 = vmatmul.mubr.f32.gmra.mrb[50].mxu1 %v22461_v35  ;;  %11883 = vmatprep.subr.bf16.mxu0 %v21411_v40  ;;  %v22472_v62 = vand.u32 4294901760, %v22471_v34  ;;  %v16808_v35 = vpack.c.bf16 %v22476_v41, %v22475_v45  ;;  %22486 = vst [vmem:[#allocation194_spill] sm:$0xff] %v16822_v9  ;;  %v22492_v45 = vld [vmem:[#allocation222_spill] sm:$0xff]  ;;  %v16836_v41 = vpack.c.bf16 %v22494_v36, %v22493_v20  ;;  %22504 = vst [vmem:[#allocation200_spill] sm:$0xff] %v16850_v39  ;;  %v22515_v36 = vld [vmem:[#allocation129_spill] sm:$0xff] }
 0x26e   :  { %2959 = vmatprep.mubr.f32.mxu1 %v22463_v55  ;;  %v22479_v55 = vand.u32 4294901760, %v22478_v14  ;;  %v22496_v14 = vld [vmem:[#allocation306_spill] sm:$0xff]  ;;  %v22514_v20 = vand.u32 4294901760, %v22231_v63 }
 0x26f   :  { %6161 = vmatmul.mubr.f32.gmra.mrb[16].mxu0 %v22464_v11  ;;  %22477 = vst [vmem:[#allocation192_spill] sm:$0xff] %v16808_v35  ;;  %v22480_v11 = vld [vmem:[#allocation299_spill] sm:$0xff]  ;;  %22495 = vst [vmem:[#allocation197_spill] sm:$0xff] %v16836_v41  ;;  %v22521_v63 = vld [vmem:[#allocation134_spill] sm:$0xff] }
 0x270   :  { %6166 = vmatprep.mubr.f32.mxu0 %v22465_v27  ;;  %11885 = vmatpush1.bf16.msra.mxu0 %v16780_v0  ;;  %v22481_v27 = vand.u32 4294901760, %v22480_v11  ;;  %v22498_v11 = vld [vmem:[#allocation309_spill] sm:$0xff]  ;;  %v13472_v0 = vld [vmem:[#allocation2 + $0xb8] ss:$28 sps:$4 sm:$0xff]   ;;  %v22578_v52 = vld [vmem:[#allocation98_spill] sm:$0xff] }
 0x271   :  { %2963 = vmatmul.mubr.f32.gmra.mrb[52].mxu1 %v22470_v19  ;;  %11886 = vmatprep.subr.bf16.mxu0 %v21411_v40  ;;  %v22487_v19 = vld [vmem:[#allocation302_spill] sm:$0xff]  ;;  %v16999_v13 = vand.u32 4294901760, %v13472_v0 }
 0x272   :  { %2970 = vmatprep.mubr.f32.mxu1 %v22472_v62  ;;  %v22488_v34 = vand.u32 4294901760, %v22487_v19  ;;  %v22489_v62 = vld [vmem:[#allocation305_spill] sm:$0xff]  ;;  %v22506_v19 = vand.u32 4294901760, %v22505_v6  ;;  %v22531_v6 = vld [vmem:[#allocation324_spill] sm:$0xff] }
 0x273   :  { %6168 = vmatmul.mubr.f32.gmra.mrb[18].mxu0 %v22473_v44  ;;  %v22490_v44 = vand.u32 4294901760, %v22489_v62  ;;  %22589 = vst [vmem:[#allocation244_spill] sm:$0xff] %v16999_v13 }
 0x274   :  { %6173 = vmatprep.mubr.f32.mxu0 %v22474_v61  ;;  %11888 = vmatpush1.bf16.msra.mxu0 %v16794_v24  ;;  %v22491_v61 = vld [vmem:[#allocation219_spill] sm:$0xff] }
 0x275   :  { %2974 = vmatmul.mubr.f32.gmra.mrb[54].mxu1 %v22479_v55  ;;  %11889 = vmatprep.subr.bf16.mxu0 %v21411_v40  ;;  %v22497_v55 = vand.u32 4294901760, %v22496_v14  ;;  %v22516_v14 = vld [vmem:[#allocation236_spill] sm:$0xff] }
 0x276   :  { %2981 = vmatprep.mubr.f32.mxu1 %v22481_v27  ;;  %v22499_v27 = vand.u32 4294901760, %v22498_v11  ;;  %v22520_v11 = vld [vmem:[#allocation130_spill] sm:$0xff] }
 0x277   :  { %6175 = vmatmul.mubr.f32.gmra.mrb[20].mxu0 %v22482_v49  ;;  %v22500_v49 = vld [vmem:[#allocation224_spill] sm:$0xff] }
 0x278   :  { %6180 = vmatprep.mubr.f32.mxu0 %v22483_v25  ;;  %11891 = vmatpush1.bf16.msra.mxu0 %v16808_v35  ;;  %v22501_v25 = vld [vmem:[#allocation229_spill] sm:$0xff] }
 0x279   :  { %2985 = vmatmul.mubr.f32.gmra.mrb[56].mxu1 %v22488_v34  ;;  %11892 = vmatprep.subr.bf16.mxu0 %v21411_v40  ;;  %v22507_v34 = vld [vmem:[#allocation316_spill] sm:$0xff] }
 0x27a   :  { %2992 = vmatprep.mubr.f32.mxu1 %v22490_v44  ;;  %v22508_v62 = vand.u32 4294901760, %v22507_v34  ;;  %v22509_v44 = vld [vmem:[#allocation231_spill] sm:$0xff] }
 0x27b   :  { %6182 = vmatmul.mubr.f32.gmra.mrb[22].mxu0 %v22491_v61  ;;  %v22510_v61 = vld [vmem:[#allocation235_spill] sm:$0xff] }
 0x27c   :  { %6187 = vmatprep.mubr.f32.mxu0 %v22492_v45  ;;  %11894 = vmatpush1.bf16.msra.mxu0 %v16822_v9  ;;  %v16864_v45 = vpack.c.bf16 %v22512_v58, %v22511_v1  ;;  %v22533_v34 = vld [vmem:[#allocation155_spill] sm:$0xff]  ;;  %v22537_v1 = vld [vmem:[#allocation166_spill] sm:$0xff]  ;;  %v22538_v58 = vld [vmem:[#allocation33_spill] sm:$0xff] }
 0x27d   :  { %2996 = vmatmul.mubr.f32.gmra.mrb[58].mxu1 %v22497_v55  ;;  %11895 = vmatprep.subr.bf16.mxu0 %v21411_v40  ;;  %v22517_v55 = vld [vmem:[#allocation241_spill] sm:$0xff] }
 0x27e   :  { %3003 = vmatprep.mubr.f32.mxu1 %v22499_v27  ;;  %22513 = vst [vmem:[#allocation204_spill] sm:$0xff] %v16864_v45  ;;  %v22522_v27 = vld [vmem:[#allocation13_spill] sm:$0xff] }
 0x27f   :  { %6189 = vmatmul.mubr.f32.gmra.mrb[24].mxu0 %v22500_v49  ;;  %v22526_v49 = vld [vmem:[#allocation321_spill] sm:$0xff] }
 0x280   :  { %6194 = vmatprep.mubr.f32.mxu0 %v22501_v25  ;;  %11897 = vmatpush1.bf16.msra.mxu0 %v16836_v41  ;;  %v22527_v25 = vld [vmem:[#allocation323_spill] sm:$0xff]  ;;  %v13470_v41 = vld [vmem:[#allocation2 + $0xbc] ss:$28 sps:$4 sm:$0xff]  }
 0x281   :  { %3007 = vmatmul.mubr.f32.gmra.mrb[60].mxu1 %v22506_v19  ;;  %11898 = vmatprep.subr.bf16.mxu0 %v21411_v40  ;;  %v22532_v19 = vld [vmem:[#allocation326_spill] sm:$0xff]  ;;  %v16980_v32 = vand.u32 4294901760, %v13470_v41 }
 0x282   :  { %3014 = vmatprep.mubr.f32.mxu1 %v22508_v62  ;;  %v22534_v62 = vld [vmem:[#allocation157_spill] sm:$0xff] }
 0x283   :  { %6196 = vmatmul.mubr.f32.gmra.mrb[26].mxu0 %v22509_v44  ;;  %v22535_v44 = vld [vmem:[#allocation28_spill] sm:$0xff]  ;;  %22580 = vst [vmem:[#allocation237_spill] sm:$0xff] %v16980_v32 }
 0x284   :  { %6201 = vmatprep.mubr.f32.mxu0 %v22510_v61  ;;  %11900 = vmatpush1.bf16.msra.mxu0 %v16850_v39  ;;  %v22536_v61 = vld [vmem:[#allocation162_spill] sm:$0xff]  ;;  %v13469_v39 = vld [vmem:[#allocation2 + $0x80] ss:$28 sps:$4 sm:$0xff]  }
 0x285   :  { %3018 = vmatmul.mubr.f32.gmra.mrb[62].mxu1 %v22514_v20  ;;  %11901 = vmatprep.subr.bf16.mxu0 %v21411_v40  ;;  %v22539_v20 = vld [vmem:[#allocation330_spill] sm:$0xff] }
 0x286   :  { %3184 = vmatprep.mubr.f32.mxu1 %v22515_v36 }
 0x287   :  { %6203 = vmatmul.mubr.f32.gmra.mrb[28].mxu0 %v22516_v14  ;;  %v22540_v14 = vld [vmem:[#allocation332_spill] sm:$0xff] }
 0x288   :  { %6208 = vmatprep.mubr.f32.mxu0 %v22517_v55  ;;  %11903 = vmatpush1.bf16.msra.mxu0 %v16864_v45  ;;  %v22541_v55 = vld [vmem:[#allocation167_spill] sm:$0xff] }
 0x289   :  { %3186 = vmatmul.mubr.f32.vlgmr.msra.gmra.mrb[0].mxu1 %v22520_v11  ;;  %11904 = vmatprep.subr.bf16.mxu0 %v21411_v40  ;;  %v22567_v45 = vld [vmem:[#allocation203_spill] sm:$0xff] }
 0x28a   :  { %3191 = vmatprep.mubr.f32.mxu1 %v22521_v63  ;;  %11525 = vmatpush1.bf16.msra.mxu1 %v22522_v27  ;;  %v22543_v27 = vld [vmem:[#allocation41_spill] sm:$0xff] }
 0x28b   :  { %6210 = vmatmul.mubr.f32.gmra.mrb[30].mxu0 %v22246_v31  ;;  %11526 = vmatprep.subr.bf16.mxu1 %v21411_v40  ;;  %v22528_v31 = vld [vmem:[#allocation146_spill] sm:$0xff] }
 0x28c   :  { %6215 = vmatprep.mubr.f32.mxu0 %v22247_v10  ;;  %11906 = vmatpush1.bf16.msra.mxu0 %v16877_v5  ;;  %v22568_v10 = vld [vmem:[#allocation208_spill] sm:$0xff] }
 0x28d   :  { %3193 = vmatmul.mubr.f32.gmra.mrb[2].mxu1 %v22523_v42  ;;  %11907 = vmatprep.subr.bf16.mxu0 %v21411_v40 }
 0x28e   :  { %3198 = vmatprep.mubr.f32.mxu1 %v22524_v7  ;;  %11528 = vmatpush1.bf16.msra.mxu1 %v22525_v26  ;;  %v22544_v26 = vld [vmem:[#allocation175_spill] sm:$0xff] }
 0x28f   :  { %6217 = vmatmul.mubr.f32.gmra.mrb[32].mxu0 %v22526_v49  ;;  %11529 = vmatprep.subr.bf16.mxu1 %v21411_v40  ;;  %v13467_v49 = vld [vmem:[#allocation2 + $0x84] ss:$28 sps:$4 sm:$0xff]  }
 0x290   :  { %6222 = vmatprep.mubr.f32.mxu0 %v22527_v25  ;;  %v16971_v24 = vand.u32 4294901760, %v13467_v49 }
 0x291   :  { %3200 = vmatmul.mubr.f32.gmra.mrb[4].mxu1 %v22528_v31 }
 0x292   :  { %3205 = vmatprep.mubr.f32.mxu1 %v22529_v60  ;;  %11531 = vmatpush1.bf16.msra.mxu1 %v22530_v56  ;;  %v22545_v56 = vld [vmem:[#allocation176_spill] sm:$0xff]  ;;  %22574 = vst [vmem:[#allocation230_spill] sm:$0xff] %v16971_v24  ;;  %v16990_v48 = vsub.f32 %v13467_v49, %v16971_v24 }
 0x293   :  { %6224 = vmatmul.mubr.f32.gmra.mrb[34].mxu0 %v22531_v6  ;;  %11532 = vmatprep.subr.bf16.mxu1 %v21411_v40  ;;  %v22561_v6 = vld [vmem:[#allocation202_spill] sm:$0xff] }
 0x294   :  { %6229 = vmatprep.mubr.f32.mxu0 %v22532_v19  ;;  %v13464_v19 = vld [vmem:[#allocation2 + $0x4c] ss:$28 sps:$4 sm:$0xff]   ;;  %22583 = vst [vmem:[#allocation145_spill] sm:$0xff] %v16990_v48 }
 0x295   :  { %3207 = vmatmul.mubr.f32.gmra.mrb[6].mxu1 %v22533_v34  ;;  %v16952_v25 = vand.u32 4294901760, %v13464_v19 }
 0x296   :  { %3212 = vmatprep.mubr.f32.mxu1 %v22534_v62  ;;  %11534 = vmatpush1.bf16.msra.mxu1 %v22535_v44  ;;  %v22546_v44 = vld [vmem:[#allocation51_spill] sm:$0xff] }
 0x297   :  { %6231 = vmatmul.mubr.f32.gmra.mrb[36].mxu0 %v22274_v38  ;;  %11535 = vmatprep.subr.bf16.mxu1 %v21411_v40  ;;  %v22557_v38 = vld [vmem:[#allocation191_spill] sm:$0xff]  ;;  %22566 = vst [vmem:[#allocation215_spill] sm:$0xff] %v16952_v25  ;;  %v16967_v9 = vsub.f32 %v13464_v19, %v16952_v25  ;;  %v22581_v19 = vld [vmem:[#allocation361_spill] sm:$0xff] }
 0x298   :  { %6236 = vmatprep.mubr.f32.mxu0 %v22275_v12  ;;  %v22555_v12 = vld [vmem:[#allocation343_spill] sm:$0xff]  ;;  %v22587_v25 = vld [vmem:[#allocation25_spill] sm:$0xff] }
 0x299   :  { %3214 = vmatmul.mubr.f32.gmra.mrb[8].mxu1 %v22536_v61  ;;  %22572 = vst [vmem:[#allocation226_spill] sm:$0xff] %v16967_v9 }
 0x29a   :  { %3219 = vmatprep.mubr.f32.mxu1 %v22537_v1  ;;  %11537 = vmatpush1.bf16.msra.mxu1 %v22538_v58  ;;  %v22547_v58 = vld [vmem:[#allocation336_spill] sm:$0xff] }
 0x29b   :  { %6238 = vmatmul.mubr.f32.gmra.mrb[38].mxu0 %v22539_v20  ;;  %11538 = vmatprep.subr.bf16.mxu1 %v21411_v40  ;;  %v22549_v20 = vld [vmem:[#allocation180_spill] sm:$0xff] }
 0x29c   :  { %6243 = vmatprep.mubr.f32.mxu0 %v22540_v14  ;;  %v22548_v14 = vld [vmem:[#allocation338_spill] sm:$0xff] }
 0x29d   :  { %3221 = vmatmul.mubr.f32.gmra.mrb[10].mxu1 %v22541_v55 }
 0x29e   :  { %3226 = vmatprep.mubr.f32.mxu1 %v22542_v54  ;;  %11540 = vmatpush1.bf16.msra.mxu1 %v22543_v27  ;;  %v22550_v27 = vld [vmem:[#allocation184_spill] sm:$0xff] }
 0x29f   :  { %6245 = vmatmul.mubr.f32.gmra.mrb[40].mxu0 %v22292_v50  ;;  %11541 = vmatprep.subr.bf16.mxu1 %v21411_v40  ;;  %v22551_v50 = vld [vmem:[#allocation59_spill] sm:$0xff] }
 0x2a0   :  { %6250 = vmatprep.mubr.f32.mxu0 %v22293_v53  ;;  %v22552_v53 = vld [vmem:[#allocation187_spill] sm:$0xff] }
 0x2a1   :  { %3228 = vmatmul.mubr.f32.gmra.mrb[12].mxu1 %v22544_v26 }
 0x2a2   :  { %3233 = vmatprep.mubr.f32.mxu1 %v22545_v56  ;;  %11543 = vmatpush1.bf16.msra.mxu1 %v22546_v44  ;;  %v22553_v44 = vld [vmem:[#allocation190_spill] sm:$0xff] }
 0x2a3   :  { %6252 = vmatmul.mubr.f32.gmra.mrb[42].mxu0 %v22547_v58  ;;  %11544 = vmatprep.subr.bf16.mxu1 %v21411_v40  ;;  %v22554_v58 = vld [vmem:[#allocation66_spill] sm:$0xff] }
 0x2a4   :  { %6257 = vmatprep.mubr.f32.mxu0 %v22548_v14  ;;  %v22556_v14 = vld [vmem:[#allocation345_spill] sm:$0xff] }
 0x2a5   :  { %3235 = vmatmul.mubr.f32.gmra.mrb[14].mxu1 %v22549_v20 }
 0x2a6   :  { %3240 = vmatprep.mubr.f32.mxu1 %v22550_v27  ;;  %11546 = vmatpush1.bf16.msra.mxu1 %v22551_v50  ;;  %v22558_v50 = vld [vmem:[#allocation195_spill] sm:$0xff] }
 0x2a7   :  { %6259 = vmatmul.mubr.f32.gmra.mrb[44].mxu0 %v22310_v59  ;;  %11547 = vmatprep.subr.bf16.mxu1 %v21411_v40  ;;  %v22559_v59 = vld [vmem:[#allocation74_spill] sm:$0xff] }
 0x2a8   :  { %6264 = vmatprep.mubr.f32.mxu0 %v22311_v47  ;;  %v13463_v47 = vld [vmem:[#allocation2 + $0x14] ss:$28 sps:$4 sm:$0xff]  }
 0x2a9   :  { %3242 = vmatmul.mubr.f32.gmra.mrb[16].mxu1 %v22552_v53  ;;  %v16946_v5 = vand.u32 4294901760, %v13463_v47 }
 0x2aa   :  { %3247 = vmatprep.mubr.f32.mxu1 %v22553_v44  ;;  %11549 = vmatpush1.bf16.msra.mxu1 %v22554_v58  ;;  %v13461_v58 = vld [vmem:[#allocation2 + $0x10] ss:$28 sps:$4 sm:$0xff]  }
 0x2ab   :  { %6266 = vmatmul.mubr.f32.gmra.mrb[46].mxu0 %v22555_v12  ;;  %11550 = vmatprep.subr.bf16.mxu1 %v21411_v40  ;;  %v22560_v12 = vld [vmem:[#allocation198_spill] sm:$0xff]  ;;  %22563 = vst [vmem:[#allocation210_spill] sm:$0xff] %v16946_v5 }
 0x2ac   :  { %6271 = vmatprep.mubr.f32.mxu0 %v22556_v14  ;;  %v22562_v14 = vld [vmem:[#allocation82_spill] sm:$0xff] }
 0x2ad   :  { %3249 = vmatmul.mubr.f32.gmra.mrb[18].mxu1 %v22557_v38 }
 0x2ae   :  { %3254 = vmatprep.mubr.f32.mxu1 %v22558_v50  ;;  %11552 = vmatpush1.bf16.msra.mxu1 %v22559_v59  ;;  %v22564_v59 = vld [vmem:[#allocation353_spill] sm:$0xff] }
 0x2af   :  { %6273 = vmatmul.mubr.f32.gmra.mrb[48].mxu0 %v22328_v51  ;;  %11553 = vmatprep.subr.bf16.mxu1 %v21411_v40  ;;  %v16950_v51 = vand.u32 4294901760, %v13461_v58 }
 0x2b0   :  { %6278 = vmatprep.mubr.f32.mxu0 %v22329_v57  ;;  %v13466_v57 = vld [vmem:[#allocation2 + $0x48] ss:$28 sps:$4 sm:$0xff]  }
 0x2b1   :  { %3256 = vmatmul.mubr.f32.gmra.mrb[20].mxu1 %v22560_v12  ;;  %22565 = vst [vmem:[#allocation212_spill] sm:$0xff] %v16950_v51  ;;  %v16969_v35 = vand.u32 4294901760, %v13466_v57 }
 0x2b2   :  { %3261 = vmatprep.mubr.f32.mxu1 %v22561_v6  ;;  %11555 = vmatpush1.bf16.msra.mxu1 %v22562_v14  ;;  %v22569_v14 = vld [vmem:[#allocation90_spill] sm:$0xff] }
 0x2b3   :  { %6280 = vmatmul.mubr.f32.gmra.mrb[50].mxu0 %v22336_v33  ;;  %11556 = vmatprep.subr.bf16.mxu1 %v21411_v40  ;;  %v16959_v33 = vsub.f32 %v13463_v47, %v16946_v5  ;;  %22573 = vst [vmem:[#allocation228_spill] sm:$0xff] %v16969_v35  ;;  %v16975_v47 = vand.u32 4294901760, %v13469_v39  ;;  %v16987_v16 = vsub.f32 %v13466_v57, %v16969_v35  ;;  %v22590_v57 = vld [vmem:[#allocation106_spill] sm:$0xff] }
 0x2b4   :  { %6285 = vmatprep.mubr.f32.mxu0 %v22564_v59  ;;  %v16964_v59 = vsub.f32 %v13461_v58, %v16950_v51  ;;  %v17009_v58 = vsub.f32 %v13470_v41, %v16980_v32  ;;  %v22595_v41 = vld [vmem:[#allocation223_spill] sm:$0xff]  ;;  %v13476_v35 = vld [vmem:[#allocation2 + $0x12c] ss:$28 sps:$4 sm:$0xff]  }
 0x2b5   :  { %3263 = vmatmul.mubr.f32.gmra.mrb[22].mxu1 %v22567_v45  ;;  %22570 = vst [vmem:[#allocation218_spill] sm:$0xff] %v16959_v33  ;;  %22577 = vst [vmem:[#allocation233_spill] sm:$0xff] %v16975_v47  ;;  %v22591_v49 = vand.u32 4294901760, %v16959_v33  ;;  %v22602_v5 = vld [vmem:[#allocation114_spill] sm:$0xff]  ;;  %v22630_v45 = vld [vmem:[#allocation63_spill] sm:$0xff] }
 0x2b6   :  { %3268 = vmatprep.mubr.f32.mxu1 %v22568_v10  ;;  %11558 = vmatpush1.bf16.msra.mxu1 %v22569_v14  ;;  %22571 = vst [vmem:[#allocation221_spill] sm:$0xff] %v16964_v59  ;;  %v22575_v14 = vld [vmem:[#allocation209_spill] sm:$0xff]  ;;  %22582 = vst [vmem:[#allocation240_spill] sm:$0xff] %v16987_v16  ;;  %v22643_v6 = vand.u32 4294901760, %v22630_v45 }
 0x2b7   :  { %6287 = vmatmul.mubr.f32.gmra.mrb[52].mxu0 %v22345_v17  ;;  %11559 = vmatprep.subr.bf16.mxu1 %v21411_v40  ;;  %v22576_v17 = vld [vmem:[#allocation214_spill] sm:$0xff]  ;;  %v17006_v24 = vsub.f32 %v16959_v33, %v22591_v49  ;;  %22592 = vst [vmem:[#allocation151_spill] sm:$0xff] %v17009_v58  ;;  %v17037_v49 = vsub.f32 %v13472_v0, %v16999_v13  ;;  %v17039_v33 = vand.u32 4294901760, %v13475_v23 }
 0x2b8   :  { %6292 = vmatprep.mubr.f32.mxu0 %v22346_v21  ;;  %v22579_v21 = vld [vmem:[#allocation359_spill] sm:$0xff] }
 0x2b9   :  { %3270 = vmatmul.mubr.f32.gmra.mrb[24].mxu1 %v22575_v14  ;;  %22600 = vst [vmem:[#allocation248_spill] sm:$0xff] %v17037_v49  ;;  %22601 = vst [vmem:[#allocation250_spill] sm:$0xff] %v17039_v33  ;;  %v13484_v14 = vld [vmem:[#allocation2 + $0x198] ss:$28 sps:$4 sm:$0xff]  }
 0x2ba   :  { %3275 = vmatprep.mubr.f32.mxu1 %v22576_v17  ;;  %11561 = vmatpush1.bf16.msra.mxu1 %v22578_v52  ;;  %v22584_v52 = vld [vmem:[#allocation216_spill] sm:$0xff] }
 0x2bb   :  { %6294 = vmatmul.mubr.f32.gmra.mrb[54].mxu0 %v22579_v21  ;;  %11562 = vmatprep.subr.bf16.mxu1 %v21411_v40  ;;  %v22585_v21 = vld [vmem:[#allocation24_spill] sm:$0xff] }
 0x2bc   :  { %6299 = vmatprep.mubr.f32.mxu0 %v22581_v19  ;;  %v16997_v19 = vsub.f32 %v13469_v39, %v16975_v47  ;;  %v22593_v39 = vand.u32 4294901760, %v16964_v59  ;;  %v22596_v32 = vand.u32 4294901760, %v22585_v21  ;;  %v17029_v47 = vand.u32 4294901760, %v13473_v37 }
 0x2bd   :  { %3277 = vmatmul.mubr.f32.gmra.mrb[26].mxu1 %v22584_v52  ;;  %v22607_v52 = vld [vmem:[#allocation227_spill] sm:$0xff] }
 0x2be   :  { %3282 = vmatprep.mubr.f32.mxu1 %v22586_v4  ;;  %22588 = vst [vmem:[#allocation242_spill] sm:$0xff] %v16997_v19  ;;  %11564 = vmatpush1.bf16.msra.mxu1 %v22590_v57  ;;  %v17016_v51 = vsub.f32 %v16964_v59, %v22593_v39  ;;  %v22594_v57 = vand.u32 4294901760, %v16967_v9  ;;  %22597 = vst [vmem:[#allocation156_spill] sm:$0xff] %v17029_v47  ;;  %v22598_v39 = vld [vmem:[#allocation225_spill] sm:$0xff]  ;;  %v22599_v59 = vand.u32 4294901760, %v22587_v25 }
 0x2bf   :  { %6301 = vmatmul.mubr.f32.gmra.mrb[56].mxu0 %v22363_v18  ;;  %11565 = vmatprep.subr.bf16.mxu1 %v21411_v40  ;;  %v17063_v13 = vsub.f32 %v13473_v37, %v17029_v47 }
 0x2c0   :  { %6306 = vmatprep.mubr.f32.mxu0 %v22364_v28  ;;  %v17021_v18 = vsub.f32 %v16967_v9, %v22594_v57  ;;  %v6908_v28 = vsub.f32 %v22585_v21, %v22596_v32  ;;  %v6915_v57 = vsub.f32 %v22587_v25, %v22599_v59  ;;  %v6427_v32 = vand.u32 4294901760, %v17006_v24  ;;  %v22603_v21 = vld [vmem:[#allocation30_spill] sm:$0xff]  ;;  %v13481_v9 = vld [vmem:[#allocation2 + $0x160] ss:$28 sps:$4 sm:$0xff]  }
 0x2c1   :  { %3284 = vmatmul.mubr.f32.gmra.mrb[28].mxu1 %v22595_v41  ;;  %v13478_v59 = vld [vmem:[#allocation2 + $0x128] ss:$28 sps:$4 sm:$0xff]   ;;  %v6433_v0 = vand.u32 4294901760, %v17016_v51  ;;  %v22606_v24 = vand.u32 4294901760, %v16990_v48  ;;  %22608 = vst [vmem:[#allocation160_spill] sm:$0xff] %v17063_v13  ;;  %v22610_v25 = vld [vmem:[#allocation232_spill] sm:$0xff] }
 0x2c2   :  { %3289 = vmatprep.mubr.f32.mxu1 %v22598_v39  ;;  %11567 = vmatpush1.bf16.msra.mxu1 %v22602_v5  ;;  %v22604_v39 = vld [vmem:[#allocation31_spill] sm:$0xff]  ;;  %v22605_v5 = vand.u32 4294901760, %v16987_v16  ;;  %v6909_v41 = vand.u32 4294901760, %v6908_v28  ;;  %v13479_v51 = vld [vmem:[#allocation2 + $0x164] ss:$28 sps:$4 sm:$0xff]   ;;  %v6916_v17 = vand.u32 4294901760, %v6915_v57 }
 0x2c3   :  { %6308 = vmatmul.mubr.f32.gmra.mrb[58].mxu0 %v22371_v8  ;;  %11568 = vmatprep.subr.bf16.mxu1 %v21411_v40  ;;  %v17059_v4 = vsub.f32 %v16990_v48, %v22606_v24  ;;  %v17075_v48 = vsub.f32 %v13475_v23, %v17039_v33  ;;  %v22613_v28 = vld [vmem:[#allocation122_spill] sm:$0xff]  ;;  %v22614_v37 = vand.u32 4294901760, %v22603_v21  ;;  %v22615_v57 = vand.u32 4294901760, %v22604_v39  ;;  %v22619_v33 = vld [vmem:[#allocation48_spill] sm:$0xff] }
 0x2c4   :  { %6313 = vmatprep.mubr.f32.mxu0 %v22372_v3  ;;  %v17054_v8 = vsub.f32 %v16987_v16, %v22605_v5  ;;  %v17065_v3 = vand.u32 4294901760, %v13476_v35  ;;  %v22611_v5 = vand.u32 4294901760, %v16997_v19  ;;  %v17090_v24 = vand.u32 4294901760, %v13478_v59 }
 0x2c5   :  { %3291 = vmatmul.mubr.f32.gmra.mrb[30].mxu1 %v22607_v52  ;;  %22612 = vst [vmem:[#allocation14_spill] sm:$0xff] %v17075_v48  ;;  %v6922_v47 = vsub.f32 %v22603_v21, %v22614_v37  ;;  %v22618_v37 = vld [vmem:[#allocation47_spill] sm:$0xff]  ;;  %v17105_v52 = vand.u32 4294901760, %v13481_v9 }
 0x2c6   :  { %22609 = vst [vmem:[#allocation317_spill] sm:$0xff] %v17065_v3  ;;  %3296 = vmatprep.mubr.f32.mxu1 %v22610_v25  ;;  %v17071_v16 = vsub.f32 %v16997_v19, %v22611_v5  ;;  %11570 = vmatpush1.bf16.msra.mxu1 %v22613_v28  ;;  %v6929_v25 = vsub.f32 %v22604_v39, %v22615_v57  ;;  %v22616_v5 = vand.u32 4294901760, %v17009_v58  ;;  %22617 = vst [vmem:[#allocation15_spill] sm:$0xff] %v17090_v24  ;;  %v22620_v57 = vld [vmem:[#allocation234_spill] sm:$0xff]  ;;  %v13482_v39 = vld [vmem:[#allocation2 + $0x19c] ss:$28 sps:$4 sm:$0xff]  }
 0x2c7   :  { %6315 = vmatmul.mubr.f32.gmra.mrb[60].mxu0 %v22377_v29  ;;  %11571 = vmatprep.subr.bf16.mxu1 %v21411_v40  ;;  %v6448_v23 = vand.u32 4294901760, %v17054_v8  ;;  %22623 = vst [vmem:[#allocation245_spill] sm:$0xff] %v17105_v52  ;;  %v11908_v8 = vpack.c.bf16 %v6916_v17, %v6909_v41  ;;  %v22625_v29 = vand.u32 4294901760, %v17037_v49  ;;  %v22627_v17 = vand.u32 4294901760, %v22618_v37 }
 0x2c8   :  { %v17088_v19 = vsub.f32 %v17009_v58, %v22616_v5  ;;  %6320 = vmatprep.mubr.f32.mxu0 %v22378_v22  ;;  %v17101_v5 = vsub.f32 %v13476_v35, %v17065_v3  ;;  %v17103_v58 = vand.u32 4294901760, %v13479_v51  ;;  %v22624_v22 = vld [vmem:[#allocation238_spill] sm:$0xff]  ;;  %v6923_v35 = vand.u32 4294901760, %v6922_v47  ;;  %v22631_v47 = vld [vmem:[#allocation239_spill] sm:$0xff] }
 0x2c9   :  { %3298 = vmatmul.mubr.f32.gmra.mrb[32].mxu1 %v22620_v57  ;;  %v17112_v21 = vsub.f32 %v17037_v49, %v22625_v29  ;;  %v6930_v3 = vand.u32 4294901760, %v6929_v25  ;;  %v6936_v41 = vsub.f32 %v22618_v37, %v22627_v17  ;;  %v22628_v29 = vand.u32 4294901760, %v22619_v33  ;;  %v22629_v57 = vld [vmem:[#allocation61_spill] sm:$0xff] }
 0x2ca   :  { %22621 = vst [vmem:[#allocation16_spill] sm:$0xff] %v17101_v5  ;;  %22622 = vst [vmem:[#allocation20_spill] sm:$0xff] %v17103_v58  ;;  %3303 = vmatprep.mubr.f32.mxu1 %v22624_v22  ;;  %v17118_v22 = vsub.f32 %v13478_v59, %v17090_v24  ;;  %v22632_v25 = vand.u32 4294901760, %v17063_v13  ;;  %v17136_v10 = vsub.f32 %v13479_v51, %v17103_v58  ;;  %v22640_v58 = vld [vmem:[#allocation78_spill] sm:$0xff]  ;;  %v22641_v49 = vand.u32 4294901760, %v17021_v18 }
 0x2cb   :  { %6322 = vmatmul.mubr.f32.gmra.mrb[62].mxu0 %v22381_v30  ;;  %v6943_v28 = vsub.f32 %v22619_v33, %v22628_v29  ;;  %v17139_v17 = vsub.f32 %v13481_v9, %v17105_v52  ;;  %v22635_v29 = vld [vmem:[#allocation243_spill] sm:$0xff]  ;;  %v22636_v30 = vand.u32 4294901760, %v17075_v48  ;;  %v17148_v33 = vand.u32 4294901760, %v13482_v39  ;;  %v22639_v9 = vld [vmem:[#allocation77_spill] sm:$0xff]  ;;  %v13488_v52 = vld [vmem:[#allocation2 + $0x20c] ss:$28 sps:$4 sm:$0xff]  }
 0x2cc   :  { %22626 = vst [vmem:[#allocation22_spill] sm:$0xff] %v17118_v22  ;;  %6428 = vmatprep.mubr.f32.mxu0 %v6427_v32  ;;  %v17132_v59 = vsub.f32 %v17063_v13, %v22632_v25  ;;  %22633 = vst [vmem:[#allocation23_spill] sm:$0xff] %v17136_v10  ;;  %v17150_v25 = vand.u32 4294901760, %v13484_v14  ;;  %v13485_v32 = vld [vmem:[#allocation2 + $0x1d4] ss:$28 sps:$4 sm:$0xff]   ;;  %v11911_v51 = vpack.c.bf16 %v6930_v3, %v6923_v35 }
 0x2cd   :  { %3305 = vmatmul.mubr.f32.gmra.mrb[34].mxu1 %v22631_v47  ;;  %22634 = vst [vmem:[#allocation26_spill] sm:$0xff] %v17139_v17  ;;  %v17146_v24 = vsub.f32 %v17075_v48, %v22636_v30  ;;  %22637 = vst [vmem:[#allocation29_spill] sm:$0xff] %v17148_v33  ;;  %v6944_v30 = vand.u32 4294901760, %v6943_v28  ;;  %v22642_v48 = vand.u32 4294901760, %v22629_v57  ;;  %v6957_v3 = vsub.f32 %v22630_v45, %v22643_v6  ;;  %v22652_v45 = vld [vmem:[#allocation95_spill] sm:$0xff] }
 0x2ce   :  { %3310 = vmatprep.mubr.f32.mxu1 %v22635_v29  ;;  %22638 = vst [vmem:[#allocation34_spill] sm:$0xff] %v17150_v25  ;;  %v6937_v29 = vand.u32 4294901760, %v6936_v41  ;;  %v6487_v35 = vand.u32 4294901760, %v17132_v59  ;;  %v22646_v41 = vld [vmem:[#allocation12_spill] sm:$0xff]  ;;  %v17176_v13 = vsub.f32 %v13482_v39, %v17148_v33  ;;  %v17179_v37 = vsub.f32 %v13484_v14, %v17150_v25 }
 0x2cf   :  { %6434 = vmatmul.mubr.f32.vlgmr.msra.gmra.mrb[0].mxu0 %v6433_v0  ;;  %v6950_v47 = vsub.f32 %v22629_v57, %v22642_v48  ;;  %v22644_v0 = vld [vmem:[#allocation246_spill] sm:$0xff]  ;;  %v17181_v59 = vand.u32 4294901760, %v13485_v32  ;;  %v22651_v28 = vand.u32 4294901760, %v22640_v58  ;;  %v22653_v57 = vld [vmem:[#allocation96_spill] sm:$0xff]  ;;  %v22654_v33 = vand.u32 4294901760, %v17059_v4 }
 0x2d0   :  { %11909 = vmatpush1.bf16.msra.mxu0 %v11908_v8  ;;  %6443 = vmatprep.mubr.f32.mxu0 %v22641_v49  ;;  %v22645_v8 = vand.u32 4294901760, %v17101_v5  ;;  %v13487_v48 = vld [vmem:[#allocation2 + $0x1d0] ss:$28 sps:$4 sm:$0xff]   ;;  %22647 = vst [vmem:[#allocation35_spill] sm:$0xff] %v17176_v13  ;;  %22648 = vst [vmem:[#allocation39_spill] sm:$0xff] %v17179_v37  ;;  %v11914_v14 = vpack.c.bf16 %v6944_v30, %v6937_v29  ;;  %v22655_v25 = vand.u32 4294901760, %v17118_v22 }
 0x2d1   :  { %3312 = vmatmul.mubr.f32.gmra.mrb[36].mxu1 %v22644_v0  ;;  %11910 = vmatprep.subr.bf16.mxu0 %v21411_v40  ;;  %22649 = vst [vmem:[#allocation44_spill] sm:$0xff] %v17181_v59  ;;  %v22657_v39 = vand.u32 4294901760, %v17136_v10  ;;  %v17219_v6 = vand.u32 4294901760, %v13488_v52 }
 0x2d2   :  { %v17169_v18 = vsub.f32 %v17101_v5, %v22645_v8  ;;  %3317 = vmatprep.mubr.f32.mxu1 %v22646_v41  ;;  %v22650_v8 = vand.u32 4294901760, %v22639_v9  ;;  %v6971_v5 = vsub.f32 %v22640_v58, %v22651_v28  ;;  %v6951_v41 = vand.u32 4294901760, %v6950_v47  ;;  %v13490_v47 = vld [vmem:[#allocation2 + $0x208] ss:$28 sps:$4 sm:$0xff]  }
 0x2d3   :  { %6449 = vmatmul.mubr.f32.gmra.mrb[2].mxu0 %v6448_v23  ;;  %v17196_v23 = vsub.f32 %v17118_v22, %v22655_v25  ;;  %v17204_v4 = vsub.f32 %v17136_v10, %v22657_v39  ;;  %v17211_v25 = vand.u32 4294901760, %v13487_v48  ;;  %22662 = vst [vmem:[#allocation57_spill] sm:$0xff] %v17219_v6  ;;  %v22663_v39 = vand.u32 4294901760, %v17071_v16  ;;  %v13494_v16 = vld [vmem:[#allocation2 + $0x27c] ss:$28 sps:$4 sm:$0xff]  }
 0x2d4   :  { %v6964_v49 = vsub.f32 %v22639_v9, %v22650_v8  ;;  %6458 = vmatprep.mubr.f32.mxu0 %v22654_v33  ;;  %11912 = vmatpush1.bf16.msra.mxu0 %v11911_v51  ;;  %v6958_v8 = vand.u32 4294901760, %v6957_v3  ;;  %v22656_v9 = vld [vmem:[#allocation249_spill] sm:$0xff]  ;;  %v6502_v28 = vand.u32 4294901760, %v17169_v18  ;;  %v22658_v33 = vand.u32 4294901760, %v17139_v17 }
 0x2d5   :  { %3319 = vmatmul.mubr.f32.gmra.mrb[38].mxu1 %v22656_v9  ;;  %11913 = vmatprep.subr.bf16.mxu0 %v21411_v40  ;;  %22659 = vst [vmem:[#allocation49_spill] sm:$0xff] %v17211_v25  ;;  %v22660_v51 = vld [vmem:[#allocation253_spill] sm:$0xff]  ;;  %v17217_v18 = vsub.f32 %v13485_v32, %v17181_v59  ;;  %v22665_v58 = vand.u32 4294901760, %v22653_v57  ;;  %v22666_v3 = vand.u32 4294901760, %v17088_v19  ;;  %v6508_v32 = vand.u32 4294901760, %v17196_v23 }
 0x2d6   :  { %v17209_v29 = vsub.f32 %v17139_v17, %v22658_v33  ;;  %3324 = vmatprep.mubr.f32.mxu1 %v22660_v51  ;;  %v6965_v10 = vand.u32 4294901760, %v6964_v49  ;;  %v6972_v33 = vand.u32 4294901760, %v6971_v5  ;;  %v22664_v17 = vand.u32 4294901760, %v22652_v45  ;;  %v22667_v51 = vld [vmem:[#allocation101_spill] sm:$0xff]  ;;  %v22669_v5 = vld [vmem:[#allocation256_spill] sm:$0xff] }
 0x2d7   :  { %22661 = vst [vmem:[#allocation52_spill] sm:$0xff] %v17217_v18  ;;  %6464 = vmatmul.mubr.f32.gmra.mrb[4].mxu0 %v22663_v39  ;;  %v6985_v30 = vsub.f32 %v22653_v57, %v22665_v58  ;;  %v11917_v59 = vpack.c.bf16 %v6958_v8, %v6951_v41  ;;  %v22668_v39 = vld [vmem:[#allocation102_spill] sm:$0xff]  ;;  %v6517_v9 = vand.u32 4294901760, %v17204_v4  ;;  %v17240_v58 = vand.u32 4294901760, %v13490_v47  ;;  %v13491_v19 = vld [vmem:[#allocation2 + $0x244] ss:$28 sps:$4 sm:$0xff]  }
 0x2d8   :  { %v6978_v22 = vsub.f32 %v22652_v45, %v22664_v17  ;;  %6473 = vmatprep.mubr.f32.mxu0 %v22666_v3  ;;  %11915 = vmatpush1.bf16.msra.mxu0 %v11914_v14  ;;  %v17238_v17 = vsub.f32 %v13487_v48, %v17211_v25  ;;  %v13493_v14 = vld [vmem:[#allocation2 + $0x240] ss:$28 sps:$4 sm:$0xff]   ;;  %v22672_v3 = vld [vmem:[#allocation18_spill] sm:$0xff]  ;;  %v22673_v23 = vand.u32 4294901760, %v17176_v13  ;;  %v22674_v4 = vand.u32 4294901760, %v17179_v37 }
 0x2d9   :  { %3326 = vmatmul.mubr.f32.gmra.mrb[40].mxu1 %v22669_v5  ;;  %11916 = vmatprep.subr.bf16.mxu0 %v21411_v40  ;;  %22671 = vst [vmem:[#allocation67_spill] sm:$0xff] %v17240_v58  ;;  %v22675_v25 = vand.u32 4294901760, %v17112_v21  ;;  %v11920_v57 = vpack.c.bf16 %v6972_v33, %v6965_v10  ;;  %v17258_v45 = vsub.f32 %v13488_v52, %v17219_v6  ;;  %v22680_v21 = vld [vmem:[#allocation110_spill] sm:$0xff]  ;;  %v22681_v10 = vld [vmem:[#allocation260_spill] sm:$0xff]  ;;  %v17286_v52 = vand.u32 4294901760, %v13494_v16 }
 0x2da   :  { %22670 = vst [vmem:[#allocation60_spill] sm:$0xff] %v17238_v17  ;;  %3331 = vmatprep.mubr.f32.mxu1 %v22672_v3  ;;  %v17247_v8 = vsub.f32 %v17176_v13, %v22673_v23  ;;  %v17252_v49 = vsub.f32 %v17179_v37, %v22674_v4  ;;  %v6979_v41 = vand.u32 4294901760, %v6978_v22  ;;  %v6986_v3 = vand.u32 4294901760, %v6985_v30  ;;  %v22679_v37 = vld [vmem:[#allocation109_spill] sm:$0xff]  ;;  %v22685_v30 = vld [vmem:[#allocation264_spill] sm:$0xff] }
 0x2db   :  { %6479 = vmatmul.mubr.f32.gmra.mrb[6].mxu0 %v22675_v25  ;;  %22676 = vst [vmem:[#allocation68_spill] sm:$0xff] %v17258_v45  ;;  %v22677_v23 = vand.u32 4294901760, %v22667_v51  ;;  %v22678_v4 = vand.u32 4294901760, %v22668_v39  ;;  %v17272_v22 = vsub.f32 %v13490_v47, %v17240_v58  ;;  %22687 = vst [vmem:[#allocation84_spill] sm:$0xff] %v17286_v52  ;;  %v13496_v5 = vld [vmem:[#allocation2 + $0x278] ss:$28 sps:$4 sm:$0xff]  }
 0x2dc   :  { %6488 = vmatprep.mubr.f32.mxu0 %v6487_v35  ;;  %11918 = vmatpush1.bf16.msra.mxu0 %v11917_v59  ;;  %v17274_v35 = vand.u32 4294901760, %v13491_v19  ;;  %v17276_v59 = vand.u32 4294901760, %v13493_v14  ;;  %v6532_v33 = vand.u32 4294901760, %v17247_v8  ;;  %v22688_v47 = vand.u32 4294901760, %v17146_v24  ;;  %v13499_v8 = vld [vmem:[#allocation2 + $0x2b0] ss:$28 sps:$4 sm:$0xff]  }
 0x2dd   :  { %v6992_v13 = vsub.f32 %v22667_v51, %v22677_v23  ;;  %v6999_v48 = vsub.f32 %v22668_v39, %v22678_v4  ;;  %3333 = vmatmul.mubr.f32.gmra.mrb[42].mxu1 %v22681_v10  ;;  %11919 = vmatprep.subr.bf16.mxu0 %v21411_v40  ;;  %22682 = vst [vmem:[#allocation75_spill] sm:$0xff] %v17272_v22  ;;  %v22686_v4 = vand.u32 4294901760, %v17217_v18  ;;  %v22689_v39 = vld [vmem:[#allocation119_spill] sm:$0xff]  ;;  %v22692_v0 = vand.u32 4294901760, %v22680_v21 }
 0x2de   :  { %22683 = vst [vmem:[#allocation76_spill] sm:$0xff] %v17274_v35  ;;  %22684 = vst [vmem:[#allocation83_spill] sm:$0xff] %v17276_v59  ;;  %3338 = vmatprep.mubr.f32.mxu1 %v22685_v30  ;;  %v11923_v6 = vpack.c.bf16 %v6986_v3, %v6979_v41  ;;  %v21042_v51 = vand.u32 4294901760, %v22689_v39  ;;  %v22690_v30 = vld [vmem:[#allocation120_spill] sm:$0xff]  ;;  %v22694_v3 = vand.u32 4294901760, %v17238_v17  ;;  %v17318_v58 = vand.u32 4294901760, %v13496_v5 }
 0x2df   :  { %v17284_v25 = vsub.f32 %v17217_v18, %v22686_v4  ;;  %6494 = vmatmul.mubr.f32.gmra.mrb[8].mxu0 %v22688_v47  ;;  %v6993_v23 = vand.u32 4294901760, %v6992_v13  ;;  %v7000_v10 = vand.u32 4294901760, %v6999_v48  ;;  %v22691_v4 = vand.u32 4294901760, %v22679_v37  ;;  %v22693_v47 = vld [vmem:[#allocation267_spill] sm:$0xff]  ;;  %v22697_v48 = vld [vmem:[#allocation270_spill] sm:$0xff] }
 0x2e0   :  { %6503 = vmatprep.mubr.f32.mxu0 %v6502_v28  ;;  %11921 = vmatpush1.bf16.msra.mxu0 %v11920_v57  ;;  %v7013_v24 = vsub.f32 %v22680_v21, %v22692_v0  ;;  %v17303_v41 = vsub.f32 %v17238_v17, %v22694_v3  ;;  %v17307_v13 = vsub.f32 %v13491_v19, %v17274_v35  ;;  %v13497_v3 = vld [vmem:[#allocation2 + $0x2b4] ss:$28 sps:$4 sm:$0xff]   ;;  %v22701_v17 = vld [vmem:[#allocation126_spill] sm:$0xff] }
 0x2e1   :  { %v7006_v18 = vsub.f32 %v22679_v37, %v22691_v4  ;;  %3340 = vmatmul.mubr.f32.gmra.mrb[44].mxu1 %v22693_v47  ;;  %v17310_v57 = vsub.f32 %v13493_v14, %v17276_v59  ;;  %11922 = vmatprep.subr.bf16.mxu0 %v21411_v40  ;;  %v6547_v0 = vand.u32 4294901760, %v17284_v25  ;;  %v17316_v4 = vsub.f32 %v13494_v16, %v17286_v52  ;;  %v22702_v35 = vld [vmem:[#allocation127_spill] sm:$0xff] }
 0x2e2   :  { %22695 = vst [vmem:[#allocation91_spill] sm:$0xff] %v17307_v13  ;;  %3345 = vmatprep.mubr.f32.mxu1 %v22697_v48  ;;  %22699 = vst [vmem:[#allocation107_spill] sm:$0xff] %v17318_v58  ;;  %v7020_v19 = vsub.f32 %v22689_v39, %v21042_v51  ;;  %v22700_v14 = vand.u32 4294901760, %v22690_v30  ;;  %v22703_v16 = vand.u32 4294901760, %v17258_v45  ;;  %v7014_v37 = vand.u32 4294901760, %v7013_v24  ;;  %v22704_v48 = vld [vmem:[#allocation271_spill] sm:$0xff] }
 0x2e3   :  { %22696 = vst [vmem:[#allocation92_spill] sm:$0xff] %v17310_v57  ;;  %22698 = vst [vmem:[#allocation100_spill] sm:$0xff] %v17316_v4  ;;  %6509 = vmatmul.mubr.f32.gmra.mrb[10].mxu0 %v6508_v32  ;;  %v11926_v32 = vpack.c.bf16 %v7000_v10, %v6993_v23  ;;  %v7007_v21 = vand.u32 4294901760, %v7006_v18  ;;  %v6553_v51 = vand.u32 4294901760, %v17303_v41  ;;  %v17346_v10 = vsub.f32 %v13496_v5, %v17318_v58 }
 0x2e4   :  { %v7027_v28 = vsub.f32 %v22690_v30, %v22700_v14  ;;  %6518 = vmatprep.mubr.f32.mxu0 %v6517_v9  ;;  %v17331_v52 = vsub.f32 %v17258_v45, %v22703_v16  ;;  %11924 = vmatpush1.bf16.msra.mxu0 %v11923_v6  ;;  %v22705_v14 = vand.u32 4294901760, %v17272_v22  ;;  %v13500_v16 = vld [vmem:[#allocation2 + $0x2ec] ss:$28 sps:$4 sm:$0xff]   ;;  %v22706_v6 = vld [vmem:[#allocation275_spill] sm:$0xff]  ;;  %v17348_v23 = vand.u32 4294901760, %v13497_v3  ;;  %v22713_v30 = vld [vmem:[#allocation133_spill] sm:$0xff] }
 0x2e5   :  { %3347 = vmatmul.mubr.f32.gmra.mrb[46].mxu1 %v22704_v48  ;;  %11925 = vmatprep.subr.bf16.mxu0 %v21411_v40  ;;  %22707 = vst [vmem:[#allocation108_spill] sm:$0xff] %v17346_v10  ;;  %v17350_v24 = vand.u32 4294901760, %v13499_v8  ;;  %v22710_v41 = vand.u32 4294901760, %v17209_v29  ;;  %v22711_v25 = vand.u32 4294901760, %v22701_v17  ;;  %v22712_v45 = vand.u32 4294901760, %v22702_v35  ;;  %v22748_v48 = vld [vmem:[#allocation293_spill] sm:$0xff] }
 0x2e6   :  { %v17338_v59 = vsub.f32 %v17272_v22, %v22705_v14  ;;  %3352 = vmatprep.mubr.f32.mxu1 %v22706_v6  ;;  %22708 = vst [vmem:[#allocation115_spill] sm:$0xff] %v17348_v23  ;;  %v7021_v14 = vand.u32 4294901760, %v7020_v19  ;;  %v7028_v9 = vand.u32 4294901760, %v7027_v28  ;;  %v6562_v5 = vand.u32 4294901760, %v17331_v52  ;;  %v22714_v6 = vld [vmem:[#allocation135_spill] sm:$0xff]  ;;  %v22718_v52 = vld [vmem:[#allocation281_spill] sm:$0xff] }
 0x2e7   :  { %22709 = vst [vmem:[#allocation116_spill] sm:$0xff] %v17350_v24  ;;  %6524 = vmatmul.mubr.f32.gmra.mrb[12].mxu0 %v22710_v41  ;;  %v7034_v22 = vsub.f32 %v22701_v17, %v22711_v25  ;;  %v7041_v18 = vsub.f32 %v22702_v35, %v22712_v45  ;;  %v11929_v58 = vpack.c.bf16 %v7014_v37, %v7007_v21  ;;  %v22715_v41 = vld [vmem:[#allocation278_spill] sm:$0xff]  ;;  %v22716_v19 = vand.u32 4294901760, %v17307_v13 }
 0x2e8   :  { %6533 = vmatprep.mubr.f32.mxu0 %v6532_v33  ;;  %11927 = vmatpush1.bf16.msra.mxu0 %v11926_v32  ;;  %v6568_v28 = vand.u32 4294901760, %v17338_v59  ;;  %v17368_v17 = vand.u32 4294901760, %v13500_v16  ;;  %v13502_v45 = vld [vmem:[#allocation2 + $0x2e8] ss:$28 sps:$4 sm:$0xff]   ;;  %v22719_v37 = vand.u32 4294901760, %v17310_v57  ;;  %v22720_v32 = vand.u32 4294901760, %v17316_v4 }
 0x2e9   :  { %3354 = vmatmul.mubr.f32.gmra.mrb[48].mxu1 %v22715_v41  ;;  %v6576_v25 = vsub.f32 %v17307_v13, %v22716_v19  ;;  %v13503_v33 = vld [vmem:[#allocation2 + $0x324] ss:$28 sps:$4 sm:$0xff]   ;;  %11928 = vmatprep.subr.bf16.mxu0 %v21411_v40  ;;  %v17384_v29 = vsub.f32 %v13497_v3, %v17348_v23  ;;  %v22722_v39 = vand.u32 4294901760, %v17252_v49  ;;  %v17389_v13 = vsub.f32 %v13499_v8, %v17350_v24  ;;  %v22727_v49 = vld [vmem:[#allocation143_spill] sm:$0xff]  ;;  %v22728_v41 = vld [vmem:[#allocation282_spill] sm:$0xff] }
 0x2ea   :  { %22717 = vst [vmem:[#allocation123_spill] sm:$0xff] %v17368_v17  ;;  %3359 = vmatprep.mubr.f32.mxu1 %v22718_v52  ;;  %v17375_v21 = vsub.f32 %v17310_v57, %v22719_v37  ;;  %v17380_v59 = vsub.f32 %v17316_v4, %v22720_v32  ;;  %v11932_v35 = vpack.c.bf16 %v7028_v9, %v7021_v14  ;;  %v7035_v52 = vand.u32 4294901760, %v7034_v22  ;;  %v22726_v4 = vld [vmem:[#allocation131_spill] sm:$0xff]  ;;  %v13505_v9 = vld [vmem:[#allocation2 + $0x320] ss:$28 sps:$4 sm:$0xff]  }
 0x2eb   :  { %22721 = vst [vmem:[#allocation124_spill] sm:$0xff] %v17384_v29  ;;  %6539 = vmatmul.mubr.f32.gmra.mrb[14].mxu0 %v22722_v39  ;;  %22723 = vst [vmem:[#allocation163_spill] sm:$0xff] %v17389_v13  ;;  %v7042_v37 = vand.u32 4294901760, %v7041_v18  ;;  %v22724_v57 = vand.u32 4294901760, %v22713_v30  ;;  %v22725_v19 = vand.u32 4294901760, %v22714_v6  ;;  %v6577_v8 = vand.u32 4294901760, %v6576_v25 }
 0x2ec   :  { %6548 = vmatprep.mubr.f32.mxu0 %v6547_v0  ;;  %11930 = vmatpush1.bf16.msra.mxu0 %v11929_v58  ;;  %v17401_v22 = vsub.f32 %v13500_v16, %v17368_v17  ;;  %v17403_v0 = vand.u32 4294901760, %v13502_v45  ;;  %v17405_v58 = vand.u32 4294901760, %v13503_v33  ;;  %v6583_v18 = vand.u32 4294901760, %v17375_v21  ;;  %v13506_v39 = vld [vmem:[#allocation2 + $0x35c] ss:$28 sps:$4 sm:$0xff]   ;;  %v22734_v24 = vld [vmem:[#allocation147_spill] sm:$0xff] }
 0x2ed   :  { %v7048_v32 = vsub.f32 %v22713_v30, %v22724_v57  ;;  %v7055_v3 = vsub.f32 %v22714_v6, %v22725_v19  ;;  %3361 = vmatmul.mubr.f32.gmra.mrb[50].mxu1 %v22728_v41  ;;  %11931 = vmatprep.subr.bf16.mxu0 %v21411_v40  ;;  %v22732_v57 = vld [vmem:[#allocation286_spill] sm:$0xff]  ;;  %v6592_v14 = vand.u32 4294901760, %v17380_v59  ;;  %v22733_v19 = vand.u32 4294901760, %v17346_v10  ;;  %v22735_v30 = vld [vmem:[#allocation132_spill] sm:$0xff] }
 0x2ee   :  { %22729 = vst [vmem:[#allocation36_spill] sm:$0xff] %v17401_v22  ;;  %22730 = vst [vmem:[#allocation38_spill] sm:$0xff] %v17403_v0  ;;  %3366 = vmatprep.mubr.f32.mxu1 %v22732_v57  ;;  %v11935_v17 = vpack.c.bf16 %v7042_v37, %v7035_v52  ;;  %v21077_v6 = vand.u32 4294901760, %v22734_v24  ;;  %v21078_v57 = vand.u32 4294901760, %v22735_v30  ;;  %v22736_v41 = vand.u32 4294901760, %v22726_v4 }
 0x2ef   :  { %22731 = vst [vmem:[#allocation252_spill] sm:$0xff] %v17405_v58  ;;  %v17414_v25 = vsub.f32 %v17346_v10, %v22733_v19  ;;  %6554 = vmatmul.mubr.f32.gmra.mrb[16].mxu0 %v6553_v51  ;;  %v7049_v21 = vand.u32 4294901760, %v7048_v32  ;;  %v7056_v59 = vand.u32 4294901760, %v7055_v3  ;;  %v22737_v10 = vand.u32 4294901760, %v22727_v49  ;;  %v22738_v51 = vld [vmem:[#allocation289_spill] sm:$0xff]  ;;  %v22742_v32 = vld [vmem:[#allocation292_spill] sm:$0xff] }
 0x2f0   :  { %6563 = vmatprep.mubr.f32.mxu0 %v6562_v5  ;;  %11933 = vmatpush1.bf16.msra.mxu0 %v11932_v35  ;;  %v7062_v19 = vsub.f32 %v22726_v4, %v22736_v41  ;;  %v17429_v37 = vsub.f32 %v13502_v45, %v17403_v0  ;;  %v17432_v5 = vsub.f32 %v13503_v33, %v17405_v58  ;;  %v17434_v35 = vand.u32 4294901760, %v13505_v9  ;;  %v13508_v52 = vld [vmem:[#allocation2 + $0x358] ss:$28 sps:$4 sm:$0xff]  }
 0x2f1   :  { %v7069_v16 = vsub.f32 %v22727_v49, %v22737_v10  ;;  %3368 = vmatmul.mubr.f32.gmra.mrb[52].mxu1 %v22738_v51  ;;  %11934 = vmatprep.subr.bf16.mxu0 %v21411_v40  ;;  %v6598_v41 = vand.u32 4294901760, %v17414_v25  ;;  %v22743_v10 = vand.u32 4294901760, %v17384_v29  ;;  %v17442_v23 = vand.u32 4294901760, %v13506_v39  ;;  %v13509_v45 = vld [vmem:[#allocation2 + $0x394] ss:$28 sps:$4 sm:$0xff]   ;;  %v22746_v25 = vld [vmem:[#allocation142_spill] sm:$0xff] }
 0x2f2   :  { %22739 = vst [vmem:[#allocation255_spill] sm:$0xff] %v17429_v37  ;;  %22740 = vst [vmem:[#allocation165_spill] sm:$0xff] %v17432_v5  ;;  %3373 = vmatprep.mubr.f32.mxu1 %v22742_v32  ;;  %v7076_v33 = vsub.f32 %v22734_v24, %v21077_v6  ;;  %v7083_v58 = vsub.f32 %v22735_v30, %v21078_v57  ;;  %v22745_v0 = vld [vmem:[#allocation139_spill] sm:$0xff]  ;;  %v7063_v32 = vand.u32 4294901760, %v7062_v19  ;;  %v22749_v6 = vand.u32 4294901760, %v17401_v22  ;;  %v22757_v30 = vld [vmem:[#allocation300_spill] sm:$0xff] }
 0x2f3   :  { %22741 = vst [vmem:[#allocation169_spill] sm:$0xff] %v17434_v35  ;;  %v6606_v3 = vsub.f32 %v17384_v29, %v22743_v10  ;;  %22744 = vst [vmem:[#allocation53_spill] sm:$0xff] %v17442_v23  ;;  %6569 = vmatmul.mubr.f32.gmra.mrb[18].mxu0 %v6568_v28  ;;  %v22747_v10 = vand.u32 4294901760, %v17389_v13  ;;  %v11938_v28 = vpack.c.bf16 %v7056_v59, %v7049_v21  ;;  %v7070_v51 = vand.u32 4294901760, %v7069_v16 }
 0x2f4   :  { %6578 = vmatprep.mubr.f32.mxu0 %v6577_v8  ;;  %11936 = vmatpush1.bf16.msra.mxu0 %v11935_v17  ;;  %v17461_v57 = vsub.f32 %v17401_v22, %v22749_v6  ;;  %v17466_v4 = vsub.f32 %v13505_v9, %v17434_v35  ;;  %v22751_v17 = vld [vmem:[#allocation297_spill] sm:$0xff]  ;;  %v17471_v16 = vsub.f32 %v13506_v39, %v17442_v23  ;;  %v17473_v59 = vand.u32 4294901760, %v13508_v52  ;;  %v13511_v6 = vld [vmem:[#allocation2 + $0x390] ss:$28 sps:$4 sm:$0xff]  }
 0x2f5   :  { %v17455_v29 = vsub.f32 %v17389_v13, %v22747_v10  ;;  %3375 = vmatmul.mubr.f32.gmra.mrb[54].mxu1 %v22748_v48  ;;  %11937 = vmatprep.subr.bf16.mxu0 %v21411_v40  ;;  %v6607_v21 = vand.u32 4294901760, %v6606_v3  ;;  %v17475_v19 = vand.u32 4294901760, %v13509_v45  ;;  %v13512_v10 = vld [vmem:[#allocation2 + $0x3cc] ss:$28 sps:$4 sm:$0xff]   ;;  %v7077_v49 = vand.u32 4294901760, %v7076_v33 }
 0x2f6   :  { %22750 = vst [vmem:[#allocation54_spill] sm:$0xff] %v17466_v4  ;;  %3380 = vmatprep.mubr.f32.mxu1 %v22751_v17  ;;  %22752 = vst [vmem:[#allocation258_spill] sm:$0xff] %v17471_v16  ;;  %v7084_v8 = vand.u32 4294901760, %v7083_v58  ;;  %v22755_v9 = vand.u32 4294901760, %v22745_v0  ;;  %v22756_v13 = vand.u32 4294901760, %v22746_v25  ;;  %v11941_v23 = vpack.c.bf16 %v7070_v51, %v7063_v32 }
 0x2f7   :  { %22753 = vst [vmem:[#allocation261_spill] sm:$0xff] %v17473_v59  ;;  %22754 = vst [vmem:[#allocation172_spill] sm:$0xff] %v17475_v19  ;;  %6584 = vmatmul.mubr.f32.gmra.mrb[20].mxu0 %v6583_v18  ;;  %v6613_v39 = vand.u32 4294901760, %v17455_v29  ;;  %v6622_v58 = vand.u32 4294901760, %v17461_v57  ;;  %v22758_v33 = vand.u32 4294901760, %v17429_v37  ;;  %v17499_v32 = vsub.f32 %v13508_v52, %v17473_v59  ;;  %v22767_v59 = vld [vmem:[#allocation303_spill] sm:$0xff] }
 0x2f8   :  { %v7090_v22 = vsub.f32 %v22745_v0, %v22755_v9  ;;  %v7097_v3 = vsub.f32 %v22746_v25, %v22756_v13  ;;  %6593 = vmatprep.mubr.f32.mxu0 %v6592_v14  ;;  %11939 = vmatpush1.bf16.msra.mxu0 %v11938_v28  ;;  %v22759_v0 = vand.u32 4294901760, %v17432_v5  ;;  %v22760_v14 = vld [vmem:[#allocation55_spill] sm:$0xff]  ;;  %v17502_v57 = vsub.f32 %v13509_v45, %v17475_v19  ;;  %v13517_v19 = vld [vmem:[#allocation2 + $0x400] ss:$28 sps:$4 sm:$0xff]  }
 0x2f9   :  { %3382 = vmatmul.mubr.f32.gmra.mrb[56].mxu1 %v22757_v30  ;;  %v6627_v9 = vsub.f32 %v17429_v37, %v22758_v33  ;;  %11940 = vmatprep.subr.bf16.mxu0 %v21411_v40  ;;  %22761 = vst [vmem:[#allocation174_spill] sm:$0xff] %v17499_v32  ;;  %v17504_v28 = vand.u32 4294901760, %v13511_v6  ;;  %v13514_v33 = vld [vmem:[#allocation2 + $0x3c8] ss:$28 sps:$4 sm:$0xff]   ;;  %v17506_v18 = vand.u32 4294901760, %v13512_v10  ;;  %v11944_v29 = vpack.c.bf16 %v7084_v8, %v7077_v49  ;;  %v22769_v8 = vld [vmem:[#allocation308_spill] sm:$0xff] }
 0x2fa   :  { %v6636_v13 = vsub.f32 %v17432_v5, %v22759_v0  ;;  %3387 = vmatprep.mubr.f32.mxu1 %v22760_v14  ;;  %22762 = vst [vmem:[#allocation71_spill] sm:$0xff] %v17502_v57  ;;  %v13515_v0 = vld [vmem:[#allocation2 + $0x404] ss:$28 sps:$4 sm:$0xff]   ;;  %v7091_v35 = vand.u32 4294901760, %v7090_v22  ;;  %v7098_v5 = vand.u32 4294901760, %v7097_v3  ;;  %v22765_v51 = vand.u32 4294901760, %v16629_v43 }
 0x2fb   :  { %22763 = vst [vmem:[#allocation72_spill] sm:$0xff] %v17504_v28  ;;  %6599 = vmatmul.mubr.f32.gmra.mrb[22].mxu0 %v6598_v41  ;;  %22764 = vst [vmem:[#allocation263_spill] sm:$0xff] %v17506_v18  ;;  %v22766_v37 = vand.u32 4294901760, %v16634_v46  ;;  %v6628_v25 = vand.u32 4294901760, %v6627_v9  ;;  %v22768_v22 = vand.u32 4294901760, %v17466_v4  ;;  %v17529_v41 = vand.u32 4294901760, %v13514_v33 }
 0x2fc   :  { %6608 = vmatprep.mubr.f32.mxu0 %v6607_v21  ;;  %11942 = vmatpush1.bf16.msra.mxu0 %v11941_v23  ;;  %v7104_v52 = vsub.f32 %v16629_v43, %v22765_v51  ;;  %v6637_v49 = vand.u32 4294901760, %v6636_v13  ;;  %v22770_v21 = vand.u32 4294901760, %v17471_v16  ;;  %v17527_v51 = vsub.f32 %v13511_v6, %v17504_v28  ;;  %v22777_v28 = vld [vmem:[#allocation311_spill] sm:$0xff] }
 0x2fd   :  { %v7111_v45 = vsub.f32 %v16634_v46, %v22766_v37  ;;  %3389 = vmatmul.mubr.f32.gmra.mrb[58].mxu1 %v22767_v59  ;;  %v6642_v23 = vsub.f32 %v17466_v4, %v22768_v22  ;;  %11943 = vmatprep.subr.bf16.mxu0 %v21411_v40  ;;  %22772 = vst [vmem:[#allocation178_spill] sm:$0xff] %v17529_v41  ;;  %v17535_v22 = vand.u32 4294901760, %v13515_v0  ;;  %v13518_v46 = vld [vmem:[#allocation2 + $0x43c] ss:$28 sps:$4 sm:$0xff]   ;;  %v22775_v6 = vand.u32 4294901760, %v16664_v15 }
 0x2fe   :  { %3394 = vmatprep.mubr.f32.mxu1 %v22769_v8  ;;  %v6651_v37 = vsub.f32 %v17471_v16, %v22770_v21  ;;  %22771 = vst [vmem:[#allocation266_spill] sm:$0xff] %v17527_v51  ;;  %v17533_v13 = vsub.f32 %v13512_v10, %v17506_v18  ;;  %v11947_v4 = vpack.c.bf16 %v7098_v5, %v7091_v35  ;;  %v7105_v21 = vand.u32 4294901760, %v7104_v52  ;;  %v22778_v18 = vld [vmem:[#allocation313_spill] sm:$0xff] }
 0x2ff   :  { %6614 = vmatmul.mubr.f32.gmra.mrb[24].mxu0 %v6613_v39  ;;  %22774 = vst [vmem:[#allocation85_spill] sm:$0xff] %v17535_v22  ;;  %v7112_v3 = vand.u32 4294901760, %v7111_v45  ;;  %v7118_v16 = vsub.f32 %v16664_v15, %v22775_v6  ;;  %v22776_v39 = vand.u32 4294901760, %v16669_v2  ;;  %v6643_v10 = vand.u32 4294901760, %v6642_v23 }
 0x300   :  { %22773 = vst [vmem:[#allocation181_spill] sm:$0xff] %v17533_v13  ;;  %6623 = vmatprep.mubr.f32.mxu0 %v6622_v58  ;;  %11945 = vmatpush1.bf16.msra.mxu0 %v11944_v29  ;;  %v6652_v5 = vand.u32 4294901760, %v6651_v37  ;;  %v22779_v35 = vand.u32 4294901760, %v17499_v32  ;;  %v17551_v52 = vsub.f32 %v13514_v33, %v17529_v41  ;;  %v22781_v45 = vand.u32 4294901760, %v17502_v57  ;;  %v13521_v29 = vld [vmem:[#allocation2 + $0x474] ss:$28 sps:$4 sm:$0xff]  }
 0x301   :  { %v7125_v9 = vsub.f32 %v16669_v2, %v22776_v39  ;;  %3396 = vmatmul.mubr.f32.gmra.mrb[60].mxu1 %v22777_v28  ;;  %11946 = vmatprep.subr.bf16.mxu0 %v21411_v40  ;;  %v17558_v39 = vsub.f32 %v13515_v0, %v17535_v22  ;;  %v17560_v37 = vand.u32 4294901760, %v13517_v19  ;;  %v13520_v2 = vld [vmem:[#allocation2 + $0x438] ss:$28 sps:$4 sm:$0xff]   ;;  %v11950_v33 = vpack.c.bf16 %v7112_v3, %v7105_v21  ;;  %v22785_v41 = vld [vmem:[#allocation314_spill] sm:$0xff] }
 0x302   :  { %3401 = vmatprep.mubr.f32.mxu1 %v22778_v18  ;;  %v6657_v58 = vsub.f32 %v17499_v32, %v22779_v35  ;;  %22780 = vst [vmem:[#allocation86_spill] sm:$0xff] %v17551_v52  ;;  %v6666_v6 = vsub.f32 %v17502_v57, %v22781_v45  ;;  %v17562_v35 = vand.u32 4294901760, %v13518_v46  ;;  %v7119_v32 = vand.u32 4294901760, %v7118_v16  ;;  %v13523_v21 = vld [vmem:[#allocation2 + $0x470] ss:$28 sps:$4 sm:$0xff]  }
 0x303   :  { %6629 = vmatmul.mubr.f32.gmra.mrb[26].mxu0 %v6628_v25  ;;  %22782 = vst [vmem:[#allocation269_spill] sm:$0xff] %v17558_v39  ;;  %22783 = vst [vmem:[#allocation272_spill] sm:$0xff] %v17560_v37  ;;  %v7126_v25 = vand.u32 4294901760, %v7125_v9  ;;  %v22786_v0 = vand.u32 4294901760, %v17527_v51  ;;  %v17575_v3 = vsub.f32 %v13517_v19, %v17560_v37  ;;  %v17577_v9 = vand.u32 4294901760, %v13520_v2 }
 0x304   :  { %6638 = vmatprep.mubr.f32.mxu0 %v6637_v49  ;;  %22784 = vst [vmem:[#allocation183_spill] sm:$0xff] %v17562_v35  ;;  %11948 = vmatpush1.bf16.msra.mxu0 %v11947_v4  ;;  %v6658_v45 = vand.u32 4294901760, %v6657_v58  ;;  %v21118_v49 = vand.u32 4294901760, %v17551_v52  ;;  %v6667_v57 = vand.u32 4294901760, %v6666_v6  ;;  %v22787_v4 = vand.u32 4294901760, %v17533_v13 }
 0x305   :  { %3403 = vmatmul.mubr.f32.gmra.mrb[62].mxu1 %v22785_v41  ;;  %11949 = vmatprep.subr.bf16.mxu0 %v21411_v40  ;;  %v6672_v23 = vsub.f32 %v17527_v51, %v22786_v0  ;;  %22788 = vst [vmem:[#allocation186_spill] sm:$0xff] %v17575_v3  ;;  %22789 = vst [vmem:[#allocation274_spill] sm:$0xff] %v17577_v9  ;;  %v17581_v58 = vsub.f32 %v13518_v46, %v17562_v35  ;;  %v17583_v0 = vand.u32 4294901760, %v13521_v29  ;;  %v13526_v46 = vld [vmem:[#allocation2 + $0x4a8] ss:$28 sps:$4 sm:$0xff]  }
 0x306   :  { %3505 = vmatprep.mubr.f32.mxu1 %v22515_v36  ;;  %v6681_v16 = vsub.f32 %v17533_v13, %v22787_v4  ;;  %v11953_v6 = vpack.c.bf16 %v7126_v25, %v7119_v32  ;;  %v22792_v4 = vld [vmem:[#allocation11_spill] sm:$0xff]  ;;  %v21119_v13 = vand.u32 4294901760, %v17575_v3  ;;  %v17594_v32 = vsub.f32 %v13520_v2, %v17577_v9 }
 0x307   :  { %6644 = vmatmul.mubr.f32.gmra.mrb[28].mxu0 %v6643_v10  ;;  %22790 = vst [vmem:[#allocation277_spill] sm:$0xff] %v17581_v58  ;;  %22791 = vst [vmem:[#allocation189_spill] sm:$0xff] %v17583_v0  ;;  %v13524_v10 = vld [vmem:[#allocation2 + $0x4ac] ss:$28 sps:$4 sm:$0xff]   ;;  %v6673_v19 = vand.u32 4294901760, %v6672_v23  ;;  %v22795_v23 = vand.u32 4294901760, %v17558_v39 }
 0x308   :  { %6653 = vmatprep.mubr.f32.mxu0 %v6652_v5  ;;  %11951 = vmatpush1.bf16.msra.mxu0 %v11950_v33  ;;  %v6687_v5 = vsub.f32 %v17551_v52, %v21118_v49  ;;  %v6682_v36 = vand.u32 4294901760, %v6681_v16  ;;  %22793 = vst [vmem:[#allocation193_spill] sm:$0xff] %v17594_v32  ;;  %v21120_v25 = vand.u32 4294901760, %v17581_v58  ;;  %v17606_v16 = vand.u32 4294901760, %v13524_v10 }
 0x309   :  { %3507 = vmatmul.mubr.f32.vlgmr.msra.gmra.mrb[0].mxu1 %v22520_v11  ;;  %11952 = vmatprep.subr.bf16.mxu0 %v21411_v40  ;;  %v17596_v11 = vand.u32 4294901760, %v13523_v21  ;;  %v6696_v33 = vsub.f32 %v17558_v39, %v22795_v23  ;;  %v13529_v23 = vld [vmem:[#allocation2 + $0x4e0] ss:$28 sps:$4 sm:$0xff]   ;;  %v13556_v39 = vld [vmem:[#allocation2 + $0x6d8] ss:$28 sps:$4 sm:$0xff]  }
 0x30a   :  { %3512 = vmatprep.mubr.f32.mxu1 %v22521_v63  ;;  %11573 = vmatpush1.bf16.msra.mxu1 %v22792_v4  ;;  %v13527_v63 = vld [vmem:[#allocation2 + $0x4e4] ss:$28 sps:$4 sm:$0xff]   ;;  %22797 = vst [vmem:[#allocation196_spill] sm:$0xff] %v17606_v16  ;;  %v6688_v2 = vand.u32 4294901760, %v6687_v5  ;;  %v17612_v4 = vand.u32 4294901760, %v13526_v46  ;;  %v6711_v5 = vsub.f32 %v17581_v58, %v21120_v25  ;;  %v17636_v49 = vand.u32 4294901760, %v13529_v23 }
 0x30b   :  { %6659 = vmatmul.mubr.f32.gmra.mrb[30].mxu0 %v6658_v45  ;;  %22794 = vst [vmem:[#allocation280_spill] sm:$0xff] %v17596_v11  ;;  %11574 = vmatprep.subr.bf16.mxu1 %v21411_v40  ;;  %v17604_v45 = vsub.f32 %v13521_v29, %v17583_v0  ;;  %v6702_v29 = vsub.f32 %v17575_v3, %v21119_v13  ;;  %v13530_v13 = vld [vmem:[#allocation2 + $0x51c] ss:$28 sps:$4 sm:$0xff]   ;;  %v22806_v25 = vand.u32 4294901760, %v17594_v32  ;;  %v13533_v3 = vld [vmem:[#allocation2 + $0x554] ss:$28 sps:$4 sm:$0xff]  }
 0x30c   :  { %6668 = vmatprep.mubr.f32.mxu0 %v6667_v57  ;;  %11954 = vmatpush1.bf16.msra.mxu0 %v11953_v6  ;;  %v22798_v57 = vld [vmem:[#allocation17_spill] sm:$0xff]  ;;  %22799 = vst [vmem:[#allocation199_spill] sm:$0xff] %v17612_v4  ;;  %v17619_v6 = vsub.f32 %v13523_v21, %v17596_v11  ;;  %v17634_v21 = vsub.f32 %v13526_v46, %v17612_v4  ;;  %22804 = vst [vmem:[#allocation291_spill] sm:$0xff] %v17636_v49 }
 0x30d   :  { %22796 = vst [vmem:[#allocation283_spill] sm:$0xff] %v17604_v45  ;;  %3514 = vmatmul.mubr.f32.gmra.mrb[2].mxu1 %v22523_v42  ;;  %11955 = vmatprep.subr.bf16.mxu0 %v21411_v40  ;;  %v17621_v42 = vand.u32 4294901760, %v13527_v63  ;;  %v22808_v46 = vand.u32 4294901760, %v17604_v45 }
 0x30e   :  { %3519 = vmatprep.mubr.f32.mxu1 %v22524_v7  ;;  %11576 = vmatpush1.bf16.msra.mxu1 %v22798_v57  ;;  %22800 = vst [vmem:[#allocation285_spill] sm:$0xff] %v17619_v6  ;;  %v6697_v7 = vand.u32 4294901760, %v6696_v33  ;;  %v17629_v57 = vsub.f32 %v13524_v10, %v17606_v16  ;;  %22803 = vst [vmem:[#allocation205_spill] sm:$0xff] %v17634_v21  ;;  %v6703_v33 = vand.u32 4294901760, %v6702_v29  ;;  %v21127_v10 = vand.u32 4294901760, %v17619_v6 }
 0x30f   :  { %6674 = vmatmul.mubr.f32.gmra.mrb[32].mxu0 %v6673_v19  ;;  %22801 = vst [vmem:[#allocation288_spill] sm:$0xff] %v17621_v42  ;;  %11577 = vmatprep.subr.bf16.mxu1 %v21411_v40  ;;  %v6717_v19 = vsub.f32 %v17594_v32, %v22806_v25  ;;  %v17644_v58 = vsub.f32 %v13527_v63, %v17621_v42  ;;  %v17651_v29 = vand.u32 4294901760, %v13530_v13 }
 0x310   :  { %6683 = vmatprep.mubr.f32.mxu0 %v6682_v36  ;;  %22802 = vst [vmem:[#allocation201_spill] sm:$0xff] %v17629_v57  ;;  %v22805_v36 = vld [vmem:[#allocation27_spill] sm:$0xff]  ;;  %v17657_v25 = vsub.f32 %v13529_v23, %v17636_v49  ;;  %v22813_v23 = vand.u32 4294901760, %v17629_v57 }
 0x311   :  { %3521 = vmatmul.mubr.f32.gmra.mrb[4].mxu1 %v22528_v31  ;;  %22807 = vst [vmem:[#allocation294_spill] sm:$0xff] %v17644_v58  ;;  %v13532_v31 = vld [vmem:[#allocation2 + $0x518] ss:$28 sps:$4 sm:$0xff]   ;;  %22809 = vst [vmem:[#allocation207_spill] sm:$0xff] %v17651_v29 }
 0x312   :  { %3526 = vmatprep.mubr.f32.mxu1 %v22529_v60  ;;  %11579 = vmatpush1.bf16.msra.mxu1 %v22805_v36  ;;  %v6712_v60 = vand.u32 4294901760, %v6711_v5  ;;  %v6726_v36 = vsub.f32 %v17604_v45, %v22808_v46  ;;  %22810 = vst [vmem:[#allocation211_spill] sm:$0xff] %v17657_v25  ;;  %v6718_v5 = vand.u32 4294901760, %v6717_v19  ;;  %v6732_v46 = vsub.f32 %v17619_v6, %v21127_v10 }
 0x313   :  { %6689 = vmatmul.mubr.f32.gmra.mrb[34].mxu0 %v6688_v2  ;;  %11580 = vmatprep.subr.bf16.mxu1 %v21411_v40  ;;  %v17664_v45 = vand.u32 4294901760, %v13532_v31  ;;  %v6741_v63 = vsub.f32 %v17629_v57, %v22813_v23  ;;  %v17673_v19 = vand.u32 4294901760, %v13533_v3  ;;  %v22816_v10 = vand.u32 4294901760, %v17634_v21 }
 0x314   :  { %6698 = vmatprep.mubr.f32.mxu0 %v6697_v7  ;;  %v22811_v7 = vld [vmem:[#allocation37_spill] sm:$0xff]  ;;  %v6733_v23 = vand.u32 4294901760, %v6732_v46 }
 0x315   :  { %3528 = vmatmul.mubr.f32.gmra.mrb[6].mxu1 %v22533_v34  ;;  %22812 = vst [vmem:[#allocation296_spill] sm:$0xff] %v17664_v45  ;;  %v13535_v34 = vld [vmem:[#allocation2 + $0x550] ss:$28 sps:$4 sm:$0xff]   ;;  %22815 = vst [vmem:[#allocation213_spill] sm:$0xff] %v17673_v19  ;;  %v6747_v2 = vsub.f32 %v17634_v21, %v22816_v10  ;;  %v17686_v6 = vsub.f32 %v13532_v31, %v17664_v45  ;;  %v6742_v10 = vand.u32 4294901760, %v6741_v63 }
 0x316   :  { %3533 = vmatprep.mubr.f32.mxu1 %v22534_v62  ;;  %11582 = vmatpush1.bf16.msra.mxu1 %v22811_v7  ;;  %v6727_v62 = vand.u32 4294901760, %v6726_v36  ;;  %v13536_v7 = vld [vmem:[#allocation2 + $0x58c] ss:$28 sps:$4 sm:$0xff]   ;;  %v13539_v46 = vld [vmem:[#allocation2 + $0x5c4] ss:$28 sps:$4 sm:$0xff]  }
 0x317   :  { %6704 = vmatmul.mubr.f32.gmra.mrb[36].mxu0 %v6703_v33  ;;  %11583 = vmatprep.subr.bf16.mxu1 %v21411_v40  ;;  %v17671_v33 = vsub.f32 %v13530_v13, %v17651_v29  ;;  %v22817_v36 = vld [vmem:[#allocation42_spill] sm:$0xff]  ;;  %v22818_v13 = vand.u32 4294901760, %v17644_v58  ;;  %22819 = vst [vmem:[#allocation217_spill] sm:$0xff] %v17686_v6  ;;  %v6748_v31 = vand.u32 4294901760, %v6747_v2  ;;  %v13541_v21 = vld [vmem:[#allocation2 + $0x5c0] ss:$28 sps:$4 sm:$0xff]  }
 0x318   :  { %6713 = vmatprep.mubr.f32.mxu0 %v6712_v60 }
 0x319   :  { %22814 = vst [vmem:[#allocation299_spill] sm:$0xff] %v17671_v33  ;;  %3535 = vmatmul.mubr.f32.gmra.mrb[8].mxu1 %v22536_v61  ;;  %v6756_v57 = vsub.f32 %v17644_v58, %v22818_v13  ;;  %v17688_v61 = vand.u32 4294901760, %v13535_v34  ;;  %v22823_v13 = vand.u32 4294901760, %v17657_v25 }
 0x31a   :  { %3540 = vmatprep.mubr.f32.mxu1 %v22537_v1  ;;  %11585 = vmatpush1.bf16.msra.mxu1 %v22817_v36  ;;  %v13538_v1 = vld [vmem:[#allocation2 + $0x588] ss:$28 sps:$4 sm:$0xff]   ;;  %v17693_v36 = vsub.f32 %v13533_v3, %v17673_v19  ;;  %v13544_v3 = vld [vmem:[#allocation2 + $0x5f8] ss:$28 sps:$4 sm:$0xff]  }
 0x31b   :  { %6719 = vmatmul.mubr.f32.gmra.mrb[38].mxu0 %v6718_v5  ;;  %22820 = vst [vmem:[#allocation302_spill] sm:$0xff] %v17688_v61  ;;  %11586 = vmatprep.subr.bf16.mxu1 %v21411_v40  ;;  %v17695_v5 = vand.u32 4294901760, %v13536_v7  ;;  %v6762_v58 = vsub.f32 %v17657_v25, %v22823_v13  ;;  %v6757_v63 = vand.u32 4294901760, %v6756_v57  ;;  %v17705_v60 = vsub.f32 %v13535_v34, %v17688_v61 }
 0x31c   :  { %6728 = vmatprep.mubr.f32.mxu0 %v6727_v62  ;;  %22821 = vst [vmem:[#allocation305_spill] sm:$0xff] %v17693_v36  ;;  %v22824_v62 = vld [vmem:[#allocation99_spill] sm:$0xff]  ;;  %v17707_v32 = vand.u32 4294901760, %v13538_v1  ;;  %v17717_v57 = vand.u32 4294901760, %v13539_v46 }
 0x31d   :  { %22822 = vst [vmem:[#allocation219_spill] sm:$0xff] %v17695_v5  ;;  %3542 = vmatmul.mubr.f32.gmra.mrb[10].mxu1 %v22541_v55  ;;  %22825 = vst [vmem:[#allocation222_spill] sm:$0xff] %v17705_v60  ;;  %v13542_v55 = vld [vmem:[#allocation2 + $0x5fc] ss:$28 sps:$4 sm:$0xff]   ;;  %v6763_v34 = vand.u32 4294901760, %v6762_v58 }
 0x31e   :  { %3547 = vmatprep.mubr.f32.mxu1 %v22542_v54  ;;  %11588 = vmatpush1.bf16.msra.mxu1 %v22824_v62  ;;  %22826 = vst [vmem:[#allocation306_spill] sm:$0xff] %v17707_v32  ;;  %v22827_v54 = vand.u32 4294901760, %v17671_v33  ;;  %22829 = vst [vmem:[#allocation224_spill] sm:$0xff] %v17717_v57  ;;  %v17721_v62 = vand.u32 4294901760, %v13541_v21  ;;  %v17731_v25 = vand.u32 4294901760, %v13542_v55 }
 0x31f   :  { %6734 = vmatmul.mubr.f32.gmra.mrb[40].mxu0 %v6733_v23  ;;  %11589 = vmatprep.subr.bf16.mxu1 %v21411_v40  ;;  %v17715_v23 = vsub.f32 %v13536_v7, %v17695_v5  ;;  %v17746_v7 = vand.u32 4294901760, %v13544_v3 }
 0x320   :  { %6743 = vmatprep.mubr.f32.mxu0 %v6742_v10  ;;  %v6771_v2 = vsub.f32 %v17671_v33, %v22827_v54  ;;  %22830 = vst [vmem:[#allocation229_spill] sm:$0xff] %v17721_v62  ;;  %v22831_v10 = vld [vmem:[#allocation58_spill] sm:$0xff]  ;;  %v22832_v54 = vand.u32 4294901760, %v17686_v6  ;;  %v17729_v33 = vsub.f32 %v13538_v1, %v17707_v32  ;;  %22834 = vst [vmem:[#allocation316_spill] sm:$0xff] %v17731_v25 }
 0x321   :  { %22828 = vst [vmem:[#allocation309_spill] sm:$0xff] %v17715_v23  ;;  %3549 = vmatmul.mubr.f32.gmra.mrb[12].mxu1 %v22544_v26  ;;  %v17744_v1 = vsub.f32 %v13541_v21, %v17721_v62  ;;  %22838 = vst [vmem:[#allocation129_spill] sm:$0xff] %v17746_v7  ;;  %v22842_v21 = vand.u32 4294901760, %v17715_v23 }
 0x322   :  { %3554 = vmatprep.mubr.f32.mxu1 %v22545_v56  ;;  %11591 = vmatpush1.bf16.msra.mxu1 %v22831_v10  ;;  %v6777_v13 = vsub.f32 %v17686_v6, %v22832_v54  ;;  %22833 = vst [vmem:[#allocation312_spill] sm:$0xff] %v17729_v33  ;;  %v6772_v26 = vand.u32 4294901760, %v6771_v2  ;;  %v22835_v56 = vand.u32 4294901760, %v17693_v36  ;;  %v17739_v10 = vsub.f32 %v13539_v46, %v17717_v57  ;;  %v13545_v54 = vld [vmem:[#allocation2 + $0x634] ss:$28 sps:$4 sm:$0xff]  }
 0x323   :  { %6749 = vmatmul.mubr.f32.gmra.mrb[42].mxu0 %v6748_v31  ;;  %11592 = vmatprep.subr.bf16.mxu1 %v21411_v40  ;;  %22837 = vst [vmem:[#allocation235_spill] sm:$0xff] %v17744_v1  ;;  %v21148_v46 = vand.u32 4294901760, %v17729_v33  ;;  %v13548_v6 = vld [vmem:[#allocation2 + $0x66c] ss:$28 sps:$4 sm:$0xff]  }
 0x324   :  { %6758 = vmatprep.mubr.f32.mxu0 %v6757_v63  ;;  %v6786_v58 = vsub.f32 %v17693_v36, %v22835_v56  ;;  %22836 = vst [vmem:[#allocation231_spill] sm:$0xff] %v17739_v10  ;;  %v22839_v63 = vld [vmem:[#allocation64_spill] sm:$0xff]  ;;  %v6778_v2 = vand.u32 4294901760, %v6777_v13  ;;  %v22840_v56 = vand.u32 4294901760, %v17705_v60  ;;  %v17754_v36 = vsub.f32 %v13542_v55, %v17731_v25 }
 0x325   :  { %3556 = vmatmul.mubr.f32.gmra.mrb[14].mxu1 %v22549_v20  ;;  %v13547_v20 = vld [vmem:[#allocation2 + $0x630] ss:$28 sps:$4 sm:$0xff]  }
 0x326   :  { %3561 = vmatprep.mubr.f32.mxu1 %v22550_v27  ;;  %11594 = vmatpush1.bf16.msra.mxu1 %v22839_v63  ;;  %v6792_v31 = vsub.f32 %v17705_v60, %v22840_v56  ;;  %22841 = vst [vmem:[#allocation236_spill] sm:$0xff] %v17754_v36  ;;  %v6787_v27 = vand.u32 4294901760, %v6786_v58  ;;  %v6801_v63 = vsub.f32 %v17715_v23, %v22842_v21  ;;  %v17774_v23 = vand.u32 4294901760, %v13547_v20  ;;  %v22859_v60 = vld [vmem:[#allocation89_spill] sm:$0xff] }
 0x327   :  { %6764 = vmatmul.mubr.f32.gmra.mrb[44].mxu0 %v6763_v34  ;;  %11595 = vmatprep.subr.bf16.mxu1 %v21411_v40  ;;  %v17761_v34 = vand.u32 4294901760, %v13545_v54  ;;  %v17767_v56 = vsub.f32 %v13544_v3, %v17746_v7  ;;  %v6807_v21 = vsub.f32 %v17729_v33, %v21148_v46  ;;  %v22847_v3 = vand.u32 4294901760, %v17739_v10 }
 0x328   :  { %6773 = vmatprep.mubr.f32.mxu0 %v6772_v26  ;;  %v22845_v26 = vld [vmem:[#allocation73_spill] sm:$0xff]  ;;  %v6793_v58 = vand.u32 4294901760, %v6792_v31  ;;  %22846 = vst [vmem:[#allocation134_spill] sm:$0xff] %v17774_v23  ;;  %v17783_v31 = vand.u32 4294901760, %v13548_v6  ;;  %v22850_v46 = vand.u32 4294901760, %v17744_v1  ;;  %v17796_v33 = vsub.f32 %v13547_v20, %v17774_v23 }
 0x329   :  { %22843 = vst [vmem:[#allocation241_spill] sm:$0xff] %v17761_v34  ;;  %3563 = vmatmul.mubr.f32.gmra.mrb[16].mxu1 %v22552_v53  ;;  %22844 = vst [vmem:[#allocation130_spill] sm:$0xff] %v17767_v56  ;;  %v13550_v53 = vld [vmem:[#allocation2 + $0x668] ss:$28 sps:$4 sm:$0xff]   ;;  %v6816_v55 = vsub.f32 %v17739_v10, %v22847_v3  ;;  %v6808_v3 = vand.u32 4294901760, %v6807_v21 }
 0x32a   :  { %3568 = vmatprep.mubr.f32.mxu1 %v22553_v44  ;;  %11597 = vmatpush1.bf16.msra.mxu1 %v22845_v26  ;;  %v6802_v44 = vand.u32 4294901760, %v6801_v63  ;;  %22849 = vst [vmem:[#allocation141_spill] sm:$0xff] %v17783_v31  ;;  %v13551_v26 = vld [vmem:[#allocation2 + $0x6a4] ss:$28 sps:$4 sm:$0xff]   ;;  %v6822_v13 = vsub.f32 %v17744_v1, %v22850_v46  ;;  %22853 = vst [vmem:[#allocation144_spill] sm:$0xff] %v17796_v33 }
 0x32b   :  { %6779 = vmatmul.mubr.f32.gmra.mrb[46].mxu0 %v6778_v2  ;;  %11598 = vmatprep.subr.bf16.mxu1 %v21411_v40  ;;  %v17781_v2 = vsub.f32 %v13545_v54, %v17761_v34  ;;  %v22851_v63 = vld [vmem:[#allocation81_spill] sm:$0xff]  ;;  %v22852_v54 = vand.u32 4294901760, %v17754_v36  ;;  %v6817_v46 = vand.u32 4294901760, %v6816_v55  ;;  %v13554_v21 = vld [vmem:[#allocation2 + $0x6dc] ss:$28 sps:$4 sm:$0xff]  }
 0x32c   :  { %6788 = vmatprep.mubr.f32.mxu0 %v6787_v27  ;;  %v6823_v20 = vand.u32 4294901760, %v6822_v13 }
 0x32d   :  { %22848 = vst [vmem:[#allocation13_spill] sm:$0xff] %v17781_v2  ;;  %3570 = vmatmul.mubr.f32.gmra.mrb[18].mxu1 %v22557_v38  ;;  %v6831_v10 = vsub.f32 %v17754_v36, %v22852_v54  ;;  %v17798_v38 = vand.u32 4294901760, %v13550_v53  ;;  %v22857_v54 = vld [vmem:[#allocation202_spill] sm:$0xff]  ;;  %v22858_v36 = vand.u32 4294901760, %v17767_v56 }
 0x32e   :  { %3575 = vmatprep.mubr.f32.mxu1 %v22558_v50  ;;  %11600 = vmatpush1.bf16.msra.mxu1 %v22851_v63  ;;  %v13553_v50 = vld [vmem:[#allocation2 + $0x6a0] ss:$28 sps:$4 sm:$0xff]   ;;  %v17803_v63 = vsub.f32 %v13548_v6, %v17783_v31 }
 0x32f   :  { %6794 = vmatmul.mubr.f32.gmra.mrb[48].mxu0 %v6793_v58  ;;  %22854 = vst [vmem:[#allocation19_spill] sm:$0xff] %v17798_v38  ;;  %11601 = vmatprep.subr.bf16.mxu1 %v21411_v40  ;;  %v17805_v58 = vand.u32 4294901760, %v13551_v26  ;;  %v6837_v1 = vsub.f32 %v17767_v56, %v22858_v36  ;;  %v6832_v55 = vand.u32 4294901760, %v6831_v10  ;;  %v17815_v6 = vsub.f32 %v13550_v53, %v17798_v38  ;;  %v22866_v53 = vld [vmem:[#allocation208_spill] sm:$0xff] }
 0x330   :  { %6803 = vmatprep.mubr.f32.mxu0 %v6802_v44  ;;  %22855 = vst [vmem:[#allocation146_spill] sm:$0xff] %v17803_v63  ;;  %v17817_v27 = vand.u32 4294901760, %v13553_v50  ;;  %v17827_v10 = vand.u32 4294901760, %v13554_v21  ;;  %v22867_v44 = vld [vmem:[#allocation97_spill] sm:$0xff] }
 0x331   :  { %22856 = vst [vmem:[#allocation152_spill] sm:$0xff] %v17805_v58  ;;  %3577 = vmatmul.mubr.f32.gmra.mrb[20].mxu1 %v22560_v12  ;;  %22860 = vst [vmem:[#allocation21_spill] sm:$0xff] %v17815_v6  ;;  %v22862_v12 = vand.u32 4294901760, %v17781_v2 }
 0x332   :  { %3582 = vmatprep.mubr.f32.mxu1 %v22857_v54  ;;  %11603 = vmatpush1.bf16.msra.mxu1 %v22859_v60  ;;  %22861 = vst [vmem:[#allocation155_spill] sm:$0xff] %v17817_v27  ;;  %v17825_v60 = vsub.f32 %v13551_v26, %v17805_v58  ;;  %22864 = vst [vmem:[#allocation28_spill] sm:$0xff] %v17827_v10  ;;  %v6838_v54 = vand.u32 4294901760, %v6837_v1  ;;  %v17837_v36 = vsub.f32 %v13553_v50, %v17817_v27  ;;  %v22875_v50 = vld [vmem:[#allocation105_spill] sm:$0xff] }
 0x333   :  { %6809 = vmatmul.mubr.f32.gmra.mrb[50].mxu0 %v6808_v3  ;;  %11604 = vmatprep.subr.bf16.mxu1 %v21411_v40  ;;  %v6846_v13 = vsub.f32 %v17781_v2, %v22862_v12  ;;  %v22865_v3 = vld [vmem:[#allocation203_spill] sm:$0xff]  ;;  %v17839_v26 = vand.u32 4294901760, %v13556_v39  ;;  %v22871_v1 = vand.u32 4294901760, %v17803_v63  ;;  %v22874_v12 = vld [vmem:[#allocation214_spill] sm:$0xff] }
 0x334   :  { %6818 = vmatprep.mubr.f32.mxu0 %v6817_v46  ;;  %22863 = vst [vmem:[#allocation157_spill] sm:$0xff] %v17825_v60  ;;  %v22868_v46 = vand.u32 4294901760, %v17796_v33  ;;  %22869 = vst [vmem:[#allocation162_spill] sm:$0xff] %v17837_v36  ;;  %v21168_v2 = vand.u32 4294901760, %v17837_v36 }
 0x335   :  { %3584 = vmatmul.mubr.f32.gmra.mrb[22].mxu1 %v22865_v3  ;;  %22870 = vst [vmem:[#allocation166_spill] sm:$0xff] %v17839_v26  ;;  %v6847_v3 = vand.u32 4294901760, %v6846_v13 }
 0x336   :  { %3589 = vmatprep.mubr.f32.mxu1 %v22866_v53  ;;  %11606 = vmatpush1.bf16.msra.mxu1 %v22867_v44  ;;  %v6852_v56 = vsub.f32 %v17796_v33, %v22868_v46  ;;  %v6861_v44 = vsub.f32 %v17803_v63, %v22871_v1  ;;  %v17847_v53 = vsub.f32 %v13554_v21, %v17827_v10  ;;  %v22873_v46 = vld [vmem:[#allocation209_spill] sm:$0xff] }
 0x337   :  { %6824 = vmatmul.mubr.f32.gmra.mrb[52].mxu0 %v6823_v20  ;;  %11607 = vmatprep.subr.bf16.mxu1 %v21411_v40  ;;  %v21167_v20 = vand.u32 4294901760, %v17825_v60  ;;  %v17857_v1 = vsub.f32 %v13556_v39, %v17839_v26  ;;  %v6882_v39 = vsub.f32 %v17837_v36, %v21168_v2  ;;  %v22885_v2 = vld [vmem:[#allocation232_spill] sm:$0xff] }
 0x338   :  { %6833 = vmatprep.mubr.f32.mxu0 %v6832_v55  ;;  %22872 = vst [vmem:[#allocation33_spill] sm:$0xff] %v17847_v53  ;;  %v6853_v33 = vand.u32 4294901760, %v6852_v56  ;;  %v22876_v55 = vand.u32 4294901760, %v17815_v6  ;;  %v6862_v21 = vand.u32 4294901760, %v6861_v44  ;;  %v22878_v56 = vld [vmem:[#allocation216_spill] sm:$0xff] }
 0x339   :  { %3591 = vmatmul.mubr.f32.gmra.mrb[24].mxu1 %v22873_v46  ;;  %22877 = vst [vmem:[#allocation167_spill] sm:$0xff] %v17857_v1  ;;  %v22879_v46 = vld [vmem:[#allocation220_spill] sm:$0xff] }
 0x33a   :  { %3596 = vmatprep.mubr.f32.mxu1 %v22874_v12  ;;  %11609 = vmatpush1.bf16.msra.mxu1 %v22875_v50  ;;  %v6867_v13 = vsub.f32 %v17815_v6, %v22876_v55  ;;  %v6876_v12 = vsub.f32 %v17825_v60, %v21167_v20  ;;  %v22880_v50 = vld [vmem:[#allocation113_spill] sm:$0xff]  ;;  %v22881_v20 = vld [vmem:[#allocation223_spill] sm:$0xff] }
 0x33b   :  { %6839 = vmatmul.mubr.f32.gmra.mrb[54].mxu0 %v6838_v54  ;;  %11610 = vmatprep.subr.bf16.mxu1 %v21411_v40  ;;  %v21169_v54 = vand.u32 4294901760, %v17847_v53 }
 0x33c   :  { %6848 = vmatprep.mubr.f32.mxu0 %v6847_v3  ;;  %v6868_v55 = vand.u32 4294901760, %v6867_v13  ;;  %v21170_v3 = vand.u32 4294901760, %v17857_v1  ;;  %v6877_v44 = vand.u32 4294901760, %v6876_v12  ;;  %v6883_v13 = vand.u32 4294901760, %v6882_v39  ;;  %v22884_v12 = vld [vmem:[#allocation227_spill] sm:$0xff]  ;;  %v22888_v39 = vld [vmem:[#allocation238_spill] sm:$0xff] }
 0x33d   :  { %3598 = vmatmul.mubr.f32.gmra.mrb[26].mxu1 %v22878_v56  ;;  %v6891_v56 = vsub.f32 %v17847_v53, %v21169_v54  ;;  %v22886_v54 = vld [vmem:[#allocation136_spill] sm:$0xff] }
 0x33e   :  { %3603 = vmatprep.mubr.f32.mxu1 %v22879_v46  ;;  %11612 = vmatpush1.bf16.msra.mxu1 %v22880_v50  ;;  %v22882_v46 = vld [vmem:[#allocation225_spill] sm:$0xff]  ;;  %v6897_v50 = vsub.f32 %v17857_v1, %v21170_v3  ;;  %v22898_v3 = vld [vmem:[#allocation246_spill] sm:$0xff] }
 0x33f   :  { %6854 = vmatmul.mubr.f32.gmra.mrb[56].mxu0 %v6853_v33  ;;  %11613 = vmatprep.subr.bf16.mxu1 %v21411_v40  ;;  %v22883_v33 = vld [vmem:[#allocation121_spill] sm:$0xff] }
 0x340   :  { %6863 = vmatprep.mubr.f32.mxu0 %v6862_v21  ;;  %v6892_v21 = vand.u32 4294901760, %v6891_v56  ;;  %v22891_v56 = vld [vmem:[#allocation25_spill] sm:$0xff] }
 0x341   :  { %3605 = vmatmul.mubr.f32.gmra.mrb[28].mxu1 %v22881_v20  ;;  %v6898_v20 = vand.u32 4294901760, %v6897_v50  ;;  %v22896_v50 = vld [vmem:[#allocation30_spill] sm:$0xff] }
 0x342   :  { %3610 = vmatprep.mubr.f32.mxu1 %v22882_v46  ;;  %11615 = vmatpush1.bf16.msra.mxu1 %v22883_v33  ;;  %v22889_v46 = vld [vmem:[#allocation210_spill] sm:$0xff] }
 0x343   :  { %6869 = vmatmul.mubr.f32.gmra.mrb[58].mxu0 %v6868_v55  ;;  %11616 = vmatprep.subr.bf16.mxu1 %v21411_v40  ;;  %v22887_v55 = vld [vmem:[#allocation234_spill] sm:$0xff] }
 0x344   :  { %6878 = vmatprep.mubr.f32.mxu0 %v6877_v44  ;;  %v22890_v44 = vld [vmem:[#allocation24_spill] sm:$0xff] }
 0x345   :  { %3612 = vmatmul.mubr.f32.gmra.mrb[30].mxu1 %v22884_v12  ;;  %v11956_v33 = vpack.c.bf16 %v22891_v56, %v22890_v44  ;;  %v22892_v12 = vld [vmem:[#allocation239_spill] sm:$0xff]  ;;  %v22910_v56 = vld [vmem:[#allocation256_spill] sm:$0xff] }
 0x346   :  { %3617 = vmatprep.mubr.f32.mxu1 %v22885_v2  ;;  %11618 = vmatpush1.bf16.msra.mxu1 %v22886_v54  ;;  %v22893_v2 = vld [vmem:[#allocation243_spill] sm:$0xff]  ;;  %v22894_v54 = vld [vmem:[#allocation212_spill] sm:$0xff] }
 0x347   :  { %6884 = vmatmul.mubr.f32.gmra.mrb[60].mxu0 %v6883_v13  ;;  %12171 = vmatprep.subr.bf16.mxu1 %v21411_v40  ;;  %v22895_v13 = vld [vmem:[#allocation215_spill] sm:$0xff] }
 0x348   :  { %6893 = vmatprep.mubr.f32.mxu0 %v6892_v21  ;;  %v22897_v21 = vld [vmem:[#allocation31_spill] sm:$0xff] }
 0x349   :  { %3619 = vmatmul.mubr.f32.gmra.mrb[32].mxu1 %v22887_v55  ;;  %v11959_v55 = vpack.c.bf16 %v22897_v21, %v22896_v50  ;;  %v22906_v21 = vld [vmem:[#allocation233_spill] sm:$0xff]  ;;  %v22909_v50 = vld [vmem:[#allocation63_spill] sm:$0xff] }
 0x34a   :  { %3624 = vmatprep.mubr.f32.mxu1 %v22888_v39  ;;  %v22900_v39 = vld [vmem:[#allocation228_spill] sm:$0xff] }
 0x34b   :  { %6899 = vmatmul.mubr.f32.gmra.mrb[62].mxu0 %v6898_v20  ;;  %v22899_v20 = vld [vmem:[#allocation12_spill] sm:$0xff] }
 0x34c   :  { %7129 = vmatprep.mubr.f32.mxu0 %v22889_v46  ;;  %v22901_v46 = vld [vmem:[#allocation230_spill] sm:$0xff] }
 0x34d   :  { %3626 = vmatmul.mubr.f32.gmra.mrb[34].mxu1 %v22892_v12  ;;  %v22902_v12 = vld [vmem:[#allocation47_spill] sm:$0xff] }
 0x34e   :  { %3631 = vmatprep.mubr.f32.mxu1 %v22893_v2  ;;  %v22903_v2 = vld [vmem:[#allocation48_spill] sm:$0xff] }
 0x34f   :  { %7131 = vmatmul.mubr.f32.vlgmr.msra.gmra.mrb[0].mxu0 %v22894_v54  ;;  %v11962_v54 = vpack.c.bf16 %v22903_v2, %v22902_v12  ;;  %v22915_v2 = vld [vmem:[#allocation78_spill] sm:$0xff]  ;;  %v22916_v12 = vld [vmem:[#allocation260_spill] sm:$0xff] }
 0x350   :  { %11957 = vmatpush1.bf16.msra.mxu0 %v11956_v33  ;;  %7136 = vmatprep.mubr.f32.mxu0 %v22895_v13  ;;  %v22904_v33 = vld [vmem:[#allocation249_spill] sm:$0xff] }
 0x351   :  { %3633 = vmatmul.mubr.f32.gmra.mrb[36].mxu1 %v22898_v3  ;;  %11958 = vmatprep.subr.bf16.mxu0 %v21411_v40  ;;  %v22905_v13 = vld [vmem:[#allocation253_spill] sm:$0xff] }
 0x352   :  { %3638 = vmatprep.mubr.f32.mxu1 %v22899_v20  ;;  %v22907_v3 = vld [vmem:[#allocation237_spill] sm:$0xff] }
 0x353   :  { %7138 = vmatmul.mubr.f32.gmra.mrb[2].mxu0 %v22900_v39  ;;  %v22908_v20 = vld [vmem:[#allocation61_spill] sm:$0xff] }
 0x354   :  { %7143 = vmatprep.mubr.f32.mxu0 %v22901_v46  ;;  %11960 = vmatpush1.bf16.msra.mxu0 %v11959_v55  ;;  %v11965_v39 = vpack.c.bf16 %v22909_v50, %v22908_v20  ;;  %v22911_v55 = vld [vmem:[#allocation18_spill] sm:$0xff]  ;;  %v22912_v46 = vld [vmem:[#allocation244_spill] sm:$0xff] }
 0x355   :  { %3640 = vmatmul.mubr.f32.gmra.mrb[38].mxu1 %v22904_v33  ;;  %11961 = vmatprep.subr.bf16.mxu0 %v21411_v40  ;;  %v22913_v33 = vld [vmem:[#allocation156_spill] sm:$0xff] }
 0x356   :  { %3645 = vmatprep.mubr.f32.mxu1 %v22905_v13  ;;  %v22914_v13 = vld [vmem:[#allocation77_spill] sm:$0xff]  ;;  %v22921_v50 = vld [vmem:[#allocation96_spill] sm:$0xff] }
 0x357   :  { %7145 = vmatmul.mubr.f32.gmra.mrb[4].mxu0 %v22906_v21  ;;  %v11968_v21 = vpack.c.bf16 %v22915_v2, %v22914_v13  ;;  %v22926_v2 = vld [vmem:[#allocation102_spill] sm:$0xff]  ;;  %v22927_v13 = vld [vmem:[#allocation271_spill] sm:$0xff] }
 0x358   :  { %7150 = vmatprep.mubr.f32.mxu0 %v22907_v3  ;;  %11963 = vmatpush1.bf16.msra.mxu0 %v11962_v54  ;;  %v22917_v54 = vld [vmem:[#allocation264_spill] sm:$0xff]  ;;  %v22918_v3 = vld [vmem:[#allocation250_spill] sm:$0xff] }
 0x359   :  { %3647 = vmatmul.mubr.f32.gmra.mrb[40].mxu1 %v22910_v56  ;;  %11964 = vmatprep.subr.bf16.mxu0 %v21411_v40  ;;  %v22919_v56 = vld [vmem:[#allocation317_spill] sm:$0xff] }
 0x35a   :  { %3652 = vmatprep.mubr.f32.mxu1 %v22911_v55  ;;  %v22920_v55 = vld [vmem:[#allocation95_spill] sm:$0xff] }
 0x35b   :  { %7152 = vmatmul.mubr.f32.gmra.mrb[6].mxu0 %v22912_v46  ;;  %v11971_v46 = vpack.c.bf16 %v22921_v50, %v22920_v55  ;;  %v22932_v50 = vld [vmem:[#allocation110_spill] sm:$0xff] }
 0x35c   :  { %7157 = vmatprep.mubr.f32.mxu0 %v22913_v33  ;;  %11966 = vmatpush1.bf16.msra.mxu0 %v11965_v39  ;;  %v22922_v39 = vld [vmem:[#allocation270_spill] sm:$0xff]  ;;  %v22923_v33 = vld [vmem:[#allocation15_spill] sm:$0xff] }
 0x35d   :  { %3654 = vmatmul.mubr.f32.gmra.mrb[42].mxu1 %v22916_v12  ;;  %11967 = vmatprep.subr.bf16.mxu0 %v21411_v40  ;;  %v22924_v12 = vld [vmem:[#allocation20_spill] sm:$0xff]  ;;  %v22933_v55 = vld [vmem:[#allocation278_spill] sm:$0xff] }
 0x35e   :  { %3659 = vmatprep.mubr.f32.mxu1 %v22917_v54  ;;  %v22925_v54 = vld [vmem:[#allocation101_spill] sm:$0xff] }
 0x35f   :  { %7159 = vmatmul.mubr.f32.gmra.mrb[8].mxu0 %v22918_v3  ;;  %v11974_v3 = vpack.c.bf16 %v22926_v2, %v22925_v54  ;;  %v22938_v2 = vld [vmem:[#allocation120_spill] sm:$0xff]  ;;  %v22939_v54 = vld [vmem:[#allocation282_spill] sm:$0xff] }
 0x360   :  { %7164 = vmatprep.mubr.f32.mxu0 %v22919_v56  ;;  %11969 = vmatpush1.bf16.msra.mxu0 %v11968_v21  ;;  %v22928_v21 = vld [vmem:[#allocation275_spill] sm:$0xff]  ;;  %v22929_v56 = vld [vmem:[#allocation245_spill] sm:$0xff] }
 0x361   :  { %3661 = vmatmul.mubr.f32.gmra.mrb[44].mxu1 %v22693_v47  ;;  %11970 = vmatprep.subr.bf16.mxu0 %v21411_v40  ;;  %v22930_v47 = vld [vmem:[#allocation29_spill] sm:$0xff] }
 0x362   :  { %3666 = vmatprep.mubr.f32.mxu1 %v22922_v39  ;;  %v22931_v39 = vld [vmem:[#allocation109_spill] sm:$0xff] }
 0x363   :  { %7166 = vmatmul.mubr.f32.gmra.mrb[10].mxu0 %v22923_v33  ;;  %v11977_v33 = vpack.c.bf16 %v22932_v50, %v22931_v39  ;;  %v22944_v50 = vld [vmem:[#allocation127_spill] sm:$0xff]  ;;  %v22945_v39 = vld [vmem:[#allocation289_spill] sm:$0xff] }
 0x364   :  { %7171 = vmatprep.mubr.f32.mxu0 %v22924_v12  ;;  %11972 = vmatpush1.bf16.msra.mxu0 %v11971_v46  ;;  %v22934_v46 = vld [vmem:[#allocation281_spill] sm:$0xff]  ;;  %v22935_v12 = vld [vmem:[#allocation34_spill] sm:$0xff] }
 0x365   :  { %3668 = vmatmul.mubr.f32.gmra.mrb[46].mxu1 %v22927_v13  ;;  %11973 = vmatprep.subr.bf16.mxu0 %v21411_v40  ;;  %v22936_v13 = vld [vmem:[#allocation44_spill] sm:$0xff] }
 0x366   :  { %3673 = vmatprep.mubr.f32.mxu1 %v22928_v21  ;;  %v22937_v21 = vld [vmem:[#allocation119_spill] sm:$0xff] }
 0x367   :  { %7173 = vmatmul.mubr.f32.gmra.mrb[12].mxu0 %v22929_v56  ;;  %v11980_v56 = vpack.c.bf16 %v22938_v2, %v22937_v21  ;;  %v22950_v2 = vld [vmem:[#allocation135_spill] sm:$0xff] }
 0x368   :  { %7178 = vmatprep.mubr.f32.mxu0 %v22930_v47  ;;  %11975 = vmatpush1.bf16.msra.mxu0 %v11974_v3  ;;  %v22940_v3 = vld [vmem:[#allocation286_spill] sm:$0xff]  ;;  %v22941_v47 = vld [vmem:[#allocation49_spill] sm:$0xff] }
 0x369   :  { %3675 = vmatmul.mubr.f32.gmra.mrb[48].mxu1 %v22933_v55  ;;  %11976 = vmatprep.subr.bf16.mxu0 %v21411_v40  ;;  %v22942_v55 = vld [vmem:[#allocation57_spill] sm:$0xff] }
 0x36a   :  { %3680 = vmatprep.mubr.f32.mxu1 %v22934_v46  ;;  %v22943_v46 = vld [vmem:[#allocation126_spill] sm:$0xff] }
 0x36b   :  { %7180 = vmatmul.mubr.f32.gmra.mrb[14].mxu0 %v22935_v12  ;;  %v11983_v12 = vpack.c.bf16 %v22944_v50, %v22943_v46 }
 0x36c   :  { %7185 = vmatprep.mubr.f32.mxu0 %v22936_v13  ;;  %11978 = vmatpush1.bf16.msra.mxu0 %v11977_v33  ;;  %v22946_v33 = vld [vmem:[#allocation292_spill] sm:$0xff]  ;;  %v22947_v13 = vld [vmem:[#allocation67_spill] sm:$0xff] }
 0x36d   :  { %3682 = vmatmul.mubr.f32.gmra.mrb[50].mxu1 %v22939_v54  ;;  %11979 = vmatprep.subr.bf16.mxu0 %v21411_v40  ;;  %v22948_v54 = vld [vmem:[#allocation76_spill] sm:$0xff] }
 0x36e   :  { %3687 = vmatprep.mubr.f32.mxu1 %v22940_v3  ;;  %v22949_v3 = vld [vmem:[#allocation133_spill] sm:$0xff] }
 0x36f   :  { %7187 = vmatmul.mubr.f32.gmra.mrb[16].mxu0 %v22941_v47  ;;  %v11986_v47 = vpack.c.bf16 %v22950_v2, %v22949_v3 }
 0x370   :  { %7192 = vmatprep.mubr.f32.mxu0 %v22942_v55  ;;  %11981 = vmatpush1.bf16.msra.mxu0 %v11980_v56  ;;  %v22951_v56 = vld [vmem:[#allocation83_spill] sm:$0xff] }
 0x371   :  { %3689 = vmatmul.mubr.f32.gmra.mrb[52].mxu1 %v22945_v39  ;;  %11982 = vmatprep.subr.bf16.mxu0 %v21411_v40  ;;  %v22952_v39 = vld [vmem:[#allocation84_spill] sm:$0xff]  ;;  %v22954_v55 = vld [vmem:[#allocation143_spill] sm:$0xff] }
 0x372   :  { %3694 = vmatprep.mubr.f32.mxu1 %v22946_v33  ;;  %v22953_v33 = vld [vmem:[#allocation131_spill] sm:$0xff] }
 0x373   :  { %7194 = vmatmul.mubr.f32.gmra.mrb[18].mxu0 %v22947_v13  ;;  %v11989_v13 = vpack.c.bf16 %v22954_v55, %v22953_v33  ;;  %v23240_v55 = vld [vmem:[#allocation373_spill] sm:$0xff] }
 0x374   :  { %7199 = vmatprep.mubr.f32.mxu0 %v22948_v54  ;;  %11984 = vmatpush1.bf16.msra.mxu0 %v11983_v12  ;;  %v22955_v12 = vld [vmem:[#allocation107_spill] sm:$0xff]  ;;  %v22960_v54 = vld [vmem:[#allocation116_spill] sm:$0xff] }
 0x375   :  { %3696 = vmatmul.mubr.f32.gmra.mrb[54].mxu1 %v22748_v48  ;;  %11985 = vmatprep.subr.bf16.mxu0 %v21411_v40  ;;  %v22956_v48 = vld [vmem:[#allocation115_spill] sm:$0xff] }
 0x376   :  { %3701 = vmatprep.mubr.f32.mxu1 %v22751_v17  ;;  %v22957_v17 = vld [vmem:[#allocation132_spill] sm:$0xff] }
 0x377   :  { %7201 = vmatmul.mubr.f32.gmra.mrb[20].mxu0 %v22951_v56  ;;  %v11992_v56 = vpack.c.bf16 %v22957_v17, %v22734_v24  ;;  %v22964_v17 = vld [vmem:[#allocation153_spill] sm:$0xff] }
 0x378   :  { %7206 = vmatprep.mubr.f32.mxu0 %v22952_v39  ;;  %11987 = vmatpush1.bf16.msra.mxu0 %v11986_v47  ;;  %v22958_v47 = vld [vmem:[#allocation247_spill] sm:$0xff] }
 0x379   :  { %3703 = vmatmul.mubr.f32.gmra.mrb[56].mxu1 %v22757_v30  ;;  %11988 = vmatprep.subr.bf16.mxu0 %v21411_v40  ;;  %v22959_v30 = vand.u32 4294901760, %v22958_v47 }
 0x37a   :  { %3708 = vmatprep.mubr.f32.mxu1 %v22760_v14  ;;  %v22961_v14 = vld [vmem:[#allocation123_spill] sm:$0xff] }
 0x37b   :  { %7208 = vmatmul.mubr.f32.gmra.mrb[22].mxu0 %v22955_v12  ;;  %v3828_v39 = vsub.f32 %v22958_v47, %v22959_v30  ;;  %v22966_v47 = vld [vmem:[#allocation251_spill] sm:$0xff] }
 0x37c   :  { %7213 = vmatprep.mubr.f32.mxu0 %v22956_v48  ;;  %11990 = vmatpush1.bf16.msra.mxu0 %v11989_v13  ;;  %v22962_v48 = vld [vmem:[#allocation139_spill] sm:$0xff]  ;;  %v22963_v13 = vld [vmem:[#allocation142_spill] sm:$0xff]  ;;  %v22967_v30 = vand.u32 4294901760, %v22966_v47 }
 0x37d   :  { %3710 = vmatmul.mubr.f32.gmra.mrb[58].mxu1 %v22767_v59  ;;  %11991 = vmatprep.subr.bf16.mxu0 %v21411_v40  ;;  %v11995_v12 = vpack.c.bf16 %v22963_v13, %v22962_v48  ;;  %v22965_v59 = vand.u32 4294901760, %v22964_v17 }
 0x37e   :  { %3715 = vmatprep.mubr.f32.mxu1 %v22769_v8  ;;  %v3829_v8 = vand.u32 4294901760, %v3828_v39 }
 0x37f   :  { %7215 = vmatmul.mubr.f32.gmra.mrb[24].mxu0 %v22960_v54  ;;  %v3834_v24 = vsub.f32 %v22964_v17, %v22965_v59  ;;  %v3843_v54 = vsub.f32 %v22966_v47, %v22967_v30  ;;  %v22971_v59 = vld [vmem:[#allocation254_spill] sm:$0xff]  ;;  %v22973_v47 = vld [vmem:[#allocation257_spill] sm:$0xff] }
 0x380   :  { %7220 = vmatprep.mubr.f32.mxu0 %v22961_v14  ;;  %11993 = vmatpush1.bf16.msra.mxu0 %v11992_v56  ;;  %v22968_v14 = vld [vmem:[#allocation38_spill] sm:$0xff]  ;;  %v22969_v56 = vld [vmem:[#allocation252_spill] sm:$0xff]  ;;  %v22972_v48 = vand.u32 4294901760, %v22971_v59  ;;  %v22974_v30 = vand.u32 4294901760, %v22973_v47 }
 0x381   :  { %3717 = vmatmul.mubr.f32.gmra.mrb[60].mxu1 %v22777_v28  ;;  %11994 = vmatprep.subr.bf16.mxu0 %v21411_v40  ;;  %v22970_v28 = vld [vmem:[#allocation150_spill] sm:$0xff]  ;;  %v3835_v17 = vand.u32 4294901760, %v3834_v24  ;;  %v3844_v39 = vand.u32 4294901760, %v3843_v54 }
 0x382   :  { %3722 = vmatprep.mubr.f32.mxu1 %v22778_v18  ;;  %v11998_v13 = vpack.c.bf16 %v22970_v28, %v16629_v43  ;;  %v3849_v18 = vsub.f32 %v22971_v59, %v22972_v48  ;;  %v22978_v43 = vld [vmem:[#allocation259_spill] sm:$0xff] }
 0x383   :  { %7222 = vmatmul.mubr.f32.gmra.mrb[26].mxu0 %v22968_v14  ;;  %v3858_v14 = vsub.f32 %v22973_v47, %v22974_v30  ;;  %v22979_v48 = vand.u32 4294901760, %v22978_v43 }
 0x384   :  { %7227 = vmatprep.mubr.f32.mxu0 %v22969_v56  ;;  %11996 = vmatpush1.bf16.msra.mxu0 %v11995_v12  ;;  %v22975_v56 = vld [vmem:[#allocation169_spill] sm:$0xff]  ;;  %v3850_v28 = vand.u32 4294901760, %v3849_v18 }
 0x385   :  { %3724 = vmatmul.mubr.f32.gmra.mrb[62].mxu1 %v22785_v41  ;;  %11997 = vmatprep.subr.bf16.mxu0 %v21411_v40  ;;  %v22976_v12 = vld [vmem:[#allocation53_spill] sm:$0xff]  ;;  %v3864_v59 = vsub.f32 %v22978_v43, %v22979_v48  ;;  %v3859_v54 = vand.u32 4294901760, %v3858_v14 }
 0x386   :  { %3830 = vmatprep.mubr.f32.mxu1 %v3829_v8  ;;  %v22977_v41 = vld [vmem:[#allocation161_spill] sm:$0xff]  ;;  %v22980_v8 = vld [vmem:[#allocation262_spill] sm:$0xff] }
 0x387   :  { %7229 = vmatmul.mubr.f32.gmra.mrb[28].mxu0 %v22975_v56  ;;  %v12001_v24 = vpack.c.bf16 %v22977_v41, %v16664_v15  ;;  %v22981_v47 = vand.u32 4294901760, %v22980_v8  ;;  %v22982_v56 = vld [vmem:[#allocation43_spill] sm:$0xff]  ;;  %v3865_v18 = vand.u32 4294901760, %v3864_v59  ;;  %v22985_v43 = vld [vmem:[#allocation265_spill] sm:$0xff]  ;;  %v22992_v59 = vld [vmem:[#allocation32_spill] sm:$0xff] }
 0x388   :  { %7234 = vmatprep.mubr.f32.mxu0 %v22976_v12  ;;  %11999 = vmatpush1.bf16.msra.mxu0 %v11998_v13  ;;  %v22983_v13 = vld [vmem:[#allocation261_spill] sm:$0xff]  ;;  %v22986_v48 = vand.u32 4294901760, %v22985_v43  ;;  %v22990_v12 = vld [vmem:[#allocation72_spill] sm:$0xff] }
 0x389   :  { %3836 = vmatmul.mubr.f32.vlgmr.msra.gmra.mrb[0].mxu1 %v3835_v17  ;;  %12000 = vmatprep.subr.bf16.mxu0 %v21411_v40  ;;  %v3873_v30 = vsub.f32 %v22980_v8, %v22981_v47  ;;  %v22984_v17 = vld [vmem:[#allocation172_spill] sm:$0xff] }
 0x38a   :  { %3845 = vmatprep.mubr.f32.mxu1 %v3844_v39  ;;  %12187 = vmatpush1.bf16.msra.mxu1 %v22982_v56  ;;  %v3879_v39 = vsub.f32 %v22985_v43, %v22986_v48  ;;  %v22987_v8 = vld [vmem:[#allocation268_spill] sm:$0xff]  ;;  %v22993_v43 = vand.u32 4294901760, %v22992_v59 }
 0x38b   :  { %7236 = vmatmul.mubr.f32.gmra.mrb[30].mxu0 %v22983_v13  ;;  %12172 = vmatprep.subr.bf16.mxu1 %v21411_v40  ;;  %v3874_v14 = vand.u32 4294901760, %v3873_v30  ;;  %v22988_v47 = vand.u32 4294901760, %v22987_v8  ;;  %v22989_v13 = vld [vmem:[#allocation46_spill] sm:$0xff]  ;;  %v22994_v30 = vld [vmem:[#allocation273_spill] sm:$0xff]  ;;  %v23211_v41 = vld [vmem:[#allocation312_spill] sm:$0xff] }
 0x38c   :  { %7241 = vmatprep.mubr.f32.mxu0 %v22984_v17  ;;  %12002 = vmatpush1.bf16.msra.mxu0 %v12001_v24  ;;  %v3880_v24 = vand.u32 4294901760, %v3879_v39  ;;  %v3894_v48 = vsub.f32 %v22992_v59, %v22993_v43  ;;  %v22995_v17 = vand.u32 4294901760, %v22994_v30  ;;  %v22998_v39 = vld [vmem:[#allocation276_spill] sm:$0xff] }
 0x38d   :  { %3851 = vmatmul.mubr.f32.gmra.mrb[2].mxu1 %v3850_v28  ;;  %12003 = vmatprep.subr.bf16.mxu0 %v21411_v40  ;;  %v3888_v56 = vsub.f32 %v22987_v8, %v22988_v47  ;;  %v22991_v28 = vld [vmem:[#allocation263_spill] sm:$0xff]  ;;  %v22996_v47 = vld [vmem:[#allocation56_spill] sm:$0xff] }
 0x38e   :  { %3860 = vmatprep.mubr.f32.mxu1 %v3859_v54  ;;  %12188 = vmatpush1.bf16.msra.mxu1 %v22989_v13  ;;  %v3903_v8 = vsub.f32 %v22994_v30, %v22995_v17  ;;  %v22997_v13 = vld [vmem:[#allocation178_spill] sm:$0xff]  ;;  %v23002_v30 = vld [vmem:[#allocation65_spill] sm:$0xff] }
 0x38f   :  { %7243 = vmatmul.mubr.f32.gmra.mrb[32].mxu0 %v22990_v12  ;;  %12173 = vmatprep.subr.bf16.mxu1 %v21411_v40  ;;  %v3889_v54 = vand.u32 4294901760, %v3888_v56  ;;  %v23000_v56 = vld [vmem:[#allocation279_spill] sm:$0xff] }
 0x390   :  { %7248 = vmatprep.mubr.f32.mxu0 %v22991_v28  ;;  %v22999_v28 = vand.u32 4294901760, %v22998_v39  ;;  %v23001_v43 = vand.u32 4294901760, %v23000_v56 }
 0x391   :  { %3866 = vmatmul.mubr.f32.gmra.mrb[4].mxu1 %v3865_v18  ;;  %v3895_v18 = vand.u32 4294901760, %v3894_v48  ;;  %v23003_v48 = vld [vmem:[#allocation40_spill] sm:$0xff] }
 0x392   :  { %3875 = vmatprep.mubr.f32.mxu1 %v3874_v14  ;;  %12189 = vmatpush1.bf16.msra.mxu1 %v22996_v47  ;;  %v3909_v59 = vsub.f32 %v22998_v39, %v22999_v28  ;;  %v3904_v14 = vand.u32 4294901760, %v3903_v8  ;;  %v3918_v17 = vsub.f32 %v23000_v56, %v23001_v43  ;;  %v23004_v47 = vand.u32 4294901760, %v23003_v48  ;;  %v23005_v8 = vld [vmem:[#allocation284_spill] sm:$0xff]  ;;  %v23007_v43 = vld [vmem:[#allocation70_spill] sm:$0xff] }
 0x393   :  { %7250 = vmatmul.mubr.f32.gmra.mrb[34].mxu0 %v22997_v13  ;;  %12174 = vmatprep.subr.bf16.mxu1 %v21411_v40  ;;  %v23006_v39 = vand.u32 4294901760, %v23005_v8  ;;  %v23131_v13 = vld [vmem:[#allocation185_spill] sm:$0xff] }
 0x394   :  { %7255 = vmatprep.mubr.f32.mxu0 %v17535_v22  ;;  %v3924_v28 = vsub.f32 %v23003_v48, %v23004_v47  ;;  %v23130_v22 = vld [vmem:[#allocation68_spill] sm:$0xff] }
 0x395   :  { %3881 = vmatmul.mubr.f32.gmra.mrb[6].mxu1 %v3880_v24  ;;  %v3910_v24 = vand.u32 4294901760, %v3909_v59  ;;  %v3933_v56 = vsub.f32 %v23005_v8, %v23006_v39  ;;  %v23008_v59 = vld [vmem:[#allocation287_spill] sm:$0xff]  ;;  %v23012_v39 = vld [vmem:[#allocation80_spill] sm:$0xff] }
 0x396   :  { %3890 = vmatprep.mubr.f32.mxu1 %v3889_v54  ;;  %12190 = vmatpush1.bf16.msra.mxu1 %v23002_v30  ;;  %v3919_v54 = vand.u32 4294901760, %v3918_v17  ;;  %v23009_v30 = vand.u32 4294901760, %v23008_v59  ;;  %v23010_v17 = vld [vmem:[#allocation290_spill] sm:$0xff] }
 0x397   :  { %7257 = vmatmul.mubr.f32.gmra.mrb[36].mxu0 %v17560_v37  ;;  %12175 = vmatprep.subr.bf16.mxu1 %v21411_v40  ;;  %v23011_v47 = vand.u32 4294901760, %v23010_v17 }
 0x398   :  { %7262 = vmatprep.mubr.f32.mxu0 %v17562_v35  ;;  %v3939_v48 = vsub.f32 %v23008_v59, %v23009_v30  ;;  %v23124_v35 = vld [vmem:[#allocation182_spill] sm:$0xff] }
 0x399   :  { %3896 = vmatmul.mubr.f32.gmra.mrb[8].mxu1 %v3895_v18  ;;  %v3925_v18 = vand.u32 4294901760, %v3924_v28  ;;  %v3948_v8 = vsub.f32 %v23010_v17, %v23011_v47  ;;  %v23013_v28 = vld [vmem:[#allocation45_spill] sm:$0xff]  ;;  %v23017_v47 = vld [vmem:[#allocation88_spill] sm:$0xff] }
 0x39a   :  { %3905 = vmatprep.mubr.f32.mxu1 %v3904_v14  ;;  %12191 = vmatpush1.bf16.msra.mxu1 %v23007_v43  ;;  %v3934_v14 = vand.u32 4294901760, %v3933_v56  ;;  %v23014_v43 = vand.u32 4294901760, %v23013_v28  ;;  %v23015_v56 = vld [vmem:[#allocation295_spill] sm:$0xff] }
 0x39b   :  { %7264 = vmatmul.mubr.f32.gmra.mrb[38].mxu0 %v17577_v9  ;;  %12176 = vmatprep.subr.bf16.mxu1 %v21411_v40  ;;  %v23016_v30 = vand.u32 4294901760, %v23015_v56  ;;  %v23123_v9 = vld [vmem:[#allocation52_spill] sm:$0xff] }
 0x39c   :  { %7269 = vmatprep.mubr.f32.mxu0 %v17583_v0  ;;  %v3954_v59 = vsub.f32 %v23013_v28, %v23014_v43 }
 0x39d   :  { %3911 = vmatmul.mubr.f32.gmra.mrb[10].mxu1 %v3910_v24  ;;  %v3940_v24 = vand.u32 4294901760, %v3939_v48  ;;  %v3963_v17 = vsub.f32 %v23015_v56, %v23016_v30  ;;  %v23018_v48 = vld [vmem:[#allocation298_spill] sm:$0xff] }
 0x39e   :  { %3920 = vmatprep.mubr.f32.mxu1 %v3919_v54  ;;  %12192 = vmatpush1.bf16.msra.mxu1 %v23012_v39  ;;  %v3949_v54 = vand.u32 4294901760, %v3948_v8  ;;  %v23019_v39 = vand.u32 4294901760, %v23018_v48  ;;  %v23020_v8 = vld [vmem:[#allocation301_spill] sm:$0xff]  ;;  %v23022_v30 = vld [vmem:[#allocation94_spill] sm:$0xff] }
 0x39f   :  { %7271 = vmatmul.mubr.f32.gmra.mrb[40].mxu0 %v17596_v11  ;;  %12177 = vmatprep.subr.bf16.mxu1 %v21411_v40  ;;  %v23021_v43 = vand.u32 4294901760, %v23020_v8  ;;  %v23117_v11 = vld [vmem:[#allocation179_spill] sm:$0xff] }
 0x3a0   :  { %7276 = vmatprep.mubr.f32.mxu0 %v17606_v16  ;;  %v3969_v28 = vsub.f32 %v23018_v48, %v23019_v39  ;;  %v23116_v16 = vld [vmem:[#allocation35_spill] sm:$0xff] }
 0x3a1   :  { %3926 = vmatmul.mubr.f32.gmra.mrb[12].mxu1 %v3925_v18  ;;  %v3955_v18 = vand.u32 4294901760, %v3954_v59  ;;  %v3978_v56 = vsub.f32 %v23020_v8, %v23021_v43  ;;  %v23023_v59 = vld [vmem:[#allocation50_spill] sm:$0xff]  ;;  %v23027_v43 = vld [vmem:[#allocation104_spill] sm:$0xff] }
 0x3a2   :  { %3935 = vmatprep.mubr.f32.mxu1 %v3934_v14  ;;  %12193 = vmatpush1.bf16.msra.mxu1 %v23017_v47  ;;  %v3964_v14 = vand.u32 4294901760, %v3963_v17  ;;  %v23024_v47 = vand.u32 4294901760, %v23023_v59  ;;  %v23025_v17 = vld [vmem:[#allocation304_spill] sm:$0xff] }
 0x3a3   :  { %7278 = vmatmul.mubr.f32.gmra.mrb[42].mxu0 %v17612_v4  ;;  %12178 = vmatprep.subr.bf16.mxu1 %v21411_v40  ;;  %v23026_v39 = vand.u32 4294901760, %v23025_v17 }
 0x3a4   :  { %7283 = vmatprep.mubr.f32.mxu0 %v17621_v42  ;;  %v3984_v48 = vsub.f32 %v23023_v59, %v23024_v47  ;;  %v23110_v42 = vld [vmem:[#allocation177_spill] sm:$0xff] }
 0x3a5   :  { %3941 = vmatmul.mubr.f32.gmra.mrb[14].mxu1 %v3940_v24  ;;  %v3970_v24 = vand.u32 4294901760, %v3969_v28  ;;  %v3993_v8 = vsub.f32 %v23025_v17, %v23026_v39  ;;  %v23028_v28 = vld [vmem:[#allocation307_spill] sm:$0xff]  ;;  %v23032_v39 = vld [vmem:[#allocation112_spill] sm:$0xff] }
 0x3a6   :  { %3950 = vmatprep.mubr.f32.mxu1 %v3949_v54  ;;  %12194 = vmatpush1.bf16.msra.mxu1 %v23022_v30  ;;  %v3979_v54 = vand.u32 4294901760, %v3978_v56  ;;  %v23029_v30 = vand.u32 4294901760, %v23028_v28  ;;  %v23030_v56 = vld [vmem:[#allocation310_spill] sm:$0xff] }
 0x3a7   :  { %7285 = vmatmul.mubr.f32.gmra.mrb[44].mxu0 %v17636_v49  ;;  %12179 = vmatprep.subr.bf16.mxu1 %v21411_v40  ;;  %v23031_v47 = vand.u32 4294901760, %v23030_v56  ;;  %v23109_v49 = vld [vmem:[#allocation23_spill] sm:$0xff] }
 0x3a8   :  { %7290 = vmatprep.mubr.f32.mxu0 %v17651_v29  ;;  %v3999_v59 = vsub.f32 %v23028_v28, %v23029_v30 }
 0x3a9   :  { %3956 = vmatmul.mubr.f32.gmra.mrb[16].mxu1 %v3955_v18  ;;  %v3985_v18 = vand.u32 4294901760, %v3984_v48  ;;  %v4008_v17 = vsub.f32 %v23030_v56, %v23031_v47  ;;  %v23033_v48 = vld [vmem:[#allocation62_spill] sm:$0xff] }
 0x3aa   :  { %3965 = vmatprep.mubr.f32.mxu1 %v3964_v14  ;;  %12195 = vmatpush1.bf16.msra.mxu1 %v23027_v43  ;;  %v3994_v14 = vand.u32 4294901760, %v3993_v8  ;;  %v23034_v43 = vand.u32 4294901760, %v23033_v48  ;;  %v23035_v8 = vld [vmem:[#allocation315_spill] sm:$0xff]  ;;  %v23037_v47 = vld [vmem:[#allocation118_spill] sm:$0xff] }
 0x3ab   :  { %7292 = vmatmul.mubr.f32.gmra.mrb[46].mxu0 %v17664_v45  ;;  %12180 = vmatprep.subr.bf16.mxu1 %v21411_v40  ;;  %v23036_v30 = vand.u32 4294901760, %v23035_v8  ;;  %v23103_v45 = vld [vmem:[#allocation173_spill] sm:$0xff] }
 0x3ac   :  { %7297 = vmatprep.mubr.f32.mxu0 %v17673_v19  ;;  %v4014_v28 = vsub.f32 %v23033_v48, %v23034_v43  ;;  %v23102_v19 = vld [vmem:[#allocation16_spill] sm:$0xff] }
 0x3ad   :  { %3971 = vmatmul.mubr.f32.gmra.mrb[18].mxu1 %v3970_v24  ;;  %v4000_v24 = vand.u32 4294901760, %v3999_v59  ;;  %v4023_v56 = vsub.f32 %v23035_v8, %v23036_v30  ;;  %v23038_v59 = vld [vmem:[#allocation318_spill] sm:$0xff]  ;;  %v23042_v30 = vld [vmem:[#allocation128_spill] sm:$0xff] }
 0x3ae   :  { %3980 = vmatprep.mubr.f32.mxu1 %v3979_v54  ;;  %12196 = vmatpush1.bf16.msra.mxu1 %v23032_v39  ;;  %v4009_v54 = vand.u32 4294901760, %v4008_v17  ;;  %v23039_v39 = vand.u32 4294901760, %v23038_v59  ;;  %v23040_v17 = vld [vmem:[#allocation69_spill] sm:$0xff] }
 0x3af   :  { %7299 = vmatmul.mubr.f32.gmra.mrb[48].mxu0 %v17688_v61  ;;  %12181 = vmatprep.subr.bf16.mxu1 %v21411_v40  ;;  %v23041_v43 = vand.u32 4294901760, %v23040_v17 }
 0x3b0   :  { %7304 = vmatprep.mubr.f32.mxu0 %v17695_v5  ;;  %v4029_v48 = vsub.f32 %v23038_v59, %v23039_v39  ;;  %v23096_v5 = vld [vmem:[#allocation170_spill] sm:$0xff] }
 0x3b1   :  { %3986 = vmatmul.mubr.f32.gmra.mrb[20].mxu1 %v3985_v18  ;;  %v4015_v18 = vand.u32 4294901760, %v4014_v28  ;;  %v4038_v8 = vsub.f32 %v23040_v17, %v23041_v43  ;;  %v23043_v28 = vld [vmem:[#allocation79_spill] sm:$0xff]  ;;  %v23047_v43 = vld [vmem:[#allocation138_spill] sm:$0xff] }
 0x3b2   :  { %3995 = vmatprep.mubr.f32.mxu1 %v3994_v14  ;;  %12197 = vmatpush1.bf16.msra.mxu1 %v23037_v47  ;;  %v4024_v14 = vand.u32 4294901760, %v4023_v56  ;;  %v23044_v47 = vand.u32 4294901760, %v23043_v28  ;;  %v23045_v56 = vld [vmem:[#allocation319_spill] sm:$0xff] }
 0x3b3   :  { %7306 = vmatmul.mubr.f32.gmra.mrb[50].mxu0 %v17707_v32  ;;  %12182 = vmatprep.subr.bf16.mxu1 %v21411_v40  ;;  %v23046_v39 = vand.u32 4294901760, %v23045_v56  ;;  %v23095_v32 = vld [vmem:[#allocation160_spill] sm:$0xff] }
 0x3b4   :  { %7311 = vmatprep.mubr.f32.mxu0 %v17717_v57  ;;  %v4044_v59 = vsub.f32 %v23043_v28, %v23044_v47 }
 0x3b5   :  { %4001 = vmatmul.mubr.f32.gmra.mrb[22].mxu1 %v4000_v24  ;;  %v4030_v24 = vand.u32 4294901760, %v4029_v48  ;;  %v4053_v17 = vsub.f32 %v23045_v56, %v23046_v39  ;;  %v18143_v48 = vld [vmem:[#allocation5 + $0x308] sm:$0xff] }
 0x3b6   :  { %4010 = vmatprep.mubr.f32.mxu1 %v4009_v54  ;;  %12198 = vmatpush1.bf16.msra.mxu1 %v23042_v30  ;;  %v4039_v54 = vand.u32 4294901760, %v4038_v8  ;;  %v4045_v30 = vand.u32 4294901760, %v4044_v59  ;;  %v23050_v56 = vld [vmem:[#allocation322_spill] sm:$0xff] }
 0x3b7   :  { %7313 = vmatmul.mubr.f32.gmra.mrb[52].mxu0 %v17721_v62  ;;  %12183 = vmatprep.subr.bf16.mxu1 %v21411_v40  ;;  %v4054_v47 = vand.u32 4294901760, %v4053_v17  ;;  %v23051_v39 = vand.u32 4294901760, %v23050_v56  ;;  %v23089_v62 = vld [vmem:[#allocation168_spill] sm:$0xff] }
 0x3b8   :  { %7318 = vmatprep.mubr.f32.mxu0 %v17731_v25  ;;  %v23088_v25 = vld [vmem:[#allocation151_spill] sm:$0xff] }
 0x3b9   :  { %4016 = vmatmul.mubr.f32.gmra.mrb[24].mxu1 %v4015_v18  ;;  %v18141_v18 = vld [vmem:[#allocation5 + $0x300] sm:$0xff] }
 0x3ba   :  { %4025 = vmatprep.mubr.f32.mxu1 %v4024_v14  ;;  %12199 = vmatpush1.bf16.msra.mxu1 %v23047_v43  ;;  %v23048_v14 = vld [vmem:[#allocation87_spill] sm:$0xff]  ;;  %v4068_v43 = vsub.f32 %v23050_v56, %v23051_v39  ;;  %v23055_v56 = vld [vmem:[#allocation325_spill] sm:$0xff] }
 0x3bb   :  { %7320 = vmatmul.mubr.f32.gmra.mrb[54].mxu0 %v17746_v7  ;;  %12184 = vmatprep.subr.bf16.mxu1 %v21411_v40  ;;  %v23049_v8 = vand.u32 4294901760, %v23048_v14  ;;  %v23052_v7 = vld [vmem:[#allocation140_spill] sm:$0xff] }
 0x3bc   :  { %7325 = vmatprep.mubr.f32.mxu0 %v17761_v34  ;;  %v21182_v34 = vand.u32 4294901760, %v18141_v18 }
 0x3bd   :  { %4031 = vmatmul.mubr.f32.gmra.mrb[26].mxu1 %v4030_v24  ;;  %v4059_v28 = vsub.f32 %v23048_v14, %v23049_v8  ;;  %v21181_v24 = vand.u32 4294901760, %v18143_v48  ;;  %v4069_v8 = vand.u32 4294901760, %v4068_v43 }
 0x3be   :  { %4040 = vmatprep.mubr.f32.mxu1 %v4039_v54  ;;  %12200 = vmatpush1.bf16.msra.mxu1 %v23052_v7  ;;  %v23053_v54 = vld [vmem:[#allocation93_spill] sm:$0xff]  ;;  %v23056_v7 = vand.u32 4294901760, %v23055_v56 }
 0x3bf   :  { %7327 = vmatmul.mubr.f32.gmra.mrb[56].mxu0 %v17774_v23  ;;  %12185 = vmatprep.subr.bf16.mxu1 %v21411_v40  ;;  %v4060_v59 = vand.u32 4294901760, %v4059_v28  ;;  %v23054_v17 = vand.u32 4294901760, %v23053_v54  ;;  %v23057_v23 = vld [vmem:[#allocation148_spill] sm:$0xff] }
 0x3c0   :  { %7332 = vmatprep.mubr.f32.mxu0 %v17783_v31  ;;  %v4083_v39 = vsub.f32 %v23055_v56, %v23056_v7 }
 0x3c1   :  { %4046 = vmatmul.mubr.f32.gmra.mrb[28].mxu1 %v4045_v30  ;;  %v4074_v14 = vsub.f32 %v23053_v54, %v23054_v17  ;;  %v18170_v30 = vpack.c.bf16 %v21181_v24, %v21182_v34  ;;  %v23061_v17 = vld [vmem:[#allocation328_spill] sm:$0xff]  ;;  %v23069_v34 = vld [vmem:[#allocation117_spill] sm:$0xff] }
 0x3c2   :  { %4055 = vmatprep.mubr.f32.mxu1 %v4054_v47  ;;  %12201 = vmatpush1.bf16.msra.mxu1 %v23057_v23  ;;  %v23059_v47 = vld [vmem:[#allocation103_spill] sm:$0xff]  ;;  %v4084_v23 = vand.u32 4294901760, %v4083_v39  ;;  %v23062_v56 = vand.u32 4294901760, %v23061_v17 }
 0x3c3   :  { %7334 = vmatmul.mubr.f32.gmra.mrb[58].mxu0 %v17798_v38  ;;  %12186 = vmatprep.subr.bf16.mxu1 %v21411_v40  ;;  %23058 = vst [vmem:[#allocation171_spill] sm:$0xff] %v18170_v30  ;;  %v4075_v28 = vand.u32 4294901760, %v4074_v14  ;;  %v23060_v43 = vand.u32 4294901760, %v23059_v47  ;;  %v23063_v38 = vld [vmem:[#allocation159_spill] sm:$0xff] }
 0x3c4   :  { %7339 = vmatprep.mubr.f32.mxu0 %v17805_v58  ;;  %v4098_v7 = vsub.f32 %v23061_v17, %v23062_v56  ;;  %v23064_v14 = vld [vmem:[#allocation111_spill] sm:$0xff]  ;;  %v23082_v58 = vld [vmem:[#allocation164_spill] sm:$0xff] }
 0x3c5   :  { %4061 = vmatmul.mubr.f32.gmra.mrb[30].mxu1 %v4060_v59  ;;  %v4089_v54 = vsub.f32 %v23059_v47, %v23060_v43  ;;  %v23065_v24 = vand.u32 4294901760, %v23064_v14  ;;  %v23066_v39 = vld [vmem:[#allocation331_spill] sm:$0xff] }
 0x3c6   :  { %4070 = vmatprep.mubr.f32.mxu1 %v4069_v8  ;;  %12202 = vmatpush1.bf16.msra.mxu1 %v23063_v38  ;;  %v4099_v8 = vand.u32 4294901760, %v4098_v7  ;;  %v23067_v43 = vand.u32 4294901760, %v23066_v39  ;;  %v23068_v38 = vld [vmem:[#allocation218_spill] sm:$0xff]  ;;  %v23073_v7 = vld [vmem:[#allocation221_spill] sm:$0xff] }
 0x3c7   :  { %7341 = vmatmul.mubr.f32.gmra.mrb[60].mxu0 %v17817_v27  ;;  %12148 = vmatprep.subr.bf16.mxu1 %v18170_v30  ;;  %v4090_v59 = vand.u32 4294901760, %v4089_v54  ;;  %v4104_v47 = vsub.f32 %v23064_v14, %v23065_v24  ;;  %v23071_v27 = vld [vmem:[#allocation334_spill] sm:$0xff] }
 0x3c8   :  { %7346 = vmatprep.mubr.f32.mxu0 %v17827_v10  ;;  %v4113_v17 = vsub.f32 %v23066_v39, %v23067_v43  ;;  %v23070_v10 = vand.u32 4294901760, %v23069_v34  ;;  %v23072_v24 = vand.u32 4294901760, %v23071_v27  ;;  %v23074_v14 = vld [vmem:[#allocation154_spill] sm:$0xff] }
 0x3c9   :  { %4076 = vmatmul.mubr.f32.gmra.mrb[32].mxu1 %v4075_v28  ;;  %v4105_v56 = vand.u32 4294901760, %v4104_v47  ;;  %v23075_v39 = vld [vmem:[#allocation226_spill] sm:$0xff] }
 0x3ca   :  { %4085 = vmatprep.mubr.f32.mxu1 %v4084_v23  ;;  %v4119_v28 = vsub.f32 %v23069_v34, %v23070_v10  ;;  %v4114_v54 = vand.u32 4294901760, %v4113_v17  ;;  %v4128_v23 = vsub.f32 %v23071_v27, %v23072_v24  ;;  %v23078_v10 = vld [vmem:[#allocation337_spill] sm:$0xff]  ;;  %v23080_v17 = vld [vmem:[#allocation240_spill] sm:$0xff] }
 0x3cb   :  { %7348 = vmatmul.mubr.f32.gmra.mrb[62].mxu0 %v17839_v26  ;;  %v23081_v24 = vld [vmem:[#allocation145_spill] sm:$0xff] }
 0x3cc   :  { %7483 = vmatprep.mubr.f32.mxu0 %v23068_v38  ;;  %v4120_v43 = vand.u32 4294901760, %v4119_v28  ;;  %v4129_v34 = vand.u32 4294901760, %v4128_v23  ;;  %v23083_v28 = vld [vmem:[#allocation137_spill] sm:$0xff]  ;;  %v23085_v23 = vld [vmem:[#allocation340_spill] sm:$0xff] }
 0x3cd   :  { %4091 = vmatmul.mubr.f32.gmra.mrb[34].mxu1 %v4090_v59  ;;  %v23076_v59 = vld [vmem:[#allocation125_spill] sm:$0xff]  ;;  %v23084_v31 = vand.u32 4294901760, %v23083_v28 }
 0x3ce   :  { %4100 = vmatprep.mubr.f32.mxu1 %v4099_v8  ;;  %v23077_v47 = vand.u32 4294901760, %v23076_v59  ;;  %v23079_v8 = vand.u32 4294901760, %v23078_v10 }
 0x3cf   :  { %7486 = vmatmul.mubr.f32.vlgmr.msra.gmra.mrb[0].mxu0 %v23073_v7 }
 0x3d0   :  { %12005 = vmatpush1.bf16.msra.mxu0 %v23074_v14  ;;  %7492 = vmatprep.mubr.f32.mxu0 %v23075_v39  ;;  %v4134_v26 = vsub.f32 %v23076_v59, %v23077_v47  ;;  %v4143_v27 = vsub.f32 %v23078_v10, %v23079_v8  ;;  %v4149_v59 = vsub.f32 %v23083_v28, %v23084_v31  ;;  %v23086_v47 = vand.u32 4294901760, %v23085_v23  ;;  %v23087_v8 = vld [vmem:[#allocation242_spill] sm:$0xff] }
 0x3d1   :  { %4106 = vmatmul.mubr.f32.gmra.mrb[36].mxu1 %v4105_v56  ;;  %12006 = vmatprep.subr.bf16.mxu0 %v21411_v40  ;;  %v23166_v14 = vld [vmem:[#allocation54_spill] sm:$0xff] }
 0x3d2   :  { %4115 = vmatprep.mubr.f32.mxu1 %v4114_v54  ;;  %v4135_v56 = vand.u32 4294901760, %v4134_v26  ;;  %v4144_v54 = vand.u32 4294901760, %v4143_v27  ;;  %v4158_v10 = vsub.f32 %v23085_v23, %v23086_v47  ;;  %v4150_v26 = vand.u32 4294901760, %v4149_v59  ;;  %v23092_v27 = vld [vmem:[#allocation344_spill] sm:$0xff]  ;;  %v23097_v59 = vld [vmem:[#allocation346_spill] sm:$0xff] }
 0x3d3   :  { %7495 = vmatmul.mubr.f32.gmra.mrb[2].mxu0 %v23080_v17  ;;  %v23093_v28 = vand.u32 4294901760, %v23092_v27  ;;  %v23094_v47 = vld [vmem:[#allocation248_spill] sm:$0xff]  ;;  %v23098_v61 = vand.u32 4294901760, %v23097_v59 }
 0x3d4   :  { %7501 = vmatprep.mubr.f32.mxu0 %v23081_v24  ;;  %12008 = vmatpush1.bf16.msra.mxu0 %v23082_v58  ;;  %v23163_v58 = vld [vmem:[#allocation165_spill] sm:$0xff] }
 0x3d5   :  { %4121 = vmatmul.mubr.f32.gmra.mrb[38].mxu1 %v4120_v43  ;;  %12009 = vmatprep.subr.bf16.mxu0 %v21411_v40  ;;  %v23090_v43 = vld [vmem:[#allocation342_spill] sm:$0xff]  ;;  %v4173_v23 = vsub.f32 %v23092_v27, %v23093_v28 }
 0x3d6   :  { %4130 = vmatprep.mubr.f32.mxu1 %v4129_v34  ;;  %v23091_v57 = vand.u32 4294901760, %v23090_v43  ;;  %v4159_v34 = vand.u32 4294901760, %v4158_v10  ;;  %v23099_v10 = vld [vmem:[#allocation348_spill] sm:$0xff]  ;;  %v23101_v28 = vld [vmem:[#allocation14_spill] sm:$0xff] }
 0x3d7   :  { %7504 = vmatmul.mubr.f32.gmra.mrb[4].mxu0 %v23087_v8 }
 0x3d8   :  { %7510 = vmatprep.mubr.f32.mxu0 %v23088_v25  ;;  %12011 = vmatpush1.bf16.msra.mxu0 %v23089_v62  ;;  %v4164_v31 = vsub.f32 %v23090_v43, %v23091_v57  ;;  %v4179_v57 = vsub.f32 %v23097_v59, %v23098_v61  ;;  %v23100_v43 = vand.u32 4294901760, %v23099_v10 }
 0x3d9   :  { %4136 = vmatmul.mubr.f32.gmra.mrb[40].mxu1 %v4135_v56  ;;  %12012 = vmatprep.subr.bf16.mxu0 %v21411_v40 }
 0x3da   :  { %4145 = vmatprep.mubr.f32.mxu1 %v4144_v54  ;;  %v4165_v56 = vand.u32 4294901760, %v4164_v31  ;;  %v4174_v54 = vand.u32 4294901760, %v4173_v23  ;;  %v4188_v27 = vsub.f32 %v23099_v10, %v23100_v43  ;;  %v23104_v31 = vld [vmem:[#allocation350_spill] sm:$0xff]  ;;  %v23106_v23 = vld [vmem:[#allocation352_spill] sm:$0xff] }
 0x3db   :  { %7513 = vmatmul.mubr.f32.gmra.mrb[6].mxu0 %v23094_v47  ;;  %v23105_v29 = vand.u32 4294901760, %v23104_v31  ;;  %v23107_v59 = vand.u32 4294901760, %v23106_v23  ;;  %v23108_v43 = vld [vmem:[#allocation22_spill] sm:$0xff] }
 0x3dc   :  { %7519 = vmatprep.mubr.f32.mxu0 %v23095_v32  ;;  %12014 = vmatpush1.bf16.msra.mxu0 %v23096_v5 }
 0x3dd   :  { %4151 = vmatmul.mubr.f32.gmra.mrb[42].mxu1 %v4150_v26  ;;  %12015 = vmatprep.subr.bf16.mxu0 %v21411_v40  ;;  %v4180_v26 = vand.u32 4294901760, %v4179_v57  ;;  %v4194_v61 = vsub.f32 %v23104_v31, %v23105_v29  ;;  %v4203_v10 = vsub.f32 %v23106_v23, %v23107_v59  ;;  %v23111_v57 = vld [vmem:[#allocation354_spill] sm:$0xff] }
 0x3de   :  { %4160 = vmatprep.mubr.f32.mxu1 %v4159_v34  ;;  %v4189_v34 = vand.u32 4294901760, %v4188_v27  ;;  %v23112_v4 = vand.u32 4294901760, %v23111_v57  ;;  %v23113_v27 = vld [vmem:[#allocation356_spill] sm:$0xff]  ;;  %v23115_v59 = vld [vmem:[#allocation26_spill] sm:$0xff] }
 0x3df   :  { %7522 = vmatmul.mubr.f32.gmra.mrb[8].mxu0 %v23101_v28  ;;  %v23114_v31 = vand.u32 4294901760, %v23113_v27 }
 0x3e0   :  { %7528 = vmatprep.mubr.f32.mxu0 %v23102_v19  ;;  %12017 = vmatpush1.bf16.msra.mxu0 %v23103_v45  ;;  %v4209_v29 = vsub.f32 %v23111_v57, %v23112_v4 }
 0x3e1   :  { %4166 = vmatmul.mubr.f32.gmra.mrb[44].mxu1 %v4165_v56  ;;  %12018 = vmatprep.subr.bf16.mxu0 %v21411_v40  ;;  %v4195_v56 = vand.u32 4294901760, %v4194_v61  ;;  %v4218_v23 = vsub.f32 %v23113_v27, %v23114_v31  ;;  %v23118_v61 = vld [vmem:[#allocation358_spill] sm:$0xff]  ;;  %v23122_v31 = vld [vmem:[#allocation39_spill] sm:$0xff] }
 0x3e2   :  { %4175 = vmatprep.mubr.f32.mxu1 %v4174_v54  ;;  %v4204_v54 = vand.u32 4294901760, %v4203_v10  ;;  %v23119_v0 = vand.u32 4294901760, %v23118_v61  ;;  %v23120_v10 = vld [vmem:[#allocation360_spill] sm:$0xff] }
 0x3e3   :  { %7531 = vmatmul.mubr.f32.gmra.mrb[10].mxu0 %v23108_v43  ;;  %v23121_v57 = vand.u32 4294901760, %v23120_v10 }
 0x3e4   :  { %7537 = vmatprep.mubr.f32.mxu0 %v23109_v49  ;;  %12020 = vmatpush1.bf16.msra.mxu0 %v23110_v42  ;;  %v4224_v4 = vsub.f32 %v23118_v61, %v23119_v0  ;;  %v23144_v42 = vand.u32 4294901760, %v18141_v18 }
 0x3e5   :  { %4181 = vmatmul.mubr.f32.gmra.mrb[46].mxu1 %v4180_v26  ;;  %12021 = vmatprep.subr.bf16.mxu0 %v21411_v40  ;;  %v4210_v26 = vand.u32 4294901760, %v4209_v29  ;;  %v4233_v27 = vsub.f32 %v23120_v10, %v23121_v57  ;;  %v23125_v29 = vld [vmem:[#allocation362_spill] sm:$0xff]  ;;  %v23129_v57 = vld [vmem:[#allocation60_spill] sm:$0xff] }
 0x3e6   :  { %4190 = vmatprep.mubr.f32.mxu1 %v4189_v34  ;;  %v4219_v34 = vand.u32 4294901760, %v4218_v23  ;;  %v23126_v37 = vand.u32 4294901760, %v23125_v29  ;;  %v23127_v23 = vld [vmem:[#allocation364_spill] sm:$0xff] }
 0x3e7   :  { %7540 = vmatmul.mubr.f32.gmra.mrb[12].mxu0 %v23115_v59  ;;  %v23128_v61 = vand.u32 4294901760, %v23127_v23 }
 0x3e8   :  { %7546 = vmatprep.mubr.f32.mxu0 %v23116_v16  ;;  %12023 = vmatpush1.bf16.msra.mxu0 %v23117_v11  ;;  %v4239_v0 = vsub.f32 %v23125_v29, %v23126_v37  ;;  %v23138_v11 = vld [vmem:[#allocation188_spill] sm:$0xff] }
 0x3e9   :  { %4196 = vmatmul.mubr.f32.gmra.mrb[48].mxu1 %v4195_v56  ;;  %12024 = vmatprep.subr.bf16.mxu0 %v21411_v40  ;;  %v4225_v56 = vand.u32 4294901760, %v4224_v4  ;;  %v4248_v10 = vsub.f32 %v23127_v23, %v23128_v61  ;;  %v23132_v4 = vld [vmem:[#allocation366_spill] sm:$0xff]  ;;  %v23136_v61 = vld [vmem:[#allocation75_spill] sm:$0xff] }
 0x3ea   :  { %4205 = vmatprep.mubr.f32.mxu1 %v4204_v54  ;;  %v4234_v54 = vand.u32 4294901760, %v4233_v27  ;;  %v23133_v12 = vand.u32 4294901760, %v23132_v4  ;;  %v23134_v27 = vld [vmem:[#allocation368_spill] sm:$0xff] }
 0x3eb   :  { %7549 = vmatmul.mubr.f32.gmra.mrb[14].mxu0 %v23122_v31  ;;  %v23135_v29 = vand.u32 4294901760, %v23134_v27 }
 0x3ec   :  { %7555 = vmatprep.mubr.f32.mxu0 %v23123_v9  ;;  %12026 = vmatpush1.bf16.msra.mxu0 %v23124_v35  ;;  %v4254_v37 = vsub.f32 %v23132_v4, %v23133_v12  ;;  %v23137_v35 = vld [vmem:[#allocation91_spill] sm:$0xff] }
 0x3ed   :  { %4211 = vmatmul.mubr.f32.gmra.mrb[50].mxu1 %v4210_v26  ;;  %12027 = vmatprep.subr.bf16.mxu0 %v21411_v40  ;;  %v4240_v26 = vand.u32 4294901760, %v4239_v0  ;;  %v4263_v23 = vsub.f32 %v23134_v27, %v23135_v29  ;;  %v23139_v0 = vld [vmem:[#allocation370_spill] sm:$0xff]  ;;  %v23143_v29 = vld [vmem:[#allocation92_spill] sm:$0xff] }
 0x3ee   :  { %4220 = vmatprep.mubr.f32.mxu1 %v4219_v34  ;;  %v4249_v34 = vand.u32 4294901760, %v4248_v10  ;;  %v23141_v10 = vld [vmem:[#allocation372_spill] sm:$0xff] }
 0x3ef   :  { %7558 = vmatmul.mubr.f32.gmra.mrb[16].mxu0 %v23129_v57  ;;  %v23142_v4 = vand.u32 4294901760, %v23141_v10 }
 0x3f0   :  { %7564 = vmatprep.mubr.f32.mxu0 %v23130_v22  ;;  %12029 = vmatpush1.bf16.msra.mxu0 %v23131_v13  ;;  %v23140_v13 = vand.u32 4294901760, %v23139_v0 }
 0x3f1   :  { %4226 = vmatmul.mubr.f32.gmra.mrb[52].mxu1 %v4225_v56  ;;  %12030 = vmatprep.subr.bf16.mxu0 %v21411_v40  ;;  %v4255_v56 = vand.u32 4294901760, %v4254_v37  ;;  %v4278_v27 = vsub.f32 %v23141_v10, %v23142_v4 }
 0x3f2   :  { %4235 = vmatprep.mubr.f32.mxu1 %v4234_v54  ;;  %v4269_v12 = vsub.f32 %v23139_v0, %v23140_v13  ;;  %v4264_v54 = vand.u32 4294901760, %v4263_v23  ;;  %v23148_v13 = vld [vmem:[#allocation100_spill] sm:$0xff]  ;;  %v23150_v0 = vld [vmem:[#allocation374_spill] sm:$0xff] }
 0x3f3   :  { %7567 = vmatmul.mubr.f32.gmra.mrb[18].mxu0 %v23136_v61  ;;  %v23151_v10 = vand.u32 4294901760, %v23150_v0 }
 0x3f4   :  { %7573 = vmatprep.mubr.f32.mxu0 %v23137_v35  ;;  %12032 = vmatpush1.bf16.msra.mxu0 %v23138_v11  ;;  %v18301_v11 = vsub.f32 %v18141_v18, %v23144_v42  ;;  %v4270_v23 = vand.u32 4294901760, %v4269_v12  ;;  %v4279_v42 = vand.u32 4294901760, %v4278_v27  ;;  %v23152_v18 = vld [vmem:[#allocation376_spill] sm:$0xff]  ;;  %v23156_v12 = vld [vmem:[#allocation194_spill] sm:$0xff]  ;;  %v23159_v27 = vld [vmem:[#allocation163_spill] sm:$0xff] }
 0x3f5   :  { %4241 = vmatmul.mubr.f32.gmra.mrb[54].mxu1 %v4240_v26  ;;  %12033 = vmatprep.subr.bf16.mxu0 %v21411_v40  ;;  %v23146_v26 = vand.u32 4294901760, %v18143_v48  ;;  %v4284_v4 = vsub.f32 %v23150_v0, %v23151_v10  ;;  %v23153_v45 = vand.u32 4294901760, %v23152_v18  ;;  %v23157_v10 = vld [vmem:[#allocation377_spill] sm:$0xff] }
 0x3f6   :  { %4250 = vmatprep.mubr.f32.mxu1 %v4249_v34  ;;  %23145 = vst [vmem:[#allocation41_spill] sm:$0xff] %v18301_v11  ;;  %v23149_v34 = vld [vmem:[#allocation192_spill] sm:$0xff]  ;;  %v23158_v62 = vand.u32 4294901760, %v23157_v10 }
 0x3f7   :  { %7576 = vmatmul.mubr.f32.gmra.mrb[20].mxu0 %v23143_v29  ;;  %v18306_v37 = vsub.f32 %v18143_v48, %v23146_v26  ;;  %v4293_v5 = vsub.f32 %v23152_v18, %v23153_v45  ;;  %v23154_v48 = vld [vmem:[#allocation108_spill] sm:$0xff]  ;;  %v21231_v26 = vand.u32 4294901760, %v18301_v11  ;;  %v4285_v0 = vand.u32 4294901760, %v4284_v4  ;;  %v23161_v4 = vld [vmem:[#allocation197_spill] sm:$0xff] }
 0x3f8   :  { %7582 = vmatprep.mubr.f32.mxu0 %v23148_v13  ;;  %12035 = vmatpush1.bf16.msra.mxu0 %v23149_v34 }
 0x3f9   :  { %23147 = vst [vmem:[#allocation175_spill] sm:$0xff] %v18306_v37  ;;  %4256 = vmatmul.mubr.f32.gmra.mrb[56].mxu1 %v4255_v56  ;;  %12036 = vmatprep.subr.bf16.mxu0 %v21411_v40  ;;  %v21232_v34 = vand.u32 4294901760, %v18306_v37  ;;  %v23155_v56 = vld [vmem:[#allocation124_spill] sm:$0xff]  ;;  %v4294_v45 = vand.u32 4294901760, %v4293_v5  ;;  %v9316_v18 = vsub.f32 %v18301_v11, %v21231_v26  ;;  %v23162_v5 = vld [vmem:[#allocation255_spill] sm:$0xff] }
 0x3fa   :  { %4265 = vmatprep.mubr.f32.mxu1 %v4264_v54  ;;  %v4299_v54 = vsub.f32 %v23157_v10, %v23158_v62  ;;  %v23164_v26 = vld [vmem:[#allocation200_spill] sm:$0xff] }
 0x3fb   :  { %7585 = vmatmul.mubr.f32.gmra.mrb[22].mxu0 %v23154_v48 }
 0x3fc   :  { %7591 = vmatprep.mubr.f32.mxu0 %v23155_v56  ;;  %12038 = vmatpush1.bf16.msra.mxu0 %v23156_v12  ;;  %v9323_v12 = vsub.f32 %v18306_v37, %v21232_v34  ;;  %v4300_v62 = vand.u32 4294901760, %v4299_v54  ;;  %v23165_v34 = vld [vmem:[#allocation320_spill] sm:$0xff]  ;;  %v23167_v54 = vld [vmem:[#allocation258_spill] sm:$0xff] }
 0x3fd   :  { %4271 = vmatmul.mubr.f32.gmra.mrb[58].mxu1 %v4270_v23  ;;  %12039 = vmatprep.subr.bf16.mxu0 %v21411_v40  ;;  %v23160_v23 = vld [vmem:[#allocation36_spill] sm:$0xff] }
 0x3fe   :  { %4280 = vmatprep.mubr.f32.mxu1 %v4279_v42  ;;  %v9317_v42 = vand.u32 4294901760, %v9316_v18  ;;  %v9324_v10 = vand.u32 4294901760, %v9323_v12  ;;  %v23170_v12 = vld [vmem:[#allocation323_spill] sm:$0xff]  ;;  %v23171_v18 = vld [vmem:[#allocation174_spill] sm:$0xff]  ;;  %v23235_v56 = vld [vmem:[#allocation144_spill] sm:$0xff] }
 0x3ff   :  { %7594 = vmatmul.mubr.f32.gmra.mrb[24].mxu0 %v23159_v27 }
 0x400   :  { %7600 = vmatprep.mubr.f32.mxu0 %v23160_v23  ;;  %12041 = vmatpush1.bf16.msra.mxu0 %v23161_v4  ;;  %v23169_v4 = vld [vmem:[#allocation321_spill] sm:$0xff] }
 0x401   :  { %4286 = vmatmul.mubr.f32.gmra.mrb[60].mxu1 %v4285_v0  ;;  %12042 = vmatprep.subr.bf16.mxu0 %v21411_v40  ;;  %v18342_v0 = vpack.c.bf16 %v9324_v10, %v9317_v42  ;;  %v23174_v42 = vld [vmem:[#allocation324_spill] sm:$0xff]  ;;  %v23175_v10 = vld [vmem:[#allocation326_spill] sm:$0xff]  ;;  %v23227_v23 = vld [vmem:[#allocation13_spill] sm:$0xff] }
 0x402   :  { %4295 = vmatprep.mubr.f32.mxu1 %v4294_v45  ;;  %v23168_v45 = vld [vmem:[#allocation204_spill] sm:$0xff] }
 0x403   :  { %7603 = vmatmul.mubr.f32.gmra.mrb[26].mxu0 %v23162_v5  ;;  %v13564_v5 = vld [vmem:[#allocation2 + $0x1a0] ss:$28 sps:$4 sm:$0xff]  }
 0x404   :  { %7609 = vmatprep.mubr.f32.mxu0 %v23163_v58  ;;  %12044 = vmatpush1.bf16.msra.mxu0 %v23164_v26  ;;  %v23179_v26 = vld [vmem:[#allocation269_spill] sm:$0xff] }
 0x405   :  { %4301 = vmatmul.mubr.f32.gmra.mrb[62].mxu1 %v4300_v62  ;;  %12045 = vmatprep.subr.bf16.mxu0 %v21411_v40  ;;  %v23173_v62 = vld [vmem:[#allocation206_spill] sm:$0xff] }
 0x406   :  { %4643 = vmatprep.mubr.f32.mxu1 %v23165_v34  ;;  %v23172_v34 = vld [vmem:[#allocation71_spill] sm:$0xff] }
 0x407   :  { %7612 = vmatmul.mubr.f32.gmra.mrb[28].mxu0 %v23166_v14  ;;  %v13563_v14 = vld [vmem:[#allocation2 + $0x168] ss:$28 sps:$4 sm:$0xff]  }
 0x408   :  { %7618 = vmatprep.mubr.f32.mxu0 %v23167_v54  ;;  %12047 = vmatpush1.bf16.msra.mxu0 %v23168_v45  ;;  %v23178_v45 = vld [vmem:[#allocation329_spill] sm:$0xff] }
 0x409   :  { %4645 = vmatmul.mubr.f32.vlgmr.msra.gmra.mrb[32].mxu1 %v23169_v4  ;;  %12048 = vmatprep.subr.bf16.mxu0 %v21411_v40  ;;  %v23176_v4 = vld [vmem:[#allocation181_spill] sm:$0xff] }
 0x40a   :  { %4650 = vmatprep.mubr.f32.mxu1 %v23170_v12  ;;  %12150 = vmatpush3.bf16.msra.mxu1 %v18170_v30  ;;  %v23177_v12 = vld [vmem:[#allocation327_spill] sm:$0xff]  ;;  %v23183_v30 = vld [vmem:[#allocation277_spill] sm:$0xff] }
 0x40b   :  { %7621 = vmatmul.mubr.f32.gmra.mrb[30].mxu0 %v23171_v18  ;;  %12152 = vmatprep.subr.bf16.mxu1 %v18342_v0  ;;  %v13560_v18 = vld [vmem:[#allocation2 + $0xc0] ss:$28 sps:$4 sm:$0xff]  }
 0x40c   :  { %7627 = vmatprep.mubr.f32.mxu0 %v23172_v34  ;;  %12050 = vmatpush1.bf16.msra.mxu0 %v23173_v62  ;;  %v23180_v34 = vld [vmem:[#allocation330_spill] sm:$0xff]  ;;  %v23181_v62 = vld [vmem:[#allocation332_spill] sm:$0xff]  ;;  %v23217_v54 = vld [vmem:[#allocation361_spill] sm:$0xff] }
 0x40d   :  { %4652 = vmatmul.mubr.f32.gmra.mrb[34].mxu1 %v23174_v42  ;;  %12051 = vmatprep.subr.bf16.mxu0 %v21411_v40  ;;  %v23182_v42 = vld [vmem:[#allocation186_spill] sm:$0xff] }
 0x40e   :  { %4657 = vmatprep.mubr.f32.mxu1 %v23175_v10  ;;  %v23184_v10 = vld [vmem:[#allocation333_spill] sm:$0xff] }
 0x40f   :  { %7630 = vmatmul.mubr.f32.gmra.mrb[32].mxu0 %v17527_v51  ;;  %v23185_v51 = vld [vmem:[#allocation335_spill] sm:$0xff] }
 0x410   :  { %7636 = vmatprep.mubr.f32.mxu0 %v23176_v4  ;;  %v23206_v4 = vld [vmem:[#allocation222_spill] sm:$0xff] }
 0x411   :  { %4659 = vmatmul.mubr.f32.gmra.mrb[36].mxu1 %v23177_v12  ;;  %v18371_v12 = vpack.c.bf16 %v18306_v37, %v18301_v11  ;;  %v23195_v37 = vld [vmem:[#allocation294_spill] sm:$0xff]  ;;  %v23196_v11 = vld [vmem:[#allocation343_spill] sm:$0xff] }
 0x412   :  { %4664 = vmatprep.mubr.f32.mxu1 %v23178_v45  ;;  %v23186_v45 = vld [vmem:[#allocation193_spill] sm:$0xff] }
 0x413   :  { %7639 = vmatmul.mubr.f32.gmra.mrb[34].mxu0 %v17551_v52  ;;  %v23187_v52 = vld [vmem:[#allocation283_spill] sm:$0xff] }
 0x414   :  { %7645 = vmatprep.mubr.f32.mxu0 %v23179_v26  ;;  %v23188_v26 = vld [vmem:[#allocation336_spill] sm:$0xff] }
 0x415   :  { %4666 = vmatmul.mubr.f32.gmra.mrb[38].mxu1 %v23180_v34  ;;  %v23189_v34 = vld [vmem:[#allocation338_spill] sm:$0xff] }
 0x416   :  { %4671 = vmatprep.mubr.f32.mxu1 %v23181_v62  ;;  %v23190_v62 = vld [vmem:[#allocation285_spill] sm:$0xff] }
 0x417   :  { %7648 = vmatmul.mubr.f32.gmra.mrb[36].mxu0 %v23182_v42  ;;  %v23191_v42 = vld [vmem:[#allocation201_spill] sm:$0xff] }
 0x418   :  { %7654 = vmatprep.mubr.f32.mxu0 %v23183_v30  ;;  %v23192_v30 = vld [vmem:[#allocation339_spill] sm:$0xff] }
 0x419   :  { %4673 = vmatmul.mubr.f32.gmra.mrb[40].mxu1 %v23184_v10  ;;  %v23193_v10 = vld [vmem:[#allocation341_spill] sm:$0xff] }
 0x41a   :  { %4678 = vmatprep.mubr.f32.mxu1 %v23185_v51  ;;  %v23194_v51 = vld [vmem:[#allocation205_spill] sm:$0xff] }
 0x41b   :  { %7657 = vmatmul.mubr.f32.gmra.mrb[38].mxu0 %v23186_v45  ;;  %v23197_v45 = vld [vmem:[#allocation345_spill] sm:$0xff] }
 0x41c   :  { %7663 = vmatprep.mubr.f32.mxu0 %v23187_v52  ;;  %v23198_v52 = vld [vmem:[#allocation211_spill] sm:$0xff] }
 0x41d   :  { %4680 = vmatmul.mubr.f32.gmra.mrb[42].mxu1 %v23188_v26  ;;  %v23199_v26 = vld [vmem:[#allocation299_spill] sm:$0xff] }
 0x41e   :  { %4685 = vmatprep.mubr.f32.mxu1 %v23189_v34  ;;  %v23200_v34 = vld [vmem:[#allocation347_spill] sm:$0xff] }
 0x41f   :  { %7666 = vmatmul.mubr.f32.gmra.mrb[40].mxu0 %v23190_v62  ;;  %v23201_v62 = vld [vmem:[#allocation349_spill] sm:$0xff] }
 0x420   :  { %7672 = vmatprep.mubr.f32.mxu0 %v23191_v42  ;;  %v13557_v42 = vld [vmem:[#allocation2 + $0x18] ss:$28 sps:$4 sm:$0xff]  }
 0x421   :  { %4687 = vmatmul.mubr.f32.gmra.mrb[44].mxu1 %v23192_v30  ;;  %v23202_v30 = vld [vmem:[#allocation217_spill] sm:$0xff] }
 0x422   :  { %4692 = vmatprep.mubr.f32.mxu1 %v23193_v10  ;;  %v23203_v10 = vld [vmem:[#allocation305_spill] sm:$0xff] }
 0x423   :  { %7675 = vmatmul.mubr.f32.gmra.mrb[42].mxu0 %v23194_v51  ;;  %v23204_v51 = vld [vmem:[#allocation351_spill] sm:$0xff] }
 0x424   :  { %7681 = vmatprep.mubr.f32.mxu0 %v23195_v37  ;;  %v13558_v37 = vld [vmem:[#allocation2 + $0x50] ss:$28 sps:$4 sm:$0xff]  }
 0x425   :  { %4694 = vmatmul.mubr.f32.gmra.mrb[46].mxu1 %v23196_v11  ;;  %v23205_v11 = vld [vmem:[#allocation353_spill] sm:$0xff] }
 0x426   :  { %4699 = vmatprep.mubr.f32.mxu1 %v23197_v45  ;;  %v1067_v45 = vsel %vm1066_vm0, %v13557_v42, 0  ;;  %v23212_v42 = vld [vmem:[#allocation231_spill] sm:$0xff] }
 0x427   :  { %7684 = vmatmul.mubr.f32.gmra.mrb[44].mxu0 %v23198_v52  ;;  %v13559_v52 = vld [vmem:[#allocation2 + $0x88] ss:$28 sps:$4 sm:$0xff]  }
 0x428   :  { %7690 = vmatprep.mubr.f32.mxu0 %v23199_v26  ;;  %v23207_v26 = vld [vmem:[#allocation309_spill] sm:$0xff] }
 0x429   :  { %4701 = vmatmul.mubr.f32.gmra.mrb[48].mxu1 %v23200_v34  ;;  %v23208_v34 = vld [vmem:[#allocation355_spill] sm:$0xff] }
 0x42a   :  { %4706 = vmatprep.mubr.f32.mxu1 %v23201_v62  ;;  %v18397_v62 = vand.u32 4294901760, %v1067_v45 }
 0x42b   :  { %7693 = vmatmul.mubr.f32.gmra.mrb[46].mxu0 %v23202_v30  ;;  %v1069_v30 = vsel %vm1066_vm0, %v13558_v37, 0  ;;  %v1073_v37 = vsel %vm1066_vm0, %v13560_v18, 0 }
 0x42c   :  { %7699 = vmatprep.mubr.f32.mxu0 %v23203_v10  ;;  %23209 = vst [vmem:[#allocation176_spill] sm:$0xff] %v18397_v62  ;;  %v23210_v10 = vld [vmem:[#allocation357_spill] sm:$0xff]  ;;  %v18404_v15 = vand.u32 4294901760, %v1069_v30 }
 0x42d   :  { %4708 = vmatmul.mubr.f32.gmra.mrb[50].mxu1 %v23204_v51  ;;  %v1071_v51 = vsel %vm1066_vm0, %v13559_v52, 0  ;;  %v23218_v52 = vld [vmem:[#allocation235_spill] sm:$0xff] }
 0x42e   :  { %4713 = vmatprep.mubr.f32.mxu1 %v23205_v11  ;;  %v13561_v11 = vld [vmem:[#allocation2 + $0xf8] ss:$28 sps:$4 sm:$0xff]   ;;  %23213 = vst [vmem:[#allocation51_spill] sm:$0xff] %v18404_v15  ;;  %v18418_v58 = vsub.f32 %v1069_v30, %v18404_v15  ;;  %v1079_v30 = vsel %vm1066_vm0, %v13563_v14, 0  ;;  %v23232_v14 = vld [vmem:[#allocation369_spill] sm:$0xff] }
 0x42f   :  { %7702 = vmatmul.mubr.f32.gmra.mrb[48].mxu0 %v23206_v4  ;;  %v23214_v4 = vld [vmem:[#allocation359_spill] sm:$0xff] }
 0x430   :  { %7708 = vmatprep.mubr.f32.mxu0 %v23207_v26  ;;  %v18410_v26 = vand.u32 4294901760, %v1071_v51  ;;  %23220 = vst [vmem:[#allocation59_spill] sm:$0xff] %v18418_v58  ;;  %v13565_v15 = vld [vmem:[#allocation2 + $0x1d8] ss:$28 sps:$4 sm:$0xff]  }
 0x431   :  { %4715 = vmatmul.mubr.f32.gmra.mrb[52].mxu1 %v23208_v34  ;;  %v18408_v34 = vsub.f32 %v1067_v45, %v18397_v62  ;;  %v23222_v45 = vld [vmem:[#allocation363_spill] sm:$0xff] }
 0x432   :  { %4720 = vmatprep.mubr.f32.mxu1 %v23210_v10  ;;  %23216 = vst [vmem:[#allocation184_spill] sm:$0xff] %v18410_v26  ;;  %v13562_v10 = vld [vmem:[#allocation2 + $0x130] ss:$28 sps:$4 sm:$0xff]   ;;  %v18425_v18 = vsub.f32 %v1071_v51, %v18410_v26 }
 0x433   :  { %7711 = vmatmul.mubr.f32.gmra.mrb[50].mxu0 %v23211_v41  ;;  %23215 = vst [vmem:[#allocation180_spill] sm:$0xff] %v18408_v34  ;;  %v1075_v41 = vsel %vm1066_vm0, %v13561_v11, 0  ;;  %v1077_v11 = vsel %vm1066_vm0, %v13562_v10, 0  ;;  %v13566_v51 = vld [vmem:[#allocation2 + $0x210] ss:$28 sps:$4 sm:$0xff]  }
 0x434   :  { %7717 = vmatprep.mubr.f32.mxu0 %v23212_v42  ;;  %v23219_v42 = vld [vmem:[#allocation236_spill] sm:$0xff]  ;;  %23223 = vst [vmem:[#allocation190_spill] sm:$0xff] %v18425_v18  ;;  %v23229_v26 = vld [vmem:[#allocation367_spill] sm:$0xff] }
 0x435   :  { %4722 = vmatmul.mubr.f32.gmra.mrb[54].mxu1 %v23214_v4  ;;  %v18420_v4 = vand.u32 4294901760, %v1073_v37 }
 0x436   :  { %4727 = vmatprep.mubr.f32.mxu1 %v23217_v54  ;;  %v23224_v54 = vld [vmem:[#allocation365_spill] sm:$0xff] }
 0x437   :  { %7720 = vmatmul.mubr.f32.gmra.mrb[52].mxu0 %v23218_v52  ;;  %23221 = vst [vmem:[#allocation187_spill] sm:$0xff] %v18420_v4  ;;  %v18428_v52 = vand.u32 4294901760, %v1075_v41  ;;  %v18436_v62 = vsub.f32 %v1073_v37, %v18420_v4  ;;  %v1081_v37 = vsel %vm1066_vm0, %v13564_v5, 0  ;;  %v13567_v4 = vld [vmem:[#allocation2 + $0x248] ss:$28 sps:$4 sm:$0xff]   ;;  %v23238_v5 = vand.u32 4294901760, %v18425_v18 }
 0x438   :  { %7726 = vmatprep.mubr.f32.mxu0 %v23219_v42  ;;  %v23226_v42 = vld [vmem:[#allocation130_spill] sm:$0xff] }
 0x439   :  { %4729 = vmatmul.mubr.f32.gmra.mrb[56].mxu1 %v23222_v45  ;;  %23225 = vst [vmem:[#allocation66_spill] sm:$0xff] %v18428_v52  ;;  %23228 = vst [vmem:[#allocation191_spill] sm:$0xff] %v18436_v62  ;;  %v18449_v45 = vand.u32 4294901760, %v1079_v30  ;;  %v9015_v48 = vsub.f32 %v18425_v18, %v23238_v5  ;;  %v23242_v18 = vand.u32 4294901760, %v18436_v62 }
 0x43a   :  { %4734 = vmatprep.mubr.f32.mxu1 %v23224_v54  ;;  %v23230_v54 = vand.u32 4294901760, %v18408_v34 }
 0x43b   :  { %7729 = vmatmul.mubr.f32.gmra.mrb[54].mxu0 %v23226_v42  ;;  %v18443_v42 = vand.u32 4294901760, %v1077_v11  ;;  %23234 = vst [vmem:[#allocation198_spill] sm:$0xff] %v18449_v45 }
 0x43c   :  { %7735 = vmatprep.mubr.f32.mxu0 %v23227_v23  ;;  %v8995_v10 = vsub.f32 %v18408_v34, %v23230_v54  ;;  %v18447_v23 = vsub.f32 %v1075_v41, %v18428_v52  ;;  %v23236_v54 = vand.u32 4294901760, %v18418_v58  ;;  %v1085_v41 = vsel %vm1066_vm0, %v13566_v51, 0  ;;  %v23237_v34 = vld [vmem:[#allocation371_spill] sm:$0xff] }
 0x43d   :  { %4736 = vmatmul.mubr.f32.gmra.mrb[58].mxu1 %v23229_v26  ;;  %23231 = vst [vmem:[#allocation195_spill] sm:$0xff] %v18443_v42  ;;  %v1083_v26 = vsel %vm1066_vm0, %v13565_v15, 0  ;;  %v18467_v15 = vand.u32 4294901760, %v1081_v37 }
 0x43e   :  { %4741 = vmatprep.mubr.f32.mxu1 %v23232_v14  ;;  %23233 = vst [vmem:[#allocation74_spill] sm:$0xff] %v18447_v23  ;;  %v9005_v27 = vsub.f32 %v18418_v58, %v23236_v54  ;;  %v8996_v52 = vand.u32 4294901760, %v8995_v10  ;;  %v18472_v14 = vsub.f32 %v1079_v30, %v18449_v45  ;;  %v18474_v51 = vand.u32 4294901760, %v1083_v26  ;;  %v13570_v54 = vld [vmem:[#allocation2 + $0x2f0] ss:$28 sps:$4 sm:$0xff]  }
 0x43f   :  { %7738 = vmatmul.mubr.f32.gmra.mrb[56].mxu0 %v23235_v56  ;;  %v18465_v56 = vsub.f32 %v1077_v11, %v18443_v42  ;;  %v18478_v10 = vand.u32 4294901760, %v1085_v41  ;;  %v13569_v11 = vld [vmem:[#allocation2 + $0x2b8] ss:$28 sps:$4 sm:$0xff]   ;;  %v18487_v45 = vsub.f32 %v1081_v37, %v18467_v15  ;;  %v13571_v42 = vld [vmem:[#allocation2 + $0x328] ss:$28 sps:$4 sm:$0xff]  }
 0x440   :  { %7744 = vmatprep.mubr.f32.mxu0 %v17803_v63  ;;  %v13568_v63 = vld [vmem:[#allocation2 + $0x280] ss:$28 sps:$4 sm:$0xff]   ;;  %23241 = vst [vmem:[#allocation90_spill] sm:$0xff] %v18472_v14  ;;  %v9006_v5 = vand.u32 4294901760, %v9005_v27  ;;  %v23243_v58 = vld [vmem:[#allocation375_spill] sm:$0xff]  ;;  %v23245_v27 = vand.u32 4294901760, %v18447_v23 }
 0x441   :  { %4743 = vmatmul.mubr.f32.gmra.mrb[60].mxu1 %v23237_v34  ;;  %23239 = vst [vmem:[#allocation82_spill] sm:$0xff] %v18465_v56  ;;  %v1087_v34 = vsel %vm1066_vm0, %v13567_v4, 0  ;;  %23244 = vst [vmem:[#allocation98_spill] sm:$0xff] %v18487_v45  ;;  %v18501_v37 = vsub.f32 %v1085_v41, %v18478_v10  ;;  %v1091_v30 = vsel %vm1066_vm0, %v13569_v11, 0  ;;  %v1095_v41 = vsel %vm1066_vm0, %v13571_v42, 0 }
 0x442   :  { %4748 = vmatprep.mubr.f32.mxu1 %v23240_v55  ;;  %v9025_v55 = vsub.f32 %v18436_v62, %v23242_v18  ;;  %v18489_v4 = vand.u32 4294901760, %v1087_v34  ;;  %v9035_v33 = vsub.f32 %v18447_v23, %v23245_v27  ;;  %v23249_v27 = vand.u32 4294901760, %v18465_v56  ;;  %v13572_v11 = vld [vmem:[#allocation2 + $0x360] ss:$28 sps:$4 sm:$0xff]   ;;  %v13573_v42 = vld [vmem:[#allocation2 + $0x398] ss:$28 sps:$4 sm:$0xff]  }
 0x443   :  { %7747 = vmatmul.mubr.f32.gmra.mrb[58].mxu0 %v17815_v6  ;;  %v1089_v6 = vsel %vm1066_vm0, %v13568_v63, 0  ;;  %23247 = vst [vmem:[#allocation114_spill] sm:$0xff] %v18501_v37 }
 0x444   :  { %7753 = vmatprep.mubr.f32.mxu0 %v17825_v60  ;;  %v9016_v60 = vand.u32 4294901760, %v9015_v48  ;;  %v9026_v63 = vand.u32 4294901760, %v9025_v55  ;;  %v18505_v48 = vand.u32 4294901760, %v1089_v6  ;;  %v18513_v23 = vsub.f32 %v1087_v34, %v18489_v4 }
 0x445   :  { %4750 = vmatmul.mubr.f32.gmra.mrb[62].mxu1 %v23243_v58  ;;  %v18497_v58 = vsub.f32 %v1083_v26, %v18474_v51  ;;  %v9045_v26 = vsub.f32 %v18465_v56, %v23249_v27  ;;  %v9036_v62 = vand.u32 4294901760, %v9035_v33  ;;  %v23251_v55 = vand.u32 4294901760, %v18472_v14 }
 0x446   :  { %10975 = vmatprep.mubr.f32.mxu1 %v8996_v52  ;;  %23248 = vst [vmem:[#allocation122_spill] sm:$0xff] %v18505_v48  ;;  %v1093_v52 = vsel %vm1066_vm0, %v13570_v54, 0  ;;  %23250 = vst [vmem:[#allocation267_spill] sm:$0xff] %v18513_v23  ;;  %v23255_v33 = vand.u32 4294901760, %v22890_v44  ;;  %v23260_v56 = vand.u32 4294901760, %v18487_v45 }
 0x447   :  { %23246 = vst [vmem:[#allocation106_spill] sm:$0xff] %v18497_v58  ;;  %7756 = vmatmul.mubr.f32.gmra.mrb[60].mxu0 %v17837_v36  ;;  %v18525_v27 = vand.u32 4294901760, %v1093_v52  ;;  %v9046_v34 = vand.u32 4294901760, %v9045_v26  ;;  %v23264_v26 = vand.u32 4294901760, %v18501_v37  ;;  %v23269_v36 = vld [vmem:[#allocation31_spill] sm:$0xff] }
 0x448   :  { %7762 = vmatprep.mubr.f32.mxu0 %v17847_v53  ;;  %v9055_v53 = vsub.f32 %v18472_v14, %v23251_v55  ;;  %v23256_v55 = vld [vmem:[#allocation25_spill] sm:$0xff]  ;;  %v18537_v14 = vand.u32 4294901760, %v1095_v41 }
 0x449   :  { %10976 = vmatmul.mubr.f32.vlgmr.msra.gmra.mrb[64].mxu1 %v9006_v5  ;;  %v18521_v5 = vand.u32 4294901760, %v1091_v30  ;;  %23253 = vst [vmem:[#allocation297_spill] sm:$0xff] %v18525_v27  ;;  %v23257_v54 = vand.u32 4294901760, %v23256_v55  ;;  %v18556_v55 = vsub.f32 %v1093_v52, %v18525_v27 }
 0x44a   :  { %10978 = vmatprep.mubr.f32.mxu1 %v9016_v60  ;;  %12154 = vmatpush3.bf16.msra.mxu1 %v18342_v0  ;;  %v23254_v60 = vand.u32 4294901760, %v23068_v38  ;;  %v18535_v0 = vsub.f32 %v1089_v6, %v18505_v48  ;;  %23259 = vst [vmem:[#allocation55_spill] sm:$0xff] %v18537_v14  ;;  %v1097_v38 = vsel %vm1066_vm0, %v13572_v11, 0  ;;  %v9056_v44 = vand.u32 4294901760, %v9055_v53 }
 0x44b   :  { %23252 = vst [vmem:[#allocation293_spill] sm:$0xff] %v18521_v5  ;;  %7765 = vmatmul.mubr.f32.gmra.mrb[62].mxu0 %v17857_v1  ;;  %12156 = vmatprep.subr.bf16.mxu1 %v18371_v12  ;;  %v12052_v18 = vpack.c.bf16 %v23257_v54, %v23255_v33  ;;  %v9065_v1 = vsub.f32 %v18487_v45, %v23260_v56  ;;  %v13574_v33 = vld [vmem:[#allocation2 + $0x3d0] ss:$28 sps:$4 sm:$0xff]   ;;  %23265 = vst [vmem:[#allocation308_spill] sm:$0xff] %v18556_v55  ;;  %v1099_v53 = vsel %vm1066_vm0, %v13573_v42, 0 }
 0x44c   :  { %7869 = vmatprep.mubr.f32.mxu0 %v23254_v60  ;;  %23258 = vst [vmem:[#allocation300_spill] sm:$0xff] %v18535_v0  ;;  %v23261_v60 = vand.u32 4294901760, %v18497_v58  ;;  %v18548_v6 = vsub.f32 %v1091_v30, %v18521_v5  ;;  %v9085_v56 = vsub.f32 %v18501_v37, %v23264_v26  ;;  %v23266_v11 = vand.u32 4294901760, %v23075_v39  ;;  %v23267_v30 = vld [vmem:[#allocation30_spill] sm:$0xff] }
 0x44d   :  { %10979 = vmatmul.mubr.f32.gmra.mrb[66].mxu1 %v9026_v63  ;;  %v23263_v63 = vand.u32 4294901760, %v23073_v7  ;;  %v18567_v45 = vsub.f32 %v1095_v41, %v18537_v14  ;;  %v18569_v26 = vand.u32 4294901760, %v1097_v38  ;;  %v9066_v52 = vand.u32 4294901760, %v9065_v1  ;;  %v13576_v41 = vld [vmem:[#allocation2 + $0x440] ss:$28 sps:$4 sm:$0xff]  }
 0x44e   :  { %10981 = vmatprep.mubr.f32.mxu1 %v9036_v62  ;;  %v9075_v54 = vsub.f32 %v18497_v58, %v23261_v60  ;;  %23262 = vst [vmem:[#allocation303_spill] sm:$0xff] %v18548_v6  ;;  %v13575_v62 = vld [vmem:[#allocation2 + $0x408] ss:$28 sps:$4 sm:$0xff]   ;;  %v23268_v60 = vand.u32 4294901760, %v23267_v30  ;;  %v23270_v58 = vand.u32 4294901760, %v23269_v36  ;;  %v23275_v30 = vand.u32 4294901760, %v23080_v17 }
 0x44f   :  { %7873 = vmatmul.mubr.f32.vlgmr.msra.gmra.mrb[0].mxu0 %v23263_v63  ;;  %23271 = vst [vmem:[#allocation311_spill] sm:$0xff] %v18567_v45  ;;  %23272 = vst [vmem:[#allocation313_spill] sm:$0xff] %v18569_v26  ;;  %v21287_v1 = vand.u32 4294901760, %v18556_v55  ;;  %v13577_v63 = vld [vmem:[#allocation2 + $0x478] ss:$28 sps:$4 sm:$0xff]  }
 0x450   :  { %12053 = vmatpush1.bf16.msra.mxu0 %v12052_v18  ;;  %7880 = vmatprep.mubr.f32.mxu0 %v23266_v11  ;;  %v12055_v7 = vpack.c.bf16 %v23270_v58, %v23268_v60  ;;  %v23273_v18 = vand.u32 4294901760, %v18513_v23  ;;  %v9076_v42 = vand.u32 4294901760, %v9075_v54  ;;  %v18576_v58 = vand.u32 4294901760, %v1099_v53  ;;  %v23278_v36 = vld [vmem:[#allocation47_spill] sm:$0xff] }
 0x451   :  { %10982 = vmatmul.mubr.f32.gmra.mrb[68].mxu1 %v9046_v34  ;;  %12054 = vmatprep.subr.bf16.mxu0 %v21411_v40  ;;  %v1101_v11 = vsel %vm1066_vm0, %v13574_v33, 0  ;;  %v9086_v34 = vand.u32 4294901760, %v9085_v56  ;;  %v1103_v60 = vsel %vm1066_vm0, %v13575_v62, 0  ;;  %v23279_v33 = vand.u32 4294901760, %v23278_v36 }
 0x452   :  { %v9095_v39 = vsub.f32 %v18513_v23, %v23273_v18  ;;  %10984 = vmatprep.mubr.f32.mxu1 %v9056_v44  ;;  %23274 = vst [vmem:[#allocation314_spill] sm:$0xff] %v18576_v58  ;;  %v23276_v18 = vand.u32 4294901760, %v23081_v24  ;;  %v23277_v44 = vand.u32 4294901760, %v18535_v0  ;;  %v23280_v23 = vld [vmem:[#allocation48_spill] sm:$0xff]  ;;  %v21286_v56 = vand.u32 4294901760, %v18567_v45 }
 0x453   :  { %7884 = vmatmul.mubr.f32.gmra.mrb[2].mxu0 %v23275_v30  ;;  %v23281_v37 = vand.u32 4294901760, %v23280_v23  ;;  %v18594_v30 = vsub.f32 %v1097_v38, %v18569_v26  ;;  %v18597_v24 = vand.u32 4294901760, %v1101_v11  ;;  %v18603_v23 = vsub.f32 %v1099_v53, %v18576_v58 }
 0x454   :  { %7891 = vmatprep.mubr.f32.mxu0 %v23276_v18  ;;  %12056 = vmatpush1.bf16.msra.mxu0 %v12055_v7  ;;  %v9105_v54 = vsub.f32 %v18535_v0, %v23277_v44  ;;  %v9096_v62 = vand.u32 4294901760, %v9095_v39  ;;  %v13578_v7 = vld [vmem:[#allocation2 + $0x4b0] ss:$28 sps:$4 sm:$0xff]   ;;  %v13579_v18 = vld [vmem:[#allocation2 + $0x4e8] ss:$28 sps:$4 sm:$0xff]   ;;  %v23284_v44 = vand.u32 4294901760, %v18548_v6  ;;  %v9125_v39 = vsub.f32 %v18556_v55, %v21287_v1 }
 0x455   :  { %v12058_v17 = vpack.c.bf16 %v23281_v37, %v23279_v33  ;;  %23282 = vst [vmem:[#allocation11_spill] sm:$0xff] %v18594_v30  ;;  %10985 = vmatmul.mubr.f32.gmra.mrb[70].mxu1 %v9066_v52  ;;  %12057 = vmatprep.subr.bf16.mxu0 %v21411_v40  ;;  %23283 = vst [vmem:[#allocation17_spill] sm:$0xff] %v18597_v24  ;;  %v18605_v37 = vand.u32 4294901760, %v1103_v60  ;;  %v1105_v38 = vsel %vm1066_vm0, %v13576_v41, 0  ;;  %v23287_v52 = vand.u32 4294901760, %v23087_v8 }
 0x456   :  { %10987 = vmatprep.mubr.f32.mxu1 %v9076_v42  ;;  %v9115_v36 = vsub.f32 %v18548_v6, %v23284_v44  ;;  %23285 = vst [vmem:[#allocation27_spill] sm:$0xff] %v18603_v23  ;;  %v1107_v42 = vsel %vm1066_vm0, %v13577_v63, 0  ;;  %v23288_v33 = vand.u32 4294901760, %v23088_v25  ;;  %v9106_v44 = vand.u32 4294901760, %v9105_v54 }
 0x457   :  { %23286 = vst [vmem:[#allocation37_spill] sm:$0xff] %v18605_v37  ;;  %7895 = vmatmul.mubr.f32.gmra.mrb[4].mxu0 %v23287_v52  ;;  %v9135_v53 = vsub.f32 %v18567_v45, %v21286_v56  ;;  %v21292_v41 = vand.u32 4294901760, %v18594_v30  ;;  %v23289_v8 = vand.u32 4294901760, %v22908_v20  ;;  %v23290_v52 = vld [vmem:[#allocation63_spill] sm:$0xff]  ;;  %v18626_v63 = vsub.f32 %v1101_v11, %v18597_v24  ;;  %v23302_v20 = vld [vmem:[#allocation78_spill] sm:$0xff] }
 0x458   :  { %7902 = vmatprep.mubr.f32.mxu0 %v23288_v33  ;;  %12059 = vmatpush1.bf16.msra.mxu0 %v12058_v17  ;;  %v23291_v6 = vand.u32 4294901760, %v23290_v52  ;;  %v18628_v25 = vand.u32 4294901760, %v1105_v38  ;;  %v1109_v54 = vsel %vm1066_vm0, %v13578_v7, 0  ;;  %v1111_v17 = vsel %vm1066_vm0, %v13579_v18, 0  ;;  %v13580_v33 = vld [vmem:[#allocation2 + $0x520] ss:$28 sps:$4 sm:$0xff]  }
 0x459   :  { %10988 = vmatmul.mubr.f32.gmra.mrb[72].mxu1 %v9086_v34  ;;  %12060 = vmatprep.subr.bf16.mxu0 %v21411_v40  ;;  %23292 = vst [vmem:[#allocation42_spill] sm:$0xff] %v18626_v63  ;;  %v9116_v56 = vand.u32 4294901760, %v9115_v36  ;;  %v18634_v52 = vsub.f32 %v1103_v60, %v18605_v37  ;;  %v13581_v34 = vld [vmem:[#allocation2 + $0x558] ss:$28 sps:$4 sm:$0xff]   ;;  %v23296_v11 = vand.u32 4294901760, %v23094_v47  ;;  %v23298_v7 = vand.u32 4294901760, %v23095_v32 }
 0x45a   :  { %v12061_v0 = vpack.c.bf16 %v23291_v6, %v23289_v8  ;;  %23293 = vst [vmem:[#allocation99_spill] sm:$0xff] %v18628_v25  ;;  %10990 = vmatprep.mubr.f32.mxu1 %v9096_v62  ;;  %v18636_v6 = vand.u32 4294901760, %v1107_v42  ;;  %v9126_v8 = vand.u32 4294901760, %v9125_v39  ;;  %v9145_v62 = vsub.f32 %v18594_v30, %v21292_v41  ;;  %v23300_v60 = vld [vmem:[#allocation77_spill] sm:$0xff]  ;;  %v23314_v32 = vld [vmem:[#allocation96_spill] sm:$0xff] }
 0x45b   :  { %23294 = vst [vmem:[#allocation58_spill] sm:$0xff] %v18634_v52  ;;  %7906 = vmatmul.mubr.f32.gmra.mrb[6].mxu0 %v23296_v11  ;;  %v18647_v18 = vand.u32 4294901760, %v1109_v54  ;;  %v23301_v36 = vand.u32 4294901760, %v23300_v60  ;;  %v23303_v45 = vand.u32 4294901760, %v23302_v20  ;;  %v18653_v47 = vand.u32 4294901760, %v1111_v17 }
 0x45c   :  { %23295 = vst [vmem:[#allocation64_spill] sm:$0xff] %v18636_v6  ;;  %v18640_v1 = vpop.f32.mrb[0].mxu1  ;;  %7913 = vmatprep.mubr.f32.mxu0 %v23298_v7  ;;  %12062 = vmatpush1.bf16.msra.mxu0 %v12061_v0  ;;  %v9136_v11 = vand.u32 4294901760, %v9135_v53  ;;  %v18657_v7 = vsub.f32 %v1105_v38, %v18628_v25  ;;  %v1113_v0 = vsel %vm1066_vm0, %v13580_v33, 0  ;;  %v23306_v60 = vand.u32 4294901760, %v18603_v23 }
 0x45d   :  { %23297 = vst [vmem:[#allocation73_spill] sm:$0xff] %v18640_v1  ;;  %23299 = vst [vmem:[#allocation81_spill] sm:$0xff] %v18647_v18  ;;  %v12064_v55 = vpack.c.bf16 %v23303_v45, %v23301_v36  ;;  %v3839_v39 = vpop.f32.mrb[1].mxu1  ;;  %10991 = vmatmul.mubr.f32.gmra.mrb[74].mxu1 %v9106_v44  ;;  %12063 = vmatprep.subr.bf16.mxu0 %v21411_v40  ;;  %v18666_v36 = vsub.f32 %v1107_v42, %v18636_v6  ;;  %v1115_v44 = vsel %vm1066_vm0, %v13581_v34, 0  ;;  %v13582_v53 = vld [vmem:[#allocation2 + $0x590] ss:$28 sps:$4 sm:$0xff]  }
 0x45e   :  { %23304 = vst [vmem:[#allocation202_spill] sm:$0xff] %v18653_v47  ;;  %23305 = vst [vmem:[#allocation89_spill] sm:$0xff] %v18657_v7  ;;  %10993 = vmatprep.mubr.f32.mxu1 %v9116_v56  ;;  %v9155_v20 = vsub.f32 %v18603_v23, %v23306_v60  ;;  %v23308_v38 = vand.u32 4294901760, %v23101_v28  ;;  %v13583_v39 = vld [vmem:[#allocation2 + $0x5c8] ss:$28 sps:$4 sm:$0xff]   ;;  %v23310_v56 = vand.u32 4294901760, %v23102_v19  ;;  %v18676_v33 = vsub.f32 %v1109_v54, %v18647_v18 }
 0x45f   :  { %23307 = vst [vmem:[#allocation203_spill] sm:$0xff] %v18666_v36  ;;  %v18679_v60 = vsub.f32 %v1111_v17, %v18653_v47  ;;  %v18681_v42 = vand.u32 4294901760, %v1113_v0  ;;  %v23312_v34 = vld [vmem:[#allocation95_spill] sm:$0xff]  ;;  %v23315_v28 = vand.u32 4294901760, %v23314_v32  ;;  %v23316_v19 = vand.u32 4294901760, %v18626_v63 }
 0x460   :  { %7917 = vmatmul.mubr.f32.gmra.mrb[8].mxu0 %v23308_v38  ;;  %v18671_v41 = vpop.f32.mrb[2].mxu1  ;;  %v23313_v45 = vand.u32 4294901760, %v23312_v34  ;;  %v9156_v17 = vand.u32 4294901760, %v9155_v20  ;;  %v23318_v34 = vand.u32 4294901760, %v18634_v52  ;;  %v21305_v20 = vand.u32 4294901760, %v18676_v33 }
 0x461   :  { %23309 = vst [vmem:[#allocation208_spill] sm:$0xff] %v18671_v41  ;;  %7924 = vmatprep.mubr.f32.mxu0 %v23310_v56  ;;  %12065 = vmatpush1.bf16.msra.mxu0 %v12064_v55  ;;  %23311 = vst [vmem:[#allocation97_spill] sm:$0xff] %v18681_v42  ;;  %v3854_v1 = vpop.f32.mrb[3].mxu1  ;;  %v9146_v41 = vand.u32 4294901760, %v9145_v62  ;;  %v9165_v56 = vsub.f32 %v18626_v63, %v23316_v19  ;;  %v18691_v55 = vand.u32 4294901760, %v1115_v44 }
 0x462   :  { %v12067_v38 = vpack.c.bf16 %v23315_v28, %v23313_v45  ;;  %10994 = vmatmul.mubr.f32.gmra.mrb[76].mxu1 %v9126_v8  ;;  %12066 = vmatprep.subr.bf16.mxu0 %v21411_v40  ;;  %v9175_v32 = vsub.f32 %v18634_v52, %v23318_v34  ;;  %v1117_v8 = vsel %vm1066_vm0, %v13582_v53, 0  ;;  %v13584_v62 = vld [vmem:[#allocation2 + $0x600] ss:$28 sps:$4 sm:$0xff]   ;;  %v23319_v45 = vand.u32 4294901760, %v23108_v43  ;;  %v13585_v19 = vld [vmem:[#allocation2 + $0x638] ss:$28 sps:$4 sm:$0xff]  }
 0x463   :  { %23317 = vst [vmem:[#allocation209_spill] sm:$0xff] %v18691_v55  ;;  %10996 = vmatprep.mubr.f32.mxu1 %v9136_v11  ;;  %v1119_v28 = vsel %vm1066_vm0, %v13583_v39, 0  ;;  %v23321_v11 = vand.u32 4294901760, %v23109_v49  ;;  %v18709_v1 = vsub.f32 %v1113_v0, %v18681_v42  ;;  %v23322_v53 = vld [vmem:[#allocation101_spill] sm:$0xff]  ;;  %v23324_v43 = vld [vmem:[#allocation102_spill] sm:$0xff]  ;;  %v9166_v23 = vand.u32 4294901760, %v9165_v56 }
 0x464   :  { %7928 = vmatmul.mubr.f32.gmra.mrb[10].mxu0 %v23319_v45  ;;  %v18702_v54 = vpop.f32.mrb[4].mxu1  ;;  %v23323_v52 = vand.u32 4294901760, %v23322_v53  ;;  %v23325_v45 = vand.u32 4294901760, %v23324_v43  ;;  %v18721_v34 = vand.u32 4294901760, %v1117_v8  ;;  %v9176_v0 = vand.u32 4294901760, %v9175_v32 }
 0x465   :  { %23320 = vst [vmem:[#allocation214_spill] sm:$0xff] %v18702_v54  ;;  %7935 = vmatprep.mubr.f32.mxu0 %v23321_v11  ;;  %12068 = vmatpush1.bf16.msra.mxu0 %v12067_v38  ;;  %v3869_v39 = vpop.f32.mrb[5].mxu1  ;;  %v23326_v54 = vand.u32 4294901760, %v18657_v7  ;;  %v18719_v11 = vsub.f32 %v1115_v44, %v18691_v55  ;;  %v23328_v38 = vand.u32 4294901760, %v18666_v36  ;;  %v18727_v53 = vand.u32 4294901760, %v1119_v28 }
 0x466   :  { %v12070_v63 = vpack.c.bf16 %v23325_v45, %v23323_v52  ;;  %10997 = vmatmul.mubr.f32.gmra.mrb[78].mxu1 %v9146_v41  ;;  %23327 = vst [vmem:[#allocation105_spill] sm:$0xff] %v18721_v34  ;;  %12069 = vmatprep.subr.bf16.mxu0 %v21411_v40  ;;  %v1121_v41 = vsel %vm1066_vm0, %v13584_v62, 0  ;;  %v13586_v56 = vld [vmem:[#allocation2 + $0x670] ss:$28 sps:$4 sm:$0xff]   ;;  %v1123_v44 = vsel %vm1066_vm0, %v13585_v19, 0  ;;  %v9205_v32 = vsub.f32 %v18676_v33, %v21305_v20 }
 0x467   :  { %v9185_v49 = vsub.f32 %v18657_v7, %v23326_v54  ;;  %10999 = vmatprep.mubr.f32.mxu1 %v9156_v17  ;;  %v9195_v52 = vsub.f32 %v18666_v36, %v23328_v38  ;;  %23329 = vst [vmem:[#allocation216_spill] sm:$0xff] %v18727_v53  ;;  %v23330_v54 = vand.u32 4294901760, %v23115_v59  ;;  %v13587_v43 = vld [vmem:[#allocation2 + $0x6a8] ss:$28 sps:$4 sm:$0xff]   ;;  %v23332_v17 = vand.u32 4294901760, %v23116_v16 }
 0x468   :  { %v18733_v45 = vpop.f32.mrb[6].mxu1  ;;  %v23333_v39 = vand.u32 4294901760, %v18679_v60  ;;  %v21313_v38 = vand.u32 4294901760, %v18709_v1  ;;  %v23334_v59 = vld [vmem:[#allocation109_spill] sm:$0xff]  ;;  %v23336_v19 = vld [vmem:[#allocation110_spill] sm:$0xff]  ;;  %v18750_v30 = vsub.f32 %v1117_v8, %v18721_v34  ;;  %v18752_v20 = vand.u32 4294901760, %v1121_v41 }
 0x469   :  { %7939 = vmatmul.mubr.f32.gmra.mrb[12].mxu0 %v23330_v54  ;;  %23331 = vst [vmem:[#allocation220_spill] sm:$0xff] %v18733_v45  ;;  %v23335_v54 = vand.u32 4294901760, %v23334_v59  ;;  %v23337_v36 = vand.u32 4294901760, %v23336_v19  ;;  %v3884_v45 = vpop.f32.mrb[7].mxu1  ;;  %v9186_v16 = vand.u32 4294901760, %v9185_v49  ;;  %v18758_v59 = vand.u32 4294901760, %v1123_v44 }
 0x46a   :  { %7946 = vmatprep.mubr.f32.mxu0 %v23332_v17  ;;  %v9215_v62 = vsub.f32 %v18679_v60, %v23333_v39  ;;  %12071 = vmatpush1.bf16.msra.mxu0 %v12070_v63  ;;  %23338 = vst [vmem:[#allocation113_spill] sm:$0xff] %v18752_v20  ;;  %v9196_v39 = vand.u32 4294901760, %v9195_v52  ;;  %v18756_v63 = vsub.f32 %v1119_v28, %v18727_v53  ;;  %v23340_v49 = vand.u32 4294901760, %v23122_v31  ;;  %v23344_v19 = vld [vmem:[#allocation120_spill] sm:$0xff] }
 0x46b   :  { %v12073_v7 = vpack.c.bf16 %v23337_v36, %v23335_v54  ;;  %11000 = vmatmul.mubr.f32.gmra.mrb[80].mxu1 %v9166_v23  ;;  %12072 = vmatprep.subr.bf16.mxu0 %v21411_v40  ;;  %23339 = vst [vmem:[#allocation223_spill] sm:$0xff] %v18758_v59  ;;  %v1125_v36 = vsel %vm1066_vm0, %v13586_v56, 0  ;;  %v13588_v23 = vld [vmem:[#allocation2 + $0x6e0] ss:$28 sps:$4 sm:$0xff]   ;;  %v1127_v8 = vsel %vm1066_vm0, %v13587_v43, 0  ;;  %v23342_v54 = vand.u32 4294901760, %v23123_v9 }
 0x46c   :  { %11002 = vmatprep.mubr.f32.mxu1 %v9176_v0  ;;  %v18764_v45 = vpop.f32.mrb[8].mxu1  ;;  %v9206_v0 = vand.u32 4294901760, %v9205_v32  ;;  %v9216_v52 = vand.u32 4294901760, %v9215_v62  ;;  %v9225_v28 = vsub.f32 %v18709_v1, %v21313_v38  ;;  %v23343_v56 = vand.u32 4294901760, %v22937_v21 }
 0x46d   :  { %7950 = vmatmul.mubr.f32.gmra.mrb[14].mxu0 %v23340_v49  ;;  %23341 = vst [vmem:[#allocation225_spill] sm:$0xff] %v18764_v45  ;;  %v23345_v17 = vand.u32 4294901760, %v23344_v19  ;;  %v3899_v49 = vpop.f32.mrb[9].mxu1  ;;  %v23346_v43 = vand.u32 4294901760, %v18719_v11  ;;  %v21312_v9 = vand.u32 4294901760, %v18750_v30  ;;  %v18780_v32 = vsub.f32 %v1121_v41, %v18752_v20 }
 0x46e   :  { %7957 = vmatprep.mubr.f32.mxu0 %v23342_v54  ;;  %12074 = vmatpush1.bf16.msra.mxu0 %v12073_v7  ;;  %v18782_v62 = vand.u32 4294901760, %v1125_v36  ;;  %v21311_v21 = vand.u32 4294901760, %v18756_v63  ;;  %v18787_v7 = vsub.f32 %v1123_v44, %v18758_v59  ;;  %v23349_v54 = vand.u32 4294901760, %v23129_v57 }
 0x46f   :  { %v12076_v31 = vpack.c.bf16 %v23345_v17, %v23343_v56  ;;  %11003 = vmatmul.mubr.f32.gmra.mrb[82].mxu1 %v9186_v16  ;;  %v9235_v45 = vsub.f32 %v18719_v11, %v23346_v43  ;;  %12075 = vmatprep.subr.bf16.mxu0 %v21411_v40  ;;  %v18789_v16 = vand.u32 4294901760, %v1127_v8  ;;  %v1129_v17 = vsel %vm1066_vm0, %v13588_v23, 0 }
 0x470   :  { %23347 = vst [vmem:[#allocation121_spill] sm:$0xff] %v18782_v62  ;;  %11005 = vmatprep.mubr.f32.mxu1 %v9196_v39  ;;  %v18794_v56 = vpop.f32.mrb[10].mxu1  ;;  %v23351_v41 = vand.u32 4294901760, %v23130_v22  ;;  %v9226_v19 = vand.u32 4294901760, %v9225_v28  ;;  %v23352_v39 = vand.u32 4294901760, %v22943_v46  ;;  %v23353_v49 = vand.u32 4294901760, %v22944_v50 }
 0x471   :  { %23348 = vst [vmem:[#allocation227_spill] sm:$0xff] %v18789_v16  ;;  %7961 = vmatmul.mubr.f32.gmra.mrb[16].mxu0 %v23349_v54  ;;  %23350 = vst [vmem:[#allocation232_spill] sm:$0xff] %v18794_v56  ;;  %v3914_v43 = vpop.f32.mrb[11].mxu1  ;;  %v9245_v23 = vsub.f32 %v18750_v30, %v21312_v9  ;;  %v21310_v57 = vand.u32 4294901760, %v18780_v32  ;;  %v18807_v54 = vsub.f32 %v1125_v36, %v18782_v62  ;;  %v18809_v22 = vand.u32 4294901760, %v1129_v17  ;;  %v23424_v9 = vld [vmem:[#allocation269_spill] sm:$0xff] }
 0x472   :  { %7968 = vmatprep.mubr.f32.mxu0 %v23351_v41  ;;  %12077 = vmatpush1.bf16.msra.mxu0 %v12076_v31  ;;  %v12079_v44 = vpack.c.bf16 %v23353_v49, %v23352_v39  ;;  %v9236_v46 = vand.u32 4294901760, %v9235_v45  ;;  %v9255_v50 = vsub.f32 %v18756_v63, %v21311_v21  ;;  %v18817_v28 = vsub.f32 %v1127_v8, %v18789_v16  ;;  %v23419_v21 = vld [vmem:[#allocation195_spill] sm:$0xff]  ;;  %v23503_v56 = vld [vmem:[#allocation168_spill] sm:$0xff] }
 0x473   :  { %11006 = vmatmul.mubr.f32.gmra.mrb[84].mxu1 %v9206_v0  ;;  %23354 = vst [vmem:[#allocation136_spill] sm:$0xff] %v18809_v22  ;;  %12078 = vmatprep.subr.bf16.mxu0 %v21411_v40  ;;  %v21306_v0 = vand.u32 4294901760, %v18787_v7  ;;  %v23355_v31 = vand.u32 4294901760, %v23136_v61  ;;  %v23357_v41 = vand.u32 4294901760, %v23137_v35  ;;  %v23358_v45 = vand.u32 4294901760, %v22949_v3 }
 0x474   :  { %11008 = vmatprep.mubr.f32.mxu1 %v9216_v52  ;;  %v18821_v36 = vpop.f32.mrb[12].mxu1  ;;  %v23359_v52 = vand.u32 4294901760, %v22950_v2  ;;  %v9246_v43 = vand.u32 4294901760, %v9245_v23  ;;  %v9265_v8 = vsub.f32 %v18780_v32, %v21310_v57  ;;  %v21307_v61 = vand.u32 4294901760, %v18807_v54 }
 0x475   :  { %7972 = vmatmul.mubr.f32.gmra.mrb[18].mxu0 %v23355_v31  ;;  %23356 = vst [vmem:[#allocation234_spill] sm:$0xff] %v18821_v36  ;;  %v3929_v49 = vpop.f32.mrb[13].mxu1  ;;  %v18834_v31 = vsub.f32 %v1129_v17, %v18809_v22  ;;  %v9256_v35 = vand.u32 4294901760, %v9255_v50  ;;  %v9275_v2 = vsub.f32 %v18787_v7, %v21306_v0  ;;  %v21308_v3 = vand.u32 4294901760, %v18817_v28  ;;  %v23363_v17 = vld [vmem:[#allocation131_spill] sm:$0xff]  ;;  %v23502_v36 = vld [vmem:[#allocation237_spill] sm:$0xff] }
 0x476   :  { %7979 = vmatprep.mubr.f32.mxu0 %v23357_v41  ;;  %12080 = vmatpush1.bf16.msra.mxu0 %v12079_v44  ;;  %v12082_v39 = vpack.c.bf16 %v23359_v52, %v23358_v45  ;;  %v23362_v23 = vand.u32 4294901760, %v23148_v13  ;;  %v23364_v41 = vand.u32 4294901760, %v23363_v17  ;;  %v23365_v45 = vld [vmem:[#allocation143_spill] sm:$0xff]  ;;  %v9266_v49 = vand.u32 4294901760, %v9265_v8 }
 0x477   :  { %11009 = vmatmul.mubr.f32.gmra.mrb[86].mxu1 %v9226_v19  ;;  %12081 = vmatprep.subr.bf16.mxu0 %v21411_v40  ;;  %v23360_v19 = vand.u32 4294901760, %v23143_v29  ;;  %v9285_v0 = vsub.f32 %v18807_v54, %v21307_v61  ;;  %v21309_v29 = vand.u32 4294901760, %v18834_v31  ;;  %v9276_v13 = vand.u32 4294901760, %v9275_v2 }
 0x478   :  { %11011 = vmatprep.mubr.f32.mxu1 %v9236_v46  ;;  %v18843_v44 = vpop.f32.mrb[14].mxu1  ;;  %v23366_v46 = vand.u32 4294901760, %v23365_v45  ;;  %v23425_v38 = vand.u32 4294901760, %v23424_v9  ;;  %v23431_v9 = vld [vmem:[#allocation193_spill] sm:$0xff] }
 0x479   :  { %7983 = vmatmul.mubr.f32.gmra.mrb[20].mxu0 %v23360_v19  ;;  %23361 = vst [vmem:[#allocation238_spill] sm:$0xff] %v18843_v44  ;;  %v3944_v52 = vpop.f32.mrb[15].mxu1  ;;  %v23367_v19 = vld [vmem:[#allocation108_spill] sm:$0xff]  ;;  %v9286_v2 = vand.u32 4294901760, %v9285_v0  ;;  %v23383_v0 = vld [vmem:[#allocation142_spill] sm:$0xff] }
 0x47a   :  { %7990 = vmatprep.mubr.f32.mxu0 %v23362_v23  ;;  %12083 = vmatpush1.bf16.msra.mxu0 %v12082_v39  ;;  %v12085_v50 = vpack.c.bf16 %v23366_v46, %v23364_v41  ;;  %v9295_v39 = vsub.f32 %v18817_v28, %v21308_v3  ;;  %v23368_v23 = vand.u32 4294901760, %v23367_v19  ;;  %v23372_v41 = vld [vmem:[#allocation147_spill] sm:$0xff]  ;;  %v23374_v46 = vld [vmem:[#allocation132_spill] sm:$0xff]  ;;  %v9305_v3 = vsub.f32 %v18834_v31, %v21309_v29  ;;  %v23500_v44 = vld [vmem:[#allocation106_spill] sm:$0xff] }
 0x47b   :  { %11012 = vmatmul.mubr.f32.gmra.mrb[88].mxu1 %v9246_v43  ;;  %12084 = vmatprep.subr.bf16.mxu0 %v21411_v40  ;;  %v23370_v43 = vld [vmem:[#allocation124_spill] sm:$0xff]  ;;  %v23373_v45 = vand.u32 4294901760, %v23372_v41  ;;  %v23375_v52 = vand.u32 4294901760, %v23374_v46  ;;  %v23384_v46 = vand.u32 4294901760, %v23383_v0 }
 0x47c   :  { %11014 = vmatprep.mubr.f32.mxu1 %v9256_v35  ;;  %v18861_v17 = vpop.f32.mrb[16].mxu1  ;;  %v23371_v8 = vand.u32 4294901760, %v23370_v43  ;;  %v9296_v19 = vand.u32 4294901760, %v9295_v39  ;;  %v9306_v29 = vand.u32 4294901760, %v9305_v3  ;;  %v23394_v3 = vld [vmem:[#allocation176_spill] sm:$0xff] }
 0x47d   :  { %7994 = vmatmul.mubr.f32.gmra.mrb[22].mxu0 %v23368_v23  ;;  %23369 = vst [vmem:[#allocation24_spill] sm:$0xff] %v18861_v17  ;;  %v12088_v61 = vpack.c.bf16 %v23375_v52, %v23373_v45  ;;  %v3959_v35 = vpop.f32.mrb[17].mxu1  ;;  %v23376_v23 = vld [vmem:[#allocation163_spill] sm:$0xff]  ;;  %v23499_v17 = vld [vmem:[#allocation98_spill] sm:$0xff] }
 0x47e   :  { %8001 = vmatprep.mubr.f32.mxu0 %v23371_v8  ;;  %12086 = vmatpush1.bf16.msra.mxu0 %v12085_v50  ;;  %v23377_v43 = vand.u32 4294901760, %v23376_v23  ;;  %v23379_v8 = vld [vmem:[#allocation36_spill] sm:$0xff]  ;;  %v23381_v45 = vld [vmem:[#allocation139_spill] sm:$0xff] }
 0x47f   :  { %11015 = vmatmul.mubr.f32.gmra.mrb[90].mxu1 %v9266_v49  ;;  %12087 = vmatprep.subr.bf16.mxu0 %v21411_v40  ;;  %v23380_v41 = vand.u32 4294901760, %v23379_v8  ;;  %v23382_v49 = vand.u32 4294901760, %v23381_v45  ;;  %v23392_v45 = vld [vmem:[#allocation150_spill] sm:$0xff] }
 0x480   :  { %11017 = vmatprep.mubr.f32.mxu1 %v9276_v13  ;;  %v18875_v50 = vpop.f32.mrb[18].mxu1  ;;  %v23385_v13 = vld [vmem:[#allocation255_spill] sm:$0xff]  ;;  %v23393_v0 = vand.u32 4294901760, %v23392_v45 }
 0x481   :  { %8005 = vmatmul.mubr.f32.gmra.mrb[24].mxu0 %v23377_v43  ;;  %23378 = vst [vmem:[#allocation239_spill] sm:$0xff] %v18875_v50  ;;  %v12091_v52 = vpack.c.bf16 %v23384_v46, %v23382_v49  ;;  %v3974_v35 = vpop.f32.mrb[19].mxu1  ;;  %v23386_v39 = vand.u32 4294901760, %v23385_v13  ;;  %v23388_v43 = vld [vmem:[#allocation165_spill] sm:$0xff]  ;;  %v23398_v13 = vld [vmem:[#allocation258_spill] sm:$0xff]  ;;  %v23498_v50 = vld [vmem:[#allocation164_spill] sm:$0xff] }
 0x482   :  { %8012 = vmatprep.mubr.f32.mxu0 %v23380_v41  ;;  %12089 = vmatpush1.bf16.msra.mxu0 %v12088_v61  ;;  %v23389_v8 = vand.u32 4294901760, %v23388_v43  ;;  %v23390_v61 = vld [vmem:[#allocation149_spill] sm:$0xff] }
 0x483   :  { %11018 = vmatmul.mubr.f32.gmra.mrb[92].mxu1 %v9286_v2  ;;  %12090 = vmatprep.subr.bf16.mxu0 %v21411_v40  ;;  %v23391_v41 = vand.u32 4294901760, %v23390_v61  ;;  %v23395_v2 = vld [vmem:[#allocation54_spill] sm:$0xff] }
 0x484   :  { %11020 = vmatprep.mubr.f32.mxu1 %v9296_v19  ;;  %v18886_v23 = vpop.f32.mrb[20].mxu1  ;;  %v23396_v19 = vand.u32 4294901760, %v23395_v2 }
 0x485   :  { %8016 = vmatmul.mubr.f32.gmra.mrb[26].mxu0 %v23386_v39  ;;  %23387 = vst [vmem:[#allocation243_spill] sm:$0xff] %v18886_v23  ;;  %v12094_v49 = vpack.c.bf16 %v23393_v0, %v23391_v41  ;;  %v3989_v46 = vpop.f32.mrb[21].mxu1  ;;  %v23399_v39 = vand.u32 4294901760, %v23398_v13  ;;  %v23405_v0 = vld [vmem:[#allocation184_spill] sm:$0xff]  ;;  %v23410_v13 = vld [vmem:[#allocation71_spill] sm:$0xff] }
 0x486   :  { %8023 = vmatprep.mubr.f32.mxu0 %v23389_v8  ;;  %12092 = vmatpush1.bf16.msra.mxu0 %v12091_v52  ;;  %v23400_v52 = vld [vmem:[#allocation158_spill] sm:$0xff]  ;;  %v23402_v8 = vld [vmem:[#allocation161_spill] sm:$0xff] }
 0x487   :  { %11021 = vmatmul.mubr.f32.gmra.mrb[94].mxu1 %v9306_v29  ;;  %12093 = vmatprep.subr.bf16.mxu0 %v21411_v40  ;;  %v23401_v43 = vand.u32 4294901760, %v23400_v52  ;;  %v23403_v61 = vand.u32 4294901760, %v23402_v8  ;;  %v23404_v29 = vld [vmem:[#allocation51_spill] sm:$0xff]  ;;  %v23406_v46 = vld [vmem:[#allocation174_spill] sm:$0xff] }
 0x488   :  { %11027 = vmatprep.mubr.f32.mxu1 %v23394_v3  ;;  %v18898_v35 = vpop.f32.mrb[22].mxu1  ;;  %v23407_v2 = vand.u32 4294901760, %v23406_v46  ;;  %v23413_v8 = vld [vmem:[#allocation66_spill] sm:$0xff]  ;;  %v23417_v46 = vld [vmem:[#allocation181_spill] sm:$0xff] }
 0x489   :  { %8027 = vmatmul.mubr.f32.gmra.mrb[28].mxu0 %v23396_v19  ;;  %23397 = vst [vmem:[#allocation246_spill] sm:$0xff] %v18898_v35  ;;  %v12097_v41 = vpack.c.bf16 %v23403_v61, %v23401_v43  ;;  %v4004_v45 = vpop.f32.mrb[23].mxu1  ;;  %v23408_v19 = vld [vmem:[#allocation171_spill] sm:$0xff]  ;;  %v23414_v61 = vld [vmem:[#allocation266_spill] sm:$0xff]  ;;  %v23482_v35 = vld [vmem:[#allocation33_spill] sm:$0xff] }
 0x48a   :  { %8034 = vmatprep.mubr.f32.mxu0 %v23399_v39  ;;  %12095 = vmatpush1.bf16.msra.mxu0 %v12094_v49  ;;  %v23411_v39 = vand.u32 4294901760, %v23410_v13  ;;  %v23412_v43 = vld [vmem:[#allocation187_spill] sm:$0xff]  ;;  %v23420_v13 = vld [vmem:[#allocation198_spill] sm:$0xff]  ;;  %v23483_v23 = vand.u32 4294901760, %v23482_v35 }
 0x48b   :  { %11028 = vmatmul.mubr.f32.vlgmr.msra.gmra.mrb[96].mxu1 %v23404_v29  ;;  %12096 = vmatprep.subr.bf16.mxu0 %v21411_v40  ;;  %v23493_v35 = vld [vmem:[#allocation215_spill] sm:$0xff] }
 0x48c   :  { %11030 = vmatprep.mubr.f32.mxu1 %v23405_v0  ;;  %12158 = vmatpush3.bf16.msra.mxu1 %v18371_v12  ;;  %v18913_v49 = vpop.f32.mrb[24].mxu1  ;;  %v23415_v12 = vand.u32 4294901760, %v23414_v61 }
 0x48d   :  { %8038 = vmatmul.mubr.f32.gmra.mrb[30].mxu0 %v23407_v2  ;;  %12160 = vmatprep.subr.bf16.mxu1 %v23408_v19  ;;  %23409 = vst [vmem:[#allocation12_spill] sm:$0xff] %v18913_v49  ;;  %v4019_v52 = vpop.f32.mrb[25].mxu1  ;;  %v23418_v2 = vand.u32 4294901760, %v23417_v46 }
 0x48e   :  { %8045 = vmatprep.mubr.f32.mxu0 %v23411_v39  ;;  %12098 = vmatpush1.bf16.msra.mxu0 %v12097_v41  ;;  %v23421_v41 = vld [vmem:[#allocation86_spill] sm:$0xff] }
 0x48f   :  { %11031 = vmatmul.mubr.f32.gmra.mrb[98].mxu1 %v23412_v43  ;;  %12099 = vmatprep.subr.bf16.mxu0 %v21411_v40  ;;  %v23422_v39 = vand.u32 4294901760, %v23421_v41 }
 0x490   :  { %11033 = vmatprep.mubr.f32.mxu1 %v23413_v8  ;;  %v18922_v45 = vpop.f32.mrb[26].mxu1 }
 0x491   :  { %8049 = vmatmul.mubr.f32.gmra.mrb[32].mxu0 %v23415_v12  ;;  %23416 = vst [vmem:[#allocation249_spill] sm:$0xff] %v18922_v45  ;;  %v4034_v57 = vpop.f32.mrb[27].mxu1  ;;  %v23426_v12 = vld [vmem:[#allocation186_spill] sm:$0xff] }
 0x492   :  { %8056 = vmatprep.mubr.f32.mxu0 %v23418_v2  ;;  %v23427_v46 = vand.u32 4294901760, %v23426_v12  ;;  %v23429_v2 = vld [vmem:[#allocation277_spill] sm:$0xff] }
 0x493   :  { %11034 = vmatmul.mubr.f32.gmra.mrb[100].mxu1 %v23419_v21  ;;  %v23430_v45 = vand.u32 4294901760, %v23429_v2  ;;  %v23435_v12 = vld [vmem:[#allocation285_spill] sm:$0xff] }
 0x494   :  { %11036 = vmatprep.mubr.f32.mxu1 %v23420_v13  ;;  %v18930_v52 = vpop.f32.mrb[28].mxu1  ;;  %v23437_v2 = vld [vmem:[#allocation201_spill] sm:$0xff] }
 0x495   :  { %8060 = vmatmul.mubr.f32.gmra.mrb[34].mxu0 %v23422_v39  ;;  %23423 = vst [vmem:[#allocation253_spill] sm:$0xff] %v18930_v52  ;;  %v4049_v61 = vpop.f32.mrb[29].mxu1  ;;  %v23433_v39 = vld [vmem:[#allocation283_spill] sm:$0xff] }
 0x496   :  { %8067 = vmatprep.mubr.f32.mxu0 %v23425_v38  ;;  %v23432_v38 = vand.u32 4294901760, %v23431_v9  ;;  %v23434_v61 = vand.u32 4294901760, %v23433_v39 }
 0x497   :  { %11037 = vmatmul.mubr.f32.gmra.mrb[102].mxu1 %v18467_v15 }
 0x498   :  { %11039 = vmatprep.mubr.f32.mxu1 %v18474_v51  ;;  %v18938_v57 = vpop.f32.mrb[30].mxu1 }
 0x499   :  { %8071 = vmatmul.mubr.f32.gmra.mrb[36].mxu0 %v23427_v46  ;;  %23428 = vst [vmem:[#allocation61_spill] sm:$0xff] %v18938_v57  ;;  %v4064_v41 = vpop.f32.mrb[31].mxu1  ;;  %v23436_v46 = vand.u32 4294901760, %v23435_v12  ;;  %v23476_v57 = vld [vmem:[#allocation162_spill] sm:$0xff] }
 0x49a   :  { %8078 = vmatprep.mubr.f32.mxu0 %v23430_v45  ;;  %v23438_v45 = vand.u32 4294901760, %v23437_v2  ;;  %v23439_v41 = vld [vmem:[#allocation205_spill] sm:$0xff] }
 0x49b   :  { %11040 = vmatmul.mubr.f32.gmra.mrb[104].mxu1 %v18478_v10  ;;  %v23440_v9 = vand.u32 4294901760, %v23439_v41 }
 0x49c   :  { %11042 = vmatprep.mubr.f32.mxu1 %v18489_v4 }
 0x49d   :  { %8082 = vmatmul.mubr.f32.gmra.mrb[38].mxu0 %v23432_v38  ;;  %v23441_v38 = vld [vmem:[#allocation294_spill] sm:$0xff] }
 0x49e   :  { %8089 = vmatprep.mubr.f32.mxu0 %v23434_v61  ;;  %v23442_v39 = vand.u32 4294901760, %v23441_v38  ;;  %v23443_v61 = vld [vmem:[#allocation211_spill] sm:$0xff] }
 0x49f   :  { %11043 = vmatmul.mubr.f32.gmra.mrb[106].mxu1 %v18505_v48  ;;  %v23444_v12 = vand.u32 4294901760, %v23443_v61  ;;  %v23563_v48 = vld [vmem:[#allocation53_spill] sm:$0xff] }
 0x4a0   :  { %11045 = vmatprep.mubr.f32.mxu1 %v18521_v5  ;;  %v23538_v5 = vld [vmem:[#allocation57_spill] sm:$0xff] }
 0x4a1   :  { %8093 = vmatmul.mubr.f32.gmra.mrb[40].mxu0 %v23436_v46  ;;  %v23445_v46 = vld [vmem:[#allocation299_spill] sm:$0xff] }
 0x4a2   :  { %8100 = vmatprep.mubr.f32.mxu0 %v23438_v45  ;;  %v23446_v2 = vand.u32 4294901760, %v23445_v46  ;;  %v23447_v45 = vld [vmem:[#allocation217_spill] sm:$0xff] }
 0x4a3   :  { %11046 = vmatmul.mubr.f32.gmra.mrb[108].mxu1 %v18525_v27  ;;  %v23448_v41 = vand.u32 4294901760, %v23447_v45  ;;  %v23528_v27 = vld [vmem:[#allocation42_spill] sm:$0xff] }
 0x4a4   :  { %11048 = vmatprep.mubr.f32.mxu1 %v18537_v14  ;;  %v23526_v14 = vld [vmem:[#allocation29_spill] sm:$0xff] }
 0x4a5   :  { %8104 = vmatmul.mubr.f32.gmra.mrb[42].mxu0 %v23440_v9  ;;  %v23449_v9 = vld [vmem:[#allocation305_spill] sm:$0xff] }
 0x4a6   :  { %8111 = vmatprep.mubr.f32.mxu0 %v23442_v39  ;;  %v23450_v38 = vand.u32 4294901760, %v23449_v9  ;;  %v23451_v39 = vld [vmem:[#allocation222_spill] sm:$0xff] }
 0x4a7   :  { %11049 = vmatmul.mubr.f32.gmra.mrb[110].mxu1 %v18569_v26  ;;  %v23452_v61 = vand.u32 4294901760, %v23451_v39 }
 0x4a8   :  { %11051 = vmatprep.mubr.f32.mxu1 %v18576_v58  ;;  %v23522_v58 = vld [vmem:[#allocation11_spill] sm:$0xff] }
 0x4a9   :  { %8115 = vmatmul.mubr.f32.gmra.mrb[44].mxu0 %v23444_v12  ;;  %v23453_v12 = vld [vmem:[#allocation309_spill] sm:$0xff] }
 0x4aa   :  { %8122 = vmatprep.mubr.f32.mxu0 %v23446_v2  ;;  %v23454_v46 = vand.u32 4294901760, %v23453_v12  ;;  %v23455_v2 = vld [vmem:[#allocation312_spill] sm:$0xff] }
 0x4ab   :  { %11052 = vmatmul.mubr.f32.gmra.mrb[112].mxu1 %v18597_v24  ;;  %v23456_v45 = vand.u32 4294901760, %v23455_v2  ;;  %v23521_v24 = vld [vmem:[#allocation177_spill] sm:$0xff] }
 0x4ac   :  { %11054 = vmatprep.mubr.f32.mxu1 %v18605_v37  ;;  %v23520_v37 = vld [vmem:[#allocation20_spill] sm:$0xff] }
 0x4ad   :  { %8126 = vmatmul.mubr.f32.gmra.mrb[46].mxu0 %v23448_v41  ;;  %v23457_v41 = vld [vmem:[#allocation231_spill] sm:$0xff] }
 0x4ae   :  { %8133 = vmatprep.mubr.f32.mxu0 %v23450_v38  ;;  %v23458_v9 = vand.u32 4294901760, %v23457_v41  ;;  %v23459_v38 = vld [vmem:[#allocation235_spill] sm:$0xff] }
 0x4af   :  { %11055 = vmatmul.mubr.f32.gmra.mrb[114].mxu1 %v18628_v25  ;;  %v23460_v39 = vand.u32 4294901760, %v23459_v38 }
 0x4b0   :  { %11057 = vmatprep.mubr.f32.mxu1 %v18636_v6  ;;  %v23516_v6 = vld [vmem:[#allocation308_spill] sm:$0xff] }
 0x4b1   :  { %8137 = vmatmul.mubr.f32.gmra.mrb[48].mxu0 %v23452_v61  ;;  %v23461_v61 = vld [vmem:[#allocation236_spill] sm:$0xff] }
 0x4b2   :  { %8144 = vmatprep.mubr.f32.mxu0 %v23454_v46  ;;  %v23462_v12 = vand.u32 4294901760, %v23461_v61  ;;  %v23463_v46 = vld [vmem:[#allocation130_spill] sm:$0xff] }
 0x4b3   :  { %11058 = vmatmul.mubr.f32.gmra.mrb[116].mxu1 %v18647_v18  ;;  %v23464_v2 = vand.u32 4294901760, %v23463_v46  ;;  %v23515_v18 = vld [vmem:[#allocation173_spill] sm:$0xff] }
 0x4b4   :  { %11060 = vmatprep.mubr.f32.mxu1 %v18653_v47  ;;  %v23514_v47 = vld [vmem:[#allocation317_spill] sm:$0xff] }
 0x4b5   :  { %8148 = vmatmul.mubr.f32.gmra.mrb[50].mxu0 %v23456_v45  ;;  %v23465_v45 = vld [vmem:[#allocation13_spill] sm:$0xff] }
 0x4b6   :  { %8155 = vmatprep.mubr.f32.mxu0 %v23458_v9  ;;  %v23466_v41 = vand.u32 4294901760, %v23465_v45  ;;  %v23467_v9 = vld [vmem:[#allocation144_spill] sm:$0xff] }
 0x4b7   :  { %11061 = vmatmul.mubr.f32.gmra.mrb[118].mxu1 %v18681_v42  ;;  %v23468_v38 = vand.u32 4294901760, %v23467_v9  ;;  %v23477_v9 = vand.u32 4294901760, %v23476_v57  ;;  %v23488_v57 = vld [vmem:[#allocation210_spill] sm:$0xff] }
 0x4b8   :  { %11063 = vmatprep.mubr.f32.mxu1 %v18691_v55  ;;  %v23512_v55 = vld [vmem:[#allocation250_spill] sm:$0xff] }
 0x4b9   :  { %8159 = vmatmul.mubr.f32.gmra.mrb[52].mxu0 %v23460_v39  ;;  %v23469_v39 = vld [vmem:[#allocation146_spill] sm:$0xff] }
 0x4ba   :  { %8166 = vmatprep.mubr.f32.mxu0 %v23462_v12  ;;  %v23470_v61 = vand.u32 4294901760, %v23469_v39  ;;  %v23471_v12 = vld [vmem:[#allocation21_spill] sm:$0xff] }
 0x4bb   :  { %11064 = vmatmul.mubr.f32.gmra.mrb[120].mxu1 %v18721_v34  ;;  %v23472_v46 = vand.u32 4294901760, %v23471_v12  ;;  %v23484_v12 = vld [vmem:[#allocation59_spill] sm:$0xff]  ;;  %v23510_v34 = vld [vmem:[#allocation300_spill] sm:$0xff] }
 0x4bc   :  { %11066 = vmatprep.mubr.f32.mxu1 %v18727_v53 }
 0x4bd   :  { %8170 = vmatmul.mubr.f32.gmra.mrb[54].mxu0 %v23464_v2  ;;  %v23473_v2 = vld [vmem:[#allocation157_spill] sm:$0xff] }
 0x4be   :  { %8177 = vmatprep.mubr.f32.mxu0 %v23466_v41  ;;  %v23474_v45 = vand.u32 4294901760, %v23473_v2  ;;  %v23475_v41 = vld [vmem:[#allocation180_spill] sm:$0xff]  ;;  %v23486_v2 = vld [vmem:[#allocation167_spill] sm:$0xff] }
 0x4bf   :  { %11067 = vmatmul.mubr.f32.gmra.mrb[122].mxu1 %v18752_v20  ;;  %v23509_v20 = vld [vmem:[#allocation170_spill] sm:$0xff] }
 0x4c0   :  { %11069 = vmatprep.mubr.f32.mxu1 %v18758_v59  ;;  %v23508_v59 = vld [vmem:[#allocation156_spill] sm:$0xff] }
 0x4c1   :  { %8181 = vmatmul.mubr.f32.gmra.mrb[56].mxu0 %v23468_v38  ;;  %v23478_v38 = vld [vmem:[#allocation41_spill] sm:$0xff] }
 0x4c2   :  { %8188 = vmatprep.mubr.f32.mxu0 %v23470_v61  ;;  %v23479_v39 = vand.u32 4294901760, %v23478_v38  ;;  %v23480_v61 = vld [vmem:[#allocation175_spill] sm:$0xff]  ;;  %v23491_v38 = vld [vmem:[#allocation212_spill] sm:$0xff] }
 0x4c3   :  { %11070 = vmatmul.mubr.f32.gmra.mrb[124].mxu1 %v18782_v62  ;;  %v23481_v52 = vand.u32 4294901760, %v23480_v61  ;;  %v23495_v61 = vld [vmem:[#allocation90_spill] sm:$0xff]  ;;  %v23506_v62 = vld [vmem:[#allocation244_spill] sm:$0xff] }
 0x4c4   :  { %11072 = vmatprep.mubr.f32.mxu1 %v18789_v16  ;;  %v23505_v16 = vld [vmem:[#allocation267_spill] sm:$0xff] }
 0x4c5   :  { %8192 = vmatmul.mubr.f32.gmra.mrb[58].mxu0 %v23472_v46  ;;  %v19016_v49 = vpack.c.bf16 %v23481_v52, %v23479_v39  ;;  %v23485_v46 = vld [vmem:[#allocation190_spill] sm:$0xff] }
 0x4c6   :  { %8199 = vmatprep.mubr.f32.mxu0 %v23474_v45  ;;  %v23487_v45 = vand.u32 4294901760, %v23486_v2  ;;  %v23490_v52 = vld [vmem:[#allocation74_spill] sm:$0xff]  ;;  %v23496_v2 = vld [vmem:[#allocation228_spill] sm:$0xff] }
 0x4c7   :  { %11073 = vmatmul.mubr.f32.gmra.mrb[126].mxu1 %v18809_v22  ;;  %v23494_v39 = vld [vmem:[#allocation82_spill] sm:$0xff] }
 0x4c8   :  { %11079 = vmatprep.mubr.f32.mxu1 %v23475_v41  ;;  %v23504_v22 = vld [vmem:[#allocation114_spill] sm:$0xff] }
 0x4c9   :  { %8203 = vmatmul.mubr.f32.gmra.mrb[60].mxu0 %v23477_v9  ;;  %v23489_v9 = vld [vmem:[#allocation191_spill] sm:$0xff] }
 0x4ca   :  { %8210 = vmatprep.mubr.f32.mxu0 %v23483_v23  ;;  %v23492_v23 = vld [vmem:[#allocation154_spill] sm:$0xff] }
 0x4cb   :  { %11080 = vmatmul.mubr.f32.vlgmr.msra.gmra.mrb[128].mxu1 %v23484_v12 }
 0x4cc   :  { %11082 = vmatprep.mubr.f32.mxu1 %v23485_v46  ;;  %12162 = vmatpush3.bf16.msra.mxu1 %v23408_v19 }
 0x4cd   :  { %8214 = vmatmul.mubr.f32.gmra.mrb[62].mxu0 %v23487_v45  ;;  %12164 = vmatprep.subr.bf16.mxu1 %v19016_v49  ;;  %v23497_v45 = vld [vmem:[#allocation230_spill] sm:$0xff] }
 0x4ce   :  { %8380 = vmatprep.mubr.f32.mxu0 %v23488_v57 }
 0x4cf   :  { %11083 = vmatmul.mubr.f32.gmra.mrb[130].mxu1 %v23489_v9 }
 0x4d0   :  { %11085 = vmatprep.mubr.f32.mxu1 %v23490_v52 }
 0x4d1   :  { %8382 = vmatmul.mubr.f32.vlgmr.msra.gmra.mrb[0].mxu0 %v23491_v38 }
 0x4d2   :  { %12101 = vmatpush1.bf16.msra.mxu0 %v23492_v23  ;;  %8387 = vmatprep.mubr.f32.mxu0 %v23493_v35  ;;  %v23501_v23 = vld [vmem:[#allocation233_spill] sm:$0xff] }
 0x4d3   :  { %11086 = vmatmul.mubr.f32.gmra.mrb[132].mxu1 %v23494_v39  ;;  %12102 = vmatprep.subr.bf16.mxu0 %v21411_v40 }
 0x4d4   :  { %11088 = vmatprep.mubr.f32.mxu1 %v23495_v61 }
 0x4d5   :  { %8389 = vmatmul.mubr.f32.gmra.mrb[2].mxu0 %v23496_v2 }
 0x4d6   :  { %8394 = vmatprep.mubr.f32.mxu0 %v23497_v45  ;;  %12104 = vmatpush1.bf16.msra.mxu0 %v23498_v50 }
 0x4d7   :  { %11089 = vmatmul.mubr.f32.gmra.mrb[134].mxu1 %v23499_v17  ;;  %12105 = vmatprep.subr.bf16.mxu0 %v21411_v40 }
 0x4d8   :  { %11091 = vmatprep.mubr.f32.mxu1 %v23500_v44 }
 0x4d9   :  { %8396 = vmatmul.mubr.f32.gmra.mrb[4].mxu0 %v23501_v23 }
 0x4da   :  { %8401 = vmatprep.mubr.f32.mxu0 %v23502_v36  ;;  %12107 = vmatpush1.bf16.msra.mxu0 %v23503_v56  ;;  %v23511_v56 = vld [vmem:[#allocation303_spill] sm:$0xff] }
 0x4db   :  { %11092 = vmatmul.mubr.f32.gmra.mrb[136].mxu1 %v23504_v22  ;;  %12108 = vmatprep.subr.bf16.mxu0 %v21411_v40 }
 0x4dc   :  { %11094 = vmatprep.mubr.f32.mxu1 %v23505_v16  ;;  %v19048_v50 = vpop.f32.mrb[32].mxu1 }
 0x4dd   :  { %8403 = vmatmul.mubr.f32.gmra.mrb[6].mxu0 %v23506_v62  ;;  %23507 = vst [vmem:[#allocation256_spill] sm:$0xff] %v19048_v50  ;;  %v4648_v53 = vpop.f32.mrb[33].mxu1 }
 0x4de   :  { %8408 = vmatprep.mubr.f32.mxu0 %v23508_v59  ;;  %12110 = vmatpush1.bf16.msra.mxu0 %v23509_v20  ;;  %v23517_v20 = vld [vmem:[#allocation311_spill] sm:$0xff] }
 0x4df   :  { %11095 = vmatmul.mubr.f32.gmra.mrb[138].mxu1 %v23510_v34  ;;  %12111 = vmatprep.subr.bf16.mxu0 %v21411_v40  ;;  %v23518_v53 = vld [vmem:[#allocation15_spill] sm:$0xff] }
 0x4e0   :  { %11097 = vmatprep.mubr.f32.mxu1 %v23511_v56  ;;  %v19056_v42 = vpop.f32.mrb[34].mxu1 }
 0x4e1   :  { %8410 = vmatmul.mubr.f32.gmra.mrb[8].mxu0 %v23512_v55  ;;  %23513 = vst [vmem:[#allocation18_spill] sm:$0xff] %v19056_v42  ;;  %v4655_v50 = vpop.f32.mrb[35].mxu1  ;;  %v23534_v55 = vld [vmem:[#allocation89_spill] sm:$0xff] }
 0x4e2   :  { %8415 = vmatprep.mubr.f32.mxu0 %v23514_v47  ;;  %12113 = vmatpush1.bf16.msra.mxu0 %v23515_v18  ;;  %v23523_v18 = vld [vmem:[#allocation27_spill] sm:$0xff]  ;;  %v23524_v50 = vld [vmem:[#allocation245_spill] sm:$0xff]  ;;  %v23532_v47 = vld [vmem:[#allocation44_spill] sm:$0xff] }
 0x4e3   :  { %11098 = vmatmul.mubr.f32.gmra.mrb[140].mxu1 %v23516_v6  ;;  %12114 = vmatprep.subr.bf16.mxu0 %v21411_v40 }
 0x4e4   :  { %11100 = vmatprep.mubr.f32.mxu1 %v23517_v20  ;;  %v19064_v25 = vpop.f32.mrb[36].mxu1 }
 0x4e5   :  { %8417 = vmatmul.mubr.f32.gmra.mrb[10].mxu0 %v23518_v53  ;;  %23519 = vst [vmem:[#allocation260_spill] sm:$0xff] %v19064_v25  ;;  %v4662_v42 = vpop.f32.mrb[37].mxu1  ;;  %v23527_v53 = vld [vmem:[#allocation179_spill] sm:$0xff] }
 0x4e6   :  { %8422 = vmatprep.mubr.f32.mxu0 %v23520_v37  ;;  %12116 = vmatpush1.bf16.msra.mxu0 %v23521_v24  ;;  %v23529_v24 = vld [vmem:[#allocation58_spill] sm:$0xff] }
 0x4e7   :  { %11101 = vmatmul.mubr.f32.gmra.mrb[142].mxu1 %v23522_v58  ;;  %12117 = vmatprep.subr.bf16.mxu0 %v21411_v40  ;;  %v23530_v42 = vld [vmem:[#allocation34_spill] sm:$0xff] }
 0x4e8   :  { %11103 = vmatprep.mubr.f32.mxu1 %v23523_v18  ;;  %v19072_v26 = vpop.f32.mrb[38].mxu1 }
 0x4e9   :  { %8424 = vmatmul.mubr.f32.gmra.mrb[12].mxu0 %v23524_v50  ;;  %23525 = vst [vmem:[#allocation264_spill] sm:$0xff] %v19072_v26  ;;  %v4669_v25 = vpop.f32.mrb[39].mxu1  ;;  %v23533_v50 = vld [vmem:[#allocation182_spill] sm:$0xff] }
 0x4ea   :  { %8429 = vmatprep.mubr.f32.mxu0 %v23526_v14  ;;  %12119 = vmatpush1.bf16.msra.mxu0 %v23527_v53  ;;  %v23535_v25 = vld [vmem:[#allocation203_spill] sm:$0xff]  ;;  %v23536_v53 = vld [vmem:[#allocation49_spill] sm:$0xff] }
 0x4eb   :  { %11104 = vmatmul.mubr.f32.gmra.mrb[144].mxu1 %v23528_v27  ;;  %12120 = vmatprep.subr.bf16.mxu0 %v21411_v40 }
 0x4ec   :  { %11106 = vmatprep.mubr.f32.mxu1 %v23529_v24  ;;  %v19080_v37 = vpop.f32.mrb[40].mxu1 }
 0x4ed   :  { %8431 = vmatmul.mubr.f32.gmra.mrb[14].mxu0 %v23530_v42  ;;  %23531 = vst [vmem:[#allocation270_spill] sm:$0xff] %v19080_v37  ;;  %v4676_v26 = vpop.f32.mrb[41].mxu1  ;;  %v23539_v42 = vld [vmem:[#allocation185_spill] sm:$0xff] }
 0x4ee   :  { %8436 = vmatprep.mubr.f32.mxu0 %v23532_v47  ;;  %12122 = vmatpush1.bf16.msra.mxu0 %v23533_v50  ;;  %v23540_v26 = vld [vmem:[#allocation67_spill] sm:$0xff]  ;;  %v23542_v47 = vld [vmem:[#allocation76_spill] sm:$0xff] }
 0x4ef   :  { %11107 = vmatmul.mubr.f32.gmra.mrb[146].mxu1 %v23534_v55  ;;  %12123 = vmatprep.subr.bf16.mxu0 %v21411_v40 }
 0x4f0   :  { %11109 = vmatprep.mubr.f32.mxu1 %v23535_v25  ;;  %v19088_v14 = vpop.f32.mrb[42].mxu1 }
 0x4f1   :  { %8438 = vmatmul.mubr.f32.gmra.mrb[16].mxu0 %v23536_v53  ;;  %23537 = vst [vmem:[#allocation271_spill] sm:$0xff] %v19088_v14  ;;  %v4683_v37 = vpop.f32.mrb[43].mxu1  ;;  %v23543_v53 = vld [vmem:[#allocation188_spill] sm:$0xff] }
 0x4f2   :  { %8443 = vmatprep.mubr.f32.mxu0 %v23538_v5  ;;  %12125 = vmatpush1.bf16.msra.mxu0 %v23539_v42  ;;  %v23544_v37 = vld [vmem:[#allocation83_spill] sm:$0xff]  ;;  %v23546_v5 = vld [vmem:[#allocation84_spill] sm:$0xff] }
 0x4f3   :  { %11110 = vmatmul.mubr.f32.gmra.mrb[148].mxu1 %v18676_v33  ;;  %12126 = vmatprep.subr.bf16.mxu0 %v21411_v40 }
 0x4f4   :  { %11112 = vmatprep.mubr.f32.mxu1 %v18679_v60  ;;  %v19096_v50 = vpop.f32.mrb[44].mxu1 }
 0x4f5   :  { %8445 = vmatmul.mubr.f32.gmra.mrb[18].mxu0 %v23540_v26  ;;  %23541 = vst [vmem:[#allocation275_spill] sm:$0xff] %v19096_v50  ;;  %v4690_v14 = vpop.f32.mrb[45].mxu1  ;;  %v23547_v26 = vld [vmem:[#allocation192_spill] sm:$0xff] }
 0x4f6   :  { %8450 = vmatprep.mubr.f32.mxu0 %v23542_v47  ;;  %12128 = vmatpush1.bf16.msra.mxu0 %v23543_v53  ;;  %v23548_v14 = vld [vmem:[#allocation107_spill] sm:$0xff] }
 0x4f7   :  { %11113 = vmatmul.mubr.f32.gmra.mrb[150].mxu1 %v18709_v1  ;;  %12129 = vmatprep.subr.bf16.mxu0 %v21411_v40  ;;  %v23550_v47 = vld [vmem:[#allocation115_spill] sm:$0xff] }
 0x4f8   :  { %11115 = vmatprep.mubr.f32.mxu1 %v18719_v11  ;;  %v19104_v42 = vpop.f32.mrb[46].mxu1 }
 0x4f9   :  { %8452 = vmatmul.mubr.f32.gmra.mrb[20].mxu0 %v23544_v37  ;;  %23545 = vst [vmem:[#allocation278_spill] sm:$0xff] %v19104_v42  ;;  %v4697_v50 = vpop.f32.mrb[47].mxu1  ;;  %v23551_v37 = vld [vmem:[#allocation194_spill] sm:$0xff] }
 0x4fa   :  { %8457 = vmatprep.mubr.f32.mxu0 %v23546_v5  ;;  %12131 = vmatpush1.bf16.msra.mxu0 %v23547_v26  ;;  %v23552_v26 = vld [vmem:[#allocation116_spill] sm:$0xff]  ;;  %v23554_v5 = vld [vmem:[#allocation123_spill] sm:$0xff] }
 0x4fb   :  { %11116 = vmatmul.mubr.f32.gmra.mrb[152].mxu1 %v18750_v30  ;;  %12132 = vmatprep.subr.bf16.mxu0 %v21411_v40 }
 0x4fc   :  { %11118 = vmatprep.mubr.f32.mxu1 %v18756_v63  ;;  %v19112_v53 = vpop.f32.mrb[48].mxu1 }
 0x4fd   :  { %8459 = vmatmul.mubr.f32.gmra.mrb[22].mxu0 %v23548_v14  ;;  %23549 = vst [vmem:[#allocation281_spill] sm:$0xff] %v19112_v53  ;;  %v4704_v42 = vpop.f32.mrb[49].mxu1  ;;  %v23555_v14 = vld [vmem:[#allocation197_spill] sm:$0xff] }
 0x4fe   :  { %8464 = vmatprep.mubr.f32.mxu0 %v23550_v47  ;;  %12134 = vmatpush1.bf16.msra.mxu0 %v23551_v37  ;;  %v23556_v37 = vld [vmem:[#allocation38_spill] sm:$0xff]  ;;  %v23558_v47 = vld [vmem:[#allocation252_spill] sm:$0xff] }
 0x4ff   :  { %11119 = vmatmul.mubr.f32.gmra.mrb[154].mxu1 %v18780_v32  ;;  %12135 = vmatprep.subr.bf16.mxu0 %v21411_v40 }
 0x500   :  { %11121 = vmatprep.mubr.f32.mxu1 %v18787_v7  ;;  %v19120_v50 = vpop.f32.mrb[50].mxu1 }
 0x501   :  { %8466 = vmatmul.mubr.f32.gmra.mrb[24].mxu0 %v23552_v26  ;;  %23553 = vst [vmem:[#allocation119_spill] sm:$0xff] %v19120_v50  ;;  %v4711_v53 = vpop.f32.mrb[51].mxu1  ;;  %v23559_v26 = vld [vmem:[#allocation200_spill] sm:$0xff] }
 0x502   :  { %8471 = vmatprep.mubr.f32.mxu0 %v23554_v5  ;;  %12137 = vmatpush1.bf16.msra.mxu0 %v23555_v14  ;;  %v23560_v14 = vand.u32 4294901760, %v23475_v41  ;;  %v23561_v53 = vld [vmem:[#allocation169_spill] sm:$0xff] }
 0x503   :  { %11122 = vmatmul.mubr.f32.gmra.mrb[156].mxu1 %v18807_v54  ;;  %12138 = vmatprep.subr.bf16.mxu0 %v21411_v40  ;;  %v23567_v41 = vld [vmem:[#allocation261_spill] sm:$0xff] }
 0x504   :  { %11124 = vmatprep.mubr.f32.mxu1 %v18817_v28  ;;  %v19128_v42 = vpop.f32.mrb[52].mxu1 }
 0x505   :  { %8473 = vmatmul.mubr.f32.gmra.mrb[26].mxu0 %v23556_v37  ;;  %23557 = vst [vmem:[#allocation282_spill] sm:$0xff] %v19128_v42  ;;  %v4718_v50 = vpop.f32.mrb[53].mxu1  ;;  %v23564_v37 = vld [vmem:[#allocation204_spill] sm:$0xff] }
 0x506   :  { %8478 = vmatprep.mubr.f32.mxu0 %v23558_v47  ;;  %12140 = vmatpush1.bf16.msra.mxu0 %v23559_v26  ;;  %v23565_v47 = vand.u32 4294901760, %v23484_v12  ;;  %v23566_v26 = vand.u32 4294901760, %v23485_v46  ;;  %v23573_v12 = vld [vmem:[#allocation72_spill] sm:$0xff]  ;;  %v23575_v46 = vld [vmem:[#allocation263_spill] sm:$0xff] }
 0x507   :  { %11125 = vmatmul.mubr.f32.gmra.mrb[158].mxu1 %v18834_v31  ;;  %12141 = vmatprep.subr.bf16.mxu0 %v21411_v40 }
 0x508   :  { %11131 = vmatprep.mubr.f32.mxu1 %v23560_v14  ;;  %v19137_v5 = vpop.f32.mrb[54].mxu1  ;;  %v23569_v14 = vld [vmem:[#allocation172_spill] sm:$0xff] }
 0x509   :  { %8480 = vmatmul.mubr.f32.gmra.mrb[28].mxu0 %v23561_v53  ;;  %23562 = vst [vmem:[#allocation286_spill] sm:$0xff] %v19137_v5  ;;  %v4725_v42 = vpop.f32.mrb[55].mxu1  ;;  %v23577_v5 = vand.u32 4294901760, %v23495_v61  ;;  %v23586_v61 = vand.u32 4294901760, %v23504_v22  ;;  %v23595_v22 = vld [vmem:[#allocation196_spill] sm:$0xff] }
 0x50a   :  { %8485 = vmatprep.mubr.f32.mxu0 %v23563_v48  ;;  %12143 = vmatpush1.bf16.msra.mxu0 %v23564_v37  ;;  %v23570_v37 = vld [vmem:[#allocation206_spill] sm:$0xff] }
 0x50b   :  { %11132 = vmatmul.mubr.f32.vlgmr.msra.gmra.mrb[160].mxu1 %v23565_v47  ;;  %12144 = vmatprep.subr.bf16.mxu0 %v21411_v40  ;;  %v23571_v47 = vand.u32 4294901760, %v23489_v9  ;;  %v23572_v40 = vand.u32 4294901760, %v23490_v52 }
 0x50c   :  { %11134 = vmatprep.mubr.f32.mxu1 %v23566_v26  ;;  %12166 = vmatpush3.bf16.msra.mxu1 %v19016_v49  ;;  %v19149_v50 = vpop.f32.mrb[56].mxu1 }
 0x50d   :  { %8487 = vmatmul.mubr.f32.gmra.mrb[30].mxu0 %v23567_v41  ;;  %12168 = vmatprep.subr.bf16.mxu1 %v23408_v19  ;;  %23568 = vst [vmem:[#allocation126_spill] sm:$0xff] %v19149_v50  ;;  %v4732_v42 = vpop.f32.mrb[57].mxu1  ;;  %v23576_v50 = vand.u32 4294901760, %v23494_v39 }
 0x50e   :  { %8492 = vmatprep.mubr.f32.mxu0 %v23569_v14  ;;  %12146 = vmatpush1.bf16.msra.mxu0 %v23570_v37  ;;  %v23578_v37 = vld [vmem:[#allocation178_spill] sm:$0xff]  ;;  %v23580_v42 = vld [vmem:[#allocation85_spill] sm:$0xff] }
 0x50f   :  { %11135 = vmatmul.mubr.f32.gmra.mrb[162].mxu1 %v23571_v47  ;;  %v23581_v47 = vand.u32 4294901760, %v23499_v17  ;;  %v23589_v17 = vld [vmem:[#allocation189_spill] sm:$0xff] }
 0x510   :  { %11137 = vmatprep.mubr.f32.mxu1 %v23572_v40  ;;  %v19158_v49 = vpop.f32.mrb[58].mxu1  ;;  %v23582_v40 = vand.u32 4294901760, %v23500_v44  ;;  %v23591_v44 = vand.u32 4294901760, %v23510_v34  ;;  %v23600_v34 = vld [vmem:[#allocation199_spill] sm:$0xff] }
 0x511   :  { %8494 = vmatmul.mubr.f32.gmra.mrb[32].mxu0 %v23573_v12  ;;  %23574 = vst [vmem:[#allocation127_spill] sm:$0xff] %v19158_v49  ;;  %v4739_v26 = vpop.f32.mrb[59].mxu1  ;;  %v23599_v49 = vand.u32 4294901760, %v23517_v20 }
 0x512   :  { %8499 = vmatprep.mubr.f32.mxu0 %v23575_v46  ;;  %v23583_v26 = vld [vmem:[#allocation272_spill] sm:$0xff] }
 0x513   :  { %11138 = vmatmul.mubr.f32.gmra.mrb[164].mxu1 %v23576_v50  ;;  %v23585_v50 = vld [vmem:[#allocation183_spill] sm:$0xff] }
 0x514   :  { %11140 = vmatprep.mubr.f32.mxu1 %v23577_v5  ;;  %v19166_v9 = vpop.f32.mrb[60].mxu1 }
 0x515   :  { %8501 = vmatmul.mubr.f32.gmra.mrb[34].mxu0 %v23578_v37  ;;  %23579 = vst [vmem:[#allocation289_spill] sm:$0xff] %v19166_v9  ;;  %v4746_v52 = vpop.f32.mrb[61].mxu1  ;;  %v23587_v9 = vand.u32 4294901760, %v23505_v16 }
 0x516   :  { %8506 = vmatprep.mubr.f32.mxu0 %v23580_v42  ;;  %v23588_v52 = vld [vmem:[#allocation274_spill] sm:$0xff] }
 0x517   :  { %11141 = vmatmul.mubr.f32.gmra.mrb[166].mxu1 %v23581_v47 }
 0x518   :  { %11143 = vmatprep.mubr.f32.mxu1 %v23582_v40  ;;  %v19174_v39 = vpop.f32.mrb[62].mxu1 }
 0x519   :  { %8508 = vmatmul.mubr.f32.gmra.mrb[36].mxu0 %v23583_v26  ;;  %23584 = vst [vmem:[#allocation292_spill] sm:$0xff] %v19174_v39  ;;  %v4753_v5 = vpop.f32.mrb[63].mxu1  ;;  %v23593_v39 = vand.u32 4294901760, %v23511_v56 }
 0x51a   :  { %8513 = vmatprep.mubr.f32.mxu0 %v23585_v50  ;;  %v23594_v5 = vld [vmem:[#allocation280_spill] sm:$0xff] }
 0x51b   :  { %11144 = vmatmul.mubr.f32.gmra.mrb[168].mxu1 %v23586_v61 }
 0x51c   :  { %11146 = vmatprep.mubr.f32.mxu1 %v23587_v9  ;;  %v19183_v47 = vpop.f32.mrb[64].mxu1  ;;  %v23597_v9 = vand.u32 4294901760, %v23516_v6  ;;  %v23606_v6 = vld [vmem:[#allocation291_spill] sm:$0xff] }
 0x51d   :  { %8515 = vmatmul.mubr.f32.gmra.mrb[38].mxu0 %v23588_v52  ;;  %23590 = vst [vmem:[#allocation133_spill] sm:$0xff] %v19183_v47  ;;  %v19187_v40 = vpop.f32.mrb[65].mxu1 }
 0x51e   :  { %8520 = vmatprep.mubr.f32.mxu0 %v23589_v17  ;;  %23592 = vst [vmem:[#allocation135_spill] sm:$0xff] %v19187_v40 }
 0x51f   :  { %11147 = vmatmul.mubr.f32.gmra.mrb[170].mxu1 %v23591_v44  ;;  %v23601_v44 = vld [vmem:[#allocation288_spill] sm:$0xff] }
 0x520   :  { %11149 = vmatprep.mubr.f32.mxu1 %v23593_v39  ;;  %v19193_v16 = vpop.f32.mrb[66].mxu1  ;;  %v23603_v39 = vand.u32 4294901760, %v23522_v58  ;;  %v23612_v58 = vld [vmem:[#allocation296_spill] sm:$0xff] }
 0x521   :  { %8522 = vmatmul.mubr.f32.gmra.mrb[40].mxu0 %v23594_v5  ;;  %23596 = vst [vmem:[#allocation247_spill] sm:$0xff] %v19193_v16  ;;  %v19197_v61 = vpop.f32.mrb[67].mxu1  ;;  %v23605_v16 = vand.u32 4294901760, %v23523_v18 }
 0x522   :  { %8527 = vmatprep.mubr.f32.mxu0 %v23595_v22  ;;  %23598 = vst [vmem:[#allocation153_spill] sm:$0xff] %v19197_v61 }
 0x523   :  { %11150 = vmatmul.mubr.f32.gmra.mrb[172].mxu1 %v23597_v9  ;;  %v23607_v9 = vld [vmem:[#allocation207_spill] sm:$0xff] }
 0x524   :  { %11152 = vmatprep.mubr.f32.mxu1 %v23599_v49  ;;  %v19203_v56 = vpop.f32.mrb[68].mxu1  ;;  %v23609_v49 = vand.u32 4294901760, %v23528_v27  ;;  %v23618_v27 = vld [vmem:[#allocation302_spill] sm:$0xff] }
 0x525   :  { %8529 = vmatmul.mubr.f32.gmra.mrb[42].mxu0 %v23600_v34  ;;  %23602 = vst [vmem:[#allocation251_spill] sm:$0xff] %v19203_v56  ;;  %v19207_v47 = vpop.f32.mrb[69].mxu1  ;;  %v23611_v56 = vand.u32 4294901760, %v23529_v24 }
 0x526   :  { %8534 = vmatprep.mubr.f32.mxu0 %v23601_v44  ;;  %23604 = vst [vmem:[#allocation254_spill] sm:$0xff] %v19207_v47 }
 0x527   :  { %11153 = vmatmul.mubr.f32.gmra.mrb[174].mxu1 %v23603_v39  ;;  %v23613_v39 = vld [vmem:[#allocation213_spill] sm:$0xff] }
 0x528   :  { %11155 = vmatprep.mubr.f32.mxu1 %v23605_v16  ;;  %v19213_v20 = vpop.f32.mrb[70].mxu1  ;;  %v23615_v16 = vand.u32 4294901760, %v23534_v55  ;;  %v23624_v55 = vld [vmem:[#allocation306_spill] sm:$0xff] }
 0x529   :  { %8536 = vmatmul.mubr.f32.gmra.mrb[44].mxu0 %v23606_v6  ;;  %23608 = vst [vmem:[#allocation257_spill] sm:$0xff] %v19213_v20  ;;  %v19217_v61 = vpop.f32.mrb[71].mxu1  ;;  %v23617_v20 = vand.u32 4294901760, %v23535_v25 }
 0x52a   :  { %8541 = vmatprep.mubr.f32.mxu0 %v23607_v9  ;;  %23610 = vst [vmem:[#allocation259_spill] sm:$0xff] %v19217_v61 }
 0x52b   :  { %11156 = vmatmul.mubr.f32.gmra.mrb[176].mxu1 %v23609_v49  ;;  %v23619_v49 = vld [vmem:[#allocation219_spill] sm:$0xff] }
 0x52c   :  { %11158 = vmatprep.mubr.f32.mxu1 %v23611_v56  ;;  %v19223_v18 = vpop.f32.mrb[72].mxu1  ;;  %v23621_v56 = vand.u32 4294901760, %v18676_v33  ;;  %v23630_v33 = vld [vmem:[#allocation229_spill] sm:$0xff] }
 0x52d   :  { %8543 = vmatmul.mubr.f32.gmra.mrb[46].mxu0 %v23612_v58  ;;  %23614 = vst [vmem:[#allocation262_spill] sm:$0xff] %v19223_v18  ;;  %v19227_v47 = vpop.f32.mrb[73].mxu1  ;;  %v23623_v18 = vand.u32 4294901760, %v18679_v60 }
 0x52e   :  { %8548 = vmatprep.mubr.f32.mxu0 %v23613_v39  ;;  %23616 = vst [vmem:[#allocation43_spill] sm:$0xff] %v19227_v47 }
 0x52f   :  { %11159 = vmatmul.mubr.f32.gmra.mrb[178].mxu1 %v23615_v16  ;;  %v23625_v16 = vld [vmem:[#allocation224_spill] sm:$0xff] }
 0x530   :  { %11161 = vmatprep.mubr.f32.mxu1 %v23617_v20  ;;  %v19233_v24 = vpop.f32.mrb[74].mxu1  ;;  %v23627_v20 = vand.u32 4294901760, %v18709_v1  ;;  %v23636_v1 = vld [vmem:[#allocation129_spill] sm:$0xff] }
 0x531   :  { %8550 = vmatmul.mubr.f32.gmra.mrb[48].mxu0 %v23618_v27  ;;  %23620 = vst [vmem:[#allocation265_spill] sm:$0xff] %v19233_v24  ;;  %v19237_v61 = vpop.f32.mrb[75].mxu1  ;;  %v23629_v24 = vand.u32 4294901760, %v18719_v11 }
 0x532   :  { %8555 = vmatprep.mubr.f32.mxu0 %v23619_v49  ;;  %23622 = vst [vmem:[#allocation268_spill] sm:$0xff] %v19237_v61 }
 0x533   :  { %11162 = vmatmul.mubr.f32.gmra.mrb[180].mxu1 %v23621_v56  ;;  %v23631_v56 = vld [vmem:[#allocation316_spill] sm:$0xff] }
 0x534   :  { %11164 = vmatprep.mubr.f32.mxu1 %v23623_v18  ;;  %v23633_v18 = vand.u32 4294901760, %v18750_v30  ;;  %v23642_v30 = vld [vmem:[#allocation134_spill] sm:$0xff] }
 0x535   :  { %8557 = vmatmul.mubr.f32.gmra.mrb[50].mxu0 %v23624_v55  ;;  %v19243_v25 = vpop.f32.mrb[76].mxu1 }
 0x536   :  { %8562 = vmatprep.mubr.f32.mxu0 %v23625_v16  ;;  %23626 = vst [vmem:[#allocation46_spill] sm:$0xff] %v19243_v25  ;;  %v19247_v47 = vpop.f32.mrb[77].mxu1  ;;  %v23635_v25 = vand.u32 4294901760, %v18756_v63 }
 0x537   :  { %11165 = vmatmul.mubr.f32.gmra.mrb[182].mxu1 %v23627_v20  ;;  %23628 = vst [vmem:[#allocation32_spill] sm:$0xff] %v19247_v47  ;;  %v23637_v20 = vld [vmem:[#allocation241_spill] sm:$0xff] }
 0x538   :  { %11167 = vmatprep.mubr.f32.mxu1 %v23629_v24  ;;  %v23639_v24 = vand.u32 4294901760, %v18780_v32  ;;  %v23648_v32 = vld [vmem:[#allocation19_spill] sm:$0xff] }
 0x539   :  { %8564 = vmatmul.mubr.f32.gmra.mrb[52].mxu0 %v23630_v33  ;;  %v19253_v60 = vpop.f32.mrb[78].mxu1 }
 0x53a   :  { %8569 = vmatprep.mubr.f32.mxu0 %v23631_v56  ;;  %23632 = vst [vmem:[#allocation273_spill] sm:$0xff] %v19253_v60  ;;  %v19257_v61 = vpop.f32.mrb[79].mxu1  ;;  %v23641_v60 = vand.u32 4294901760, %v18787_v7 }
 0x53b   :  { %11168 = vmatmul.mubr.f32.gmra.mrb[184].mxu1 %v23633_v18  ;;  %23634 = vst [vmem:[#allocation56_spill] sm:$0xff] %v19257_v61  ;;  %v23643_v18 = vld [vmem:[#allocation141_spill] sm:$0xff] }
 0x53c   :  { %11170 = vmatprep.mubr.f32.mxu1 %v23635_v25  ;;  %v23645_v25 = vand.u32 4294901760, %v18807_v54  ;;  %v23653_v54 = vld [vmem:[#allocation155_spill] sm:$0xff] }
 0x53d   :  { %8571 = vmatmul.mubr.f32.gmra.mrb[54].mxu0 %v23636_v1 }
 0x53e   :  { %8576 = vmatprep.mubr.f32.mxu0 %v23637_v20  ;;  %v19263_v11 = vpop.f32.mrb[80].mxu1 }
 0x53f   :  { %23638 = vst [vmem:[#allocation276_spill] sm:$0xff] %v19263_v11  ;;  %11171 = vmatmul.mubr.f32.gmra.mrb[186].mxu1 %v23639_v24  ;;  %v19267_v47 = vpop.f32.mrb[81].mxu1  ;;  %v23647_v11 = vand.u32 4294901760, %v18817_v28  ;;  %v23649_v24 = vld [vmem:[#allocation152_spill] sm:$0xff] }
 0x540   :  { %23640 = vst [vmem:[#allocation279_spill] sm:$0xff] %v19267_v47  ;;  %11173 = vmatprep.mubr.f32.mxu1 %v23641_v60  ;;  %v23651_v60 = vand.u32 4294901760, %v18834_v31  ;;  %v23657_v31 = vld [vmem:[#allocation166_spill] sm:$0xff] }
 0x541   :  { %8578 = vmatmul.mubr.f32.gmra.mrb[56].mxu0 %v23642_v30 }
 0x542   :  { %8583 = vmatprep.mubr.f32.mxu0 %v23643_v18  ;;  %v19273_v63 = vpop.f32.mrb[82].mxu1 }
 0x543   :  { %23644 = vst [vmem:[#allocation65_spill] sm:$0xff] %v19273_v63  ;;  %11174 = vmatmul.mubr.f32.gmra.mrb[188].mxu1 %v23645_v25  ;;  %v19277_v61 = vpop.f32.mrb[83].mxu1  ;;  %v23654_v25 = vld [vmem:[#allocation28_spill] sm:$0xff] }
 0x544   :  { %23646 = vst [vmem:[#allocation40_spill] sm:$0xff] %v19277_v61  ;;  %11176 = vmatprep.mubr.f32.mxu1 %v23647_v11 }
 0x545   :  { %8585 = vmatmul.mubr.f32.gmra.mrb[58].mxu0 %v23648_v32 }
 0x546   :  { %8590 = vmatprep.mubr.f32.mxu0 %v23649_v24  ;;  %v19283_v7 = vpop.f32.mrb[84].mxu1 }
 0x547   :  { %23650 = vst [vmem:[#allocation284_spill] sm:$0xff] %v19283_v7  ;;  %11177 = vmatmul.mubr.f32.gmra.mrb[190].mxu1 %v23651_v60  ;;  %v19287_v47 = vpop.f32.mrb[85].mxu1 }
 0x548   :  { %23652 = vst [vmem:[#allocation70_spill] sm:$0xff] %v19287_v47  ;;  %11183 = vmatprep.mubr.f32.mxu1 %v23394_v3  ;;  %v23683_v47 = vld [vmem:[#allocation29_spill] sm:$0xff] }
 0x549   :  { %8592 = vmatmul.mubr.f32.gmra.mrb[60].mxu0 %v23653_v54 }
 0x54a   :  { %8597 = vmatprep.mubr.f32.mxu0 %v23654_v25  ;;  %v19292_v63 = vpop.f32.mrb[86].mxu1 }
 0x54b   :  { %23655 = vst [vmem:[#allocation287_spill] sm:$0xff] %v19292_v63  ;;  %11184 = vmatmul.mubr.f32.vlgmr.msra.gmra.mrb[192].mxu1 %v23404_v29  ;;  %v19295_v28 = vpop.f32.mrb[87].mxu1 }
 0x54c   :  { %23656 = vst [vmem:[#allocation290_spill] sm:$0xff] %v19295_v28  ;;  %11186 = vmatprep.mubr.f32.mxu1 %v23405_v0  ;;  %12170 = vmatpush3.bf16.msra.mxu1 %v23408_v19  ;;  %v23679_v28 = vld [vmem:[#allocation313_spill] sm:$0xff] }
 0x54d   :  { %8599 = vmatmul.mubr.f32.gmra.mrb[62].mxu0 %v23657_v31 }
 0x54e   :  { %8701 = vmatprep.mubr.f32.mxu0 %v23488_v57  ;;  %v19301_v11 = vpop.f32.mrb[88].mxu1 }
 0x54f   :  { %23658 = vst [vmem:[#allocation80_spill] sm:$0xff] %v19301_v11  ;;  %11187 = vmatmul.mubr.f32.gmra.mrb[194].mxu1 %v23412_v43  ;;  %v19304_v60 = vpop.f32.mrb[89].mxu1 }
 0x550   :  { %23659 = vst [vmem:[#allocation45_spill] sm:$0xff] %v19304_v60  ;;  %11189 = vmatprep.mubr.f32.mxu1 %v23413_v8 }
 0x551   :  { %8703 = vmatmul.mubr.f32.vlgmr.msra.gmra.mrb[0].mxu0 %v23491_v38 }
 0x552   :  { %8708 = vmatprep.mubr.f32.mxu0 %v23493_v35  ;;  %v19309_v63 = vpop.f32.mrb[90].mxu1 }
 0x553   :  { %23660 = vst [vmem:[#allocation295_spill] sm:$0xff] %v19309_v63  ;;  %11190 = vmatmul.mubr.f32.gmra.mrb[196].mxu1 %v23419_v21  ;;  %v19312_v19 = vpop.f32.mrb[91].mxu1 }
 0x554   :  { %23661 = vst [vmem:[#allocation88_spill] sm:$0xff] %v19312_v19  ;;  %11192 = vmatprep.mubr.f32.mxu1 %v23420_v13  ;;  %v23677_v19 = vld [vmem:[#allocation20_spill] sm:$0xff] }
 0x555   :  { %8710 = vmatmul.mubr.f32.gmra.mrb[2].mxu0 %v23496_v2 }
 0x556   :  { %8715 = vmatprep.mubr.f32.mxu0 %v23497_v45  ;;  %v19317_v57 = vpop.f32.mrb[92].mxu1  ;;  %v23667_v45 = vld [vmem:[#allocation122_spill] sm:$0xff] }
 0x557   :  { %23662 = vst [vmem:[#allocation298_spill] sm:$0xff] %v19317_v57  ;;  %11193 = vmatmul.mubr.f32.gmra.mrb[198].mxu1 %v18467_v15  ;;  %v19320_v11 = vpop.f32.mrb[93].mxu1 }
 0x558   :  { %23663 = vst [vmem:[#allocation301_spill] sm:$0xff] %v19320_v11  ;;  %11195 = vmatprep.mubr.f32.mxu1 %v18474_v51 }
 0x559   :  { %8717 = vmatmul.mubr.f32.gmra.mrb[4].mxu0 %v23501_v23  ;;  %v23669_v23 = vld [vmem:[#allocation293_spill] sm:$0xff] }
 0x55a   :  { %8722 = vmatprep.mubr.f32.mxu0 %v23502_v36  ;;  %v19325_v38 = vpop.f32.mrb[94].mxu1  ;;  %v23670_v36 = vld [vmem:[#allocation250_spill] sm:$0xff] }
 0x55b   :  { %23664 = vst [vmem:[#allocation94_spill] sm:$0xff] %v19325_v38  ;;  %11196 = vmatmul.mubr.f32.gmra.mrb[200].mxu1 %v18478_v10  ;;  %v19328_v35 = vpop.f32.mrb[95].mxu1  ;;  %v23671_v38 = vld [vmem:[#allocation317_spill] sm:$0xff] }
 0x55c   :  { %23665 = vst [vmem:[#allocation50_spill] sm:$0xff] %v19328_v35  ;;  %11198 = vmatprep.mubr.f32.mxu1 %v18489_v4  ;;  %v23673_v35 = vld [vmem:[#allocation297_spill] sm:$0xff] }
 0x55d   :  { %8724 = vmatmul.mubr.f32.gmra.mrb[6].mxu0 %v23506_v62  ;;  %v23675_v62 = vld [vmem:[#allocation55_spill] sm:$0xff] }
 0x55e   :  { %8729 = vmatprep.mubr.f32.mxu0 %v23508_v59  ;;  %v19333_v2 = vpop.f32.mrb[96].mxu1  ;;  %v23676_v59 = vld [vmem:[#allocation15_spill] sm:$0xff] }
 0x55f   :  { %23666 = vst [vmem:[#allocation304_spill] sm:$0xff] %v19333_v2  ;;  %11199 = vmatmul.mubr.f32.gmra.mrb[202].mxu1 %v23667_v45  ;;  %v19336_v57 = vpop.f32.mrb[97].mxu1 }
 0x560   :  { %23668 = vst [vmem:[#allocation104_spill] sm:$0xff] %v19336_v57  ;;  %11201 = vmatprep.mubr.f32.mxu1 %v23669_v23 }
 0x561   :  { %8731 = vmatmul.mubr.f32.gmra.mrb[8].mxu0 %v23670_v36  ;;  %v23681_v36 = vld [vmem:[#allocation314_spill] sm:$0xff] }
 0x562   :  { %8736 = vmatprep.mubr.f32.mxu0 %v23671_v38  ;;  %v19341_v11 = vpop.f32.mrb[98].mxu1  ;;  %v23682_v38 = vld [vmem:[#allocation245_spill] sm:$0xff] }
 0x563   :  { %23672 = vst [vmem:[#allocation307_spill] sm:$0xff] %v19341_v11  ;;  %11202 = vmatmul.mubr.f32.gmra.mrb[204].mxu1 %v23673_v35  ;;  %v19344_v63 = vpop.f32.mrb[99].mxu1  ;;  %v23685_v11 = vld [vmem:[#allocation17_spill] sm:$0xff] }
 0x564   :  { %23674 = vst [vmem:[#allocation310_spill] sm:$0xff] %v19344_v63  ;;  %11204 = vmatprep.mubr.f32.mxu1 %v23675_v62 }
 0x565   :  { %8738 = vmatmul.mubr.f32.gmra.mrb[10].mxu0 %v23676_v59  ;;  %v23687_v59 = vld [vmem:[#allocation37_spill] sm:$0xff] }
 0x566   :  { %8743 = vmatprep.mubr.f32.mxu0 %v23677_v19  ;;  %v19349_v60 = vpop.f32.mrb[100].mxu1  ;;  %v23688_v19 = vld [vmem:[#allocation34_spill] sm:$0xff] }
 0x567   :  { %23678 = vst [vmem:[#allocation112_spill] sm:$0xff] %v19349_v60  ;;  %11205 = vmatmul.mubr.f32.gmra.mrb[206].mxu1 %v23679_v28  ;;  %v19352_v7 = vpop.f32.mrb[101].mxu1  ;;  %v23689_v60 = vld [vmem:[#allocation44_spill] sm:$0xff] }
 0x568   :  { %23680 = vst [vmem:[#allocation62_spill] sm:$0xff] %v19352_v7  ;;  %11207 = vmatprep.mubr.f32.mxu1 %v23681_v36  ;;  %v23691_v7 = vld [vmem:[#allocation99_spill] sm:$0xff] }
 0x569   :  { %8745 = vmatmul.mubr.f32.gmra.mrb[12].mxu0 %v23682_v38  ;;  %v23693_v38 = vld [vmem:[#allocation64_spill] sm:$0xff] }
 0x56a   :  { %8750 = vmatprep.mubr.f32.mxu0 %v23683_v47  ;;  %v19357_v61 = vpop.f32.mrb[102].mxu1  ;;  %v23694_v47 = vld [vmem:[#allocation49_spill] sm:$0xff] }
 0x56b   :  { %23684 = vst [vmem:[#allocation315_spill] sm:$0xff] %v19357_v61  ;;  %11208 = vmatmul.mubr.f32.gmra.mrb[208].mxu1 %v23685_v11  ;;  %v19360_v63 = vpop.f32.mrb[103].mxu1  ;;  %v23695_v61 = vld [vmem:[#allocation57_spill] sm:$0xff] }
 0x56c   :  { %23686 = vst [vmem:[#allocation118_spill] sm:$0xff] %v19360_v63  ;;  %11210 = vmatprep.mubr.f32.mxu1 %v23687_v59  ;;  %v23697_v63 = vld [vmem:[#allocation81_spill] sm:$0xff] }
 0x56d   :  { %8752 = vmatmul.mubr.f32.gmra.mrb[14].mxu0 %v23688_v19  ;;  %v23699_v19 = vld [vmem:[#allocation202_spill] sm:$0xff] }
 0x56e   :  { %8757 = vmatprep.mubr.f32.mxu0 %v23689_v60  ;;  %v19365_v2 = vpop.f32.mrb[104].mxu1  ;;  %v23700_v60 = vld [vmem:[#allocation67_spill] sm:$0xff] }
 0x56f   :  { %23690 = vst [vmem:[#allocation318_spill] sm:$0xff] %v19365_v2  ;;  %11211 = vmatmul.mubr.f32.gmra.mrb[210].mxu1 %v23691_v7  ;;  %v19368_v57 = vpop.f32.mrb[105].mxu1  ;;  %v23701_v2 = vld [vmem:[#allocation76_spill] sm:$0xff] }
 0x570   :  { %23692 = vst [vmem:[#allocation69_spill] sm:$0xff] %v19368_v57  ;;  %11213 = vmatprep.mubr.f32.mxu1 %v23693_v38  ;;  %v23703_v57 = vld [vmem:[#allocation97_spill] sm:$0xff] }
 0x571   :  { %8759 = vmatmul.mubr.f32.gmra.mrb[16].mxu0 %v23694_v47  ;;  %v23705_v47 = vld [vmem:[#allocation209_spill] sm:$0xff] }
 0x572   :  { %8764 = vmatprep.mubr.f32.mxu0 %v23695_v61  ;;  %v19373_v40 = vpop.f32.mrb[106].mxu1  ;;  %v23706_v61 = vld [vmem:[#allocation83_spill] sm:$0xff] }
 0x573   :  { %23696 = vst [vmem:[#allocation128_spill] sm:$0xff] %v19373_v40  ;;  %11214 = vmatmul.mubr.f32.gmra.mrb[212].mxu1 %v23697_v63  ;;  %v19376_v31 = vpop.f32.mrb[107].mxu1  ;;  %v23707_v40 = vld [vmem:[#allocation84_spill] sm:$0xff] }
 0x574   :  { %23698 = vst [vmem:[#allocation79_spill] sm:$0xff] %v19376_v31  ;;  %11216 = vmatprep.mubr.f32.mxu1 %v23699_v19  ;;  %v23709_v31 = vld [vmem:[#allocation105_spill] sm:$0xff] }
 0x575   :  { %8766 = vmatmul.mubr.f32.gmra.mrb[18].mxu0 %v23700_v60  ;;  %v23711_v60 = vld [vmem:[#allocation216_spill] sm:$0xff] }
 0x576   :  { %8771 = vmatprep.mubr.f32.mxu0 %v23701_v2  ;;  %v19381_v25 = vpop.f32.mrb[108].mxu1  ;;  %v23712_v2 = vld [vmem:[#allocation107_spill] sm:$0xff] }
 0x577   :  { %23702 = vst [vmem:[#allocation319_spill] sm:$0xff] %v19381_v25  ;;  %11217 = vmatmul.mubr.f32.gmra.mrb[214].mxu1 %v23703_v57  ;;  %v19384_v54 = vpop.f32.mrb[109].mxu1  ;;  %v23713_v25 = vld [vmem:[#allocation115_spill] sm:$0xff] }
 0x578   :  { %23704 = vst [vmem:[#allocation138_spill] sm:$0xff] %v19384_v54  ;;  %11219 = vmatprep.mubr.f32.mxu1 %v23705_v47  ;;  %v23715_v54 = vld [vmem:[#allocation113_spill] sm:$0xff] }
 0x579   :  { %8773 = vmatmul.mubr.f32.gmra.mrb[20].mxu0 %v23706_v61  ;;  %v23717_v61 = vld [vmem:[#allocation223_spill] sm:$0xff] }
 0x57a   :  { %8778 = vmatprep.mubr.f32.mxu0 %v23707_v40  ;;  %v19389_v24 = vpop.f32.mrb[110].mxu1  ;;  %v23718_v40 = vld [vmem:[#allocation116_spill] sm:$0xff] }
 0x57b   :  { %23708 = vst [vmem:[#allocation87_spill] sm:$0xff] %v19389_v24  ;;  %11220 = vmatmul.mubr.f32.gmra.mrb[216].mxu1 %v23709_v31  ;;  %v19392_v32 = vpop.f32.mrb[111].mxu1  ;;  %v23719_v24 = vld [vmem:[#allocation123_spill] sm:$0xff] }
 0x57c   :  { %23710 = vst [vmem:[#allocation322_spill] sm:$0xff] %v19392_v32  ;;  %11222 = vmatprep.mubr.f32.mxu1 %v23711_v60  ;;  %v23721_v32 = vld [vmem:[#allocation121_spill] sm:$0xff] }
 0x57d   :  { %8780 = vmatmul.mubr.f32.gmra.mrb[22].mxu0 %v23712_v2  ;;  %v23722_v2 = vld [vmem:[#allocation227_spill] sm:$0xff] }
 0x57e   :  { %8785 = vmatprep.mubr.f32.mxu0 %v23713_v25  ;;  %v19397_v18 = vpop.f32.mrb[112].mxu1  ;;  %v23723_v25 = vld [vmem:[#allocation38_spill] sm:$0xff] }
 0x57f   :  { %23714 = vst [vmem:[#allocation140_spill] sm:$0xff] %v19397_v18  ;;  %11223 = vmatmul.mubr.f32.gmra.mrb[218].mxu1 %v23715_v54  ;;  %v19400_v30 = vpop.f32.mrb[113].mxu1  ;;  %v23724_v18 = vld [vmem:[#allocation252_spill] sm:$0xff] }
 0x580   :  { %23716 = vst [vmem:[#allocation93_spill] sm:$0xff] %v19400_v30  ;;  %11225 = vmatprep.mubr.f32.mxu1 %v23717_v61  ;;  %v23726_v30 = vld [vmem:[#allocation136_spill] sm:$0xff] }
 0x581   :  { %8787 = vmatmul.mubr.f32.gmra.mrb[24].mxu0 %v23718_v40 }
 0x582   :  { %8792 = vmatprep.mubr.f32.mxu0 %v23719_v24  ;;  %v19405_v20 = vpop.f32.mrb[114].mxu1 }
 0x583   :  { %23720 = vst [vmem:[#allocation325_spill] sm:$0xff] %v19405_v20  ;;  %11226 = vmatmul.mubr.f32.gmra.mrb[220].mxu1 %v23721_v32  ;;  %v19408_v1 = vpop.f32.mrb[115].mxu1 }
 0x584   :  { %11228 = vmatprep.mubr.f32.mxu1 %v23722_v2 }
 0x585   :  { %8794 = vmatmul.mubr.f32.gmra.mrb[26].mxu0 %v23723_v25 }
 0x586   :  { %8799 = vmatprep.mubr.f32.mxu0 %v23724_v18  ;;  %v19413_v54 = vpop.f32.mrb[116].mxu1 }
 0x587   :  { %23725 = vst [vmem:[#allocation148_spill] sm:$0xff] %v19413_v54  ;;  %11229 = vmatmul.mubr.f32.gmra.mrb[222].mxu1 %v23726_v30  ;;  %v19416_v61 = vpop.f32.mrb[117].mxu1  ;;  %v23781_v54 = vld [vmem:[#allocation133_spill] sm:$0xff] }
 0x588   :  { %23727 = vst [vmem:[#allocation103_spill] sm:$0xff] %v19416_v61  ;;  %11235 = vmatprep.mubr.f32.mxu1 %v23394_v3 }
 0x589   :  { %8801 = vmatmul.mubr.f32.gmra.mrb[28].mxu0 %v23561_v53 }
 0x58a   :  { %8806 = vmatprep.mubr.f32.mxu0 %v23563_v48  ;;  %v19421_v24 = vpop.f32.mrb[118].mxu1 }
 0x58b   :  { %23728 = vst [vmem:[#allocation328_spill] sm:$0xff] %v19421_v24  ;;  %11236 = vmatmul.mubr.f32.vlgmr.msra.gmra.mrb[224].mxu1 %v23404_v29  ;;  %v19424_v40 = vpop.f32.mrb[119].mxu1 }
 0x58c   :  { %23729 = vst [vmem:[#allocation159_spill] sm:$0xff] %v19424_v40  ;;  %11238 = vmatprep.mubr.f32.mxu1 %v23405_v0  ;;  %v23779_v40 = vld [vmem:[#allocation104_spill] sm:$0xff] }
 0x58d   :  { %8808 = vmatmul.mubr.f32.gmra.mrb[30].mxu0 %v23567_v41 }
 0x58e   :  { %8813 = vmatprep.mubr.f32.mxu0 %v23569_v14  ;;  %v19429_v18 = vpop.f32.mrb[120].mxu1 }
 0x58f   :  { %23730 = vst [vmem:[#allocation111_spill] sm:$0xff] %v19429_v18  ;;  %11239 = vmatmul.mubr.f32.gmra.mrb[226].mxu1 %v23412_v43  ;;  %v19432_v3 = vpop.f32.mrb[121].mxu1 }
 0x590   :  { %23731 = vst [vmem:[#allocation331_spill] sm:$0xff] %v19432_v3  ;;  %11241 = vmatprep.mubr.f32.mxu1 %v23413_v8 }
 0x591   :  { %8815 = vmatmul.mubr.f32.gmra.mrb[32].mxu0 %v23573_v12 }
 0x592   :  { %8820 = vmatprep.mubr.f32.mxu0 %v23575_v46  ;;  %v19437_v48 = vpop.f32.mrb[122].mxu1 }
 0x593   :  { %23732 = vst [vmem:[#allocation218_spill] sm:$0xff] %v19437_v48  ;;  %11242 = vmatmul.mubr.f32.gmra.mrb[228].mxu1 %v23419_v21  ;;  %v19440_v29 = vpop.f32.mrb[123].mxu1 }
 0x594   :  { %23733 = vst [vmem:[#allocation117_spill] sm:$0xff] %v19440_v29  ;;  %11244 = vmatprep.mubr.f32.mxu1 %v23420_v13 }
 0x595   :  { %8822 = vmatmul.mubr.f32.gmra.mrb[34].mxu0 %v23578_v37 }
 0x596   :  { %8827 = vmatprep.mubr.f32.mxu0 %v23580_v42  ;;  %v19445_v0 = vpop.f32.mrb[124].mxu1 }
 0x597   :  { %23734 = vst [vmem:[#allocation334_spill] sm:$0xff] %v19445_v0  ;;  %11245 = vmatmul.mubr.f32.gmra.mrb[230].mxu1 %v18467_v15  ;;  %v19448_v43 = vpop.f32.mrb[125].mxu1 }
 0x598   :  { %23735 = vst [vmem:[#allocation221_spill] sm:$0xff] %v19448_v43  ;;  %11247 = vmatprep.mubr.f32.mxu1 %v18474_v51 }
 0x599   :  { %8829 = vmatmul.mubr.f32.gmra.mrb[36].mxu0 %v23583_v26 }
 0x59a   :  { %8834 = vmatprep.mubr.f32.mxu0 %v23585_v50  ;;  %v19453_v21 = vpop.f32.mrb[126].mxu1 }
 0x59b   :  { %23736 = vst [vmem:[#allocation226_spill] sm:$0xff] %v19453_v21  ;;  %11248 = vmatmul.mubr.f32.gmra.mrb[232].mxu1 %v18478_v10  ;;  %v19456_v8 = vpop.f32.mrb[127].mxu1 }
 0x59c   :  { %23737 = vst [vmem:[#allocation125_spill] sm:$0xff] %v19456_v8  ;;  %11250 = vmatprep.mubr.f32.mxu1 %v18489_v4 }
 0x59d   :  { %8836 = vmatmul.mubr.f32.gmra.mrb[38].mxu0 %v23588_v52 }
 0x59e   :  { %8841 = vmatprep.mubr.f32.mxu0 %v23589_v17  ;;  %v19461_v15 = vpop.f32.mrb[128].mxu1 }
 0x59f   :  { %11251 = vmatmul.mubr.f32.gmra.mrb[234].mxu1 %v23667_v45  ;;  %v19464_v51 = vpop.f32.mrb[129].mxu1 }
 0x5a0   :  { %11253 = vmatprep.mubr.f32.mxu1 %v23669_v23 }
 0x5a1   :  { %8843 = vmatmul.mubr.f32.gmra.mrb[40].mxu0 %v23594_v5  ;;  %v23738_v5 = vld [vmem:[#allocation129_spill] sm:$0xff] }
 0x5a2   :  { %8848 = vmatprep.mubr.f32.mxu0 %v23595_v22  ;;  %v19469_v10 = vpop.f32.mrb[130].mxu1  ;;  %v23739_v22 = vld [vmem:[#allocation241_spill] sm:$0xff] }
 0x5a3   :  { %11254 = vmatmul.mubr.f32.gmra.mrb[236].mxu1 %v23673_v35  ;;  %v19472_v4 = vpop.f32.mrb[131].mxu1 }
 0x5a4   :  { %11256 = vmatprep.mubr.f32.mxu1 %v23675_v62 }
 0x5a5   :  { %8850 = vmatmul.mubr.f32.gmra.mrb[42].mxu0 %v23600_v34 }
 0x5a6   :  { %8855 = vmatprep.mubr.f32.mxu0 %v23601_v44  ;;  %v19477_v13 = vpop.f32.mrb[132].mxu1  ;;  %v23740_v44 = vld [vmem:[#allocation113_spill] sm:$0xff] }
 0x5a7   :  { %11257 = vmatmul.mubr.f32.gmra.mrb[238].mxu1 %v23679_v28  ;;  %v19480_v53 = vpop.f32.mrb[133].mxu1 }
 0x5a8   :  { %11259 = vmatprep.mubr.f32.mxu1 %v23681_v36 }
 0x5a9   :  { %8857 = vmatmul.mubr.f32.gmra.mrb[44].mxu0 %v23606_v6 }
 0x5aa   :  { %8862 = vmatprep.mubr.f32.mxu0 %v23607_v9  ;;  %v19485_v41 = vpop.f32.mrb[134].mxu1  ;;  %v23741_v9 = vld [vmem:[#allocation223_spill] sm:$0xff] }
 0x5ab   :  { %11260 = vmatmul.mubr.f32.gmra.mrb[240].mxu1 %v23685_v11  ;;  %v19488_v14 = vpop.f32.mrb[135].mxu1 }
 0x5ac   :  { %11262 = vmatprep.mubr.f32.mxu1 %v23687_v59 }
 0x5ad   :  { %8864 = vmatmul.mubr.f32.gmra.mrb[46].mxu0 %v23612_v58  ;;  %v23742_v58 = vld [vmem:[#allocation134_spill] sm:$0xff] }
 0x5ae   :  { %8869 = vmatprep.mubr.f32.mxu0 %v23613_v39  ;;  %v19493_v12 = vpop.f32.mrb[136].mxu1  ;;  %v23743_v39 = vld [vmem:[#allocation141_spill] sm:$0xff] }
 0x5af   :  { %11263 = vmatmul.mubr.f32.gmra.mrb[242].mxu1 %v23691_v7  ;;  %v19496_v46 = vpop.f32.mrb[137].mxu1  ;;  %v23751_v7 = vld [vmem:[#allocation28_spill] sm:$0xff] }
 0x5b0   :  { %11265 = vmatprep.mubr.f32.mxu1 %v23693_v38 }
 0x5b1   :  { %8871 = vmatmul.mubr.f32.gmra.mrb[48].mxu0 %v23618_v27 }
 0x5b2   :  { %8876 = vmatprep.mubr.f32.mxu0 %v23619_v49  ;;  %v19501_v37 = vpop.f32.mrb[138].mxu1 }
 0x5b3   :  { %11266 = vmatmul.mubr.f32.gmra.mrb[244].mxu1 %v23697_v63  ;;  %v19504_v42 = vpop.f32.mrb[139].mxu1  ;;  %v23750_v63 = vld [vmem:[#allocation155_spill] sm:$0xff] }
 0x5b4   :  { %11268 = vmatprep.mubr.f32.mxu1 %v23699_v19 }
 0x5b5   :  { %8878 = vmatmul.mubr.f32.gmra.mrb[50].mxu0 %v23624_v55  ;;  %v23746_v55 = vld [vmem:[#allocation19_spill] sm:$0xff] }
 0x5b6   :  { %8883 = vmatprep.mubr.f32.mxu0 %v23625_v16  ;;  %v19509_v26 = vpop.f32.mrb[140].mxu1  ;;  %v23747_v16 = vld [vmem:[#allocation152_spill] sm:$0xff] }
 0x5b7   :  { %11269 = vmatmul.mubr.f32.gmra.mrb[246].mxu1 %v23703_v57  ;;  %v19512_v50 = vpop.f32.mrb[141].mxu1 }
 0x5b8   :  { %11271 = vmatprep.mubr.f32.mxu1 %v23705_v47 }
 0x5b9   :  { %8885 = vmatmul.mubr.f32.gmra.mrb[52].mxu0 %v23630_v33 }
 0x5ba   :  { %8890 = vmatprep.mubr.f32.mxu0 %v23631_v56  ;;  %v19517_v52 = vpop.f32.mrb[142].mxu1 }
 0x5bb   :  { %11272 = vmatmul.mubr.f32.gmra.mrb[248].mxu1 %v23709_v31  ;;  %v19520_v17 = vpop.f32.mrb[143].mxu1  ;;  %v23754_v31 = vld [vmem:[#allocation166_spill] sm:$0xff] }
 0x5bc   :  { %11274 = vmatprep.mubr.f32.mxu1 %v23711_v60 }
 0x5bd   :  { %8892 = vmatmul.mubr.f32.gmra.mrb[54].mxu0 %v23738_v5 }
 0x5be   :  { %8897 = vmatprep.mubr.f32.mxu0 %v23739_v22  ;;  %v19525_v34 = vpop.f32.mrb[144].mxu1 }
 0x5bf   :  { %11275 = vmatmul.mubr.f32.gmra.mrb[250].mxu1 %v23740_v44  ;;  %v19528_v6 = vpop.f32.mrb[145].mxu1 }
 0x5c0   :  { %11277 = vmatprep.mubr.f32.mxu1 %v23741_v9 }
 0x5c1   :  { %8899 = vmatmul.mubr.f32.gmra.mrb[56].mxu0 %v23742_v58 }
 0x5c2   :  { %8904 = vmatprep.mubr.f32.mxu0 %v23743_v39  ;;  %v19533_v27 = vpop.f32.mrb[146].mxu1 }
 0x5c3   :  { %23744 = vst [vmem:[#allocation337_spill] sm:$0xff] %v19533_v27  ;;  %11278 = vmatmul.mubr.f32.gmra.mrb[252].mxu1 %v23721_v32  ;;  %v19536_v49 = vpop.f32.mrb[147].mxu1  ;;  %v23783_v27 = vld [vmem:[#allocation214_spill] sm:$0xff] }
 0x5c4   :  { %23745 = vst [vmem:[#allocation240_spill] sm:$0xff] %v19536_v49  ;;  %11280 = vmatprep.mubr.f32.mxu1 %v23722_v2  ;;  %v23786_v49 = vld [vmem:[#allocation220_spill] sm:$0xff] }
 0x5c5   :  { %8906 = vmatmul.mubr.f32.gmra.mrb[58].mxu0 %v23746_v55 }
 0x5c6   :  { %8911 = vmatprep.mubr.f32.mxu0 %v23747_v16  ;;  %v19541_v33 = vpop.f32.mrb[148].mxu1 }
 0x5c7   :  { %23748 = vst [vmem:[#allocation145_spill] sm:$0xff] %v19541_v33  ;;  %11281 = vmatmul.mubr.f32.gmra.mrb[254].mxu1 %v23726_v30  ;;  %v19544_v56 = vpop.f32.mrb[149].mxu1  ;;  %v23780_v33 = vld [vmem:[#allocation208_spill] sm:$0xff] }
 0x5c8   :  { %23749 = vst [vmem:[#allocation137_spill] sm:$0xff] %v19544_v56 }
 0x5c9   :  { %8913 = vmatmul.mubr.f32.gmra.mrb[60].mxu0 %v23750_v63 }
 0x5ca   :  { %8918 = vmatprep.mubr.f32.mxu0 %v23751_v7  ;;  %v19548_v28 = vpop.f32.mrb[150].mxu1 }
 0x5cb   :  { %23752 = vst [vmem:[#allocation340_spill] sm:$0xff] %v19548_v28  ;;  %v19550_v32 = vpop.f32.mrb[151].mxu1 }
 0x5cc   :  { %23753 = vst [vmem:[#allocation242_spill] sm:$0xff] %v19550_v32 }
 0x5cd   :  { %8920 = vmatmul.mubr.f32.gmra.mrb[62].mxu0 %v23754_v31 }
 0x5ce   :  { %v19553_v11 = vpop.f32.mrb[152].mxu1 }
 0x5cf   :  { %23755 = vst [vmem:[#allocation151_spill] sm:$0xff] %v19553_v11  ;;  %v19555_v57 = vpop.f32.mrb[153].mxu1 }
 0x5d0   :  { %23756 = vst [vmem:[#allocation342_spill] sm:$0xff] %v19555_v57 }
 0x5d2   :  { %v19557_v35 = vpop.f32.mrb[154].mxu1 }
 0x5d3   :  { %23757 = vst [vmem:[#allocation344_spill] sm:$0xff] %v19557_v35  ;;  %v19559_v45 = vpop.f32.mrb[155].mxu1 }
 0x5d4   :  { %23758 = vst [vmem:[#allocation248_spill] sm:$0xff] %v19559_v45 }
 0x5d6   :  { %v19561_v30 = vpop.f32.mrb[156].mxu1 }
 0x5d7   :  { %23759 = vst [vmem:[#allocation160_spill] sm:$0xff] %v19561_v30  ;;  %v19563_v23 = vpop.f32.mrb[157].mxu1 }
 0x5d8   :  { %23760 = vst [vmem:[#allocation346_spill] sm:$0xff] %v19563_v23 }
 0x5da   :  { %v19565_v62 = vpop.f32.mrb[158].mxu1 }
 0x5db   :  { %23761 = vst [vmem:[#allocation348_spill] sm:$0xff] %v19565_v62  ;;  %v19567_v36 = vpop.f32.mrb[159].mxu1 }
 0x5dc   :  { %23762 = vst [vmem:[#allocation14_spill] sm:$0xff] %v19567_v36 }
 0x5de   :  { %v11133_v59 = vpop.f32.mrb[160].mxu1 }
 0x5df   :  { %v9943_v38 = vpop.f32.mrb[161].mxu1 }
 0x5e2   :  { %v19569_v19 = vpop.f32.mrb[162].mxu1 }
 0x5e3   :  { %v19571_v47 = vpop.f32.mrb[163].mxu1 }
 0x5e6   :  { %v19573_v60 = vpop.f32.mrb[164].mxu1 }
 0x5e7   :  { %v19575_v2 = vpop.f32.mrb[165].mxu1 }
 0x5ea   :  { %v19577_v25 = vpop.f32.mrb[166].mxu1 }
 0x5eb   :  { %v19579_v5 = vpop.f32.mrb[167].mxu1 }
 0x5ee   :  { %v19581_v22 = vpop.f32.mrb[168].mxu1 }
 0x5ef   :  { %v19583_v44 = vpop.f32.mrb[169].mxu1 }
 0x5f2   :  { %v19585_v9 = vpop.f32.mrb[170].mxu1 }
 0x5f3   :  { %v19587_v58 = vpop.f32.mrb[171].mxu1 }
 0x5f6   :  { %v19589_v39 = vpop.f32.mrb[172].mxu1 }
 0x5f7   :  { %v19591_v55 = vpop.f32.mrb[173].mxu1 }
 0x5fa   :  { %v19593_v16 = vpop.f32.mrb[174].mxu1 }
 0x5fb   :  { %v19595_v63 = vpop.f32.mrb[175].mxu1 }
 0x5fe   :  { %v19597_v7 = vpop.f32.mrb[176].mxu1 }
 0x5ff   :  { %v19599_v31 = vpop.f32.mrb[177].mxu1 }
 0x602   :  { %v19601_v62 = vpop.f32.mrb[178].mxu1 }
 0x603   :  { %23763 = vst [vmem:[#allocation16_spill] sm:$0xff] %v19601_v62  ;;  %v19603_v21 = vpop.f32.mrb[179].mxu1 }
 0x604   :  { %23764 = vst [vmem:[#allocation350_spill] sm:$0xff] %v19603_v21 }
 0x606   :  { %v19605_v36 = vpop.f32.mrb[180].mxu1 }
 0x607   :  { %23765 = vst [vmem:[#allocation352_spill] sm:$0xff] %v19605_v36  ;;  %v19607_v8 = vpop.f32.mrb[181].mxu1 }
 0x608   :  { %23766 = vst [vmem:[#allocation22_spill] sm:$0xff] %v19607_v8 }
 0x60a   :  { %v19609_v30 = vpop.f32.mrb[182].mxu1 }
 0x60b   :  { %23767 = vst [vmem:[#allocation23_spill] sm:$0xff] %v19609_v30  ;;  %v19611_v0 = vpop.f32.mrb[183].mxu1 }
 0x60c   :  { %23768 = vst [vmem:[#allocation354_spill] sm:$0xff] %v19611_v0 }
 0x60e   :  { %v19613_v23 = vpop.f32.mrb[184].mxu1 }
 0x60f   :  { %23769 = vst [vmem:[#allocation356_spill] sm:$0xff] %v19613_v23  ;;  %v19615_v43 = vpop.f32.mrb[185].mxu1  ;;  %v23777_v23 = vld [vmem:[#allocation73_spill] sm:$0xff] }
 0x610   :  { %23770 = vst [vmem:[#allocation26_spill] sm:$0xff] %v19615_v43 }
 0x612   :  { %v19617_v35 = vpop.f32.mrb[186].mxu1 }
 0x613   :  { %23771 = vst [vmem:[#allocation35_spill] sm:$0xff] %v19617_v35  ;;  %v19619_v48 = vpop.f32.mrb[187].mxu1  ;;  %v23778_v35 = vld [vmem:[#allocation135_spill] sm:$0xff] }
 0x614   :  { %23772 = vst [vmem:[#allocation358_spill] sm:$0xff] %v19619_v48 }
 0x616   :  { %v19621_v45 = vpop.f32.mrb[188].mxu1 }
 0x617   :  { %23773 = vst [vmem:[#allocation360_spill] sm:$0xff] %v19621_v45  ;;  %v19623_v29 = vpop.f32.mrb[189].mxu1 }
 0x618   :  { %23774 = vst [vmem:[#allocation39_spill] sm:$0xff] %v19623_v29 }
 0x61a   :  { %v19625_v11 = vpop.f32.mrb[190].mxu1 }
 0x61b   :  { %23775 = vst [vmem:[#allocation52_spill] sm:$0xff] %v19625_v11  ;;  %v19627_v18 = vpop.f32.mrb[191].mxu1 }
 0x61c   :  { %23776 = vst [vmem:[#allocation362_spill] sm:$0xff] %v19627_v18 }
 0x61e   :  { %v11185_v57 = vpop.f32.mrb[192].mxu1 }
 0x61f   :  { %v10268_v30 = vpop.f32.mrb[193].mxu1 }
 0x622   :  { %v11188_v3 = vpop.f32.mrb[194].mxu1 }
 0x623   :  { %v10280_v28 = vpop.f32.mrb[195].mxu1 }
 0x624   :  { %v8704_v0 = vpop.f32.mrb[0].mxu0 }
 0x625   :  { %v12203_v24 = vadd.f32 %v8704_v0, %v23777_v23  ;;  %v8706_v43 = vpop.f32.mrb[1].mxu0 }
 0x626   :  { %v19630_v32 = vpop.f32.mrb[196].mxu1  ;;  %v23782_v43 = vld [vmem:[#allocation304_spill] sm:$0xff] }
 0x627   :  { %v8999_v48 = vadd.f32 %v12203_v24, %v23778_v35  ;;  %v10292_v36 = vpop.f32.mrb[197].mxu1 }
 0x628   :  { %v8711_v45 = vpop.f32.mrb[2].mxu0 }
 0x629   :  { %v9390_v29 = vadd.f32 %v23779_v40, %v8999_v48  ;;  %v12204_v11 = vadd.f32 %v8711_v45, %v23780_v33  ;;  %v8713_v8 = vpop.f32.mrb[3].mxu0  ;;  %v23784_v40 = vld [vmem:[#allocation153_spill] sm:$0xff] }
 0x62a   :  { %v19635_v18 = vpop.f32.mrb[198].mxu1 }
 0x62b   :  { %v9009_v56 = vadd.f32 %v12204_v11, %v23781_v54  ;;  %v9652_v62 = vadd.f32 %v19464_v51, %v9390_v29  ;;  %v19639_v61 = vpop.f32.mrb[199].mxu1  ;;  %v23785_v51 = vld [vmem:[#allocation310_spill] sm:$0xff] }
 0x62c   :  { %v8718_v0 = vpop.f32.mrb[4].mxu0 }
 0x62d   :  { %v9396_v23 = vadd.f32 %v23782_v43, %v9009_v56  ;;  %v12205_v24 = vadd.f32 %v8718_v0, %v23783_v27  ;;  %v8720_v35 = vpop.f32.mrb[5].mxu0  ;;  %v9944_v21 = vadd.f32 %v9943_v38, %v9652_v62  ;;  %v23787_v38 = vld [vmem:[#allocation247_spill] sm:$0xff] }
 0x62e   :  { %v19643_v20 = vpop.f32.mrb[200].mxu1  ;;  %v23789_v35 = vld [vmem:[#allocation225_spill] sm:$0xff] }
 0x62f   :  { %v9019_v48 = vadd.f32 %v12205_v24, %v23784_v40  ;;  %v9659_v8 = vadd.f32 %v19461_v15, %v9396_v23  ;;  %v19647_v33 = vadd.f32 %v10268_v30, %v9944_v21  ;;  %v19649_v54 = vpop.f32.mrb[201].mxu1  ;;  %v23788_v30 = vld [vmem:[#allocation307_spill] sm:$0xff] }
 0x630   :  { %v8725_v29 = vpop.f32.mrb[6].mxu0 }
 0x631   :  { %v9402_v11 = vadd.f32 %v23785_v51, %v9019_v48  ;;  %v9952_v45 = vadd.f32 %v11133_v59, %v9659_v8  ;;  %v12206_v56 = vadd.f32 %v8725_v29, %v23786_v49  ;;  %v8727_v43 = vpop.f32.mrb[7].mxu0 }
 0x632   :  { %v19653_v27 = vpop.f32.mrb[202].mxu1 }
 0x633   :  { %v19655_v62 = vadd.f32 %v11185_v57, %v9952_v45  ;;  %v9029_v0 = vadd.f32 %v12206_v56, %v23787_v38  ;;  %v9666_v24 = vadd.f32 %v19472_v4, %v9402_v11  ;;  %v19659_v15 = vpop.f32.mrb[203].mxu1  ;;  %v23790_v57 = vld [vmem:[#allocation254_spill] sm:$0xff]  ;;  %v23792_v38 = vld [vmem:[#allocation232_spill] sm:$0xff] }
 0x634   :  { %v8732_v21 = vpop.f32.mrb[8].mxu0  ;;  %v23791_v56 = vld [vmem:[#allocation62_spill] sm:$0xff] }
 0x635   :  { %v9408_v23 = vadd.f32 %v23788_v30, %v9029_v0  ;;  %v12207_v40 = vadd.f32 %v8732_v21, %v23789_v35  ;;  %v9960_v59 = vadd.f32 %v19571_v47, %v9666_v24  ;;  %v8734_v48 = vpop.f32.mrb[9].mxu0  ;;  %v23793_v30 = vld [vmem:[#allocation251_spill] sm:$0xff] }
 0x636   :  { %v19664_v49 = vpop.f32.mrb[204].mxu1  ;;  %v23795_v48 = vld [vmem:[#allocation234_spill] sm:$0xff] }
 0x637   :  { %v9673_v8 = vadd.f32 %v19469_v10, %v9408_v23  ;;  %v9039_v29 = vadd.f32 %v12207_v40, %v23790_v57  ;;  %v19668_v51 = vadd.f32 %v10280_v28, %v9960_v59  ;;  %v19670_v45 = vpop.f32.mrb[205].mxu1  ;;  %v23794_v40 = vld [vmem:[#allocation112_spill] sm:$0xff] }
 0x638   :  { %v8739_v4 = vpop.f32.mrb[10].mxu0 }
 0x639   :  { %v9968_v11 = vadd.f32 %v19569_v19, %v9673_v8  ;;  %v9414_v43 = vadd.f32 %v23791_v56, %v9039_v29  ;;  %v12208_v0 = vadd.f32 %v8739_v4, %v23792_v38  ;;  %v8741_v21 = vpop.f32.mrb[11].mxu0  ;;  %v23797_v38 = vld [vmem:[#allocation118_spill] sm:$0xff] }
 0x63a   :  { %v19675_v47 = vpop.f32.mrb[206].mxu1  ;;  %v23798_v21 = vld [vmem:[#allocation238_spill] sm:$0xff] }
 0x63b   :  { %v19677_v24 = vadd.f32 %v11188_v3, %v9968_v11  ;;  %v9049_v10 = vadd.f32 %v12208_v0, %v23793_v30  ;;  %v9680_v23 = vadd.f32 %v19480_v53, %v9414_v43  ;;  %v19681_v28 = vpop.f32.mrb[207].mxu1  ;;  %v23796_v3 = vld [vmem:[#allocation259_spill] sm:$0xff] }
 0x63c   :  { %v8746_v35 = vpop.f32.mrb[12].mxu0 }
 0x63d   :  { %v9420_v59 = vadd.f32 %v23794_v40, %v9049_v10  ;;  %v9976_v19 = vadd.f32 %v19575_v2, %v9680_v23  ;;  %v12209_v8 = vadd.f32 %v8746_v35, %v23795_v48  ;;  %v8748_v57 = vpop.f32.mrb[13].mxu0 }
 0x63e   :  { %v19686_v29 = vpop.f32.mrb[208].mxu1 }
 0x63f   :  { %v19688_v4 = vadd.f32 %v10292_v36, %v9976_v19  ;;  %v9059_v11 = vadd.f32 %v12209_v8, %v23796_v3  ;;  %v19691_v56 = vpop.f32.mrb[209].mxu1  ;;  %v9687_v53 = vadd.f32 %v19477_v13, %v9420_v59  ;;  %v23799_v36 = vld [vmem:[#allocation257_spill] sm:$0xff]  ;;  %v23800_v8 = vld [vmem:[#allocation315_spill] sm:$0xff]  ;;  %v23801_v3 = vld [vmem:[#allocation24_spill] sm:$0xff] }
 0x640   :  { %v8753_v43 = vpop.f32.mrb[14].mxu0 }
 0x641   :  { %v9426_v0 = vadd.f32 %v23797_v38, %v9059_v11  ;;  %v12210_v30 = vadd.f32 %v8753_v43, %v23798_v21  ;;  %v8755_v10 = vpop.f32.mrb[15].mxu0  ;;  %v9984_v2 = vadd.f32 %v19573_v60, %v9687_v53 }
 0x642   :  { %v19697_v23 = vpop.f32.mrb[210].mxu1 }
 0x643   :  { %v9694_v35 = vadd.f32 %v19488_v14, %v9426_v0  ;;  %v9069_v40 = vadd.f32 %v12210_v30, %v23799_v36  ;;  %v19701_v19 = vpop.f32.mrb[211].mxu1  ;;  %v19704_v48 = vadd.f32 %v19630_v32, %v9984_v2  ;;  %v23802_v14 = vld [vmem:[#allocation43_spill] sm:$0xff]  ;;  %v23803_v30 = vld [vmem:[#allocation69_spill] sm:$0xff] }
 0x644   :  { %v8760_v13 = vpop.f32.mrb[16].mxu0 }
 0x645   :  { %v9992_v59 = vadd.f32 %v19579_v5, %v9694_v35  ;;  %v9432_v57 = vadd.f32 %v23800_v8, %v9069_v40  ;;  %v12211_v11 = vadd.f32 %v8760_v13, %v23801_v3  ;;  %v8762_v43 = vpop.f32.mrb[17].mxu0  ;;  %v23804_v5 = vld [vmem:[#allocation239_spill] sm:$0xff]  ;;  %v23805_v13 = vld [vmem:[#allocation262_spill] sm:$0xff] }
 0x646   :  { %v19709_v60 = vpop.f32.mrb[212].mxu1  ;;  %v23807_v43 = vld [vmem:[#allocation243_spill] sm:$0xff] }
 0x647   :  { %v19712_v53 = vadd.f32 %v19639_v61, %v9992_v59  ;;  %v9079_v38 = vadd.f32 %v12211_v11, %v23802_v14  ;;  %v19715_v0 = vpop.f32.mrb[213].mxu1  ;;  %v9701_v32 = vadd.f32 %v19485_v41, %v9432_v57  ;;  %v23806_v57 = vld [vmem:[#allocation318_spill] sm:$0xff] }
 0x648   :  { %v8767_v21 = vpop.f32.mrb[18].mxu0 }
 0x649   :  { %v9438_v10 = vadd.f32 %v23803_v30, %v9079_v38  ;;  %v12212_v2 = vadd.f32 %v8767_v21, %v23804_v5  ;;  %v8769_v35 = vpop.f32.mrb[19].mxu0  ;;  %v10000_v36 = vadd.f32 %v19577_v25, %v9701_v32  ;;  %v23808_v32 = vld [vmem:[#allocation268_spill] sm:$0xff] }
 0x64a   :  { %v19721_v40 = vpop.f32.mrb[214].mxu1 }
 0x64b   :  { %v9089_v8 = vadd.f32 %v12212_v2, %v23805_v13  ;;  %v19724_v61 = vpop.f32.mrb[215].mxu1  ;;  %v19727_v59 = vadd.f32 %v19635_v18, %v10000_v36  ;;  %v9708_v3 = vadd.f32 %v19496_v46, %v9438_v10  ;;  %v23809_v10 = vld [vmem:[#allocation79_spill] sm:$0xff]  ;;  %v23810_v36 = vld [vmem:[#allocation246_spill] sm:$0xff] }
 0x64c   :  { %v8774_v41 = vpop.f32.mrb[20].mxu0 }
 0x64d   :  { %v9444_v11 = vadd.f32 %v23806_v57, %v9089_v8  ;;  %v12213_v14 = vadd.f32 %v8774_v41, %v23807_v43  ;;  %v8776_v38 = vpop.f32.mrb[21].mxu0  ;;  %v10008_v21 = vadd.f32 %v19583_v44, %v9708_v3  ;;  %v23811_v3 = vld [vmem:[#allocation265_spill] sm:$0xff] }
 0x64e   :  { %v19733_v25 = vpop.f32.mrb[216].mxu1 }
 0x64f   :  { %v9099_v30 = vadd.f32 %v12213_v14, %v23808_v32  ;;  %v19736_v5 = vpop.f32.mrb[217].mxu1  ;;  %v9715_v2 = vadd.f32 %v19493_v12, %v9444_v11  ;;  %v19740_v18 = vadd.f32 %v19649_v54, %v10008_v21  ;;  %v23812_v11 = vld [vmem:[#allocation128_spill] sm:$0xff] }
 0x650   :  { %v8781_v46 = vpop.f32.mrb[22].mxu0  ;;  %v23813_v21 = vld [vmem:[#allocation12_spill] sm:$0xff] }
 0x651   :  { %v9450_v35 = vadd.f32 %v23809_v10, %v9099_v30  ;;  %v12214_v13 = vadd.f32 %v8781_v46, %v23810_v36  ;;  %v8783_v8 = vpop.f32.mrb[23].mxu0  ;;  %v10016_v41 = vadd.f32 %v19581_v22, %v9715_v2  ;;  %v23814_v2 = vld [vmem:[#allocation32_spill] sm:$0xff] }
 0x652   :  { %v19745_v44 = vpop.f32.mrb[218].mxu1 }
 0x653   :  { %v9109_v57 = vadd.f32 %v12214_v13, %v23811_v3  ;;  %v19748_v43 = vpop.f32.mrb[219].mxu1  ;;  %v19751_v14 = vadd.f32 %v19643_v20, %v10016_v41  ;;  %v9722_v12 = vadd.f32 %v19504_v42, %v9450_v35  ;;  %v23815_v35 = vld [vmem:[#allocation138_spill] sm:$0xff]  ;;  %v23816_v41 = vld [vmem:[#allocation249_spill] sm:$0xff] }
 0x654   :  { %v8788_v54 = vpop.f32.mrb[24].mxu0 }
 0x655   :  { %v9456_v38 = vadd.f32 %v23812_v11, %v9109_v57  ;;  %v12215_v32 = vadd.f32 %v8788_v54, %v23813_v21  ;;  %v8790_v30 = vpop.f32.mrb[25].mxu0  ;;  %v10024_v46 = vadd.f32 %v19587_v58, %v9722_v12  ;;  %v23817_v12 = vld [vmem:[#allocation46_spill] sm:$0xff] }
 0x656   :  { %v19757_v22 = vpop.f32.mrb[220].mxu1 }
 0x657   :  { %v9119_v10 = vadd.f32 %v12215_v32, %v23814_v2  ;;  %v19760_v36 = vpop.f32.mrb[221].mxu1  ;;  %v9729_v13 = vadd.f32 %v19501_v37, %v9456_v38  ;;  %v19764_v20 = vadd.f32 %v19659_v15, %v10024_v46  ;;  %v23818_v38 = vld [vmem:[#allocation319_spill] sm:$0xff]  ;;  %v23819_v46 = vld [vmem:[#allocation253_spill] sm:$0xff] }
 0x658   :  { %v8795_v42 = vpop.f32.mrb[26].mxu0 }
 0x659   :  { %v9462_v8 = vadd.f32 %v23815_v35, %v9119_v10  ;;  %v12216_v3 = vadd.f32 %v8795_v42, %v23816_v41  ;;  %v8797_v57 = vpop.f32.mrb[27].mxu0  ;;  %v10032_v54 = vadd.f32 %v19585_v9, %v9729_v13  ;;  %v23820_v13 = vld [vmem:[#allocation56_spill] sm:$0xff] }
 0x65a   :  { %v19769_v58 = vpop.f32.mrb[222].mxu1 }
 0x65b   :  { %v9129_v11 = vadd.f32 %v12216_v3, %v23817_v12  ;;  %v19772_v21 = vpop.f32.mrb[223].mxu1  ;;  %v19775_v32 = vadd.f32 %v19653_v27, %v10032_v54  ;;  %v9736_v37 = vadd.f32 %v19512_v50, %v9462_v8  ;;  %v23821_v54 = vld [vmem:[#allocation322_spill] sm:$0xff] }
 0x65c   :  { %v8802_v15 = vpop.f32.mrb[28].mxu0 }
 0x65d   :  { %v9468_v30 = vadd.f32 %v23818_v38, %v9129_v11  ;;  %v12217_v2 = vadd.f32 %v8802_v15, %v23819_v46  ;;  %v8804_v10 = vpop.f32.mrb[29].mxu0  ;;  %v10040_v42 = vadd.f32 %v19591_v55, %v9736_v37  ;;  %v23822_v11 = vld [vmem:[#allocation61_spill] sm:$0xff] }
 0x65e   :  { %v11237_v9 = vpop.f32.mrb[224].mxu1 }
 0x65f   :  { %v9139_v35 = vadd.f32 %v12217_v2, %v23820_v13  ;;  %v10534_v41 = vadd.f32 %v11237_v9, %v19655_v62  ;;  %v10527_v3 = vpop.f32.mrb[225].mxu1  ;;  %v9743_v57 = vadd.f32 %v19509_v26, %v9468_v30  ;;  %v19785_v27 = vadd.f32 %v19670_v45, %v10040_v42  ;;  %v23823_v62 = vld [vmem:[#allocation273_spill] sm:$0xff]  ;;  %v23824_v42 = vld [vmem:[#allocation87_spill] sm:$0xff]  ;;  %v23825_v13 = vld [vmem:[#allocation256_spill] sm:$0xff] }
 0x660   :  { %v10528_v50 = vadd.f32 %v10527_v3, %v19647_v33  ;;  %v8809_v8 = vpop.f32.mrb[30].mxu0 }
 0x661   :  { %v9474_v12 = vadd.f32 %v23821_v54, %v9139_v35  ;;  %10718 = vst [vmem:[#allocation7 + $0x8] sm:$0xff] %v10534_v41  ;;  %v12218_v15 = vadd.f32 %v8809_v8, %v23822_v11  ;;  %v8811_v55 = vpop.f32.mrb[31].mxu0  ;;  %v10048_v37 = vadd.f32 %v19589_v39, %v9743_v57 }
 0x662   :  { %10717 = vst [vmem:[#allocation7] sm:$0xff] %v10528_v50  ;;  %v11240_v38 = vpop.f32.mrb[226].mxu1 }
 0x663   :  { %v9149_v46 = vadd.f32 %v12218_v15, %v23823_v62  ;;  %v10546_v26 = vadd.f32 %v11240_v38, %v19677_v24  ;;  %v10539_v30 = vpop.f32.mrb[227].mxu1  ;;  %v19794_v45 = vadd.f32 %v19664_v49, %v10048_v37  ;;  %v9750_v33 = vadd.f32 %v19520_v17, %v9474_v12  ;;  %v23826_v24 = vld [vmem:[#allocation279_spill] sm:$0xff]  ;;  %v23827_v12 = vld [vmem:[#allocation93_spill] sm:$0xff]  ;;  %v23828_v15 = vld [vmem:[#allocation18_spill] sm:$0xff] }
 0x664   :  { %v10540_v2 = vadd.f32 %v10539_v30, %v19668_v51  ;;  %v8816_v10 = vpop.f32.mrb[32].mxu0 }
 0x665   :  { %v9480_v9 = vadd.f32 %v23824_v42, %v9149_v46  ;;  %10720 = vst [vmem:[#allocation7 + $0x18] sm:$0xff] %v10546_v26  ;;  %v12219_v39 = vadd.f32 %v8816_v10, %v23825_v13  ;;  %v8818_v35 = vpop.f32.mrb[33].mxu0  ;;  %v10056_v41 = vadd.f32 %v19595_v63, %v9750_v33  ;;  %v23830_v33 = vld [vmem:[#allocation140_spill] sm:$0xff] }
 0x666   :  { %10719 = vst [vmem:[#allocation7 + $0x10] sm:$0xff] %v10540_v2  ;;  %v11243_v3 = vpop.f32.mrb[228].mxu1  ;;  %v23831_v10 = vld [vmem:[#allocation260_spill] sm:$0xff] }
 0x667   :  { %v9159_v57 = vadd.f32 %v12219_v39, %v23826_v24  ;;  %v10558_v49 = vadd.f32 %v11243_v3, %v19704_v48  ;;  %v10551_v50 = vpop.f32.mrb[229].mxu1  ;;  %v9757_v17 = vadd.f32 %v19517_v52, %v9480_v9  ;;  %v19805_v51 = vadd.f32 %v19681_v28, %v10056_v41  ;;  %v23829_v48 = vld [vmem:[#allocation276_spill] sm:$0xff] }
 0x668   :  { %v10552_v8 = vadd.f32 %v10551_v50, %v19688_v4  ;;  %v8823_v54 = vpop.f32.mrb[34].mxu0  ;;  %v23832_v39 = vld [vmem:[#allocation40_spill] sm:$0xff] }
 0x669   :  { %v9486_v11 = vadd.f32 %v23827_v12, %v9159_v57  ;;  %10722 = vst [vmem:[#allocation7 + $0x28] sm:$0xff] %v10558_v49  ;;  %v12220_v63 = vadd.f32 %v8823_v54, %v23828_v15  ;;  %v8825_v55 = vpop.f32.mrb[35].mxu0  ;;  %v10064_v37 = vadd.f32 %v19593_v16, %v9757_v17  ;;  %v23833_v57 = vld [vmem:[#allocation264_spill] sm:$0xff]  ;;  %v23836_v15 = vld [vmem:[#allocation325_spill] sm:$0xff] }
 0x66a   :  { %10721 = vst [vmem:[#allocation7 + $0x20] sm:$0xff] %v10552_v8  ;;  %v11246_v38 = vpop.f32.mrb[230].mxu1  ;;  %v23834_v8 = vld [vmem:[#allocation65_spill] sm:$0xff]  ;;  %v23835_v12 = vld [vmem:[#allocation240_spill] sm:$0xff]  ;;  %v23837_v55 = vld [vmem:[#allocation270_spill] sm:$0xff] }
 0x66b   :  { %v9169_v62 = vadd.f32 %v12220_v63, %v23829_v48  ;;  %v10570_v52 = vadd.f32 %v11246_v38, %v19727_v59  ;;  %v10563_v46 = vpop.f32.mrb[231].mxu1  ;;  %v10359_v28 = vadd.f32 %v19675_v47, %v10064_v37  ;;  %v9764_v4 = vadd.f32 %v19528_v6, %v9486_v11  ;;  %v23838_v38 = vld [vmem:[#allocation350_spill] sm:$0xff] }
 0x66c   :  { %v10564_v26 = vadd.f32 %v10563_v46, %v19712_v53  ;;  %v8830_v30 = vpop.f32.mrb[36].mxu0 }
 0x66d   :  { %v9492_v2 = vadd.f32 %v23830_v33, %v9169_v62  ;;  %10724 = vst [vmem:[#allocation7 + $0x38] sm:$0xff] %v10570_v52  ;;  %v12221_v42 = vadd.f32 %v8830_v30, %v23831_v10  ;;  %v8832_v16 = vpop.f32.mrb[37].mxu0  ;;  %v10072_v9 = vadd.f32 %v19599_v31, %v9764_v4  ;;  %v23839_v52 = vld [vmem:[#allocation70_spill] sm:$0xff]  ;;  %v23840_v4 = vld [vmem:[#allocation337_spill] sm:$0xff] }
 0x66e   :  { %10723 = vst [vmem:[#allocation7 + $0x30] sm:$0xff] %v10564_v26  ;;  %v11249_v13 = vpop.f32.mrb[232].mxu1 }
 0x66f   :  { %v9179_v59 = vadd.f32 %v12221_v42, %v23832_v39  ;;  %v10582_v35 = vadd.f32 %v11249_v13, %v19751_v14  ;;  %v10575_v47 = vpop.f32.mrb[233].mxu1  ;;  %v9771_v6 = vadd.f32 %v19525_v34, %v9492_v2  ;;  %v10365_v53 = vadd.f32 %v19691_v56, %v10072_v9  ;;  %v23841_v2 = vld [vmem:[#allocation103_spill] sm:$0xff]  ;;  %v23843_v13 = vld [vmem:[#allocation16_spill] sm:$0xff] }
 0x670   :  { %v10576_v41 = vadd.f32 %v10575_v47, %v19740_v18  ;;  %v8837_v3 = vpop.f32.mrb[38].mxu0  ;;  %v23842_v42 = vld [vmem:[#allocation271_spill] sm:$0xff] }
 0x671   :  { %v9498_v24 = vadd.f32 %v19408_v1, %v9179_v59  ;;  %10726 = vst [vmem:[#allocation7 + $0x48] sm:$0xff] %v10582_v35  ;;  %v12222_v49 = vadd.f32 %v8837_v3, %v23833_v57  ;;  %v8839_v31 = vpop.f32.mrb[39].mxu0  ;;  %v10080_v50 = vadd.f32 %v19597_v7, %v9771_v6  ;;  %v23844_v35 = vld [vmem:[#allocation284_spill] sm:$0xff] }
 0x672   :  { %10725 = vst [vmem:[#allocation7 + $0x40] sm:$0xff] %v10576_v41  ;;  %v11252_v17 = vpop.f32.mrb[234].mxu1  ;;  %v23846_v57 = vld [vmem:[#allocation148_spill] sm:$0xff]  ;;  %v23847_v31 = vld [vmem:[#allocation275_spill] sm:$0xff] }
 0x673   :  { %v9189_v14 = vadd.f32 %v12222_v49, %v23834_v8  ;;  %v10594_v54 = vadd.f32 %v11252_v17, %v19775_v32  ;;  %v10587_v34 = vpop.f32.mrb[235].mxu1  ;;  %v10371_v56 = vadd.f32 %v19686_v29, %v10080_v50  ;;  %v9778_v18 = vadd.f32 %v23835_v12, %v9498_v24  ;;  %v23848_v8 = vld [vmem:[#allocation22_spill] sm:$0xff] }
 0x674   :  { %v10588_v11 = vadd.f32 %v10587_v34, %v19764_v20  ;;  %v8844_v1 = vpop.f32.mrb[40].mxu0  ;;  %v23849_v34 = vld [vmem:[#allocation290_spill] sm:$0xff] }
 0x675   :  { %v9504_v63 = vadd.f32 %v23836_v15, %v9189_v14  ;;  %10728 = vst [vmem:[#allocation7 + $0x58] sm:$0xff] %v10594_v54  ;;  %v12223_v37 = vadd.f32 %v8844_v1, %v23837_v55  ;;  %v8846_v7 = vpop.f32.mrb[41].mxu0  ;;  %v10088_v48 = vadd.f32 %v23838_v38, %v9778_v18 }
 0x676   :  { %10727 = vst [vmem:[#allocation7 + $0x50] sm:$0xff] %v10588_v11  ;;  %v11255_v62 = vpop.f32.mrb[236].mxu1 }
 0x677   :  { %v9199_v32 = vadd.f32 %v12223_v37, %v23839_v52  ;;  %v10606_v46 = vadd.f32 %v11255_v62, %v19794_v45  ;;  %v10599_v29 = vpop.f32.mrb[237].mxu1  ;;  %v9785_v26 = vadd.f32 %v23840_v4, %v9504_v63  ;;  %v10377_v20 = vadd.f32 %v19701_v19, %v10088_v48  ;;  %v23845_v19 = vld [vmem:[#allocation137_spill] sm:$0xff]  ;;  %v23851_v63 = vld [vmem:[#allocation159_spill] sm:$0xff]  ;;  %v23852_v37 = vld [vmem:[#allocation278_spill] sm:$0xff] }
 0x678   :  { %v10600_v30 = vadd.f32 %v10599_v29, %v19785_v27  ;;  %v8851_v33 = vpop.f32.mrb[42].mxu0  ;;  %v23853_v48 = vld [vmem:[#allocation352_spill] sm:$0xff] }
 0x679   :  { %v9510_v10 = vadd.f32 %v23841_v2, %v9199_v32  ;;  %10730 = vst [vmem:[#allocation7 + $0x68] sm:$0xff] %v10606_v46  ;;  %v12224_v16 = vadd.f32 %v8851_v33, %v23842_v42  ;;  %v8853_v9 = vpop.f32.mrb[43].mxu0  ;;  %v10096_v39 = vadd.f32 %v23843_v13, %v9785_v26  ;;  %v23854_v32 = vld [vmem:[#allocation287_spill] sm:$0xff]  ;;  %v23855_v26 = vld [vmem:[#allocation242_spill] sm:$0xff]  ;;  %v23856_v33 = vld [vmem:[#allocation328_spill] sm:$0xff] }
 0x67a   :  { %10729 = vst [vmem:[#allocation7 + $0x60] sm:$0xff] %v10600_v30  ;;  %v11258_v59 = vpop.f32.mrb[238].mxu1  ;;  %v23858_v9 = vld [vmem:[#allocation354_spill] sm:$0xff] }
 0x67b   :  { %v9209_v45 = vadd.f32 %v12224_v16, %v23844_v35  ;;  %v10618_v47 = vadd.f32 %v11258_v59, %v10359_v28  ;;  %v10611_v6 = vpop.f32.mrb[239].mxu1  ;;  %v10383_v41 = vadd.f32 %v19697_v23, %v10096_v39  ;;  %v9792_v3 = vadd.f32 %v23845_v19, %v9510_v10  ;;  %v23850_v23 = vld [vmem:[#allocation145_spill] sm:$0xff] }
 0x67c   :  { %v10612_v27 = vadd.f32 %v10611_v6, %v19805_v51  ;;  %v8858_v24 = vpop.f32.mrb[44].mxu0  ;;  %v23857_v10 = vld [vmem:[#allocation281_spill] sm:$0xff]  ;;  %v23860_v6 = vld [vmem:[#allocation340_spill] sm:$0xff] }
 0x67d   :  { %v9516_v49 = vadd.f32 %v23846_v57, %v9209_v45  ;;  %10732 = vst [vmem:[#allocation7 + $0x78] sm:$0xff] %v10618_v47  ;;  %v12225_v50 = vadd.f32 %v8858_v24, %v23847_v31  ;;  %v8860_v17 = vpop.f32.mrb[45].mxu0  ;;  %v10104_v14 = vadd.f32 %v23848_v8, %v9792_v3  ;;  %v23859_v59 = vld [vmem:[#allocation45_spill] sm:$0xff]  ;;  %v23861_v3 = vld [vmem:[#allocation331_spill] sm:$0xff]  ;;  %v23864_v8 = vld [vmem:[#allocation80_spill] sm:$0xff] }
 0x67e   :  { %10731 = vst [vmem:[#allocation7 + $0x70] sm:$0xff] %v10612_v27  ;;  %v11261_v54 = vpop.f32.mrb[240].mxu1  ;;  %v23862_v24 = vld [vmem:[#allocation119_spill] sm:$0xff] }
 0x67f   :  { %v9219_v28 = vadd.f32 %v12225_v50, %v23849_v34  ;;  %v10630_v12 = vadd.f32 %v11261_v54, %v10371_v56  ;;  %v10623_v18 = vpop.f32.mrb[241].mxu1  ;;  %v9799_v11 = vadd.f32 %v23850_v23, %v9516_v49  ;;  %v10389_v1 = vadd.f32 %v19715_v0, %v10104_v14  ;;  %v23863_v49 = vld [vmem:[#allocation23_spill] sm:$0xff] }
 0x680   :  { %v10624_v51 = vadd.f32 %v10623_v18, %v10365_v53  ;;  %v8865_v15 = vpop.f32.mrb[46].mxu0  ;;  %v23866_v23 = vld [vmem:[#allocation111_spill] sm:$0xff] }
 0x681   :  { %v9522_v55 = vadd.f32 %v23851_v63, %v9219_v28  ;;  %10734 = vst [vmem:[#allocation7 + $0x88] sm:$0xff] %v10630_v12  ;;  %v12226_v7 = vadd.f32 %v8865_v15, %v23852_v37  ;;  %v8867_v38 = vpop.f32.mrb[47].mxu0  ;;  %v10112_v62 = vadd.f32 %v23853_v48, %v9799_v11  ;;  %v23865_v28 = vld [vmem:[#allocation342_spill] sm:$0xff] }
 0x682   :  { %10733 = vst [vmem:[#allocation7 + $0x80] sm:$0xff] %v10624_v51  ;;  %v11264_v52 = vpop.f32.mrb[242].mxu1  ;;  %v23867_v51 = vld [vmem:[#allocation282_spill] sm:$0xff]  ;;  %v23869_v38 = vld [vmem:[#allocation88_spill] sm:$0xff] }
 0x683   :  { %v9229_v46 = vadd.f32 %v12226_v7, %v23854_v32  ;;  %v10642_v56 = vadd.f32 %v11264_v52, %v10383_v41  ;;  %v10635_v29 = vpop.f32.mrb[243].mxu1  ;;  %v10395_v4 = vadd.f32 %v19709_v60, %v10112_v62  ;;  %v9806_v0 = vadd.f32 %v23855_v26, %v9522_v55  ;;  %v23868_v55 = vld [vmem:[#allocation26_spill] sm:$0xff]  ;;  %v23870_v62 = vld [vmem:[#allocation151_spill] sm:$0xff] }
 0x684   :  { %v10636_v53 = vadd.f32 %v10635_v29, %v10377_v20  ;;  %v8872_v30 = vpop.f32.mrb[48].mxu0 }
 0x685   :  { %v9528_v2 = vadd.f32 %v23856_v33, %v9229_v46  ;;  %10736 = vst [vmem:[#allocation7 + $0x98] sm:$0xff] %v10642_v56  ;;  %v12227_v42 = vadd.f32 %v8872_v30, %v23857_v10  ;;  %v8874_v16 = vpop.f32.mrb[49].mxu0  ;;  %v10120_v13 = vadd.f32 %v23858_v9, %v9806_v0  ;;  %v23871_v56 = vld [vmem:[#allocation117_spill] sm:$0xff]  ;;  %v23873_v0 = vld [vmem:[#allocation286_spill] sm:$0xff]  ;;  %v23875_v9 = vld [vmem:[#allocation248_spill] sm:$0xff] }
 0x686   :  { %10735 = vst [vmem:[#allocation7 + $0x90] sm:$0xff] %v10636_v53  ;;  %v11267_v39 = vpop.f32.mrb[244].mxu1 }
 0x687   :  { %v9239_v35 = vadd.f32 %v12227_v42, %v23859_v59  ;;  %v10654_v45 = vadd.f32 %v11267_v39, %v10395_v4  ;;  %v10647_v47 = vpop.f32.mrb[245].mxu1  ;;  %v9813_v60 = vadd.f32 %v23860_v6, %v9528_v2  ;;  %v10401_v41 = vadd.f32 %v19724_v61, %v10120_v13  ;;  %v23872_v4 = vld [vmem:[#allocation356_spill] sm:$0xff]  ;;  %v23874_v42 = vld [vmem:[#allocation295_spill] sm:$0xff] }
 0x688   :  { %v10648_v20 = vadd.f32 %v10647_v47, %v10389_v1  ;;  %v8879_v19 = vpop.f32.mrb[50].mxu0  ;;  %v23877_v47 = vld [vmem:[#allocation126_spill] sm:$0xff] }
 0x689   :  { %v9534_v27 = vadd.f32 %v23861_v3, %v9239_v35  ;;  %10738 = vst [vmem:[#allocation7 + $0xa8] sm:$0xff] %v10654_v45  ;;  %v12228_v57 = vadd.f32 %v8879_v19, %v23862_v24  ;;  %v10128_v31 = vadd.f32 %v23863_v49, %v9813_v60  ;;  %v8881_v50 = vpop.f32.mrb[51].mxu0  ;;  %v23876_v35 = vld [vmem:[#allocation218_spill] sm:$0xff]  ;;  %v23879_v3 = vld [vmem:[#allocation301_spill] sm:$0xff] }
 0x68a   :  { %10737 = vst [vmem:[#allocation7 + $0xa0] sm:$0xff] %v10648_v20  ;;  %v11270_v17 = vpop.f32.mrb[246].mxu1  ;;  %v23881_v50 = vld [vmem:[#allocation221_spill] sm:$0xff] }
 0x68b   :  { %v9249_v14 = vadd.f32 %v12228_v57, %v23864_v8  ;;  %v10407_v54 = vadd.f32 %v19721_v40, %v10128_v31  ;;  %v10659_v34 = vpop.f32.mrb[247].mxu1  ;;  %v9820_v12 = vadd.f32 %v23865_v28, %v9534_v27  ;;  %v23882_v8 = vld [vmem:[#allocation35_spill] sm:$0xff] }
 0x68c   :  { %v10660_v61 = vadd.f32 %v10659_v34, %v10401_v41  ;;  %v8886_v18 = vpop.f32.mrb[52].mxu0  ;;  %v23878_v41 = vld [vmem:[#allocation358_spill] sm:$0xff] }
 0x68d   :  { %v9540_v11 = vadd.f32 %v23866_v23, %v9249_v14  ;;  %v10666_v1 = vadd.f32 %v11270_v17, %v10407_v54  ;;  %v12229_v15 = vadd.f32 %v8886_v18, %v23867_v51  ;;  %v8888_v63 = vpop.f32.mrb[53].mxu0  ;;  %v10136_v37 = vadd.f32 %v23868_v55, %v9820_v12  ;;  %v23883_v54 = vld [vmem:[#allocation127_spill] sm:$0xff]  ;;  %v23884_v23 = vld [vmem:[#allocation298_spill] sm:$0xff] }
 0x68e   :  { %10739 = vst [vmem:[#allocation7 + $0xb0] sm:$0xff] %v10660_v61  ;;  %v11273_v7 = vpop.f32.mrb[248].mxu1  ;;  %v23886_v55 = vld [vmem:[#allocation334_spill] sm:$0xff] }
 0x68f   :  { %10740 = vst [vmem:[#allocation7 + $0xb8] sm:$0xff] %v10666_v1  ;;  %v9259_v48 = vadd.f32 %v12229_v15, %v23869_v38  ;;  %v9827_v40 = vadd.f32 %v23870_v62, %v9540_v11  ;;  %v10413_v52 = vadd.f32 %v19736_v5, %v10136_v37  ;;  %v10671_v32 = vpop.f32.mrb[249].mxu1  ;;  %v23885_v1 = vld [vmem:[#allocation346_spill] sm:$0xff]  ;;  %v23888_v62 = vld [vmem:[#allocation39_spill] sm:$0xff] }
 0x690   :  { %v8893_v46 = vpop.f32.mrb[54].mxu0 }
 0x691   :  { %v9546_v29 = vadd.f32 %v23871_v56, %v9259_v48  ;;  %v10144_v26 = vadd.f32 %v23872_v4, %v9827_v40  ;;  %v12230_v53 = vadd.f32 %v8893_v46, %v23873_v0  ;;  %v10672_v30 = vadd.f32 %v10671_v32, %v10413_v52  ;;  %v8895_v33 = vpop.f32.mrb[55].mxu0  ;;  %v23889_v52 = vld [vmem:[#allocation50_spill] sm:$0xff]  ;;  %v23890_v46 = vld [vmem:[#allocation160_spill] sm:$0xff]  ;;  %v23891_v4 = vld [vmem:[#allocation125_spill] sm:$0xff] }
 0x692   :  { %v11276_v2 = vpop.f32.mrb[250].mxu1  ;;  %v23892_v0 = vld [vmem:[#allocation360_spill] sm:$0xff] }
 0x693   :  { %v10419_v10 = vadd.f32 %v19733_v25, %v10144_v26  ;;  %v9269_v16 = vadd.f32 %v12230_v53, %v23874_v42  ;;  %10741 = vst [vmem:[#allocation7 + $0xc0] sm:$0xff] %v10672_v30  ;;  %v9834_v13 = vadd.f32 %v23875_v9, %v9546_v29  ;;  %v10683_v39 = vpop.f32.mrb[251].mxu1  ;;  %v23880_v25 = vld [vmem:[#allocation344_spill] sm:$0xff] }
 0x694   :  { %v8900_v5 = vpop.f32.mrb[56].mxu0  ;;  %v23893_v30 = vld [vmem:[#allocation292_spill] sm:$0xff] }
 0x695   :  { %v10678_v59 = vadd.f32 %v11273_v7, %v10419_v10  ;;  %v9552_v45 = vadd.f32 %v23876_v35, %v9269_v16  ;;  %v12231_v6 = vadd.f32 %v8900_v5, %v23877_v47  ;;  %v8902_v60 = vpop.f32.mrb[57].mxu0  ;;  %v10152_v20 = vadd.f32 %v23878_v41, %v9834_v13  ;;  %v23887_v7 = vld [vmem:[#allocation289_spill] sm:$0xff]  ;;  %v23894_v16 = vld [vmem:[#allocation94_spill] sm:$0xff]  ;;  %v23898_v47 = vld [vmem:[#allocation348_spill] sm:$0xff] }
 0x696   :  { %v11279_v19 = vpop.f32.mrb[252].mxu1  ;;  %v23895_v13 = vld [vmem:[#allocation14_spill] sm:$0xff]  ;;  %v23899_v41 = vld [vmem:[#allocation52_spill] sm:$0xff] }
 0x697   :  { %10742 = vst [vmem:[#allocation7 + $0xc8] sm:$0xff] %v10678_v59  ;;  %v9279_v27 = vadd.f32 %v12231_v6, %v23879_v3  ;;  %v9841_v24 = vadd.f32 %v23880_v25, %v9552_v45  ;;  %v10425_v57 = vadd.f32 %v19748_v43, %v10152_v20  ;;  %v10695_v49 = vpop.f32.mrb[253].mxu1  ;;  %v23896_v59 = vld [vmem:[#allocation226_spill] sm:$0xff] }
 0x698   :  { %v8907_v31 = vpop.f32.mrb[58].mxu0 }
 0x699   :  { %v9558_v17 = vadd.f32 %v23881_v50, %v9279_v27  ;;  %v10160_v14 = vadd.f32 %v23882_v8, %v9841_v24  ;;  %v12232_v34 = vadd.f32 %v8907_v31, %v23883_v54  ;;  %v10684_v28 = vadd.f32 %v10683_v39, %v10425_v57  ;;  %v8909_v12 = vpop.f32.mrb[59].mxu0 }
 0x69a   :  { %v11282_v61 = vpop.f32.mrb[254].mxu1 }
 0x69b   :  { %v10431_v18 = vadd.f32 %v19745_v44, %v10160_v14  ;;  %v9289_v11 = vadd.f32 %v12232_v34, %v23884_v23  ;;  %10743 = vst [vmem:[#allocation7 + $0xd0] sm:$0xff] %v10684_v28  ;;  %v9848_v51 = vadd.f32 %v23885_v1, %v9558_v17  ;;  %v10707_v15 = vpop.f32.mrb[255].mxu1 }
 0x69c   :  { %v8914_v43 = vpop.f32.mrb[60].mxu0 }
 0x69d   :  { %v10690_v63 = vadd.f32 %v11276_v2, %v10431_v18  ;;  %v9564_v37 = vadd.f32 %v23886_v55, %v9289_v11  ;;  %v12233_v38 = vadd.f32 %v8914_v43, %v23887_v7  ;;  %v8916_v48 = vpop.f32.mrb[61].mxu0  ;;  %v10168_v40 = vadd.f32 %v23888_v62, %v9848_v51 }
 0x69f   :  { %10744 = vst [vmem:[#allocation7 + $0xd8] sm:$0xff] %v10690_v63  ;;  %v9299_v32 = vadd.f32 %v12233_v38, %v23889_v52  ;;  %v9855_v44 = vadd.f32 %v23890_v46, %v9564_v37  ;;  %v10437_v56 = vadd.f32 %v19760_v36, %v10168_v40  ;;  %v23897_v36 = vld [vmem:[#allocation362_spill] sm:$0xff] }
 0x6a0   :  { %v8921_v29 = vpop.f32.mrb[62].mxu0 }
 0x6a1   :  { %v9570_v26 = vadd.f32 %v23891_v4, %v9299_v32  ;;  %v10176_v53 = vadd.f32 %v23892_v0, %v9855_v44  ;;  %v12234_v33 = vadd.f32 %v8921_v29, %v23893_v30  ;;  %v10696_v2 = vadd.f32 %v10695_v49, %v10437_v56  ;;  %v8923_v10 = vpop.f32.mrb[63].mxu0 }
 0x6a3   :  { %v10443_v42 = vadd.f32 %v19757_v22, %v10176_v53  ;;  %v9309_v9 = vadd.f32 %v12234_v33, %v23894_v16  ;;  %10745 = vst [vmem:[#allocation7 + $0xe0] sm:$0xff] %v10696_v2  ;;  %v9862_v39 = vadd.f32 %v23895_v13, %v9570_v26 }
 0x6a5   :  { %v10702_v5 = vadd.f32 %v11279_v19, %v10443_v42  ;;  %v9576_v35 = vadd.f32 %v23896_v59, %v9309_v9  ;;  %v10184_v45 = vadd.f32 %v23897_v36, %v9862_v39 }
 0x6a7   :  { %10746 = vst [vmem:[#allocation7 + $0xe8] sm:$0xff] %v10702_v5  ;;  %v9869_v6 = vadd.f32 %v23898_v47, %v9576_v35  ;;  %v10449_v60 = vadd.f32 %v19772_v21, %v10184_v45 }
 0x6a9   :  { %v10192_v20 = vadd.f32 %v23899_v41, %v9869_v6  ;;  %v10708_v3 = vadd.f32 %v10707_v15, %v10449_v60 }
 0x6ab   :  { %v10455_v22 = vadd.f32 %v19769_v58, %v10192_v20  ;;  %10747 = vst [vmem:[#allocation7 + $0xf0] sm:$0xff] %v10708_v3 }
 0x6ad   :  { %v10714_v27 = vadd.f32 %v11282_v61, %v10455_v22 }
 0x6af   :  { %10748 = vst [vmem:[#allocation7 + $0xf8] sm:$0xff] %v10714_v27 }
 0x6b0   :  { %10753 = vsyncadd [#allocation4], 4032  ;;  %s13699_s1 = smov [#allocation7]  }
 0x6b1   :  { %s10754_s9 = sshll.u32 %s13699_s1, 4  ;;  %s10755_s9 = int_to_ptr.vmem [resolvable:$true] %s10754_s9 }
 0x6b2   :  { %s13664_s10 = scalar_lea.vmem %s10755_s9, 64  ;;  %s13668_s11 = scalar_lea.vmem %s10755_s9, 4096 }
 0x6b3   :  { %p13665_p2 = scmp.ne.s32.totalorder %s10755_s9, %s13664_s10  ;;  %p13669_p3 = scmp.lt.s32.totalorder %s10755_s9, %s10755_s9 }
 0x6b4   :  { %p13670_p4 = scmp.lt.s32.totalorder %s13668_s11, %s13664_s10 }
 0x6b6   :  { %p13671_p5 = por %p13670_p4, %p13669_p3 }
 0x6b8   :  { %p13672_p6 = pnand %p13671_p5, %p13665_p2 }
 0x6ba   :  { %13675 = shalt.err (!%p13672_p6)
}
 0x6bb   :  { %s13676_s14 = scalar_lea.hbm %s19927_s2, 64 }
 0x6bc   :  { %p13677_p7 = scmp.ne.s32.totalorder %s19927_s2, %s13676_s14  ;;  %p13680_p8 = scmp.lt.u32.totalorder %s13676_s14, %s19927_s2 }
 0x6be   :  { %p13682_p9 = pnand %p13680_p8, %p13677_p7 }
 0x6c0   :  { %13685 = shalt.err (!%p13682_p9)
}
 0x6c1   :  { %s13700_s19 = smov 64   ;;  %s13701_s20 = smov 4  }
 0x6c2   :  { %10760 = dma.vmem_to_hbm [thread:$0]  %s10755_s9, 64, %s19927_s2, [#allocation4], %s13700_s19, %s13700_s19, %s13701_s20  }
 0x6c3   :  { %13690 = dma.done.wait [#allocation4], 4096  }
 0x6c4   :  { %13691 = vsyncadd [#allocation4], 4294963200 }
 0x6c5   :  { %10764 = vsyncpa [#allocation3], 1 }
 0x6c6   :  { %10765 = vsyncpa [#allocation6], 1 }
 0x6c7   :  { %10766 = vsyncpa [#allocation4], 1 }

</bundles_post_ra>
